<compile_context>
chip_gen: v7x
topology: tpu7x:2x2x1
jax: 0.10.0
libtpu: 0.0.40
codegen_flags: <defaults>
</compile_context>

<pallas_src>
import functools

import jax
import jax.numpy as jnp
from jax.experimental import pallas as pl
from jax.experimental.pallas import tpu as pltpu

EPS = 1e-5


# ---------------------------------------------------------------------------
# Kernels
# ---------------------------------------------------------------------------
def _matmul_stats_kernel(x_ref, w_ref, y_ref, sum_ref, ssq_ref):
    """y = x @ w on the MXU (bf16 in, f32 acc), bf16 store + streaming BN stats.

    Grid is (Cout tiles ["parallel"], M tiles ["arbitrary"]); the (1, tn) stats
    accumulators are resident across the M axis for a fixed Cout tile.
    """
    @pl.when(pl.program_id(1) == 0)
    def _init():
        sum_ref[...] = jnp.zeros_like(sum_ref)
        ssq_ref[...] = jnp.zeros_like(ssq_ref)

    y = jnp.dot(x_ref[...], w_ref[...], preferred_element_type=jnp.float32)
    y_ref[...] = y.astype(y_ref.dtype)
    sum_ref[...] += jnp.sum(y, axis=0, keepdims=True)
    ssq_ref[...] += jnp.sum(y * y, axis=0, keepdims=True)


def _conv3x3_bn_relu_stats_kernel(y1_ref, sc_ref, sh_ref, w_ref,
                                  y2_ref, sum_ref, ssq_ref,
                                  apad_ref, acc_ref):
    """Fused bn1 + relu + 3x3 conv (pad=1, stride=1) + streaming BN2 stats.

    One image per grid step.  The bn1+relu activation is staged into a
    zero-bordered (H+2, W+2, C) VMEM scratch; the convolution is 9 shifted MXU
    matmuls accumulated into an f32 VMEM scratch (no HBM im2col slab).
    """
    _, h, w, c = y1_ref.shape

    @pl.when(pl.program_id(0) == 0)
    def _init():
        sum_ref[...] = jnp.zeros_like(sum_ref)
        ssq_ref[...] = jnp.zeros_like(ssq_ref)
        apad_ref[...] = jnp.zeros_like(apad_ref)   # zero halo once; interior rewritten

    # bn1 + relu in f32, staged as bf16 for the MXU.
    a = jnp.maximum(y1_ref[...].reshape(h * w, c) * sc_ref[...] + sh_ref[...], 0.0)
    apad_ref[pl.ds(1, h), pl.ds(1, w), :] = a.reshape(h, w, c).astype(apad_ref.dtype)

    # 9 shifted matmuls: acc[y, x, :] += a_pad[y+dy, x+dx, :] @ W[dy, dx].
    for k in range(9):
        dy, dx = divmod(k, 3)
        tap = apad_ref[pl.ds(dy, h), pl.ds(dx, w), :].reshape(h * w, c)
        contrib = jnp.dot(tap, w_ref[k], preferred_element_type=jnp.float32)
        if k == 0:
            acc_ref[...] = contrib
        else:
            acc_ref[...] += contrib

    y2 = acc_ref[...]
    y2_ref[...] = y2.reshape(1, h, w, c).astype(y2_ref.dtype)
    sum_ref[...] += jnp.sum(y2, axis=0, keepdims=True)
    ssq_ref[...] += jnp.sum(y2 * y2, axis=0, keepdims=True)


def _bn_relu_matmul_stats_kernel(y_ref, sc_ref, sh_ref, w_ref,
                                 o_ref, sum_ref, ssq_ref):
    """Fused bn2 + relu + conv3 (1x1, MXU) + streaming BN3 stats."""
    @pl.when(pl.program_id(1) == 0)
    def _init():
        sum_ref[...] = jnp.zeros_like(sum_ref)
        ssq_ref[...] = jnp.zeros_like(ssq_ref)

    a = jnp.maximum(y_ref[...].astype(jnp.float32) * sc_ref[...] + sh_ref[...], 0.0)
    y = jnp.dot(a.astype(jnp.bfloat16), w_ref[...],
                preferred_element_type=jnp.float32)
    o_ref[...] = y.astype(o_ref.dtype)
    sum_ref[...] += jnp.sum(y, axis=0, keepdims=True)
    ssq_ref[...] += jnp.sum(y * y, axis=0, keepdims=True)


def _bn_add_relu_kernel(y_ref, sc_ref, sh_ref, id_ref, o_ref):
    """out = relu(bn3(y) + identity); bf16 activation streams, f32 output."""
    bn = y_ref[...].astype(jnp.float32) * sc_ref[...] + sh_ref[...]
    o_ref[...] = jnp.maximum(bn + id_ref[...].astype(jnp.float32), 0.0)


# ---------------------------------------------------------------------------
# Sizing helpers (generation aware)
# ---------------------------------------------------------------------------
def _hw_config():
    """v7x-class TCs have 64 MiB VMEM and 2 cores; v5e/v6e have 128 MiB, 1 core."""
    vmem_cap = 128 * 1024 * 1024
    try:
        vmem_cap = pltpu.get_tpu_info().vmem_capacity_bytes
    except Exception:
        pass
    small_vmem = vmem_cap <= 64 * 1024 * 1024
    return dict(
        vmem_limit=(32 if small_vmem else 48) * 1024 * 1024,
        mm_tile=256 if small_vmem else 512,
        ew_tile=1024 if small_vmem else 2048,
        split_cout=small_vmem,          # only split Cout where a 2nd core can use it
    )


def _tile_rows(m, target):
    """Largest 8-aligned divisor of m that is <= target (full extent fallback)."""
    target = min(target, m)
    if target >= m:
        return m
    for t in range(target, 7, -1):
        if m % t == 0 and t % 8 == 0:
            return t
    return m   # full-extent block bypasses the (8,128) divisibility rule


def _cout_tile(cout, split):
    """Split Cout into two 128-aligned tiles (v7x megacore), else keep it whole."""
    half = cout // 2
    if split and cout >= 256 and half % 128 == 0:
        return half
    return cout


# ---------------------------------------------------------------------------
# pallas_call wrappers
# ---------------------------------------------------------------------------
def _matmul_stats(x_bf16, w_bf16, tile_m, tile_n, hw):
    m, k = x_bf16.shape
    cout = w_bf16.shape[1]
    tm = _tile_rows(m, tile_m)
    tn = tile_n
    nj = cout // tn
    cost = pl.CostEstimate(
        flops=2 * m * k * cout, transcendentals=0,
        bytes_accessed=2 * nj * m * k + 2 * k * cout + 2 * m * cout + 8 * cout)
    return pl.pallas_call(
        _matmul_stats_kernel,
        out_shape=(jax.ShapeDtypeStruct((m, cout), jnp.bfloat16),
                   jax.ShapeDtypeStruct((1, cout), jnp.float32),
                   jax.ShapeDtypeStruct((1, cout), jnp.float32)),
        grid=(nj, m // tm),
        in_specs=[pl.BlockSpec((tm, k), lambda j, i: (i, 0)),
                  pl.BlockSpec((k, tn), lambda j, i: (0, j))],
        out_specs=(pl.BlockSpec((tm, tn), lambda j, i: (i, j)),
                   pl.BlockSpec((1, tn), lambda j, i: (0, j)),
                   pl.BlockSpec((1, tn), lambda j, i: (0, j))),
        compiler_params=pltpu.CompilerParams(
            dimension_semantics=("parallel", "arbitrary"),
            vmem_limit_bytes=hw["vmem_limit"]),
        cost_estimate=cost,
    )(x_bf16, w_bf16)


def _conv3x3_bn_relu_stats(y1_img, sc1, sh1, w2, hw):
    n, h, w, c = y1_img.shape
    cost = pl.CostEstimate(
        flops=2 * n * h * w * 9 * c * c, transcendentals=0,
        bytes_accessed=4 * n * h * w * c + 18 * c * c + 16 * c)
    return pl.pallas_call(
        _conv3x3_bn_relu_stats_kernel,
        out_shape=(jax.ShapeDtypeStruct((n, h, w, c), jnp.bfloat16),
                   jax.ShapeDtypeStruct((1, c), jnp.float32),
                   jax.ShapeDtypeStruct((1, c), jnp.float32)),
        grid=(n,),
        in_specs=[pl.BlockSpec((1, h, w, c), lambda i: (i, 0, 0, 0)),
                  pl.BlockSpec((1, c), lambda i: (0, 0)),
                  pl.BlockSpec((1, c), lambda i: (0, 0)),
                  pl.BlockSpec((9, c, c), lambda i: (0, 0, 0))],
        out_specs=(pl.BlockSpec((1, h, w, c), lambda i: (i, 0, 0, 0)),
                   pl.BlockSpec((1, c), lambda i: (0, 0)),
                   pl.BlockSpec((1, c), lambda i: (0, 0))),
        scratch_shapes=[pltpu.VMEM((h + 2, w + 2, c), jnp.bfloat16),
                        pltpu.VMEM((h * w, c), jnp.float32)],
        compiler_params=pltpu.CompilerParams(
            dimension_semantics=("arbitrary",),
            vmem_limit_bytes=hw["vmem_limit"]),
        cost_estimate=cost,
    )(y1_img, sc1, sh1, w2)


def _bn_relu_matmul_stats(y2, sc2, sh2, w_bf16, tile_m, tile_n, hw):
    m, k = y2.shape
    cout = w_bf16.shape[1]
    tm = _tile_rows(m, tile_m)
    tn = tile_n
    nj = cout // tn
    cost = pl.CostEstimate(
        flops=2 * m * k * cout, transcendentals=0,
        bytes_accessed=2 * nj * m * k + 2 * k * cout + 2 * m * cout + 8 * cout)
    return pl.pallas_call(
        _bn_relu_matmul_stats_kernel,
        out_shape=(jax.ShapeDtypeStruct((m, cout), jnp.bfloat16),
                   jax.ShapeDtypeStruct((1, cout), jnp.float32),
                   jax.ShapeDtypeStruct((1, cout), jnp.float32)),
        grid=(nj, m // tm),
        in_specs=[pl.BlockSpec((tm, k), lambda j, i: (i, 0)),
                  pl.BlockSpec((1, k), lambda j, i: (0, 0)),
                  pl.BlockSpec((1, k), lambda j, i: (0, 0)),
                  pl.BlockSpec((k, tn), lambda j, i: (0, j))],
        out_specs=(pl.BlockSpec((tm, tn), lambda j, i: (i, j)),
                   pl.BlockSpec((1, tn), lambda j, i: (0, j)),
                   pl.BlockSpec((1, tn), lambda j, i: (0, j))),
        compiler_params=pltpu.CompilerParams(
            dimension_semantics=("parallel", "arbitrary"),
            vmem_limit_bytes=hw["vmem_limit"]),
        cost_estimate=cost,
    )(y2, sc2, sh2, w_bf16)


def _bn_add_relu(y3, sc3, sh3, identity_bf16, hw):
    m, c = y3.shape
    per_row = c * (2 + 2 + 4) * 2            # bf16+bf16 in, f32 out, double-buffered
    target = max(128, min(hw["ew_tile"], (8 << 20) // per_row))
    tm = _tile_rows(m, target)
    return pl.pallas_call(
        _bn_add_relu_kernel,
        out_shape=jax.ShapeDtypeStruct((m, c), jnp.float32),
        grid=(m // tm,),
        in_specs=[pl.BlockSpec((tm, c), lambda i: (i, 0)),
                  pl.BlockSpec((1, c), lambda i: (0, 0)),
                  pl.BlockSpec((1, c), lambda i: (0, 0)),
                  pl.BlockSpec((tm, c), lambda i: (i, 0))],
        out_specs=pl.BlockSpec((tm, c), lambda i: (i, 0)),
        compiler_params=pltpu.CompilerParams(
            dimension_semantics=("parallel",),
            vmem_limit_bytes=hw["vmem_limit"]),
    )(y3, sc3, sh3, identity_bf16)


# ---------------------------------------------------------------------------
# Wrapper-side (tiny) BN finalize
# ---------------------------------------------------------------------------
def _bn_scale_shift(s, ss, gamma, beta, m):
    mean = s / m
    var = ss / m - mean * mean               # biased variance (torch BN train mode)
    inv = jax.lax.rsqrt(var + EPS)
    scale = gamma * inv
    shift = beta - mean * scale
    return scale, shift


# ---------------------------------------------------------------------------
# Bottleneck forward
# ---------------------------------------------------------------------------
def bottleneck_forward(x_nchw, params, tile_m=None):
    """Bottleneck forward (stride=1, no downsample). x_nchw: (N, C, H, W) f32."""
    hw = _hw_config()
    if tile_m is None:
        tile_m = hw["mm_tile"]

    n, cin, h, w = x_nchw.shape
    m = n * h * w
    # NCHW -> (M, C); the bf16 slab doubles as conv1 input and residual identity.
    x2d_bf = jnp.transpose(x_nchw, (0, 2, 3, 1)).reshape(m, cin).astype(jnp.bfloat16)

    w1 = params["w1"].astype(jnp.bfloat16)      # (Cin, width)
    w2 = params["w2"].astype(jnp.bfloat16)      # (9, width, width), tap-major
    w3 = params["w3"].astype(jnp.bfloat16)      # (width, Cout)
    width = w1.shape[1]
    cout = w3.shape[1]
    assert cout == cin, "stride=1 / no-downsample path requires inplanes == planes*4"

    tn1 = _cout_tile(width, hw["split_cout"])
    tn3 = _cout_tile(cout, hw["split_cout"])

    # conv1 (1x1) + streaming BN1 stats (bf16 activation slab)
    y1, s1, ss1 = _matmul_stats(x2d_bf, w1, tile_m, tn1, hw)
    sc1, sh1 = _bn_scale_shift(s1, ss1, params["g1"], params["b1"], m)

    # fused bn1 + relu + conv2 (3x3, pad=1, in-kernel halo) + streaming BN2 stats
    y2, s2, ss2 = _conv3x3_bn_relu_stats(y1.reshape(n, h, w, width), sc1, sh1, w2, hw)
    sc2, sh2 = _bn_scale_shift(s2, ss2, params["g2"], params["b2"], m)

    # fused bn2 + relu + conv3 (1x1) + streaming BN3 stats
    y3, s3, ss3 = _bn_relu_matmul_stats(y2.reshape(m, width), sc2, sh2, w3,
                                        tile_m, tn3, hw)
    sc3, sh3 = _bn_scale_shift(s3, ss3, params["g3"], params["b3"], m)

    # fused bn3 + identity add + relu (identity streamed in bf16)
    out = _bn_add_relu(y3, sc3, sh3, x2d_bf, hw)

    # TODO(synk): keep (M, C)/NHWC (and bf16) output when chaining blocks; NCHW f32
    #             is returned here to match the PyTorch module contract.
    return jnp.transpose(out.reshape(n, h, w, cout), (0, 3, 1, 2))


# ---------------------------------------------------------------------------
# Pure-JAX f32 reference (mirrors PyTorch train-mode forward)
# ---------------------------------------------------------------------------
def _bn_ref(y_nchw, g, b):
    mean = jnp.mean(y_nchw, axis=(0, 2, 3), keepdims=True)
    var = jnp.mean((y_nchw - mean) ** 2, axis=(0, 2, 3), keepdims=True)
    return (y_nchw - mean) * jax.lax.rsqrt(var + EPS) * g.reshape(1, -1, 1, 1) \
        + b.reshape(1, -1, 1, 1)


def bottleneck_ref(x, p):
    dn = ("NCHW", "OIHW", "NCHW")
    out = jax.lax.conv_general_dilated(x, p["w1"], (1, 1), "VALID",
                                       dimension_numbers=dn)
    out = jnp.maximum(_bn_ref(out, p["g1"], p["b1"]), 0.0)
    out = jax.lax.conv_general_dilated(out, p["w2"], (1, 1),
                                       [(1, 1), (1, 1)], dimension_numbers=dn)
    out = jnp.maximum(_bn_ref(out, p["g2"], p["b2"]), 0.0)
    out = jax.lax.conv_general_dilated(out, p["w3"], (1, 1), "VALID",
                                       dimension_numbers=dn)
    out = _bn_ref(out, p["g3"], p["b3"])
    return jnp.maximum(out + x, 0.0)


# ---------------------------------------------------------------------------
if __name__ == "__main__":
    # Bottleneck(inplanes=16, planes=4): width=4, out_ch = planes*4 = 16 = inplanes.
    N, inplanes, H, W = 2, 16, 16, 16
    planes = 4
    width = int(planes * (64 / 64.0)) * 1
    out_ch = planes * 4

    key = jax.random.PRNGKey(0)
    ks = jax.random.split(key, 10)

    # PyTorch-shaped weights (Cout, Cin, kH, kW)
    w1_t = 0.1 * jax.random.normal(ks[0], (width, inplanes, 1, 1), jnp.float32)
    w2_t = 0.1 * jax.random.normal(ks[1], (width, width, 3, 3), jnp.float32)
    w3_t = 0.1 * jax.random.normal(ks[2], (out_ch, width, 1, 1), jnp.float32)
    g1 = 1.0 + 0.1 * jax.random.normal(ks[3], (width,), jnp.float32)
    b1 = 0.1 * jax.random.normal(ks[4], (width,), jnp.float32)
    g2 = 1.0 + 0.1 * jax.random.normal(ks[5], (width,), jnp.float32)
    b2 = 0.1 * jax.random.normal(ks[6], (width,), jnp.float32)
    g3 = 1.0 + 0.1 * jax.random.normal(ks[7], (out_ch,), jnp.float32)
    b3 = 0.1 * jax.random.normal(ks[8], (out_ch,), jnp.float32)

    # Kernel layout: 1x1 weights (Cin, Cout); 3x3 as tap-major (9, Cin, Cout).
    params = dict(
        w1=jnp.transpose(w1_t[:, :, 0, 0], (1, 0)),
        w2=jnp.transpose(w2_t, (2, 3, 1, 0)).reshape(9, width, width),
        w3=jnp.transpose(w3_t[:, :, 0, 0], (1, 0)),
        g1=g1.reshape(1, -1), b1=b1.reshape(1, -1),
        g2=g2.reshape(1, -1), b2=b2.reshape(1, -1),
        g3=g3.reshape(1, -1), b3=b3.reshape(1, -1),
    )
    params_torch = dict(w1=w1_t, w2=w2_t, w3=w3_t,
                        g1=g1, b1=b1, g2=g2, b2=b2, g3=g3, b3=b3)

    x = jax.random.normal(ks[9], (N, inplanes, H, W), jnp.float32)

    # tile_m=128 -> M=512 gives a 4-step M grid, exercising the streaming BN path;
    # conv2 runs its 2-step per-image grid.
    fwd = jax.jit(functools.partial(bottleneck_forward, tile_m=128))
    out = jax.block_until_ready(fwd(x, params))
    ref = jax.block_until_ready(bottleneck_ref(x, params_torch))

    assert out.shape == (N, out_ch, H, W)
    max_err = jnp.max(jnp.abs(out - ref))
    # bf16 MXU matmuls + bf16 inter-kernel activations vs f32 reference.
    assert jnp.allclose(out, ref, rtol=6e-2, atol=6e-2), f"max err {max_err}"
    print("KERNEL_OK")
</pallas_src>

<mosaic_0001>
module attributes {stable_mosaic.version = 11 : i64} {
  func.func @_matmul_stats_kernel(%arg0: i32, %arg1: i32, %arg2: memref<128x16xbf16, #tpu.memory_space<vmem>>, %arg3: memref<16x4xbf16, #tpu.memory_space<vmem>>, %arg4: memref<128x4xbf16, #tpu.memory_space<vmem>>, %arg5: memref<1x4xf32, #tpu.memory_space<vmem>>, %arg6: memref<1x4xf32, #tpu.memory_space<vmem>>) attributes {dimension_semantics = [#tpu.dimension_semantics<parallel>, #tpu.dimension_semantics<arbitrary>], iteration_bounds = array<i64: 1, 4>, scalar_prefetch = 0 : i64, scratch_operands = 0 : i64, tpu.core_type = #tpu.core_type<tc>, window_params = [{transform_indices = @transform_0, window_bounds = array<i64: 128, 16>}, {transform_indices = @transform_1, window_bounds = array<i64: 16, 4>}, {transform_indices = @transform_2, window_bounds = array<i64: 128, 4>}, {transform_indices = @transform_3, window_bounds = array<i64: 1, 4>}, {transform_indices = @transform_4, window_bounds = array<i64: 1, 4>}]} {
    %c0_i32 = arith.constant 0 : i32
    %0 = arith.cmpi eq, %arg1, %c0_i32 : i32
    %1 = arith.extui %0 : i1 to i32
    %c0_i32_0 = arith.constant 0 : i32
    %2 = arith.cmpi ne, %1, %c0_i32_0 : i32
    scf.if %2 {
      %cst_16 = arith.constant 0.000000e+00 : f32
      %19 = vector.broadcast %cst_16 : f32 to vector<1x4xf32>
      %c0_17 = arith.constant 0 : index
      %c0_18 = arith.constant 0 : index
      %20 = vector.load %arg5[%c0_17, %c0_18] : memref<1x4xf32, #tpu.memory_space<vmem>>, vector<1x4xf32>
      tpu.vector_store %arg5[%c0_17, %c0_18], %19 {strides = array<i32>} : memref<1x4xf32, #tpu.memory_space<vmem>>, vector<1x4xf32>,
      %cst_19 = arith.constant 0.000000e+00 : f32
      %21 = vector.broadcast %cst_19 : f32 to vector<1x4xf32>
      %c0_20 = arith.constant 0 : index
      %c0_21 = arith.constant 0 : index
      %22 = vector.load %arg6[%c0_20, %c0_21] : memref<1x4xf32, #tpu.memory_space<vmem>>, vector<1x4xf32>
      tpu.vector_store %arg6[%c0_20, %c0_21], %21 {strides = array<i32>} : memref<1x4xf32, #tpu.memory_space<vmem>>, vector<1x4xf32>,
    } else {
    }
    %c0 = arith.constant 0 : index
    %c0_1 = arith.constant 0 : index
    %3 = vector.load %arg2[%c0, %c0_1] : memref<128x16xbf16, #tpu.memory_space<vmem>>, vector<128x16xbf16>
    %c0_2 = arith.constant 0 : index
    %c0_3 = arith.constant 0 : index
    %4 = vector.load %arg3[%c0_2, %c0_3] : memref<16x4xbf16, #tpu.memory_space<vmem>>, vector<16x4xbf16>
    %cst = arith.constant dense<0.000000e+00> : vector<128x4xf32>
    %5 = tpu.matmul %3, %4, %cst {dimension_numbers = #tpu.dot_dimension_numbers<[1], [0], [0], [1], [0, 0, 1, 1], [], []>} : vector<128x16xbf16>, vector<16x4xbf16>, vector<128x4xf32> -> vector<128x4xf32>
    %6 = arith.truncf %5 : vector<128x4xf32> to vector<128x4xbf16>
    %c0_4 = arith.constant 0 : index
    %c0_5 = arith.constant 0 : index
    %7 = vector.load %arg4[%c0_4, %c0_5] : memref<128x4xbf16, #tpu.memory_space<vmem>>, vector<128x4xbf16>
    tpu.vector_store %arg4[%c0_4, %c0_5], %6 {strides = array<i32>} : memref<128x4xbf16, #tpu.memory_space<vmem>>, vector<128x4xbf16>,
    %c0_6 = arith.constant 0 : index
    %c0_7 = arith.constant 0 : index
    %8 = vector.load %arg5[%c0_6, %c0_7] : memref<1x4xf32, #tpu.memory_space<vmem>>, vector<1x4xf32>
    %cst_8 = arith.constant dense<0.000000e+00> : vector<4xf32>
    %9 = vector.multi_reduction <add>, %5, %cst_8 [0] : vector<128x4xf32> to vector<4xf32>
    %10 = vector.shape_cast %9 : vector<4xf32> to vector<1x4xf32>
    %11 = arith.addf %8, %10 : vector<1x4xf32>
    %c0_9 = arith.constant 0 : index
    %c0_10 = arith.constant 0 : index
    %12 = vector.load %arg5[%c0_9, %c0_10] : memref<1x4xf32, #tpu.memory_space<vmem>>, vector<1x4xf32>
    tpu.vector_store %arg5[%c0_9, %c0_10], %11 {strides = array<i32>} : memref<1x4xf32, #tpu.memory_space<vmem>>, vector<1x4xf32>,
    %c0_11 = arith.constant 0 : index
    %c0_12 = arith.constant 0 : index
    %13 = vector.load %arg6[%c0_11, %c0_12] : memref<1x4xf32, #tpu.memory_space<vmem>>, vector<1x4xf32>
    %14 = arith.mulf %5, %5 : vector<128x4xf32>
    %cst_13 = arith.constant dense<0.000000e+00> : vector<4xf32>
    %15 = vector.multi_reduction <add>, %14, %cst_13 [0] : vector<128x4xf32> to vector<4xf32>
    %16 = vector.shape_cast %15 : vector<4xf32> to vector<1x4xf32>
    %17 = arith.addf %13, %16 : vector<1x4xf32>
    %c0_14 = arith.constant 0 : index
    %c0_15 = arith.constant 0 : index
    %18 = vector.load %arg6[%c0_14, %c0_15] : memref<1x4xf32, #tpu.memory_space<vmem>>, vector<1x4xf32>
    tpu.vector_store %arg6[%c0_14, %c0_15], %17 {strides = array<i32>} : memref<1x4xf32, #tpu.memory_space<vmem>>, vector<1x4xf32>,
    return
  }
  func.func @transform_0(%arg0: i32, %arg1: i32) -> (i32, i32) {
    %c0_i32 = arith.constant 0 : i32
    %c0_i32_0 = arith.constant 0 : i32
    return %arg1, %c0_i32 : i32, i32
  }
  func.func @transform_1(%arg0: i32, %arg1: i32) -> (i32, i32) {
    %c0_i32 = arith.constant 0 : i32
    %c0_i32_0 = arith.constant 0 : i32
    return %c0_i32, %arg0 : i32, i32
  }
  func.func @transform_2(%arg0: i32, %arg1: i32) -> (i32, i32) {
    %c0_i32 = arith.constant 0 : i32
    return %arg1, %arg0 : i32, i32
  }
  func.func @transform_3(%arg0: i32, %arg1: i32) -> (i32, i32) {
    %c0_i32 = arith.constant 0 : i32
    %c0_i32_0 = arith.constant 0 : i32
    return %c0_i32, %arg0 : i32, i32
  }
  func.func @transform_4(%arg0: i32, %arg1: i32) -> (i32, i32) {
    %c0_i32 = arith.constant 0 : i32
    %c0_i32_0 = arith.constant 0 : i32
    return %c0_i32, %arg0 : i32, i32
  }
}

module attributes {stable_mosaic.version = 11 : i64} {
  func.func @_conv3x3_bn_relu_stats_kernel(%arg0: i32, %arg1: memref<1x16x16x4xbf16, #tpu.memory_space<vmem>>, %arg2: memref<1x4xf32, #tpu.memory_space<vmem>>, %arg3: memref<1x4xf32, #tpu.memory_space<vmem>>, %arg4: memref<9x4x4xbf16, #tpu.memory_space<vmem>>, %arg5: memref<1x16x16x4xbf16, #tpu.memory_space<vmem>>, %arg6: memref<1x4xf32, #tpu.memory_space<vmem>>, %arg7: memref<1x4xf32, #tpu.memory_space<vmem>>, %arg8: memref<18x18x4xbf16, #tpu.memory_space<vmem>>, %arg9: memref<256x4xf32, #tpu.memory_space<vmem>>) attributes {dimension_semantics = [#tpu.dimension_semantics<arbitrary>], iteration_bounds = array<i64: 2>, scalar_prefetch = 0 : i64, scratch_operands = 2 : i64, tpu.core_type = #tpu.core_type<tc>, window_params = [{transform_indices = @transform_0, window_bounds = array<i64: 1, 16, 16, 4>}, {pipeline_mode = #tpu.pipeline_mode<synchronous>, transform_indices = @transform_1, window_bounds = array<i64: 1, 4>}, {pipeline_mode = #tpu.pipeline_mode<synchronous>, transform_indices = @transform_2, window_bounds = array<i64: 1, 4>}, {pipeline_mode = #tpu.pipeline_mode<synchronous>, transform_indices = @transform_3, window_bounds = array<i64: 9, 4, 4>}, {transform_indices = @transform_4, window_bounds = array<i64: 1, 16, 16, 4>}, {pipeline_mode = #tpu.pipeline_mode<synchronous>, transform_indices = @transform_5, window_bounds = array<i64: 1, 4>}, {pipeline_mode = #tpu.pipeline_mode<synchronous>, transform_indices = @transform_6, window_bounds = array<i64: 1, 4>}]} {
    %c0_i32 = arith.constant 0 : i32
    %0 = arith.cmpi eq, %arg0, %c0_i32 : i32
    %1 = arith.extui %0 : i1 to i32
    %c0_i32_0 = arith.constant 0 : i32
    %2 = arith.cmpi ne, %1, %c0_i32_0 : i32
    scf.if %2 {
      %cst_116 = arith.constant 0.000000e+00 : f32
      %102 = vector.broadcast %cst_116 : f32 to vector<1x4xf32>
      %c0_117 = arith.constant 0 : index
      %c0_118 = arith.constant 0 : index
      %103 = vector.load %arg6[%c0_117, %c0_118] : memref<1x4xf32, #tpu.memory_space<vmem>>, vector<1x4xf32>
      tpu.vector_store %arg6[%c0_117, %c0_118], %102 {strides = array<i32>} : memref<1x4xf32, #tpu.memory_space<vmem>>, vector<1x4xf32>,
      %cst_119 = arith.constant 0.000000e+00 : f32
      %104 = vector.broadcast %cst_119 : f32 to vector<1x4xf32>
      %c0_120 = arith.constant 0 : index
      %c0_121 = arith.constant 0 : index
      %105 = vector.load %arg7[%c0_120, %c0_121] : memref<1x4xf32, #tpu.memory_space<vmem>>, vector<1x4xf32>
      tpu.vector_store %arg7[%c0_120, %c0_121], %104 {strides = array<i32>} : memref<1x4xf32, #tpu.memory_space<vmem>>, vector<1x4xf32>,
      %cst_122 = arith.constant 0.000000e+00 : bf16
      %106 = vector.broadcast %cst_122 : bf16 to vector<18x18x4xbf16>
      %c0_123 = arith.constant 0 : index
      %c0_124 = arith.constant 0 : index
      %c0_125 = arith.constant 0 : index
      %107 = vector.load %arg8[%c0_123, %c0_124, %c0_125] : memref<18x18x4xbf16, #tpu.memory_space<vmem>>, vector<18x18x4xbf16>
      tpu.vector_store %arg8[%c0_123, %c0_124, %c0_125], %106 {strides = array<i32>} : memref<18x18x4xbf16, #tpu.memory_space<vmem>>, vector<18x18x4xbf16>,
    } else {
    }
    %c0 = arith.constant 0 : index
    %c0_1 = arith.constant 0 : index
    %c0_2 = arith.constant 0 : index
    %c0_3 = arith.constant 0 : index
    %3 = vector.load %arg1[%c0, %c0_1, %c0_2, %c0_3] : memref<1x16x16x4xbf16, #tpu.memory_space<vmem>>, vector<1x16x16x4xbf16>
    %4 = vector.shape_cast %3 : vector<1x16x16x4xbf16> to vector<256x4xbf16>
    %c0_4 = arith.constant 0 : index
    %c0_5 = arith.constant 0 : index
    %5 = vector.load %arg2[%c0_4, %c0_5] : memref<1x4xf32, #tpu.memory_space<vmem>>, vector<1x4xf32>
    %6 = arith.extf %4 : vector<256x4xbf16> to vector<256x4xf32>
    %7 = vector.broadcast %5 : vector<1x4xf32> to vector<256x4xf32>
    %8 = arith.mulf %6, %7 : vector<256x4xf32>
    %c0_6 = arith.constant 0 : index
    %c0_7 = arith.constant 0 : index
    %9 = vector.load %arg3[%c0_6, %c0_7] : memref<1x4xf32, #tpu.memory_space<vmem>>, vector<1x4xf32>
    %10 = vector.broadcast %9 : vector<1x4xf32> to vector<256x4xf32>
    %11 = arith.addf %8, %10 : vector<256x4xf32>
    %cst = arith.constant 0.000000e+00 : f32
    %12 = vector.broadcast %cst : f32 to vector<256x4xf32>
    %13 = arith.maximumf %11, %12 : vector<256x4xf32>
    %14 = vector.shape_cast %13 : vector<256x4xf32> to vector<16x16x4xf32>
    %15 = arith.truncf %14 : vector<16x16x4xf32> to vector<16x16x4xbf16>
    %c1 = arith.constant 1 : index
    %c1_8 = arith.constant 1 : index
    %c0_9 = arith.constant 0 : index
    %16 = vector.load %arg8[%c1, %c1_8, %c0_9] : memref<18x18x4xbf16, #tpu.memory_space<vmem>>, vector<16x16x4xbf16>
    tpu.vector_store %arg8[%c1, %c1_8, %c0_9], %15 {strides = array<i32>} : memref<18x18x4xbf16, #tpu.memory_space<vmem>>, vector<16x16x4xbf16>,
    %c0_10 = arith.constant 0 : index
    %c0_11 = arith.constant 0 : index
    %c0_12 = arith.constant 0 : index
    %17 = vector.load %arg8[%c0_10, %c0_11, %c0_12] : memref<18x18x4xbf16, #tpu.memory_space<vmem>>, vector<16x16x4xbf16>
    %18 = vector.shape_cast %17 : vector<16x16x4xbf16> to vector<256x4xbf16>
    %c0_13 = arith.constant 0 : index
    %c0_14 = arith.constant 0 : index
    %c0_15 = arith.constant 0 : index
    %19 = vector.load %arg4[%c0_13, %c0_14, %c0_15] : memref<9x4x4xbf16, #tpu.memory_space<vmem>>, vector<1x4x4xbf16>
    %20 = vector.shape_cast %19 : vector<1x4x4xbf16> to vector<4x4xbf16>
    %cst_16 = arith.constant dense<0.000000e+00> : vector<256x4xf32>
    %21 = tpu.matmul %18, %20, %cst_16 {dimension_numbers = #tpu.dot_dimension_numbers<[1], [0], [0], [1], [0, 0, 1, 1], [], []>} : vector<256x4xbf16>, vector<4x4xbf16>, vector<256x4xf32> -> vector<256x4xf32>
    %c0_17 = arith.constant 0 : index
    %c0_18 = arith.constant 0 : index
    %22 = vector.load %arg9[%c0_17, %c0_18] : memref<256x4xf32, #tpu.memory_space<vmem>>, vector<256x4xf32>
    tpu.vector_store %arg9[%c0_17, %c0_18], %21 {strides = array<i32>} : memref<256x4xf32, #tpu.memory_space<vmem>>, vector<256x4xf32>,
    %c0_19 = arith.constant 0 : index
    %c1_20 = arith.constant 1 : index
    %c0_21 = arith.constant 0 : index
    %23 = vector.load %arg8[%c0_19, %c1_20, %c0_21] : memref<18x18x4xbf16, #tpu.memory_space<vmem>>, vector<16x16x4xbf16>
    %24 = vector.shape_cast %23 : vector<16x16x4xbf16> to vector<256x4xbf16>
    %c1_22 = arith.constant 1 : index
    %c0_23 = arith.constant 0 : index
    %c0_24 = arith.constant 0 : index
    %25 = vector.load %arg4[%c1_22, %c0_23, %c0_24] : memref<9x4x4xbf16, #tpu.memory_space<vmem>>, vector<1x4x4xbf16>
    %26 = vector.shape_cast %25 : vector<1x4x4xbf16> to vector<4x4xbf16>
    %cst_25 = arith.constant dense<0.000000e+00> : vector<256x4xf32>
    %27 = tpu.matmul %24, %26, %cst_25 {dimension_numbers = #tpu.dot_dimension_numbers<[1], [0], [0], [1], [0, 0, 1, 1], [], []>} : vector<256x4xbf16>, vector<4x4xbf16>, vector<256x4xf32> -> vector<256x4xf32>
    %c0_26 = arith.constant 0 : index
    %c0_27 = arith.constant 0 : index
    %28 = vector.load %arg9[%c0_26, %c0_27] : memref<256x4xf32, #tpu.memory_space<vmem>>, vector<256x4xf32>
    %29 = arith.addf %28, %27 : vector<256x4xf32>
    %c0_28 = arith.constant 0 : index
    %c0_29 = arith.constant 0 : index
    %30 = vector.load %arg9[%c0_28, %c0_29] : memref<256x4xf32, #tpu.memory_space<vmem>>, vector<256x4xf32>
    tpu.vector_store %arg9[%c0_28, %c0_29], %29 {strides = array<i32>} : memref<256x4xf32, #tpu.memory_space<vmem>>, vector<256x4xf32>,
    %c0_30 = arith.constant 0 : index
    %c2 = arith.constant 2 : index
    %c0_31 = arith.constant 0 : index
    %31 = vector.load %arg8[%c0_30, %c2, %c0_31] : memref<18x18x4xbf16, #tpu.memory_space<vmem>>, vector<16x16x4xbf16>
    %32 = vector.shape_cast %31 : vector<16x16x4xbf16> to vector<256x4xbf16>
    %c2_32 = arith.constant 2 : index
    %c0_33 = arith.constant 0 : index
    %c0_34 = arith.constant 0 : index
    %33 = vector.load %arg4[%c2_32, %c0_33, %c0_34] : memref<9x4x4xbf16, #tpu.memory_space<vmem>>, vector<1x4x4xbf16>
    %34 = vector.shape_cast %33 : vector<1x4x4xbf16> to vector<4x4xbf16>
    %cst_35 = arith.constant dense<0.000000e+00> : vector<256x4xf32>
    %35 = tpu.matmul %32, %34, %cst_35 {dimension_numbers = #tpu.dot_dimension_numbers<[1], [0], [0], [1], [0, 0, 1, 1], [], []>} : vector<256x4xbf16>, vector<4x4xbf16>, vector<256x4xf32> -> vector<256x4xf32>
    %c0_36 = arith.constant 0 : index
    %c0_37 = arith.constant 0 : index
    %36 = vector.load %arg9[%c0_36, %c0_37] : memref<256x4xf32, #tpu.memory_space<vmem>>, vector<256x4xf32>
    %37 = arith.addf %36, %35 : vector<256x4xf32>
    %c0_38 = arith.constant 0 : index
    %c0_39 = arith.constant 0 : index
    %38 = vector.load %arg9[%c0_38, %c0_39] : memref<256x4xf32, #tpu.memory_space<vmem>>, vector<256x4xf32>
    tpu.vector_store %arg9[%c0_38, %c0_39], %37 {strides = array<i32>} : memref<256x4xf32, #tpu.memory_space<vmem>>, vector<256x4xf32>,
    %c1_40 = arith.constant 1 : index
    %c0_41 = arith.constant 0 : index
    %c0_42 = arith.constant 0 : index
    %39 = vector.load %arg8[%c1_40, %c0_41, %c0_42] : memref<18x18x4xbf16, #tpu.memory_space<vmem>>, vector<16x16x4xbf16>
    %40 = vector.shape_cast %39 : vector<16x16x4xbf16> to vector<256x4xbf16>
    %c3 = arith.constant 3 : index
    %c0_43 = arith.constant 0 : index
    %c0_44 = arith.constant 0 : index
    %41 = vector.load %arg4[%c3, %c0_43, %c0_44] : memref<9x4x4xbf16, #tpu.memory_space<vmem>>, vector<1x4x4xbf16>
    %42 = vector.shape_cast %41 : vector<1x4x4xbf16> to vector<4x4xbf16>
    %cst_45 = arith.constant dense<0.000000e+00> : vector<256x4xf32>
    %43 = tpu.matmul %40, %42, %cst_45 {dimension_numbers = #tpu.dot_dimension_numbers<[1], [0], [0], [1], [0, 0, 1, 1], [], []>} : vector<256x4xbf16>, vector<4x4xbf16>, vector<256x4xf32> -> vector<256x4xf32>
    %c0_46 = arith.constant 0 : index
    %c0_47 = arith.constant 0 : index
    %44 = vector.load %arg9[%c0_46, %c0_47] : memref<256x4xf32, #tpu.memory_space<vmem>>, vector<256x4xf32>
    %45 = arith.addf %44, %43 : vector<256x4xf32>
    %c0_48 = arith.constant 0 : index
    %c0_49 = arith.constant 0 : index
    %46 = vector.load %arg9[%c0_48, %c0_49] : memref<256x4xf32, #tpu.memory_space<vmem>>, vector<256x4xf32>
    tpu.vector_store %arg9[%c0_48, %c0_49], %45 {strides = array<i32>} : memref<256x4xf32, #tpu.memory_space<vmem>>, vector<256x4xf32>,
    %c1_50 = arith.constant 1 : index
    %c1_51 = arith.constant 1 : index
    %c0_52 = arith.constant 0 : index
    %47 = vector.load %arg8[%c1_50, %c1_51, %c0_52] : memref<18x18x4xbf16, #tpu.memory_space<vmem>>, vector<16x16x4xbf16>
    %48 = vector.shape_cast %47 : vector<16x16x4xbf16> to vector<256x4xbf16>
    %c4 = arith.constant 4 : index
    %c0_53 = arith.constant 0 : index
    %c0_54 = arith.constant 0 : index
    %49 = vector.load %arg4[%c4, %c0_53, %c0_54] : memref<9x4x4xbf16, #tpu.memory_space<vmem>>, vector<1x4x4xbf16>
    %50 = vector.shape_cast %49 : vector<1x4x4xbf16> to vector<4x4xbf16>
    %cst_55 = arith.constant dense<0.000000e+00> : vector<256x4xf32>
    %51 = tpu.matmul %48, %50, %cst_55 {dimension_numbers = #tpu.dot_dimension_numbers<[1], [0], [0], [1], [0, 0, 1, 1], [], []>} : vector<256x4xbf16>, vector<4x4xbf16>, vector<256x4xf32> -> vector<256x4xf32>
    %c0_56 = arith.constant 0 : index
    %c0_57 = arith.constant 0 : index
    %52 = vector.load %arg9[%c0_56, %c0_57] : memref<256x4xf32, #tpu.memory_space<vmem>>, vector<256x4xf32>
    %53 = arith.addf %52, %51 : vector<256x4xf32>
    %c0_58 = arith.constant 0 : index
    %c0_59 = arith.constant 0 : index
    %54 = vector.load %arg9[%c0_58, %c0_59] : memref<256x4xf32, #tpu.memory_space<vmem>>, vector<256x4xf32>
    tpu.vector_store %arg9[%c0_58, %c0_59], %53 {strides = array<i32>} : memref<256x4xf32, #tpu.memory_space<vmem>>, vector<256x4xf32>,
    %c1_60 = arith.constant 1 : index
    %c2_61 = arith.constant 2 : index
    %c0_62 = arith.constant 0 : index
    %55 = vector.load %arg8[%c1_60, %c2_61, %c0_62] : memref<18x18x4xbf16, #tpu.memory_space<vmem>>, vector<16x16x4xbf16>
    %56 = vector.shape_cast %55 : vector<16x16x4xbf16> to vector<256x4xbf16>
    %c5 = arith.constant 5 : index
    %c0_63 = arith.constant 0 : index
    %c0_64 = arith.constant 0 : index
    %57 = vector.load %arg4[%c5, %c0_63, %c0_64] : memref<9x4x4xbf16, #tpu.memory_space<vmem>>, vector<1x4x4xbf16>
    %58 = vector.shape_cast %57 : vector<1x4x4xbf16> to vector<4x4xbf16>
    %cst_65 = arith.constant dense<0.000000e+00> : vector<256x4xf32>
    %59 = tpu.matmul %56, %58, %cst_65 {dimension_numbers = #tpu.dot_dimension_numbers<[1], [0], [0], [1], [0, 0, 1, 1], [], []>} : vector<256x4xbf16>, vector<4x4xbf16>, vector<256x4xf32> -> vector<256x4xf32>
    %c0_66 = arith.constant 0 : index
    %c0_67 = arith.constant 0 : index
    %60 = vector.load %arg9[%c0_66, %c0_67] : memref<256x4xf32, #tpu.memory_space<vmem>>, vector<256x4xf32>
    %61 = arith.addf %60, %59 : vector<256x4xf32>
    %c0_68 = arith.constant 0 : index
    %c0_69 = arith.constant 0 : index
    %62 = vector.load %arg9[%c0_68, %c0_69] : memref<256x4xf32, #tpu.memory_space<vmem>>, vector<256x4xf32>
    tpu.vector_store %arg9[%c0_68, %c0_69], %61 {strides = array<i32>} : memref<256x4xf32, #tpu.memory_space<vmem>>, vector<256x4xf32>,
    %c2_70 = arith.constant 2 : index
    %c0_71 = arith.constant 0 : index
    %c0_72 = arith.constant 0 : index
    %63 = vector.load %arg8[%c2_70, %c0_71, %c0_72] : memref<18x18x4xbf16, #tpu.memory_space<vmem>>, vector<16x16x4xbf16>
    %64 = vector.shape_cast %63 : vector<16x16x4xbf16> to vector<256x4xbf16>
    %c6 = arith.constant 6 : index
    %c0_73 = arith.constant 0 : index
    %c0_74 = arith.constant 0 : index
    %65 = vector.load %arg4[%c6, %c0_73, %c0_74] : memref<9x4x4xbf16, #tpu.memory_space<vmem>>, vector<1x4x4xbf16>
    %66 = vector.shape_cast %65 : vector<1x4x4xbf16> to vector<4x4xbf16>
    %cst_75 = arith.constant dense<0.000000e+00> : vector<256x4xf32>
    %67 = tpu.matmul %64, %66, %cst_75 {dimension_numbers = #tpu.dot_dimension_numbers<[1], [0], [0], [1], [0, 0, 1, 1], [], []>} : vector<256x4xbf16>, vector<4x4xbf16>, vector<256x4xf32> -> vector<256x4xf32>
    %c0_76 = arith.constant 0 : index
    %c0_77 = arith.constant 0 : index
    %68 = vector.load %arg9[%c0_76, %c0_77] : memref<256x4xf32, #tpu.memory_space<vmem>>, vector<256x4xf32>
    %69 = arith.addf %68, %67 : vector<256x4xf32>
    %c0_78 = arith.constant 0 : index
    %c0_79 = arith.constant 0 : index
    %70 = vector.load %arg9[%c0_78, %c0_79] : memref<256x4xf32, #tpu.memory_space<vmem>>, vector<256x4xf32>
    tpu.vector_store %arg9[%c0_78, %c0_79], %69 {strides = array<i32>} : memref<256x4xf32, #tpu.memory_space<vmem>>, vector<256x4xf32>,
    %c2_80 = arith.constant 2 : index
    %c1_81 = arith.constant 1 : index
    %c0_82 = arith.constant 0 : index
    %71 = vector.load %arg8[%c2_80, %c1_81, %c0_82] : memref<18x18x4xbf16, #tpu.memory_space<vmem>>, vector<16x16x4xbf16>
    %72 = vector.shape_cast %71 : vector<16x16x4xbf16> to vector<256x4xbf16>
    %c7 = arith.constant 7 : index
    %c0_83 = arith.constant 0 : index
    %c0_84 = arith.constant 0 : index
    %73 = vector.load %arg4[%c7, %c0_83, %c0_84] : memref<9x4x4xbf16, #tpu.memory_space<vmem>>, vector<1x4x4xbf16>
    %74 = vector.shape_cast %73 : vector<1x4x4xbf16> to vector<4x4xbf16>
    %cst_85 = arith.constant dense<0.000000e+00> : vector<256x4xf32>
    %75 = tpu.matmul %72, %74, %cst_85 {dimension_numbers = #tpu.dot_dimension_numbers<[1], [0], [0], [1], [0, 0, 1, 1], [], []>} : vector<256x4xbf16>, vector<4x4xbf16>, vector<256x4xf32> -> vector<256x4xf32>
    %c0_86 = arith.constant 0 : index
    %c0_87 = arith.constant 0 : index
    %76 = vector.load %arg9[%c0_86, %c0_87] : memref<256x4xf32, #tpu.memory_space<vmem>>, vector<256x4xf32>
    %77 = arith.addf %76, %75 : vector<256x4xf32>
    %c0_88 = arith.constant 0 : index
    %c0_89 = arith.constant 0 : index
    %78 = vector.load %arg9[%c0_88, %c0_89] : memref<256x4xf32, #tpu.memory_space<vmem>>, vector<256x4xf32>
    tpu.vector_store %arg9[%c0_88, %c0_89], %77 {strides = array<i32>} : memref<256x4xf32, #tpu.memory_space<vmem>>, vector<256x4xf32>,
    %c2_90 = arith.constant 2 : index
    %c2_91 = arith.constant 2 : index
    %c0_92 = arith.constant 0 : index
    %79 = vector.load %arg8[%c2_90, %c2_91, %c0_92] : memref<18x18x4xbf16, #tpu.memory_space<vmem>>, vector<16x16x4xbf16>
    %80 = vector.shape_cast %79 : vector<16x16x4xbf16> to vector<256x4xbf16>
    %c8 = arith.constant 8 : index
    %c0_93 = arith.constant 0 : index
    %c0_94 = arith.constant 0 : index
    %81 = vector.load %arg4[%c8, %c0_93, %c0_94] : memref<9x4x4xbf16, #tpu.memory_space<vmem>>, vector<1x4x4xbf16>
    %82 = vector.shape_cast %81 : vector<1x4x4xbf16> to vector<4x4xbf16>
    %cst_95 = arith.constant dense<0.000000e+00> : vector<256x4xf32>
    %83 = tpu.matmul %80, %82, %cst_95 {dimension_numbers = #tpu.dot_dimension_numbers<[1], [0], [0], [1], [0, 0, 1, 1], [], []>} : vector<256x4xbf16>, vector<4x4xbf16>, vector<256x4xf32> -> vector<256x4xf32>
    %c0_96 = arith.constant 0 : index
    %c0_97 = arith.constant 0 : index
    %84 = vector.load %arg9[%c0_96, %c0_97] : memref<256x4xf32, #tpu.memory_space<vmem>>, vector<256x4xf32>
    %85 = arith.addf %84, %83 : vector<256x4xf32>
    %c0_98 = arith.constant 0 : index
    %c0_99 = arith.constant 0 : index
    %86 = vector.load %arg9[%c0_98, %c0_99] : memref<256x4xf32, #tpu.memory_space<vmem>>, vector<256x4xf32>
    tpu.vector_store %arg9[%c0_98, %c0_99], %85 {strides = array<i32>} : memref<256x4xf32, #tpu.memory_space<vmem>>, vector<256x4xf32>,
    %c0_100 = arith.constant 0 : index
    %c0_101 = arith.constant 0 : index
    %87 = vector.load %arg9[%c0_100, %c0_101] : memref<256x4xf32, #tpu.memory_space<vmem>>, vector<256x4xf32>
    %88 = vector.shape_cast %87 : vector<256x4xf32> to vector<1x16x16x4xf32>
    %89 = arith.truncf %88 : vector<1x16x16x4xf32> to vector<1x16x16x4xbf16>
    %c0_102 = arith.constant 0 : index
    %c0_103 = arith.constant 0 : index
    %c0_104 = arith.constant 0 : index
    %c0_105 = arith.constant 0 : index
    %90 = vector.load %arg5[%c0_102, %c0_103, %c0_104, %c0_105] : memref<1x16x16x4xbf16, #tpu.memory_space<vmem>>, vector<1x16x16x4xbf16>
    tpu.vector_store %arg5[%c0_102, %c0_103, %c0_104, %c0_105], %89 {strides = array<i32>} : memref<1x16x16x4xbf16, #tpu.memory_space<vmem>>, vector<1x16x16x4xbf16>,
    %c0_106 = arith.constant 0 : index
    %c0_107 = arith.constant 0 : index
    %91 = vector.load %arg6[%c0_106, %c0_107] : memref<1x4xf32, #tpu.memory_space<vmem>>, vector<1x4xf32>
    %cst_108 = arith.constant dense<0.000000e+00> : vector<4xf32>
    %92 = vector.multi_reduction <add>, %87, %cst_108 [0] : vector<256x4xf32> to vector<4xf32>
    %93 = vector.shape_cast %92 : vector<4xf32> to vector<1x4xf32>
    %94 = arith.addf %91, %93 : vector<1x4xf32>
    %c0_109 = arith.constant 0 : index
    %c0_110 = arith.constant 0 : index
    %95 = vector.load %arg6[%c0_109, %c0_110] : memref<1x4xf32, #tpu.memory_space<vmem>>, vector<1x4xf32>
    tpu.vector_store %arg6[%c0_109, %c0_110], %94 {strides = array<i32>} : memref<1x4xf32, #tpu.memory_space<vmem>>, vector<1x4xf32>,
    %c0_111 = arith.constant 0 : index
    %c0_112 = arith.constant 0 : index
    %96 = vector.load %arg7[%c0_111, %c0_112] : memref<1x4xf32, #tpu.memory_space<vmem>>, vector<1x4xf32>
    %97 = arith.mulf %87, %87 : vector<256x4xf32>
    %cst_113 = arith.constant dense<0.000000e+00> : vector<4xf32>
    %98 = vector.multi_reduction <add>, %97, %cst_113 [0] : vector<256x4xf32> to vector<4xf32>
    %99 = vector.shape_cast %98 : vector<4xf32> to vector<1x4xf32>
    %100 = arith.addf %96, %99 : vector<1x4xf32>
    %c0_114 = arith.constant 0 : index
    %c0_115 = arith.constant 0 : index
    %101 = vector.load %arg7[%c0_114, %c0_115] : memref<1x4xf32, #tpu.memory_space<vmem>>, vector<1x4xf32>
    tpu.vector_store %arg7[%c0_114, %c0_115], %100 {strides = array<i32>} : memref<1x4xf32, #tpu.memory_space<vmem>>, vector<1x4xf32>,
    return
  }
  func.func @transform_0(%arg0: i32) -> (i32, i32, i32, i32) {
    %c0_i32 = arith.constant 0 : i32
    %c0_i32_0 = arith.constant 0 : i32
    %c0_i32_1 = arith.constant 0 : i32
    %c0_i32_2 = arith.constant 0 : i32
    return %arg0, %c0_i32, %c0_i32_0, %c0_i32_1 : i32, i32, i32, i32
  }
  func.func @transform_1(%arg0: i32) -> (i32, i32) {
    %c0_i32 = arith.constant 0 : i32
    %c0_i32_0 = arith.constant 0 : i32
    %c0_i32_1 = arith.constant 0 : i32
    return %c0_i32, %c0_i32_0 : i32, i32
  }
  func.func @transform_2(%arg0: i32) -> (i32, i32) {
    %c0_i32 = arith.constant 0 : i32
    %c0_i32_0 = arith.constant 0 : i32
    %c0_i32_1 = arith.constant 0 : i32
    return %c0_i32, %c0_i32_0 : i32, i32
  }
  func.func @transform_3(%arg0: i32) -> (i32, i32, i32) {
    %c0_i32 = arith.constant 0 : i32
    %c0_i32_0 = arith.constant 0 : i32
    %c0_i32_1 = arith.constant 0 : i32
    %c0_i32_2 = arith.constant 0 : i32
    return %c0_i32, %c0_i32_0, %c0_i32_1 : i32, i32, i32
  }
  func.func @transform_4(%arg0: i32) -> (i32, i32, i32, i32) {
    %c0_i32 = arith.constant 0 : i32
    %c0_i32_0 = arith.constant 0 : i32
    %c0_i32_1 = arith.constant 0 : i32
    %c0_i32_2 = arith.constant 0 : i32
    return %arg0, %c0_i32, %c0_i32_0, %c0_i32_1 : i32, i32, i32, i32
  }
  func.func @transform_5(%arg0: i32) -> (i32, i32) {
    %c0_i32 = arith.constant 0 : i32
    %c0_i32_0 = arith.constant 0 : i32
    %c0_i32_1 = arith.constant 0 : i32
    return %c0_i32, %c0_i32_0 : i32, i32
  }
  func.func @transform_6(%arg0: i32) -> (i32, i32) {
    %c0_i32 = arith.constant 0 : i32
    %c0_i32_0 = arith.constant 0 : i32
    %c0_i32_1 = arith.constant 0 : i32
    return %c0_i32, %c0_i32_0 : i32, i32
  }
}

module attributes {stable_mosaic.version = 11 : i64} {
  func.func @_bn_relu_matmul_stats_kernel(%arg0: i32, %arg1: i32, %arg2: memref<128x4xbf16, #tpu.memory_space<vmem>>, %arg3: memref<1x4xf32, #tpu.memory_space<vmem>>, %arg4: memref<1x4xf32, #tpu.memory_space<vmem>>, %arg5: memref<4x16xbf16, #tpu.memory_space<vmem>>, %arg6: memref<128x16xbf16, #tpu.memory_space<vmem>>, %arg7: memref<1x16xf32, #tpu.memory_space<vmem>>, %arg8: memref<1x16xf32, #tpu.memory_space<vmem>>) attributes {dimension_semantics = [#tpu.dimension_semantics<parallel>, #tpu.dimension_semantics<arbitrary>], iteration_bounds = array<i64: 1, 4>, scalar_prefetch = 0 : i64, scratch_operands = 0 : i64, tpu.core_type = #tpu.core_type<tc>, window_params = [{transform_indices = @transform_0, window_bounds = array<i64: 128, 4>}, {pipeline_mode = #tpu.pipeline_mode<synchronous>, transform_indices = @transform_1, window_bounds = array<i64: 1, 4>}, {pipeline_mode = #tpu.pipeline_mode<synchronous>, transform_indices = @transform_2, window_bounds = array<i64: 1, 4>}, {transform_indices = @transform_3, window_bounds = array<i64: 4, 16>}, {transform_indices = @transform_4, window_bounds = array<i64: 128, 16>}, {transform_indices = @transform_5, window_bounds = array<i64: 1, 16>}, {transform_indices = @transform_6, window_bounds = array<i64: 1, 16>}]} {
    %c0_i32 = arith.constant 0 : i32
    %0 = arith.cmpi eq, %arg1, %c0_i32 : i32
    %1 = arith.extui %0 : i1 to i32
    %c0_i32_0 = arith.constant 0 : i32
    %2 = arith.cmpi ne, %1, %c0_i32_0 : i32
    scf.if %2 {
      %cst_21 = arith.constant 0.000000e+00 : f32
      %29 = vector.broadcast %cst_21 : f32 to vector<1x16xf32>
      %c0_22 = arith.constant 0 : index
      %c0_23 = arith.constant 0 : index
      %30 = vector.load %arg7[%c0_22, %c0_23] : memref<1x16xf32, #tpu.memory_space<vmem>>, vector<1x16xf32>
      tpu.vector_store %arg7[%c0_22, %c0_23], %29 {strides = array<i32>} : memref<1x16xf32, #tpu.memory_space<vmem>>, vector<1x16xf32>,
      %cst_24 = arith.constant 0.000000e+00 : f32
      %31 = vector.broadcast %cst_24 : f32 to vector<1x16xf32>
      %c0_25 = arith.constant 0 : index
      %c0_26 = arith.constant 0 : index
      %32 = vector.load %arg8[%c0_25, %c0_26] : memref<1x16xf32, #tpu.memory_space<vmem>>, vector<1x16xf32>
      tpu.vector_store %arg8[%c0_25, %c0_26], %31 {strides = array<i32>} : memref<1x16xf32, #tpu.memory_space<vmem>>, vector<1x16xf32>,
    } else {
    }
    %c0 = arith.constant 0 : index
    %c0_1 = arith.constant 0 : index
    %3 = vector.load %arg2[%c0, %c0_1] : memref<128x4xbf16, #tpu.memory_space<vmem>>, vector<128x4xbf16>
    %4 = arith.extf %3 : vector<128x4xbf16> to vector<128x4xf32>
    %c0_2 = arith.constant 0 : index
    %c0_3 = arith.constant 0 : index
    %5 = vector.load %arg3[%c0_2, %c0_3] : memref<1x4xf32, #tpu.memory_space<vmem>>, vector<1x4xf32>
    %6 = vector.broadcast %5 : vector<1x4xf32> to vector<128x4xf32>
    %7 = arith.mulf %4, %6 : vector<128x4xf32>
    %c0_4 = arith.constant 0 : index
    %c0_5 = arith.constant 0 : index
    %8 = vector.load %arg4[%c0_4, %c0_5] : memref<1x4xf32, #tpu.memory_space<vmem>>, vector<1x4xf32>
    %9 = vector.broadcast %8 : vector<1x4xf32> to vector<128x4xf32>
    %10 = arith.addf %7, %9 : vector<128x4xf32>
    %cst = arith.constant 0.000000e+00 : f32
    %11 = vector.broadcast %cst : f32 to vector<128x4xf32>
    %12 = arith.maximumf %10, %11 : vector<128x4xf32>
    %13 = arith.truncf %12 : vector<128x4xf32> to vector<128x4xbf16>
    %c0_6 = arith.constant 0 : index
    %c0_7 = arith.constant 0 : index
    %14 = vector.load %arg5[%c0_6, %c0_7] : memref<4x16xbf16, #tpu.memory_space<vmem>>, vector<4x16xbf16>
    %cst_8 = arith.constant dense<0.000000e+00> : vector<128x16xf32>
    %15 = tpu.matmul %13, %14, %cst_8 {dimension_numbers = #tpu.dot_dimension_numbers<[1], [0], [0], [1], [0, 0, 1, 1], [], []>} : vector<128x4xbf16>, vector<4x16xbf16>, vector<128x16xf32> -> vector<128x16xf32>
    %16 = arith.truncf %15 : vector<128x16xf32> to vector<128x16xbf16>
    %c0_9 = arith.constant 0 : index
    %c0_10 = arith.constant 0 : index
    %17 = vector.load %arg6[%c0_9, %c0_10] : memref<128x16xbf16, #tpu.memory_space<vmem>>, vector<128x16xbf16>
    tpu.vector_store %arg6[%c0_9, %c0_10], %16 {strides = array<i32>} : memref<128x16xbf16, #tpu.memory_space<vmem>>, vector<128x16xbf16>,
    %c0_11 = arith.constant 0 : index
    %c0_12 = arith.constant 0 : index
    %18 = vector.load %arg7[%c0_11, %c0_12] : memref<1x16xf32, #tpu.memory_space<vmem>>, vector<1x16xf32>
    %cst_13 = arith.constant dense<0.000000e+00> : vector<16xf32>
    %19 = vector.multi_reduction <add>, %15, %cst_13 [0] : vector<128x16xf32> to vector<16xf32>
    %20 = vector.shape_cast %19 : vector<16xf32> to vector<1x16xf32>
    %21 = arith.addf %18, %20 : vector<1x16xf32>
    %c0_14 = arith.constant 0 : index
    %c0_15 = arith.constant 0 : index
    %22 = vector.load %arg7[%c0_14, %c0_15] : memref<1x16xf32, #tpu.memory_space<vmem>>, vector<1x16xf32>
    tpu.vector_store %arg7[%c0_14, %c0_15], %21 {strides = array<i32>} : memref<1x16xf32, #tpu.memory_space<vmem>>, vector<1x16xf32>,
    %c0_16 = arith.constant 0 : index
    %c0_17 = arith.constant 0 : index
    %23 = vector.load %arg8[%c0_16, %c0_17] : memref<1x16xf32, #tpu.memory_space<vmem>>, vector<1x16xf32>
    %24 = arith.mulf %15, %15 : vector<128x16xf32>
    %cst_18 = arith.constant dense<0.000000e+00> : vector<16xf32>
    %25 = vector.multi_reduction <add>, %24, %cst_18 [0] : vector<128x16xf32> to vector<16xf32>
    %26 = vector.shape_cast %25 : vector<16xf32> to vector<1x16xf32>
    %27 = arith.addf %23, %26 : vector<1x16xf32>
    %c0_19 = arith.constant 0 : index
    %c0_20 = arith.constant 0 : index
    %28 = vector.load %arg8[%c0_19, %c0_20] : memref<1x16xf32, #tpu.memory_space<vmem>>, vector<1x16xf32>
    tpu.vector_store %arg8[%c0_19, %c0_20], %27 {strides = array<i32>} : memref<1x16xf32, #tpu.memory_space<vmem>>, vector<1x16xf32>,
    return
  }
  func.func @transform_0(%arg0: i32, %arg1: i32) -> (i32, i32) {
    %c0_i32 = arith.constant 0 : i32
    %c0_i32_0 = arith.constant 0 : i32
    return %arg1, %c0_i32 : i32, i32
  }
  func.func @transform_1(%arg0: i32, %arg1: i32) -> (i32, i32) {
    %c0_i32 = arith.constant 0 : i32
    %c0_i32_0 = arith.constant 0 : i32
    %c0_i32_1 = arith.constant 0 : i32
    return %c0_i32, %c0_i32_0 : i32, i32
  }
  func.func @transform_2(%arg0: i32, %arg1: i32) -> (i32, i32) {
    %c0_i32 = arith.constant 0 : i32
    %c0_i32_0 = arith.constant 0 : i32
    %c0_i32_1 = arith.constant 0 : i32
    return %c0_i32, %c0_i32_0 : i32, i32
  }
  func.func @transform_3(%arg0: i32, %arg1: i32) -> (i32, i32) {
    %c0_i32 = arith.constant 0 : i32
    %c0_i32_0 = arith.constant 0 : i32
    return %c0_i32, %arg0 : i32, i32
  }
  func.func @transform_4(%arg0: i32, %arg1: i32) -> (i32, i32) {
    %c0_i32 = arith.constant 0 : i32
    return %arg1, %arg0 : i32, i32
  }
  func.func @transform_5(%arg0: i32, %arg1: i32) -> (i32, i32) {
    %c0_i32 = arith.constant 0 : i32
    %c0_i32_0 = arith.constant 0 : i32
    return %c0_i32, %arg0 : i32, i32
  }
  func.func @transform_6(%arg0: i32, %arg1: i32) -> (i32, i32) {
    %c0_i32 = arith.constant 0 : i32
    %c0_i32_0 = arith.constant 0 : i32
    return %c0_i32, %arg0 : i32, i32
  }
}

module attributes {stable_mosaic.version = 11 : i64} {
  func.func @_bn_add_relu_kernel(%arg0: i32, %arg1: memref<512x16xbf16, #tpu.memory_space<vmem>>, %arg2: memref<1x16xf32, #tpu.memory_space<vmem>>, %arg3: memref<1x16xf32, #tpu.memory_space<vmem>>, %arg4: memref<512x16xbf16, #tpu.memory_space<vmem>>, %arg5: memref<512x16xf32, #tpu.memory_space<vmem>>) attributes {dimension_semantics = [#tpu.dimension_semantics<parallel>], iteration_bounds = array<i64: 1>, scalar_prefetch = 0 : i64, scratch_operands = 0 : i64, tpu.core_type = #tpu.core_type<tc>, window_params = [{transform_indices = @transform_0, window_bounds = array<i64: 512, 16>}, {pipeline_mode = #tpu.pipeline_mode<synchronous>, transform_indices = @transform_1, window_bounds = array<i64: 1, 16>}, {pipeline_mode = #tpu.pipeline_mode<synchronous>, transform_indices = @transform_2, window_bounds = array<i64: 1, 16>}, {transform_indices = @transform_3, window_bounds = array<i64: 512, 16>}, {transform_indices = @transform_4, window_bounds = array<i64: 512, 16>}]} {
    %c0 = arith.constant 0 : index
    %c0_0 = arith.constant 0 : index
    %0 = vector.load %arg1[%c0, %c0_0] : memref<512x16xbf16, #tpu.memory_space<vmem>>, vector<512x16xbf16>
    %1 = arith.extf %0 : vector<512x16xbf16> to vector<512x16xf32>
    %c0_1 = arith.constant 0 : index
    %c0_2 = arith.constant 0 : index
    %2 = vector.load %arg2[%c0_1, %c0_2] : memref<1x16xf32, #tpu.memory_space<vmem>>, vector<1x16xf32>
    %3 = vector.broadcast %2 : vector<1x16xf32> to vector<512x16xf32>
    %4 = arith.mulf %1, %3 : vector<512x16xf32>
    %c0_3 = arith.constant 0 : index
    %c0_4 = arith.constant 0 : index
    %5 = vector.load %arg3[%c0_3, %c0_4] : memref<1x16xf32, #tpu.memory_space<vmem>>, vector<1x16xf32>
    %6 = vector.broadcast %5 : vector<1x16xf32> to vector<512x16xf32>
    %7 = arith.addf %4, %6 : vector<512x16xf32>
    %c0_5 = arith.constant 0 : index
    %c0_6 = arith.constant 0 : index
    %8 = vector.load %arg4[%c0_5, %c0_6] : memref<512x16xbf16, #tpu.memory_space<vmem>>, vector<512x16xbf16>
    %9 = arith.extf %8 : vector<512x16xbf16> to vector<512x16xf32>
    %10 = arith.addf %7, %9 : vector<512x16xf32>
    %cst = arith.constant 0.000000e+00 : f32
    %11 = vector.broadcast %cst : f32 to vector<512x16xf32>
    %12 = arith.maximumf %10, %11 : vector<512x16xf32>
    %c0_7 = arith.constant 0 : index
    %c0_8 = arith.constant 0 : index
    %13 = vector.load %arg5[%c0_7, %c0_8] : memref<512x16xf32, #tpu.memory_space<vmem>>, vector<512x16xf32>
    tpu.vector_store %arg5[%c0_7, %c0_8], %12 {strides = array<i32>} : memref<512x16xf32, #tpu.memory_space<vmem>>, vector<512x16xf32>,
    return
  }
  func.func @transform_0(%arg0: i32) -> (i32, i32) {
    %c0_i32 = arith.constant 0 : i32
    %c0_i32_0 = arith.constant 0 : i32
    return %arg0, %c0_i32 : i32, i32
  }
  func.func @transform_1(%arg0: i32) -> (i32, i32) {
    %c0_i32 = arith.constant 0 : i32
    %c0_i32_0 = arith.constant 0 : i32
    %c0_i32_1 = arith.constant 0 : i32
    return %c0_i32, %c0_i32_0 : i32, i32
  }
  func.func @transform_2(%arg0: i32) -> (i32, i32) {
    %c0_i32 = arith.constant 0 : i32
    %c0_i32_0 = arith.constant 0 : i32
    %c0_i32_1 = arith.constant 0 : i32
    return %c0_i32, %c0_i32_0 : i32, i32
  }
  func.func @transform_3(%arg0: i32) -> (i32, i32) {
    %c0_i32 = arith.constant 0 : i32
    %c0_i32_0 = arith.constant 0 : i32
    return %arg0, %c0_i32 : i32, i32
  }
  func.func @transform_4(%arg0: i32) -> (i32, i32) {
    %c0_i32 = arith.constant 0 : i32
    %c0_i32_0 = arith.constant 0 : i32
    return %arg0, %c0_i32 : i32, i32
  }
}

</mosaic_0001>

<bundles_post_ra>
// kernel: bottleneck_forward.4
= control target key start
LH: loop header
LB: loop body
LE: loop exit
PB: predicated region body
PF: predicated region fallthrough
CT: control target
= control target key end

     0   :  { %s939_s15 = smov 0   ;;  %s941_s16 = smov 0   ;;  %s1109_s0 = inlined_call_operand.vmem [shape: bf16[512,16], index: 0, kind: input, shape index: {}]   ;;  %s1110_s1 = inlined_call_operand.vmem [shape: bf16[16,4], index: 1, kind: input, shape index: {}]   ;;  %s1111_s2 = inlined_call_operand.vmem [shape: bf16[512,4], index: 2, kind: output, shape index: {0}]   ;;  %s1112_s3 = inlined_call_operand.vmem [shape: f32[1,4], index: 3, kind: output, shape index: {1}]   ;;  %s1113_s4 = inlined_call_operand.vmem [shape: f32[1,4], index: 4, kind: output, shape index: {2}]  }
   0x1   :  { %s943_s17 = smov 0  }
   0x2 LB: > { %s24_s18 = sadd.s32 1, %s907_s16  ;;  %p767_p0 = scmp.ge.s32.totalorder %s911_s17, 1  ;;  %s911_s17 = sphi %s943_s17, %s15_s17   ;;  %s907_s16 = sphi %s941_s16, %s1115_s16   ;;  %s903_s15 = sphi %s939_s15, %s1114_s15  }
   0x3   : > { %p25_p1 = scmp.ge.s32.totalorder %s24_s18, 4  ;;  %p191_p2 = scmp.lt.s32.totalorder %s911_s17, 5 }
   0x5   : > { %s1117_s18 = smov (%p25_p1, %s24_s18), 0  ;;  %p192_p3 = pnand %p767_p0, %p191_p2 }
   0x6   : > { %s768_s19 = sshll.u32 (!%p192_p3), %s903_s15, 4  ;;  %p772_p5 = scmp.ne.s32.totalorder (!%p192_p3), %s903_s15, 0 }
   0x7   : > { %195 = sbr.rel (%p192_p3) target bundleno = 289 (0x121), region = 28  ;;  %p231_p4 = scmp.lt.s32.totalorder (!%p192_p3), %s768_s19, 63 }
   0xe   : > { %s1119_s19 = smov (!%p231_p4, %s768_s19), 63  ;;  %259 = sbr.rel (%p772_p5) target bundleno = 21 (0x15), region = 32 }
   0xf   : > { %s769_s20 = sshll.u32 %s1119_s19, 2  ;;  %vm260_vm0 = vcmask (!%p772_p5), 24576   ;;  %v913_v0 = vmov (!%p772_p5), 0.0  }
  0x10   : > { %s234_s23 = scalar_lea.vmem %s1109_s0, %s769_s20  ;;  %s963_s26 = scalar_lea.vmem %s1111_s2, %s769_s20  ;;  %261 = vst.msk [vmem:[%s1112_s3] sm:$0x1] (!%p772_p5), %vm260_vm0, %v913_v0  ;;  %262 = vst.msk [vmem:[%s1113_s4] sm:$0x1] (!%p772_p5), %vm260_vm0, %v913_v0 }
  0x15 PF: > { %v880_v1 = vld [vmem:[%s1110_s1] sm:$0xff]   ;;  %vm327_vm1 = vcmask 130048   ;;  %v882_v3 = vld [vmem:[%s234_s23 + $0x8] sm:$0xff]   ;;  %v883_v4 = vld [vmem:[%s234_s23 + $0x10] sm:$0xff]   ;;  %vm513_vm2 = vcmask 27648   ;;  %vm531_vm3 = vcmask 31744  }
  0x16   : > { %v881_v2 = vld [vmem:[%s234_s23] sm:$0xff]   ;;  %835 = vmatprep.subr.bf16.mxu0 %v880_v1  ;;  %853 = vmatprep.subr.bf16.mxu1 %v880_v1  ;;  %v886_v6 = vld [vmem:[%s234_s23 + $0x28] sm:$0xff]   ;;  %v887_v7 = vld [vmem:[%s234_s23 + $0x30] sm:$0xff]   ;;  %vm570_vm4 = vcmask 24576  }
  0x17   : > { %836 = vmatpush3.bf16.msra.mxu0 %v880_v1  ;;  %837 = vmatprep.mubr.msk.bf16.mxu0 %vm327_vm1, %v881_v2  ;;  %v885_v5 = vld [vmem:[%s234_s23 + $0x20] sm:$0xff]   ;;  %v884_v8 = vld [vmem:[%s234_s23 + $0x18] sm:$0xff]  }
  0x18   : > { %854 = vmatpush3.bf16.msra.mxu1 %v880_v1  ;;  %845 = vmatprep.mubr.msk.bf16.mxu1 %vm327_vm1, %v885_v5  ;;  %v888_v9 = vld [vmem:[%s234_s23 + $0x38] sm:$0xff]  }
  0x1a   : > { %838 = vmatmul.mubr.msk.bf16.vlgmr.msra.gmra.mrb[0].mxu0 %vm327_vm1, %v882_v3 }
  0x1b   : > { %841 = vmatprep.mubr.msk.bf16.mxu0 %vm327_vm1, %v883_v4  ;;  %846 = vmatmul.mubr.msk.bf16.vlgmr.msra.gmra.mrb[0].mxu1 %vm327_vm1, %v886_v6 }
  0x1c   : > { %849 = vmatprep.mubr.msk.bf16.mxu1 %vm327_vm1, %v887_v7 }
  0x22   : > { %842 = vmatmul.mubr.msk.bf16.gmra.mrb[4].mxu0 %vm327_vm1, %v884_v8 }
  0x23   : > { %850 = vmatmul.mubr.msk.bf16.gmra.mrb[4].mxu1 %vm327_vm1, %v888_v9 }
  0xed   : > { %v839_v10 = vpop.f32.mrb[0].mxu0 }
  0xee   : > { %v812_v11 = vpack.c.bf16 %v839_v10, %v839_v10  ;;  %v386_v12 = vpop.f32.mrb[1].mxu0  ;;  %v982_v16 = vpop.f32.mrb[0].mxu1  ;;  %v575_v17 = vmul.f32 %v839_v10, %v839_v10  ;;  %v535_v30 = vsel %vm531_vm3, %v839_v10, 0.0 }
  0xef   : > { %v810_v13 = vpack.c.bf16 %v386_v12, %v386_v12  ;;  %v573_v14 = vmul.f32 %v386_v12, %v386_v12  ;;  %v840_v15 = vpop.f32.mrb[2].mxu0  ;;  %v986_v20 = vpop.f32.mrb[1].mxu1  ;;  %v532_v21 = vsel %vm531_vm3, %v386_v12, 0.0  ;;  %v820_v28 = vpack.c.bf16 %v982_v16, %v982_v16 }
  0xf0   : > { %516 = vst.msk [vmem:[%s963_s26 + $0x8] sm:$0xf] %vm513_vm2, %v812_v11  ;;  %v813_v18 = vpack.c.bf16 %v840_v15, %v840_v15  ;;  %v389_v19 = vpop.f32.mrb[3].mxu0  ;;  %v992_v25 = vpop.f32.mrb[2].mxu1  ;;  %v576_v26 = vmul.f32 %v840_v15, %v840_v15  ;;  %v818_v33 = vpack.c.bf16 %v986_v20, %v986_v20  ;;  %v592_v37 = vsel %vm531_vm3, %v575_v17, 0.0 }
  0xf1   : > { %514 = vst.msk [vmem:[%s963_s26] sm:$0xf] %vm513_vm2, %v810_v13  ;;  %v811_v22 = vpack.c.bf16 %v389_v19, %v389_v19  ;;  %v533_v23 = vsel %vm531_vm3, %v389_v19, 0.0  ;;  %v574_v24 = vmul.f32 %v389_v19, %v389_v19  ;;  %v998_v29 = vpop.f32.mrb[3].mxu1  ;;  %v589_v31 = vsel %vm531_vm3, %v573_v14, 0.0 }
  0xf2   : > { %517 = vst.msk [vmem:[%s963_s26 + $0xc] sm:$0xf] %vm513_vm2, %v813_v18  ;;  %v534_v27 = vadd.f32 %v533_v23, %v532_v21  ;;  %524 = vst.msk [vmem:[%s963_s26 + $0x28] sm:$0xf] %vm513_vm2, %v820_v28  ;;  %v821_v36 = vpack.c.bf16 %v992_v25, %v992_v25  ;;  %v819_v39 = vpack.c.bf16 %v998_v29, %v998_v29  ;;  %v537_v40 = vsel %vm531_vm3, %v840_v15, 0.0 }
  0xf3   : > { %515 = vst.msk [vmem:[%s963_s26 + $0x4] sm:$0xf] %vm513_vm2, %v811_v22  ;;  %v590_v32 = vsel %vm531_vm3, %v574_v24, 0.0  ;;  %522 = vst.msk [vmem:[%s963_s26 + $0x20] sm:$0xf] %vm513_vm2, %v818_v33  ;;  %v594_v41 = vsel %vm531_vm3, %v576_v26, 0.0  ;;  %v581_v1 = vmul.f32 %v986_v20, %v986_v20  ;;  %v582_v18 = vmul.f32 %v998_v29, %v998_v29 }
  0xf4   : > { %v536_v34 = vadd.f32 %v535_v30, %v534_v27  ;;  %v591_v35 = vadd.f32 %v590_v32, %v589_v31  ;;  %525 = vst.msk [vmem:[%s963_s26 + $0x2c] sm:$0xf] %vm513_vm2, %v821_v36  ;;  %523 = vst.msk [vmem:[%s963_s26 + $0x24] sm:$0xf] %vm513_vm2, %v819_v39  ;;  %v547_v11 = vsel %vm531_vm3, %v986_v20, 0.0  ;;  %v583_v22 = vmul.f32 %v982_v16, %v982_v16 }
  0xf5   : > { %v843_v38 = vpop.f32.mrb[4].mxu0  ;;  %v604_v17 = vsel %vm531_vm3, %v581_v1, 0.0  ;;  %v549_v23 = vsel %vm531_vm3, %v998_v29, 0.0  ;;  %v551_v27 = vsel %vm531_vm3, %v982_v16, 0.0  ;;  %v584_v28 = vmul.f32 %v992_v25, %v992_v25 }
  0xf6   : > { %v593_v42 = vadd.f32 %v592_v37, %v591_v35  ;;  %v816_v43 = vpack.c.bf16 %v843_v38, %v843_v38  ;;  %v402_v44 = vpop.f32.mrb[5].mxu0  ;;  %v538_v46 = vadd.f32 %v537_v40, %v536_v34  ;;  %v1023_v50 = vpop.f32.mrb[4].mxu1  ;;  %v579_v59 = vmul.f32 %v843_v38, %v843_v38 }
  0xf7   : > { %v814_v45 = vpack.c.bf16 %v402_v44, %v402_v44  ;;  %v539_v47 = vsel %vm531_vm3, %v402_v44, 0.0  ;;  %v577_v48 = vmul.f32 %v402_v44, %v402_v44  ;;  %v844_v49 = vpop.f32.mrb[6].mxu0  ;;  %v434_v54 = vpop.f32.mrb[5].mxu1  ;;  %v543_v2 = vsel %vm531_vm3, %v843_v38, 0.0 }
  0xf8   : > { %520 = vst.msk [vmem:[%s963_s26 + $0x18] sm:$0xf] %vm513_vm2, %v816_v43  ;;  %v595_v51 = vadd.f32 %v594_v41, %v593_v42  ;;  %v817_v52 = vpack.c.bf16 %v844_v49, %v844_v49  ;;  %v405_v53 = vpop.f32.mrb[7].mxu0  ;;  %v540_v55 = vadd.f32 %v539_v47, %v538_v46  ;;  %v1030_v58 = vpop.f32.mrb[6].mxu1  ;;  %v580_v3 = vmul.f32 %v844_v49, %v844_v49 }
  0xf9   : > { %518 = vst.msk [vmem:[%s963_s26 + $0x10] sm:$0xf] %vm513_vm2, %v814_v45  ;;  %v596_v56 = vsel %vm531_vm3, %v577_v48, 0.0  ;;  %v815_v57 = vpack.c.bf16 %v405_v53, %v405_v53  ;;  %v541_v61 = vsel %vm531_vm3, %v405_v53, 0.0  ;;  %v578_v62 = vmul.f32 %v405_v53, %v405_v53  ;;  %v437_v63 = vpop.f32.mrb[7].mxu1 }
  0xfa   : > { %v597_v60 = vadd.f32 %v596_v56, %v595_v51  ;;  %521 = vst.msk [vmem:[%s963_s26 + $0x1c] sm:$0xf] %vm513_vm2, %v817_v52  ;;  %v542_v0 = vadd.f32 %v541_v61, %v540_v55  ;;  %v824_v5 = vpack.c.bf16 %v1023_v50, %v1023_v50  ;;  %v822_v8 = vpack.c.bf16 %v434_v54, %v434_v54 }
  0xfb   : > { %519 = vst.msk [vmem:[%s963_s26 + $0x14] sm:$0xf] %vm513_vm2, %v815_v57  ;;  %v598_v4 = vsel %vm531_vm3, %v578_v62, 0.0  ;;  %v600_v9 = vsel %vm531_vm3, %v579_v59, 0.0  ;;  %v545_v10 = vsel %vm531_vm3, %v844_v49, 0.0  ;;  %v825_v12 = vpack.c.bf16 %v1030_v58, %v1030_v58 }
  0xfc   : > { %v544_v6 = vadd.f32 %v543_v2, %v542_v0  ;;  %v599_v7 = vadd.f32 %v598_v4, %v597_v60  ;;  %528 = vst.msk [vmem:[%s963_s26 + $0x38] sm:$0xf] %vm513_vm2, %v824_v5  ;;  %526 = vst.msk [vmem:[%s963_s26 + $0x30] sm:$0xf] %vm513_vm2, %v822_v8  ;;  %v602_v15 = vsel %vm531_vm3, %v580_v3, 0.0  ;;  %v823_v19 = vpack.c.bf16 %v437_v63, %v437_v63 }
  0xfd   : > { %529 = vst.msk [vmem:[%s963_s26 + $0x3c] sm:$0xf] %vm513_vm2, %v825_v12  ;;  %v606_v30 = vsel %vm531_vm3, %v582_v18, 0.0  ;;  %v585_v31 = vmul.f32 %v434_v54, %v434_v54  ;;  %v608_v34 = vsel %vm531_vm3, %v583_v22, 0.0  ;;  %v553_v29 = vsel %vm531_vm3, %v992_v25, 0.0 }
  0xfe   : > { %v601_v13 = vadd.f32 %v600_v9, %v599_v7  ;;  %v546_v14 = vadd.f32 %v545_v10, %v544_v6  ;;  %527 = vst.msk [vmem:[%s963_s26 + $0x34] sm:$0xf] %vm513_vm2, %v823_v19  ;;  %v555_v35 = vsel %vm531_vm3, %v434_v54, 0.0  ;;  %v610_v38 = vsel %vm531_vm3, %v584_v28, 0.0  ;;  %v530_v2 = vld [vmem:[%s1112_s3] sm:$0x1] }
  0xff   : > { %v612_v16 = vsel %vm531_vm3, %v585_v31, 0.0  ;;  %v586_v39 = vmul.f32 %v437_v63, %v437_v63  ;;  %v587_v42 = vmul.f32 %v1023_v50, %v1023_v50  ;;  %v557_v43 = vsel %vm531_vm3, %v437_v63, 0.0  ;;  %v572_v4 = vld [vmem:[%s1113_s4] sm:$0x1] }
 0x100   : > { %v548_v20 = vadd.f32 %v547_v11, %v546_v14  ;;  %v603_v21 = vadd.f32 %v602_v15, %v601_v13  ;;  %v559_v25 = vsel %vm531_vm3, %v1023_v50, 0.0  ;;  %v588_v46 = vmul.f32 %v1030_v58, %v1030_v58 }
 0x101   : > { %v614_v47 = vsel %vm531_vm3, %v586_v39, 0.0  ;;  %v616_v51 = vsel %vm531_vm3, %v587_v42, 0.0  ;;  %v561_v52 = vsel %vm531_vm3, %v1030_v58, 0.0 }
 0x102   : > { %v605_v24 = vadd.f32 %v604_v17, %v603_v21  ;;  %v550_v26 = vadd.f32 %v549_v23, %v548_v20  ;;  %v618_v55 = vsel %vm531_vm3, %v588_v46, 0.0 }
 0x104   : > { %v552_v32 = vadd.f32 %v551_v27, %v550_v26  ;;  %v607_v33 = vadd.f32 %v606_v30, %v605_v24 }
 0x106   : > { %v609_v36 = vadd.f32 %v608_v34, %v607_v33  ;;  %v554_v37 = vadd.f32 %v553_v29, %v552_v32 }
 0x108   : > { %v556_v40 = vadd.f32 %v555_v35, %v554_v37  ;;  %v611_v41 = vadd.f32 %v610_v38, %v609_v36 }
 0x10a   : > { %v613_v44 = vadd.f32 %v612_v16, %v611_v41  ;;  %v558_v45 = vadd.f32 %v557_v43, %v556_v40 }
 0x10c   : > { %v560_v48 = vadd.f32 %v559_v25, %v558_v45  ;;  %v615_v49 = vadd.f32 %v614_v47, %v613_v44 }
 0x10e   : > { %v562_v53 = vadd.f32 %v561_v52, %v560_v48  ;;  %v617_v54 = vadd.f32 %v616_v51, %v615_v49 }
 0x110   : > { %v563_v56 = vrot.slane %v562_v53, 4  ;;  %v619_v57 = vadd.f32 %v618_v55, %v617_v54 }
 0x112   : > { %v564_v59 = vadd.f32 %v563_v56, %v562_v53  ;;  %v620_v50 = vrot.slane %v619_v57, 4 }
 0x114   : > { %v565_v60 = vrot.slane %v564_v59, 2  ;;  %v621_v61 = vadd.f32 %v620_v50, %v619_v57 }
 0x116   : > { %v566_v62 = vadd.f32 %v565_v60, %v564_v59  ;;  %v622_v63 = vrot.slane %v621_v61, 2 }
 0x118   : > { %v567_v0 = vrot.slane %v566_v62, 1  ;;  %v623_v1 = vadd.f32 %v622_v63, %v621_v61 }
 0x11a   : > { %v568_v3 = vadd.f32 %v567_v0, %v566_v62  ;;  %v624_v58 = vrot.slane %v623_v1, 1 }
 0x11c   : > { %v569_v5 = vadd.f32 %v568_v3, %v530_v2  ;;  %v625_v6 = vadd.f32 %v624_v58, %v623_v1 }
 0x11e   : > { %571 = vst.msk [vmem:[%s1112_s3] sm:$0x1] %vm570_vm4, %v569_v5  ;;  %v626_v7 = vadd.f32 %v625_v6, %v572_v4 }
 0x120   : > { %627 = vst.msk [vmem:[%s1113_s4] sm:$0x1] %vm570_vm4, %v626_v7 }
 0x121 PF: > { %s15_s17 = sadd.s32 1, %s911_s17   ;;  %s1114_s15 = smov %s907_s16 }
 0x122   : > { %p12_p6 = scmp.ge.s32.totalorder %s15_s17, 6   ;;  %s1115_s16 = smov %s1117_s18 }
 0x124   :  { %14 = sbr.rel (!%p12_p6) target bundleno = 2 (0x2), region = 89 }

// kernel: bottleneck_forward.6
= control target key start
LH: loop header
LB: loop body
LE: loop exit
PB: predicated region body
PF: predicated region fallthrough
CT: control target
= control target key end

     0   :  { %s1071_s21 = smov 0   ;;  %s1073_s22 = smov 0   ;;  %s1251_s0 = inlined_call_operand.vmem [shape: bf16[512,4], index: 0, kind: input, shape index: {}]   ;;  %s1252_s1 = inlined_call_operand.vmem [shape: f32[1,4], index: 1, kind: input, shape index: {}]   ;;  %s1253_s2 = inlined_call_operand.vmem [shape: f32[1,4], index: 2, kind: input, shape index: {}]   ;;  %s1254_s3 = inlined_call_operand.vmem [shape: bf16[4,16], index: 3, kind: input, shape index: {}]   ;;  %s1255_s4 = inlined_call_operand.vmem [shape: bf16[512,16], index: 4, kind: output, shape index: {0}]   ;;  %s1256_s5 = inlined_call_operand.vmem [shape: f32[1,16], index: 5, kind: output, shape index: {1}]   ;;  %s1257_s6 = inlined_call_operand.vmem [shape: f32[1,16], index: 6, kind: output, shape index: {2}]  }
   0x1   :  { %s1075_s23 = smov 0  }
   0x2 LB: > { %s26_s24 = sadd.s32 1, %s1029_s22  ;;  %p864_p0 = scmp.ge.s32.totalorder %s1033_s23, 1  ;;  %s1033_s23 = sphi %s1075_s23, %s17_s23   ;;  %s1029_s22 = sphi %s1073_s22, %s1259_s22   ;;  %s1025_s21 = sphi %s1071_s21, %s1258_s21  }
   0x3   : > { %p27_p1 = scmp.ge.s32.totalorder %s26_s24, 4  ;;  %p241_p2 = scmp.lt.s32.totalorder %s1033_s23, 5 }
   0x5   : > { %s1261_s24 = smov (%p27_p1, %s26_s24), 0  ;;  %p242_p3 = pnand %p864_p0, %p241_p2 }
   0x6   : > { %s865_s25 = sshll.u32 (!%p242_p3), %s1025_s21, 4  ;;  %p869_p5 = scmp.ne.s32.totalorder (!%p242_p3), %s1025_s21, 0 }
   0x7   : > { %245 = sbr.rel (%p242_p3) target bundleno = 297 (0x129), region = 36  ;;  %p285_p4 = scmp.lt.s32.totalorder (!%p242_p3), %s865_s25, 63 }
   0xe   : > { %s1263_s25 = smov (!%p285_p4, %s865_s25), 63  ;;  %313 = sbr.rel (%p869_p5) target bundleno = 21 (0x15), region = 40 }
   0xf   : > { %s866_s26 = sshll.u32 %s1263_s25, 2  ;;  %vm314_vm0 = vcmask (!%p869_p5), 122880   ;;  %v1035_v0 = vmov (!%p869_p5), 0.0  }
  0x10   : > { %s1092_s29 = scalar_lea.vmem %s1251_s0, %s866_s26  ;;  %s1097_s8 = scalar_lea.vmem %s1255_s4, %s866_s26  ;;  %315 = vst.msk [vmem:[%s1256_s5] sm:$0x1] (!%p869_p5), %vm314_vm0, %v1035_v0  ;;  %316 = vst.msk [vmem:[%s1257_s6] sm:$0x1] (!%p869_p5), %vm314_vm0, %v1035_v0 }
  0x15 PF: > { %v419_v1 = vld [vmem:[%s1254_s3] sm:$0x3]  ;;  %vm445_vm1 = vcmask 1041408   ;;  %vm420_vm2 = vcmask 31744   ;;  %v948_v7 = vld [vmem:[%s1092_s29 + $0x8] sm:$0xff]   ;;  %v949_v8 = vld [vmem:[%s1092_s29 + $0x10] sm:$0xff]  }
  0x16   : > { %v917_v2 = vld [vmem:[%s1092_s29] sm:$0xff]   ;;  %984 = vmatprep.subr.msk.bf16.mxu0 %vm445_vm1, %v419_v1  ;;  %v447_v4 = vsel %vm445_vm1, %v419_v1, 0  ;;  %985 = vmatprep.subr.msk.bf16.mxu1 %vm445_vm1, %v419_v1  ;;  %v922_v10 = vunpack.c.l.bf16 %v948_v7  ;;  %v923_v11 = vunpack.c.h.bf16 %v948_v7  ;;  %v926_v12 = vunpack.c.l.bf16 %v949_v8  ;;  %v950_v14 = vld [vmem:[%s1092_s29 + $0x18] sm:$0xff]   ;;  %v952_v36 = vld [vmem:[%s1092_s29 + $0x28] sm:$0xff]  }
  0x17   : > { %v1112_v3 = vld [vmem:[%s1252_s1] ss:$0 sm:$0xff]  ;;  %v918_v5 = vunpack.c.l.bf16 %v917_v2  ;;  %v919_v6 = vunpack.c.h.bf16 %v917_v2  ;;  %965 = vmatpush3.bf16.msra.mxu0 %v447_v4  ;;  %v927_v13 = vunpack.c.h.bf16 %v949_v8  ;;  %983 = vmatpush3.bf16.msra.mxu1 %v447_v4  ;;  %v930_v17 = vunpack.c.l.bf16 %v950_v14  ;;  %v953_v41 = vld [vmem:[%s1092_s29 + $0x30] sm:$0xff]   ;;  %v954_v45 = vld [vmem:[%s1092_s29 + $0x38] sm:$0xff]  }
  0x18   : > { %v1119_v9 = vld [vmem:[%s1253_s2] ss:$0 sm:$0xff]  ;;  %v931_v18 = vunpack.c.h.bf16 %v950_v14  ;;  %v358_v19 = vmul.f32 %v922_v10, %v1112_v3  ;;  %v359_v20 = vmul.f32 %v923_v11, %v1112_v3  ;;  %v360_v21 = vmul.f32 %v926_v12, %v1112_v3 }
  0x19   : > { %v356_v15 = vmul.f32 %v918_v5, %v1112_v3  ;;  %v357_v16 = vmul.f32 %v919_v6, %v1112_v3  ;;  %v361_v22 = vmul.f32 %v927_v13, %v1112_v3  ;;  %v362_v25 = vmul.f32 %v930_v17, %v1112_v3  ;;  %v951_v31 = vld [vmem:[%s1092_s29 + $0x20] sm:$0xff]  }
  0x1a   : > { %v363_v26 = vmul.f32 %v931_v18, %v1112_v3  ;;  %v381_v27 = vadd.f32 %v1119_v9, %v358_v19  ;;  %v382_v28 = vadd.f32 %v1119_v9, %v359_v20  ;;  %v383_v29 = vadd.f32 %v1119_v9, %v360_v21 }
  0x1b   : > { %v379_v23 = vadd.f32 %v1119_v9, %v356_v15  ;;  %v380_v24 = vadd.f32 %v1119_v9, %v357_v16  ;;  %v384_v30 = vadd.f32 %v1119_v9, %v361_v22  ;;  %v385_v34 = vadd.f32 %v1119_v9, %v362_v25 }
  0x1c   : > { %v386_v35 = vadd.f32 %v1119_v9, %v363_v26  ;;  %v397_v37 = vmax.f32 %v381_v27, 0.0  ;;  %v398_v38 = vmax.f32 %v382_v28, 0.0  ;;  %v399_v39 = vmax.f32 %v383_v29, 0.0 }
  0x1d   : > { %v395_v32 = vmax.f32 %v379_v23, 0.0  ;;  %v396_v33 = vmax.f32 %v380_v24, 0.0  ;;  %v400_v40 = vmax.f32 %v384_v30, 0.0  ;;  %v401_v43 = vmax.f32 %v385_v34, 0.0 }
  0x1e   : > { %v934_v44 = vunpack.c.l.bf16 %v951_v31  ;;  %v412_v46 = vpack.c.bf16 %v398_v38, %v397_v37  ;;  %v935_v48 = vunpack.c.h.bf16 %v951_v31  ;;  %v938_v49 = vunpack.c.l.bf16 %v952_v36 }
  0x1f   : > { %v411_v42 = vpack.c.bf16 %v396_v33, %v395_v32  ;;  %v413_v47 = vpack.c.bf16 %v400_v40, %v399_v39  ;;  %v402_v50 = vmax.f32 %v386_v35, 0.0  ;;  %v939_v52 = vunpack.c.h.bf16 %v952_v36 }
  0x20   : > { %v364_v51 = vmul.f32 %v934_v44, %v1112_v3  ;;  %v942_v53 = vunpack.c.l.bf16 %v953_v41  ;;  %v365_v54 = vmul.f32 %v935_v48, %v1112_v3  ;;  %v366_v55 = vmul.f32 %v938_v49, %v1112_v3 }
  0x21   : > { %966 = vmatprep.mubr.msk.bf16.mxu0 %vm420_vm2, %v411_v42  ;;  %v943_v56 = vunpack.c.h.bf16 %v953_v41  ;;  %v946_v57 = vunpack.c.l.bf16 %v954_v45  ;;  %v367_v59 = vmul.f32 %v939_v52, %v1112_v3  ;;  %v947_v61 = vunpack.c.h.bf16 %v954_v45 }
  0x22   : > { %967 = vmatmul.mubr.msk.bf16.vlgmr.msra.gmra.mrb[0].mxu0 %vm420_vm2, %v412_v46  ;;  %v387_v58 = vadd.f32 %v1119_v9, %v364_v51  ;;  %v368_v60 = vmul.f32 %v942_v53, %v1112_v3  ;;  %v388_v62 = vadd.f32 %v1119_v9, %v365_v54  ;;  %v389_v63 = vadd.f32 %v1119_v9, %v366_v55 }
  0x23   : > { %970 = vmatprep.mubr.msk.bf16.mxu0 %vm420_vm2, %v413_v47  ;;  %v369_v0 = vmul.f32 %v943_v56, %v1112_v3  ;;  %v370_v1 = vmul.f32 %v946_v57, %v1112_v3  ;;  %v390_v4 = vadd.f32 %v1119_v9, %v367_v59  ;;  %v371_v6 = vmul.f32 %v947_v61, %v1112_v3 }
  0x24   : > { %v403_v2 = vmax.f32 %v387_v58, 0.0  ;;  %v391_v5 = vadd.f32 %v1119_v9, %v368_v60  ;;  %v414_v7 = vpack.c.bf16 %v402_v50, %v401_v43  ;;  %v404_v8 = vmax.f32 %v388_v62, 0.0 }
  0x25   : > { %v405_v10 = vmax.f32 %v389_v63, 0.0  ;;  %v392_v11 = vadd.f32 %v1119_v9, %v369_v0  ;;  %v406_v12 = vmax.f32 %v390_v4, 0.0  ;;  %v393_v14 = vadd.f32 %v1119_v9, %v370_v1 }
  0x26   : > { %v407_v13 = vmax.f32 %v391_v5, 0.0  ;;  %v394_v15 = vadd.f32 %v1119_v9, %v371_v6  ;;  %v415_v16 = vpack.c.bf16 %v404_v8, %v403_v2  ;;  %vm610_vm3 = vcmask 125952  }
  0x27   : > { %v408_v17 = vmax.f32 %v392_v11, 0.0  ;;  %v416_v18 = vpack.c.bf16 %v406_v12, %v405_v10  ;;  %v409_v19 = vmax.f32 %v393_v14, 0.0  ;;  %vm628_vm4 = vcmask 130048  }
  0x28   : > { %974 = vmatprep.mubr.msk.bf16.mxu1 %vm420_vm2, %v415_v16  ;;  %v410_v20 = vmax.f32 %v394_v15, 0.0  ;;  %vm667_vm5 = vcmask 122880  }
  0x29   : > { %v417_v3 = vpack.c.bf16 %v408_v17, %v407_v13  ;;  %975 = vmatmul.mubr.msk.bf16.vlgmr.msra.gmra.mrb[0].mxu1 %vm420_vm2, %v416_v18 }
  0x2a   : > { %971 = vmatmul.mubr.msk.bf16.gmra.mrb[4].mxu0 %vm420_vm2, %v414_v7  ;;  %v418_v21 = vpack.c.bf16 %v410_v20, %v409_v19 }
  0x2b   : > { %978 = vmatprep.mubr.msk.bf16.mxu1 %vm420_vm2, %v417_v3 }
  0x31   : > { %979 = vmatmul.mubr.msk.bf16.gmra.mrb[4].mxu1 %vm420_vm2, %v418_v21 }
  0xf5   : > { %v968_v9 = vpop.f32.mrb[0].mxu0 }
  0xf6   : > { %v902_v22 = vpack.c.bf16 %v968_v9, %v968_v9  ;;  %v483_v23 = vpop.f32.mrb[1].mxu0  ;;  %v672_v27 = vmul.f32 %v968_v9, %v968_v9  ;;  %v632_v36 = vsel %vm628_vm4, %v968_v9, 0.0 }
  0xf7   : > { %v900_v24 = vpack.c.bf16 %v483_v23, %v483_v23  ;;  %v670_v25 = vmul.f32 %v483_v23, %v483_v23  ;;  %v969_v26 = vpop.f32.mrb[2].mxu0  ;;  %v629_v30 = vsel %vm628_vm4, %v483_v23, 0.0 }
  0xf8   : > { %613 = vst.msk [vmem:[%s1097_s8 + $0x8] sm:$0xf] %vm610_vm3, %v902_v22  ;;  %v903_v28 = vpack.c.bf16 %v969_v26, %v969_v26  ;;  %v486_v29 = vpop.f32.mrb[3].mxu0  ;;  %v673_v34 = vmul.f32 %v969_v26, %v969_v26  ;;  %v689_v41 = vsel %vm628_vm4, %v672_v27, 0.0  ;;  %v634_v43 = vsel %vm628_vm4, %v969_v26, 0.0 }
  0xf9   : > { %611 = vst.msk [vmem:[%s1097_s8] sm:$0xf] %vm610_vm3, %v900_v24  ;;  %v901_v31 = vpack.c.bf16 %v486_v29, %v486_v29  ;;  %v630_v32 = vsel %vm628_vm4, %v486_v29, 0.0  ;;  %v671_v33 = vmul.f32 %v486_v29, %v486_v29  ;;  %v686_v37 = vsel %vm628_vm4, %v670_v25, 0.0 }
  0xfa   : > { %614 = vst.msk [vmem:[%s1097_s8 + $0xc] sm:$0xf] %vm610_vm3, %v903_v28  ;;  %v631_v35 = vadd.f32 %v630_v32, %v629_v30  ;;  %v691_v44 = vsel %vm628_vm4, %v673_v34, 0.0 }
  0xfb   : > { %612 = vst.msk [vmem:[%s1097_s8 + $0x4] sm:$0xf] %vm610_vm3, %v901_v31  ;;  %v687_v38 = vsel %vm628_vm4, %v671_v33, 0.0 }
  0xfc   : > { %v633_v39 = vadd.f32 %v632_v36, %v631_v35  ;;  %v688_v40 = vadd.f32 %v687_v38, %v686_v37  ;;  %v976_v48 = vpop.f32.mrb[0].mxu1 }
  0xfd   : > { %v972_v42 = vpop.f32.mrb[4].mxu0  ;;  %v515_v54 = vpop.f32.mrb[1].mxu1  ;;  %v910_v4 = vpack.c.bf16 %v976_v48, %v976_v48  ;;  %v680_v30 = vmul.f32 %v976_v48, %v976_v48  ;;  %v648_v33 = vsel %vm628_vm4, %v976_v48, 0.0 }
  0xfe   : > { %v690_v45 = vadd.f32 %v689_v41, %v688_v40  ;;  %v906_v46 = vpack.c.bf16 %v972_v42, %v972_v42  ;;  %v499_v47 = vpop.f32.mrb[5].mxu0  ;;  %v635_v50 = vadd.f32 %v634_v43, %v633_v39  ;;  %v977_v58 = vpop.f32.mrb[2].mxu1  ;;  %v676_v59 = vmul.f32 %v972_v42, %v972_v42 }
  0xff   : > { %v904_v49 = vpack.c.bf16 %v499_v47, %v499_v47  ;;  %v636_v51 = vsel %vm628_vm4, %v499_v47, 0.0  ;;  %v674_v52 = vmul.f32 %v499_v47, %v499_v47  ;;  %v973_v53 = vpop.f32.mrb[6].mxu0  ;;  %v518_v63 = vpop.f32.mrb[3].mxu1  ;;  %v640_v5 = vsel %vm628_vm4, %v972_v42, 0.0  ;;  %621 = vst.msk [vmem:[%s1097_s8 + $0x28] sm:$0xf] %vm610_vm3, %v910_v4 }
 0x100   : > { %617 = vst.msk [vmem:[%s1097_s8 + $0x18] sm:$0xf] %vm610_vm3, %v906_v46  ;;  %v692_v55 = vadd.f32 %v691_v44, %v690_v45  ;;  %v907_v56 = vpack.c.bf16 %v973_v53, %v973_v53  ;;  %v502_v57 = vpop.f32.mrb[7].mxu0  ;;  %v637_v60 = vadd.f32 %v636_v51, %v635_v50  ;;  %v677_v7 = vmul.f32 %v973_v53, %v973_v53 }
 0x101   : > { %615 = vst.msk [vmem:[%s1097_s8 + $0x10] sm:$0xf] %vm610_vm3, %v904_v49  ;;  %v693_v61 = vsel %vm628_vm4, %v674_v52, 0.0  ;;  %v905_v62 = vpack.c.bf16 %v502_v57, %v502_v57  ;;  %v638_v1 = vsel %vm628_vm4, %v502_v57, 0.0  ;;  %v675_v2 = vmul.f32 %v502_v57, %v502_v57 }
 0x102   : > { %v694_v0 = vadd.f32 %v693_v61, %v692_v55  ;;  %618 = vst.msk [vmem:[%s1097_s8 + $0x1c] sm:$0xf] %vm610_vm3, %v907_v56  ;;  %v639_v6 = vadd.f32 %v638_v1, %v637_v60  ;;  %v908_v10 = vpack.c.bf16 %v515_v54, %v515_v54  ;;  %v678_v11 = vmul.f32 %v515_v54, %v515_v54 }
 0x103   : > { %616 = vst.msk [vmem:[%s1097_s8 + $0x14] sm:$0xf] %vm610_vm3, %v905_v62  ;;  %v695_v8 = vsel %vm628_vm4, %v675_v2, 0.0  ;;  %v911_v14 = vpack.c.bf16 %v977_v58, %v977_v58  ;;  %v697_v15 = vsel %vm628_vm4, %v676_v59, 0.0  ;;  %v642_v16 = vsel %vm628_vm4, %v973_v53, 0.0 }
 0x104   : > { %v641_v12 = vadd.f32 %v640_v5, %v639_v6  ;;  %v696_v13 = vadd.f32 %v695_v8, %v694_v0  ;;  %619 = vst.msk [vmem:[%s1097_s8 + $0x20] sm:$0xf] %vm610_vm3, %v908_v10  ;;  %v644_v17 = vsel %vm628_vm4, %v515_v54, 0.0  ;;  %v909_v18 = vpack.c.bf16 %v518_v63, %v518_v63  ;;  %v980_v3 = vpop.f32.mrb[4].mxu1 }
 0x105   : > { %622 = vst.msk [vmem:[%s1097_s8 + $0x2c] sm:$0xf] %vm610_vm3, %v911_v14  ;;  %v531_v21 = vpop.f32.mrb[5].mxu1  ;;  %v699_v9 = vsel %vm628_vm4, %v677_v7, 0.0  ;;  %v701_v22 = vsel %vm628_vm4, %v678_v11, 0.0  ;;  %v679_v23 = vmul.f32 %v518_v63, %v518_v63  ;;  %v914_v24 = vpack.c.bf16 %v980_v3, %v980_v3 }
 0x106   : > { %v698_v19 = vadd.f32 %v697_v15, %v696_v13  ;;  %v643_v20 = vadd.f32 %v642_v16, %v641_v12  ;;  %620 = vst.msk [vmem:[%s1097_s8 + $0x24] sm:$0xf] %vm610_vm3, %v909_v18  ;;  %v981_v25 = vpop.f32.mrb[6].mxu1  ;;  %v912_v28 = vpack.c.bf16 %v531_v21, %v531_v21  ;;  %v646_v31 = vsel %vm628_vm4, %v518_v63, 0.0  ;;  %v627_v14 = vld [vmem:[%s1256_s5] sm:$0x1] }
 0x107   : > { %v534_v29 = vpop.f32.mrb[7].mxu1  ;;  %625 = vst.msk [vmem:[%s1097_s8 + $0x38] sm:$0xf] %vm610_vm3, %v914_v24  ;;  %v915_v32 = vpack.c.bf16 %v981_v25, %v981_v25  ;;  %v681_v36 = vmul.f32 %v977_v58, %v977_v58  ;;  %v703_v37 = vsel %vm628_vm4, %v679_v23, 0.0  ;;  %v682_v38 = vmul.f32 %v531_v21, %v531_v21 }
 0x108   : > { %v645_v26 = vadd.f32 %v644_v17, %v643_v20  ;;  %v700_v27 = vadd.f32 %v699_v9, %v698_v19  ;;  %623 = vst.msk [vmem:[%s1097_s8 + $0x30] sm:$0xf] %vm610_vm3, %v912_v28  ;;  %v913_v39 = vpack.c.bf16 %v534_v29, %v534_v29  ;;  %v705_v42 = vsel %vm628_vm4, %v680_v30, 0.0  ;;  %v669_v17 = vld [vmem:[%s1257_s6] sm:$0x1] }
 0x109   : > { %626 = vst.msk [vmem:[%s1097_s8 + $0x3c] sm:$0xf] %vm610_vm3, %v915_v32  ;;  %v650_v43 = vsel %vm628_vm4, %v977_v58, 0.0  ;;  %v652_v44 = vsel %vm628_vm4, %v531_v21, 0.0  ;;  %v707_v47 = vsel %vm628_vm4, %v681_v36, 0.0  ;;  %v709_v48 = vsel %vm628_vm4, %v682_v38, 0.0 }
 0x10a   : > { %v702_v34 = vadd.f32 %v701_v22, %v700_v27  ;;  %v647_v35 = vadd.f32 %v646_v31, %v645_v26  ;;  %624 = vst.msk [vmem:[%s1097_s8 + $0x34] sm:$0xf] %vm610_vm3, %v913_v39  ;;  %v683_v49 = vmul.f32 %v534_v29, %v534_v29  ;;  %v684_v52 = vmul.f32 %v980_v3, %v980_v3 }
 0x10b   : > { %v654_v53 = vsel %vm628_vm4, %v534_v29, 0.0  ;;  %v656_v56 = vsel %vm628_vm4, %v980_v3, 0.0  ;;  %v685_v57 = vmul.f32 %v981_v25, %v981_v25  ;;  %v658_v62 = vsel %vm628_vm4, %v981_v25, 0.0 }
 0x10c   : > { %v649_v40 = vadd.f32 %v648_v33, %v647_v35  ;;  %v704_v41 = vadd.f32 %v703_v37, %v702_v34  ;;  %v711_v58 = vsel %vm628_vm4, %v683_v49, 0.0  ;;  %v713_v61 = vsel %vm628_vm4, %v684_v52, 0.0 }
 0x10d   : > { %v715_v1 = vsel %vm628_vm4, %v685_v57, 0.0 }
 0x10e   : > { %v706_v45 = vadd.f32 %v705_v42, %v704_v41  ;;  %v651_v46 = vadd.f32 %v650_v43, %v649_v40 }
 0x110   : > { %v653_v50 = vadd.f32 %v652_v44, %v651_v46  ;;  %v708_v51 = vadd.f32 %v707_v47, %v706_v45 }
 0x112   : > { %v710_v54 = vadd.f32 %v709_v48, %v708_v51  ;;  %v655_v55 = vadd.f32 %v654_v53, %v653_v50 }
 0x114   : > { %v657_v59 = vadd.f32 %v656_v56, %v655_v55  ;;  %v712_v60 = vadd.f32 %v711_v58, %v710_v54 }
 0x116   : > { %v659_v63 = vadd.f32 %v658_v62, %v657_v59  ;;  %v714_v0 = vadd.f32 %v713_v61, %v712_v60 }
 0x118   : > { %v660_v2 = vrot.slane %v659_v63, 4  ;;  %v716_v4 = vadd.f32 %v715_v1, %v714_v0 }
 0x11a   : > { %v661_v5 = vadd.f32 %v660_v2, %v659_v63  ;;  %v717_v6 = vrot.slane %v716_v4, 4 }
 0x11c   : > { %v662_v7 = vrot.slane %v661_v5, 2  ;;  %v718_v8 = vadd.f32 %v717_v6, %v716_v4 }
 0x11e   : > { %v663_v10 = vadd.f32 %v662_v7, %v661_v5  ;;  %v719_v11 = vrot.slane %v718_v8, 2 }
 0x120   : > { %v664_v12 = vrot.slane %v663_v10, 1  ;;  %v720_v13 = vadd.f32 %v719_v11, %v718_v8 }
 0x122   : > { %v665_v15 = vadd.f32 %v664_v12, %v663_v10  ;;  %v721_v16 = vrot.slane %v720_v13, 1 }
 0x124   : > { %v666_v18 = vadd.f32 %v665_v15, %v627_v14  ;;  %v722_v3 = vadd.f32 %v721_v16, %v720_v13 }
 0x126   : > { %668 = vst.msk [vmem:[%s1256_s5] sm:$0x1] %vm667_vm5, %v666_v18  ;;  %v723_v19 = vadd.f32 %v722_v3, %v669_v17 }
 0x128   : > { %724 = vst.msk [vmem:[%s1257_s6] sm:$0x1] %vm667_vm5, %v723_v19 }
 0x129 PF: > { %s17_s23 = sadd.s32 1, %s1033_s23   ;;  %s1258_s21 = smov %s1029_s22 }
 0x12a   : > { %p14_p6 = scmp.ge.s32.totalorder %s17_s23, 6   ;;  %s1259_s22 = smov %s1261_s24 }
 0x12c   :  { %16 = sbr.rel (!%p14_p6) target bundleno = 2 (0x2), region = 97 }

// kernel: bottleneck_forward.7
= control target key start
LH: loop header
LB: loop body
LE: loop exit
PB: predicated region body
PF: predicated region fallthrough
CT: control target
= control target key end

     0   :  { %vm543_vm0 = vcmask 130048   ;;  %s1543_s0 = inlined_call_operand.vmem [shape: bf16[512,16], index: 0, kind: input, shape index: {}]   ;;  %s1544_s1 = inlined_call_operand.vmem [shape: f32[1,16], index: 1, kind: input, shape index: {}]   ;;  %s1545_s2 = inlined_call_operand.vmem [shape: f32[1,16], index: 2, kind: input, shape index: {}]   ;;  %s1546_s3 = inlined_call_operand.vmem [shape: bf16[512,16], index: 3, kind: input, shape index: {}]   ;;  %s1547_s4 = inlined_call_operand.vmem [shape: f32[512,16], index: 4, kind: output, shape index: {}]  }
   0x1   :  { %v615_v0 = vld [vmem:[%s1543_s0] sm:$0xff]   ;;  %v870_v5 = vld [vmem:[%s1543_s0 + $0x8] sm:$0xff]   ;;  %v871_v12 = vld [vmem:[%s1543_s0 + $0x10] sm:$0xff]  }
   0x2   :  { %v963_v1 = vld [vmem:[%s1544_s1] ss:$0 sm:$0xff]  ;;  %v616_v2 = vunpack.c.l.bf16 %v615_v0  ;;  %v617_v4 = vunpack.c.h.bf16 %v615_v0  ;;  %v901_v6 = vld [vmem:[%s1546_s3 + $0x8] sm:$0xff]   ;;  %v620_v10 = vunpack.c.l.bf16 %v870_v5  ;;  %v902_v13 = vld [vmem:[%s1546_s3 + $0x10] sm:$0xff]   ;;  %v621_v16 = vunpack.c.h.bf16 %v870_v5 }
   0x3   :  { %v743_v3 = vld [vmem:[%s1546_s3] sm:$0xff]   ;;  %v748_v11 = vunpack.c.l.bf16 %v901_v6  ;;  %v749_v17 = vunpack.c.h.bf16 %v901_v6  ;;  %v872_v18 = vld [vmem:[%s1543_s0 + $0x18] sm:$0xff]   ;;  %v624_v20 = vunpack.c.l.bf16 %v871_v12  ;;  %v752_v21 = vunpack.c.l.bf16 %v902_v13  ;;  %v874_v54 = vld [vmem:[%s1543_s0 + $0x28] sm:$0xff]  }
   0x4   :  { %v977_v7 = vld [vmem:[%s1545_s2] ss:$0 sm:$0xff]  ;;  %v744_v8 = vunpack.c.l.bf16 %v743_v3  ;;  %v745_v9 = vunpack.c.h.bf16 %v743_v3  ;;  %v152_v14 = vmul.f32 %v616_v2, %v963_v1  ;;  %v153_v15 = vmul.f32 %v617_v4, %v963_v1  ;;  %v903_v23 = vld [vmem:[%s1546_s3 + $0x18] sm:$0xff]   ;;  %v905_v55 = vld [vmem:[%s1546_s3 + $0x28] sm:$0xff]  }
   0x5   :  { %v154_v19 = vmul.f32 %v620_v10, %v963_v1  ;;  %v625_v22 = vunpack.c.h.bf16 %v871_v12  ;;  %v155_v26 = vmul.f32 %v621_v16, %v963_v1  ;;  %v753_v27 = vunpack.c.h.bf16 %v902_v13  ;;  %v873_v40 = vld [vmem:[%s1543_s0 + $0x20] sm:$0xff]   ;;  %v875_v0 = vld [vmem:[%s1543_s0 + $0x30] sm:$0xff]   ;;  %v876_v16 = vld [vmem:[%s1543_s0 + $0x38] sm:$0xff]  }
   0x6   :  { %v223_v24 = vadd.f32 %v977_v7, %v152_v14  ;;  %v224_v25 = vadd.f32 %v977_v7, %v153_v15  ;;  %v156_v29 = vmul.f32 %v624_v20, %v963_v1  ;;  %v628_v31 = vunpack.c.l.bf16 %v872_v18  ;;  %v904_v45 = vld [vmem:[%s1546_s3 + $0x20] sm:$0xff]   ;;  %v906_v2 = vld [vmem:[%s1546_s3 + $0x30] sm:$0xff]  }
   0x7   :  { %v225_v28 = vadd.f32 %v977_v7, %v154_v19  ;;  %v157_v30 = vmul.f32 %v625_v22, %v963_v1  ;;  %v226_v34 = vadd.f32 %v977_v7, %v155_v26  ;;  %v756_v35 = vunpack.c.l.bf16 %v903_v23 }
   0x8   :  { %v415_v32 = vadd.f32 %v744_v8, %v223_v24  ;;  %v416_v33 = vadd.f32 %v745_v9, %v224_v25  ;;  %v227_v37 = vadd.f32 %v977_v7, %v156_v29  ;;  %v158_v39 = vmul.f32 %v628_v31, %v963_v1 }
   0x9   :  { %v417_v36 = vadd.f32 %v748_v11, %v225_v28  ;;  %v228_v38 = vadd.f32 %v977_v7, %v157_v30  ;;  %v418_v43 = vadd.f32 %v749_v17, %v226_v34  ;;  %v629_v44 = vunpack.c.h.bf16 %v872_v18  ;;  %v877_v34 = vld [vmem:[%s1543_s0 + $0x40] sm:$0xff]  }
   0xa   :  { %v479_v41 = vmax.f32 %v415_v32, 0.0  ;;  %v480_v42 = vmax.f32 %v416_v33, 0.0  ;;  %v419_v47 = vadd.f32 %v752_v21, %v227_v37  ;;  %v229_v49 = vadd.f32 %v977_v7, %v158_v39  ;;  %v907_v21 = vld [vmem:[%s1546_s3 + $0x38] sm:$0xff]   ;;  %v908_v39 = vld [vmem:[%s1546_s3 + $0x40] sm:$0xff]  }
   0xb   :  { %v481_v46 = vmax.f32 %v417_v36, 0.0  ;;  %v420_v48 = vadd.f32 %v753_v27, %v228_v38  ;;  %v482_v50 = vmax.f32 %v418_v43, 0.0  ;;  %v159_v51 = vmul.f32 %v629_v44, %v963_v1 }
   0xc   :  { %544 = vst.msk [vmem:[%s1547_s4] sm:$0xff] %vm543_vm0, %v479_v41  ;;  %545 = vst.msk [vmem:[%s1547_s4 + $0x8] sm:$0xff] %vm543_vm0, %v480_v42  ;;  %v757_v52 = vunpack.c.h.bf16 %v903_v23  ;;  %v632_v53 = vunpack.c.l.bf16 %v873_v40  ;;  %v483_v56 = vmax.f32 %v419_v47, 0.0  ;;  %v421_v58 = vadd.f32 %v756_v35, %v229_v49  ;;  %v909_v49 = vld [vmem:[%s1546_s3 + $0x48] sm:$0xff]  }
   0xd   :  { %546 = vst.msk [vmem:[%s1547_s4 + $0x10] sm:$0xff] %vm543_vm0, %v481_v46  ;;  %v484_v57 = vmax.f32 %v420_v48, 0.0  ;;  %v760_v59 = vunpack.c.l.bf16 %v904_v45  ;;  %547 = vst.msk [vmem:[%s1547_s4 + $0x18] sm:$0xff] %vm543_vm0, %v482_v50  ;;  %v230_v60 = vadd.f32 %v977_v7, %v159_v51  ;;  %v633_v62 = vunpack.c.h.bf16 %v873_v40  ;;  %v878_v48 = vld [vmem:[%s1543_s0 + $0x48] sm:$0xff]  }
   0xe   :  { %v160_v61 = vmul.f32 %v632_v53, %v963_v1  ;;  %v761_v63 = vunpack.c.h.bf16 %v904_v45  ;;  %548 = vst.msk [vmem:[%s1547_s4 + $0x20] sm:$0xff] %vm543_vm0, %v483_v56  ;;  %v485_v3 = vmax.f32 %v421_v58, 0.0  ;;  %v636_v4 = vunpack.c.l.bf16 %v874_v54  ;;  %v879_v58 = vld [vmem:[%s1543_s0 + $0x50] sm:$0xff]  }
   0xf   :  { %549 = vst.msk [vmem:[%s1547_s4 + $0x28] sm:$0xff] %vm543_vm0, %v484_v57  ;;  %v764_v5 = vunpack.c.l.bf16 %v905_v55  ;;  %v637_v6 = vunpack.c.h.bf16 %v874_v54  ;;  %v422_v8 = vadd.f32 %v757_v52, %v230_v60  ;;  %v161_v10 = vmul.f32 %v633_v62, %v963_v1 }
  0x10   :  { %v231_v9 = vadd.f32 %v977_v7, %v160_v61  ;;  %v765_v11 = vunpack.c.h.bf16 %v905_v55  ;;  %550 = vst.msk [vmem:[%s1547_s4 + $0x30] sm:$0xff] %vm543_vm0, %v485_v3  ;;  %v162_v12 = vmul.f32 %v636_v4, %v963_v1  ;;  %v640_v14 = vunpack.c.l.bf16 %v875_v0 }
  0x11   :  { %v163_v13 = vmul.f32 %v637_v6, %v963_v1  ;;  %v768_v15 = vunpack.c.l.bf16 %v906_v2  ;;  %v486_v17 = vmax.f32 %v422_v8, 0.0  ;;  %v232_v19 = vadd.f32 %v977_v7, %v161_v10  ;;  %v880_v10 = vld [vmem:[%s1543_s0 + $0x58] sm:$0xff]  }
  0x12   :  { %v423_v18 = vadd.f32 %v760_v59, %v231_v9  ;;  %v641_v20 = vunpack.c.h.bf16 %v875_v0  ;;  %v233_v22 = vadd.f32 %v977_v7, %v162_v12  ;;  %v164_v24 = vmul.f32 %v640_v14, %v963_v1 }
  0x13   :  { %v234_v23 = vadd.f32 %v977_v7, %v163_v13  ;;  %v769_v25 = vunpack.c.h.bf16 %v906_v2  ;;  %551 = vst.msk [vmem:[%s1547_s4 + $0x38] sm:$0xff] %vm543_vm0, %v486_v17  ;;  %v424_v27 = vadd.f32 %v761_v63, %v232_v19  ;;  %v644_v29 = vunpack.c.l.bf16 %v876_v16  ;;  %v910_v63 = vld [vmem:[%s1546_s3 + $0x50] sm:$0xff]   ;;  %v911_v19 = vld [vmem:[%s1546_s3 + $0x58] sm:$0xff]  }
  0x14   :  { %v487_v26 = vmax.f32 %v423_v18, 0.0  ;;  %v165_v28 = vmul.f32 %v641_v20, %v963_v1  ;;  %v425_v30 = vadd.f32 %v764_v5, %v233_v22  ;;  %v235_v32 = vadd.f32 %v977_v7, %v164_v24 }
  0x15   :  { %v426_v31 = vadd.f32 %v765_v11, %v234_v23  ;;  %v772_v33 = vunpack.c.l.bf16 %v907_v21  ;;  %v488_v35 = vmax.f32 %v424_v27, 0.0  ;;  %v166_v37 = vmul.f32 %v644_v29, %v963_v1 }
  0x16   :  { %552 = vst.msk [vmem:[%s1547_s4 + $0x40] sm:$0xff] %vm543_vm0, %v487_v26  ;;  %v236_v36 = vadd.f32 %v977_v7, %v165_v28  ;;  %v645_v38 = vunpack.c.h.bf16 %v876_v16  ;;  %v489_v40 = vmax.f32 %v425_v30, 0.0  ;;  %v427_v42 = vadd.f32 %v768_v15, %v235_v32  ;;  %v881_v28 = vld [vmem:[%s1543_s0 + $0x60] sm:$0xff]  }
  0x17   :  { %v490_v41 = vmax.f32 %v426_v31, 0.0  ;;  %v773_v43 = vunpack.c.h.bf16 %v907_v21  ;;  %553 = vst.msk [vmem:[%s1547_s4 + $0x48] sm:$0xff] %vm543_vm0, %v488_v35  ;;  %v237_v45 = vadd.f32 %v977_v7, %v166_v37  ;;  %v648_v47 = vunpack.c.l.bf16 %v877_v34 }
  0x18   :  { %v428_v44 = vadd.f32 %v769_v25, %v236_v36  ;;  %v167_v46 = vmul.f32 %v645_v38, %v963_v1  ;;  %554 = vst.msk [vmem:[%s1547_s4 + $0x50] sm:$0xff] %vm543_vm0, %v489_v40  ;;  %v491_v50 = vmax.f32 %v427_v42, 0.0  ;;  %v776_v51 = vunpack.c.l.bf16 %v908_v39  ;;  %v882_v42 = vld [vmem:[%s1543_s0 + $0x68] sm:$0xff]  }
  0x19   :  { %555 = vst.msk [vmem:[%s1547_s4 + $0x58] sm:$0xff] %vm543_vm0, %v490_v41  ;;  %v649_v52 = vunpack.c.h.bf16 %v877_v34  ;;  %v777_v53 = vunpack.c.h.bf16 %v908_v39  ;;  %v429_v55 = vadd.f32 %v772_v33, %v237_v45  ;;  %v168_v57 = vmul.f32 %v648_v47, %v963_v1  ;;  %v912_v33 = vld [vmem:[%s1546_s3 + $0x60] sm:$0xff]  }
  0x1a   :  { %v492_v54 = vmax.f32 %v428_v44, 0.0  ;;  %v238_v56 = vadd.f32 %v977_v7, %v167_v46  ;;  %556 = vst.msk [vmem:[%s1547_s4 + $0x60] sm:$0xff] %vm543_vm0, %v491_v50  ;;  %v652_v60 = vunpack.c.l.bf16 %v878_v48  ;;  %v780_v61 = vunpack.c.l.bf16 %v909_v49 }
  0x1b   :  { %v169_v59 = vmul.f32 %v649_v52, %v963_v1  ;;  %v653_v62 = vunpack.c.h.bf16 %v878_v48  ;;  %v493_v0 = vmax.f32 %v429_v55, 0.0  ;;  %v239_v3 = vadd.f32 %v977_v7, %v168_v57  ;;  %v883_v52 = vld [vmem:[%s1543_s0 + $0x70] sm:$0xff]  }
  0x1c   :  { %557 = vst.msk [vmem:[%s1547_s4 + $0x68] sm:$0xff] %vm543_vm0, %v492_v54  ;;  %v430_v2 = vadd.f32 %v773_v43, %v238_v56  ;;  %v781_v4 = vunpack.c.h.bf16 %v909_v49  ;;  %v170_v6 = vmul.f32 %v652_v60, %v963_v1  ;;  %v656_v9 = vunpack.c.l.bf16 %v879_v58  ;;  %v913_v43 = vld [vmem:[%s1546_s3 + $0x68] sm:$0xff]   ;;  %v914_v57 = vld [vmem:[%s1546_s3 + $0x70] sm:$0xff]  }
  0x1d   :  { %v240_v5 = vadd.f32 %v977_v7, %v169_v59  ;;  %v171_v8 = vmul.f32 %v653_v62, %v963_v1  ;;  %558 = vst.msk [vmem:[%s1547_s4 + $0x70] sm:$0xff] %vm543_vm0, %v493_v0  ;;  %v431_v12 = vadd.f32 %v776_v51, %v239_v3  ;;  %v784_v13 = vunpack.c.l.bf16 %v910_v63  ;;  %v884_v3 = vld [vmem:[%s1543_s0 + $0x78] sm:$0xff]  }
  0x1e   :  { %v494_v11 = vmax.f32 %v430_v2, 0.0  ;;  %v657_v14 = vunpack.c.h.bf16 %v879_v58  ;;  %v241_v16 = vadd.f32 %v977_v7, %v170_v6  ;;  %v172_v18 = vmul.f32 %v656_v9, %v963_v1 }
  0x1f   :  { %v432_v15 = vadd.f32 %v777_v53, %v240_v5  ;;  %v242_v17 = vadd.f32 %v977_v7, %v171_v8  ;;  %v495_v20 = vmax.f32 %v431_v12, 0.0  ;;  %v785_v22 = vunpack.c.h.bf16 %v910_v63 }
  0x20   :  { %559 = vst.msk [vmem:[%s1547_s4 + $0x78] sm:$0xff] %vm543_vm0, %v494_v11  ;;  %v173_v21 = vmul.f32 %v657_v14, %v963_v1  ;;  %v660_v23 = vunpack.c.l.bf16 %v880_v10  ;;  %v433_v25 = vadd.f32 %v780_v61, %v241_v16  ;;  %v243_v27 = vadd.f32 %v977_v7, %v172_v18 }
  0x21   :  { %v496_v24 = vmax.f32 %v432_v15, 0.0  ;;  %v434_v26 = vadd.f32 %v781_v4, %v242_v17  ;;  %560 = vst.msk [vmem:[%s1547_s4 + $0x80] sm:$0xff] %vm543_vm0, %v495_v20  ;;  %v788_v31 = vunpack.c.l.bf16 %v911_v19  ;;  %v661_v32 = vunpack.c.h.bf16 %v880_v10 }
  0x22   :  { %v244_v29 = vadd.f32 %v977_v7, %v173_v21  ;;  %v174_v30 = vmul.f32 %v660_v23, %v963_v1  ;;  %v497_v34 = vmax.f32 %v433_v25, 0.0  ;;  %v435_v36 = vadd.f32 %v784_v13, %v243_v27  ;;  %v915_v13 = vld [vmem:[%s1546_s3 + $0x78] sm:$0xff]   ;;  %v916_v27 = vld [vmem:[%s1546_s3 + $0x80] sm:$0xff]  }
  0x23   :  { %561 = vst.msk [vmem:[%s1547_s4 + $0x88] sm:$0xff] %vm543_vm0, %v496_v24  ;;  %v498_v35 = vmax.f32 %v434_v26, 0.0  ;;  %v789_v37 = vunpack.c.h.bf16 %v911_v19  ;;  %v175_v40 = vmul.f32 %v661_v32, %v963_v1  ;;  %v664_v41 = vunpack.c.l.bf16 %v881_v28 }
  0x24   :  { %v436_v38 = vadd.f32 %v785_v22, %v244_v29  ;;  %v245_v39 = vadd.f32 %v977_v7, %v174_v30  ;;  %562 = vst.msk [vmem:[%s1547_s4 + $0x90] sm:$0xff] %vm543_vm0, %v497_v34  ;;  %v499_v44 = vmax.f32 %v435_v36, 0.0  ;;  %v792_v45 = vunpack.c.l.bf16 %v912_v33  ;;  %v885_v22 = vld [vmem:[%s1543_s0 + $0x80] sm:$0xff]   ;;  %v886_v36 = vld [vmem:[%s1543_s0 + $0x88] sm:$0xff]  }
  0x25   :  { %563 = vst.msk [vmem:[%s1547_s4 + $0x98] sm:$0xff] %vm543_vm0, %v498_v35  ;;  %v665_v46 = vunpack.c.h.bf16 %v881_v28  ;;  %v793_v47 = vunpack.c.h.bf16 %v912_v33  ;;  %v246_v50 = vadd.f32 %v977_v7, %v175_v40  ;;  %v176_v51 = vmul.f32 %v664_v41, %v963_v1 }
  0x26   :  { %v500_v48 = vmax.f32 %v436_v38, 0.0  ;;  %v437_v49 = vadd.f32 %v788_v31, %v245_v39  ;;  %564 = vst.msk [vmem:[%s1547_s4 + $0xa0] sm:$0xff] %vm543_vm0, %v499_v44  ;;  %v668_v54 = vunpack.c.l.bf16 %v882_v42  ;;  %v796_v55 = vunpack.c.l.bf16 %v913_v43 }
  0x27   :  { %v177_v53 = vmul.f32 %v665_v46, %v963_v1  ;;  %v669_v56 = vunpack.c.h.bf16 %v882_v42  ;;  %v438_v59 = vadd.f32 %v789_v37, %v246_v50  ;;  %v247_v60 = vadd.f32 %v977_v7, %v176_v51  ;;  %v917_v37 = vld [vmem:[%s1546_s3 + $0x88] sm:$0xff]   ;;  %v887_v46 = vld [vmem:[%s1543_s0 + $0x90] sm:$0xff]  }
  0x28   :  { %565 = vst.msk [vmem:[%s1547_s4 + $0xa8] sm:$0xff] %vm543_vm0, %v500_v48  ;;  %v501_v58 = vmax.f32 %v437_v49, 0.0  ;;  %v797_v61 = vunpack.c.h.bf16 %v913_v43  ;;  %v178_v63 = vmul.f32 %v668_v54, %v963_v1  ;;  %v672_v2 = vunpack.c.l.bf16 %v883_v52  ;;  %v918_v51 = vld [vmem:[%s1546_s3 + $0x90] sm:$0xff]  }
  0x29   :  { %v248_v62 = vadd.f32 %v977_v7, %v177_v53  ;;  %v179_v0 = vmul.f32 %v669_v56, %v963_v1  ;;  %v502_v4 = vmax.f32 %v438_v59, 0.0  ;;  %v439_v5 = vadd.f32 %v792_v45, %v247_v60  ;;  %v888_v60 = vld [vmem:[%s1543_s0 + $0x98] sm:$0xff]  }
  0x2a   :  { %566 = vst.msk [vmem:[%s1547_s4 + $0xb0] sm:$0xff] %vm543_vm0, %v501_v58  ;;  %v800_v6 = vunpack.c.l.bf16 %v914_v57  ;;  %v673_v8 = vunpack.c.h.bf16 %v883_v52  ;;  %v249_v10 = vadd.f32 %v977_v7, %v178_v63  ;;  %v180_v12 = vmul.f32 %v672_v2, %v963_v1 }
  0x2b   :  { %v440_v9 = vadd.f32 %v793_v47, %v248_v62  ;;  %v250_v11 = vadd.f32 %v977_v7, %v179_v0  ;;  %567 = vst.msk [vmem:[%s1547_s4 + $0xb8] sm:$0xff] %vm543_vm0, %v502_v4  ;;  %v503_v14 = vmax.f32 %v439_v5, 0.0  ;;  %v801_v16 = vunpack.c.h.bf16 %v914_v57 }
  0x2c   :  { %v181_v15 = vmul.f32 %v673_v8, %v963_v1  ;;  %v676_v17 = vunpack.c.l.bf16 %v884_v3  ;;  %v441_v19 = vadd.f32 %v796_v55, %v249_v10  ;;  %v251_v21 = vadd.f32 %v977_v7, %v180_v12 }
  0x2d   :  { %v504_v18 = vmax.f32 %v440_v9, 0.0  ;;  %v442_v20 = vadd.f32 %v797_v61, %v250_v11  ;;  %568 = vst.msk [vmem:[%s1547_s4 + $0xc0] sm:$0xff] %vm543_vm0, %v503_v14  ;;  %v804_v25 = vunpack.c.l.bf16 %v915_v13  ;;  %v677_v26 = vunpack.c.h.bf16 %v884_v3 }
  0x2e   :  { %v252_v23 = vadd.f32 %v977_v7, %v181_v15  ;;  %v182_v24 = vmul.f32 %v676_v17, %v963_v1  ;;  %v505_v28 = vmax.f32 %v441_v19, 0.0  ;;  %v443_v30 = vadd.f32 %v800_v6, %v251_v21  ;;  %v919_v6 = vld [vmem:[%s1546_s3 + $0x98] sm:$0xff]   ;;  %v920_v21 = vld [vmem:[%s1546_s3 + $0xa0] sm:$0xff]  }
  0x2f   :  { %569 = vst.msk [vmem:[%s1547_s4 + $0xc8] sm:$0xff] %vm543_vm0, %v504_v18  ;;  %v506_v29 = vmax.f32 %v442_v20, 0.0  ;;  %v805_v31 = vunpack.c.h.bf16 %v915_v13  ;;  %v183_v34 = vmul.f32 %v677_v26, %v963_v1  ;;  %v680_v35 = vunpack.c.l.bf16 %v885_v22 }
  0x30   :  { %v444_v32 = vadd.f32 %v801_v16, %v252_v23  ;;  %v253_v33 = vadd.f32 %v977_v7, %v182_v24  ;;  %570 = vst.msk [vmem:[%s1547_s4 + $0xd0] sm:$0xff] %vm543_vm0, %v505_v28  ;;  %v507_v38 = vmax.f32 %v443_v30, 0.0  ;;  %v808_v39 = vunpack.c.l.bf16 %v916_v27  ;;  %v889_v16 = vld [vmem:[%s1543_s0 + $0xa0] sm:$0xff]   ;;  %v890_v30 = vld [vmem:[%s1543_s0 + $0xa8] sm:$0xff]  }
  0x31   :  { %571 = vst.msk [vmem:[%s1547_s4 + $0xd8] sm:$0xff] %vm543_vm0, %v506_v29  ;;  %v681_v40 = vunpack.c.h.bf16 %v885_v22  ;;  %v809_v41 = vunpack.c.h.bf16 %v916_v27  ;;  %v254_v44 = vadd.f32 %v977_v7, %v183_v34  ;;  %v184_v45 = vmul.f32 %v680_v35, %v963_v1 }
  0x32   :  { %v508_v42 = vmax.f32 %v444_v32, 0.0  ;;  %v445_v43 = vadd.f32 %v804_v25, %v253_v33  ;;  %572 = vst.msk [vmem:[%s1547_s4 + $0xe0] sm:$0xff] %vm543_vm0, %v507_v38  ;;  %v684_v48 = vunpack.c.l.bf16 %v886_v36  ;;  %v812_v49 = vunpack.c.l.bf16 %v917_v37 }
  0x33   :  { %v185_v47 = vmul.f32 %v681_v40, %v963_v1  ;;  %v685_v50 = vunpack.c.h.bf16 %v886_v36  ;;  %v446_v53 = vadd.f32 %v805_v31, %v254_v44  ;;  %v255_v54 = vadd.f32 %v977_v7, %v184_v45  ;;  %v921_v31 = vld [vmem:[%s1546_s3 + $0xa8] sm:$0xff]   ;;  %v891_v40 = vld [vmem:[%s1543_s0 + $0xb0] sm:$0xff]  }
  0x34   :  { %573 = vst.msk [vmem:[%s1547_s4 + $0xe8] sm:$0xff] %vm543_vm0, %v508_v42  ;;  %v509_v52 = vmax.f32 %v445_v43, 0.0  ;;  %v813_v55 = vunpack.c.h.bf16 %v917_v37  ;;  %v186_v57 = vmul.f32 %v684_v48, %v963_v1  ;;  %v688_v59 = vunpack.c.l.bf16 %v887_v46  ;;  %v922_v45 = vld [vmem:[%s1546_s3 + $0xb0] sm:$0xff]  }
  0x35   :  { %v256_v56 = vadd.f32 %v977_v7, %v185_v47  ;;  %v187_v58 = vmul.f32 %v685_v50, %v963_v1  ;;  %v510_v61 = vmax.f32 %v446_v53, 0.0  ;;  %v447_v62 = vadd.f32 %v808_v39, %v255_v54  ;;  %v892_v54 = vld [vmem:[%s1543_s0 + $0xb8] sm:$0xff]  }
  0x36   :  { %574 = vst.msk [vmem:[%s1547_s4 + $0xf0] sm:$0xff] %vm543_vm0, %v509_v52  ;;  %v816_v63 = vunpack.c.l.bf16 %v918_v51  ;;  %v689_v0 = vunpack.c.h.bf16 %v887_v46  ;;  %v257_v3 = vadd.f32 %v977_v7, %v186_v57  ;;  %v188_v5 = vmul.f32 %v688_v59, %v963_v1 }
  0x37   :  { %v448_v2 = vadd.f32 %v809_v41, %v256_v56  ;;  %v258_v4 = vadd.f32 %v977_v7, %v187_v58  ;;  %575 = vst.msk [vmem:[%s1547_s4 + $0xf8] sm:$0xff] %vm543_vm0, %v510_v61  ;;  %v511_v8 = vmax.f32 %v447_v62, 0.0  ;;  %v817_v10 = vunpack.c.h.bf16 %v918_v51 }
  0x38   :  { %v189_v9 = vmul.f32 %v689_v0, %v963_v1  ;;  %v692_v11 = vunpack.c.l.bf16 %v888_v60  ;;  %v449_v13 = vadd.f32 %v812_v49, %v257_v3  ;;  %v259_v15 = vadd.f32 %v977_v7, %v188_v5 }
  0x39   :  { %v512_v12 = vmax.f32 %v448_v2, 0.0  ;;  %v450_v14 = vadd.f32 %v813_v55, %v258_v4  ;;  %576 = vst.msk [vmem:[%s1547_s4 + $0x100] sm:$0xff] %vm543_vm0, %v511_v8  ;;  %v820_v19 = vunpack.c.l.bf16 %v919_v6  ;;  %v693_v20 = vunpack.c.h.bf16 %v888_v60 }
  0x3a   :  { %v260_v17 = vadd.f32 %v977_v7, %v189_v9  ;;  %v190_v18 = vmul.f32 %v692_v11, %v963_v1  ;;  %v513_v22 = vmax.f32 %v449_v13, 0.0  ;;  %v451_v24 = vadd.f32 %v816_v63, %v259_v15  ;;  %v923_v63 = vld [vmem:[%s1546_s3 + $0xb8] sm:$0xff]   ;;  %v924_v15 = vld [vmem:[%s1546_s3 + $0xc0] sm:$0xff]  }
  0x3b   :  { %577 = vst.msk [vmem:[%s1547_s4 + $0x108] sm:$0xff] %vm543_vm0, %v512_v12  ;;  %v514_v23 = vmax.f32 %v450_v14, 0.0  ;;  %v821_v25 = vunpack.c.h.bf16 %v919_v6  ;;  %v191_v28 = vmul.f32 %v693_v20, %v963_v1  ;;  %v696_v29 = vunpack.c.l.bf16 %v889_v16 }
  0x3c   :  { %v452_v26 = vadd.f32 %v817_v10, %v260_v17  ;;  %v261_v27 = vadd.f32 %v977_v7, %v190_v18  ;;  %578 = vst.msk [vmem:[%s1547_s4 + $0x110] sm:$0xff] %vm543_vm0, %v513_v22  ;;  %v515_v32 = vmax.f32 %v451_v24, 0.0  ;;  %v824_v33 = vunpack.c.l.bf16 %v920_v21  ;;  %v893_v10 = vld [vmem:[%s1543_s0 + $0xc0] sm:$0xff]   ;;  %v894_v24 = vld [vmem:[%s1543_s0 + $0xc8] sm:$0xff]  }
  0x3d   :  { %579 = vst.msk [vmem:[%s1547_s4 + $0x118] sm:$0xff] %vm543_vm0, %v514_v23  ;;  %v697_v34 = vunpack.c.h.bf16 %v889_v16  ;;  %v825_v35 = vunpack.c.h.bf16 %v920_v21  ;;  %v262_v38 = vadd.f32 %v977_v7, %v191_v28  ;;  %v192_v39 = vmul.f32 %v696_v29, %v963_v1 }
  0x3e   :  { %v516_v36 = vmax.f32 %v452_v26, 0.0  ;;  %v453_v37 = vadd.f32 %v820_v19, %v261_v27  ;;  %580 = vst.msk [vmem:[%s1547_s4 + $0x120] sm:$0xff] %vm543_vm0, %v515_v32  ;;  %v700_v42 = vunpack.c.l.bf16 %v890_v30  ;;  %v828_v43 = vunpack.c.l.bf16 %v921_v31 }
  0x3f   :  { %v193_v41 = vmul.f32 %v697_v34, %v963_v1  ;;  %v701_v44 = vunpack.c.h.bf16 %v890_v30  ;;  %v454_v47 = vadd.f32 %v821_v25, %v262_v38  ;;  %v263_v48 = vadd.f32 %v977_v7, %v192_v39  ;;  %v925_v25 = vld [vmem:[%s1546_s3 + $0xc8] sm:$0xff]   ;;  %v895_v34 = vld [vmem:[%s1543_s0 + $0xd0] sm:$0xff]  }
  0x40   :  { %581 = vst.msk [vmem:[%s1547_s4 + $0x128] sm:$0xff] %vm543_vm0, %v516_v36  ;;  %v517_v46 = vmax.f32 %v453_v37, 0.0  ;;  %v829_v49 = vunpack.c.h.bf16 %v921_v31  ;;  %v194_v51 = vmul.f32 %v700_v42, %v963_v1  ;;  %v704_v53 = vunpack.c.l.bf16 %v891_v40  ;;  %v926_v39 = vld [vmem:[%s1546_s3 + $0xd0] sm:$0xff]  }
  0x41   :  { %v264_v50 = vadd.f32 %v977_v7, %v193_v41  ;;  %v195_v52 = vmul.f32 %v701_v44, %v963_v1  ;;  %v518_v55 = vmax.f32 %v454_v47, 0.0  ;;  %v455_v56 = vadd.f32 %v824_v33, %v263_v48  ;;  %v896_v48 = vld [vmem:[%s1543_s0 + $0xd8] sm:$0xff]  }
  0x42   :  { %582 = vst.msk [vmem:[%s1547_s4 + $0x130] sm:$0xff] %vm543_vm0, %v517_v46  ;;  %v832_v57 = vunpack.c.l.bf16 %v922_v45  ;;  %v705_v58 = vunpack.c.h.bf16 %v891_v40  ;;  %v265_v60 = vadd.f32 %v977_v7, %v194_v51  ;;  %v196_v62 = vmul.f32 %v704_v53, %v963_v1 }
  0x43   :  { %v456_v59 = vadd.f32 %v825_v35, %v264_v50  ;;  %v266_v61 = vadd.f32 %v977_v7, %v195_v52  ;;  %583 = vst.msk [vmem:[%s1547_s4 + $0x138] sm:$0xff] %vm543_vm0, %v518_v55  ;;  %v519_v0 = vmax.f32 %v455_v56, 0.0  ;;  %v833_v3 = vunpack.c.h.bf16 %v922_v45 }
  0x44   :  { %v197_v2 = vmul.f32 %v705_v58, %v963_v1  ;;  %v708_v4 = vunpack.c.l.bf16 %v892_v54  ;;  %v457_v6 = vadd.f32 %v828_v43, %v265_v60  ;;  %v267_v9 = vadd.f32 %v977_v7, %v196_v62 }
  0x45   :  { %v520_v5 = vmax.f32 %v456_v59, 0.0  ;;  %v458_v8 = vadd.f32 %v829_v49, %v266_v61  ;;  %584 = vst.msk [vmem:[%s1547_s4 + $0x140] sm:$0xff] %vm543_vm0, %v519_v0  ;;  %v836_v13 = vunpack.c.l.bf16 %v923_v63  ;;  %v709_v14 = vunpack.c.h.bf16 %v892_v54 }
  0x46   :  { %v268_v11 = vadd.f32 %v977_v7, %v197_v2  ;;  %v198_v12 = vmul.f32 %v708_v4, %v963_v1  ;;  %v521_v16 = vmax.f32 %v457_v6, 0.0  ;;  %v459_v18 = vadd.f32 %v832_v57, %v267_v9  ;;  %v927_v57 = vld [vmem:[%s1546_s3 + $0xd8] sm:$0xff]   ;;  %v928_v9 = vld [vmem:[%s1546_s3 + $0xe0] sm:$0xff]  }
  0x47   :  { %585 = vst.msk [vmem:[%s1547_s4 + $0x148] sm:$0xff] %vm543_vm0, %v520_v5  ;;  %v522_v17 = vmax.f32 %v458_v8, 0.0  ;;  %v837_v19 = vunpack.c.h.bf16 %v923_v63  ;;  %v199_v22 = vmul.f32 %v709_v14, %v963_v1  ;;  %v712_v23 = vunpack.c.l.bf16 %v893_v10 }
  0x48   :  { %v460_v20 = vadd.f32 %v833_v3, %v268_v11  ;;  %v269_v21 = vadd.f32 %v977_v7, %v198_v12  ;;  %586 = vst.msk [vmem:[%s1547_s4 + $0x150] sm:$0xff] %vm543_vm0, %v521_v16  ;;  %v523_v26 = vmax.f32 %v459_v18, 0.0  ;;  %v840_v27 = vunpack.c.l.bf16 %v924_v15  ;;  %v897_v3 = vld [vmem:[%s1543_s0 + $0xe0] sm:$0xff]   ;;  %v898_v18 = vld [vmem:[%s1543_s0 + $0xe8] sm:$0xff]  }
  0x49   :  { %587 = vst.msk [vmem:[%s1547_s4 + $0x158] sm:$0xff] %vm543_vm0, %v522_v17  ;;  %v713_v28 = vunpack.c.h.bf16 %v893_v10  ;;  %v841_v29 = vunpack.c.h.bf16 %v924_v15  ;;  %v270_v32 = vadd.f32 %v977_v7, %v199_v22  ;;  %v200_v33 = vmul.f32 %v712_v23, %v963_v1 }
  0x4a   :  { %v524_v30 = vmax.f32 %v460_v20, 0.0  ;;  %v461_v31 = vadd.f32 %v836_v13, %v269_v21  ;;  %588 = vst.msk [vmem:[%s1547_s4 + $0x160] sm:$0xff] %vm543_vm0, %v523_v26  ;;  %v716_v36 = vunpack.c.l.bf16 %v894_v24  ;;  %v844_v37 = vunpack.c.l.bf16 %v925_v25 }
  0x4b   :  { %v201_v35 = vmul.f32 %v713_v28, %v963_v1  ;;  %v717_v38 = vunpack.c.h.bf16 %v894_v24  ;;  %v462_v41 = vadd.f32 %v837_v19, %v270_v32  ;;  %v271_v42 = vadd.f32 %v977_v7, %v200_v33  ;;  %v929_v19 = vld [vmem:[%s1546_s3 + $0xe8] sm:$0xff]   ;;  %v899_v28 = vld [vmem:[%s1543_s0 + $0xf0] sm:$0xff]  }
  0x4c   :  { %589 = vst.msk [vmem:[%s1547_s4 + $0x168] sm:$0xff] %vm543_vm0, %v524_v30  ;;  %v525_v40 = vmax.f32 %v461_v31, 0.0  ;;  %v845_v43 = vunpack.c.h.bf16 %v925_v25  ;;  %v202_v45 = vmul.f32 %v716_v36, %v963_v1  ;;  %v720_v47 = vunpack.c.l.bf16 %v895_v34  ;;  %v930_v33 = vld [vmem:[%s1546_s3 + $0xf0] sm:$0xff]  }
  0x4d   :  { %v272_v44 = vadd.f32 %v977_v7, %v201_v35  ;;  %v203_v46 = vmul.f32 %v717_v38, %v963_v1  ;;  %v526_v49 = vmax.f32 %v462_v41, 0.0  ;;  %v463_v50 = vadd.f32 %v840_v27, %v271_v42  ;;  %v900_v42 = vld [vmem:[%s1543_s0 + $0xf8] sm:$0xff]  }
  0x4e   :  { %590 = vst.msk [vmem:[%s1547_s4 + $0x170] sm:$0xff] %vm543_vm0, %v525_v40  ;;  %v848_v51 = vunpack.c.l.bf16 %v926_v39  ;;  %v721_v52 = vunpack.c.h.bf16 %v895_v34  ;;  %v273_v54 = vadd.f32 %v977_v7, %v202_v45  ;;  %v204_v56 = vmul.f32 %v720_v47, %v963_v1 }
  0x4f   :  { %v464_v53 = vadd.f32 %v841_v29, %v272_v44  ;;  %v274_v55 = vadd.f32 %v977_v7, %v203_v46  ;;  %591 = vst.msk [vmem:[%s1547_s4 + $0x178] sm:$0xff] %vm543_vm0, %v526_v49  ;;  %v527_v58 = vmax.f32 %v463_v50, 0.0  ;;  %v849_v60 = vunpack.c.h.bf16 %v926_v39 }
  0x50   :  { %v205_v59 = vmul.f32 %v721_v52, %v963_v1  ;;  %v724_v61 = vunpack.c.l.bf16 %v896_v48  ;;  %v465_v63 = vadd.f32 %v844_v37, %v273_v54  ;;  %v275_v2 = vadd.f32 %v977_v7, %v204_v56 }
  0x51   :  { %v528_v62 = vmax.f32 %v464_v53, 0.0  ;;  %v466_v0 = vadd.f32 %v845_v43, %v274_v55  ;;  %592 = vst.msk [vmem:[%s1547_s4 + $0x180] sm:$0xff] %vm543_vm0, %v527_v58  ;;  %v852_v6 = vunpack.c.l.bf16 %v927_v57  ;;  %v725_v8 = vunpack.c.h.bf16 %v896_v48 }
  0x52   :  { %v276_v4 = vadd.f32 %v977_v7, %v205_v59  ;;  %v206_v5 = vmul.f32 %v724_v61, %v963_v1  ;;  %v529_v10 = vmax.f32 %v465_v63, 0.0  ;;  %v467_v12 = vadd.f32 %v848_v51, %v275_v2  ;;  %v931_v51 = vld [vmem:[%s1546_s3 + $0xf8] sm:$0xff]  }
  0x53   :  { %593 = vst.msk [vmem:[%s1547_s4 + $0x188] sm:$0xff] %vm543_vm0, %v528_v62  ;;  %v530_v11 = vmax.f32 %v466_v0, 0.0  ;;  %v853_v13 = vunpack.c.h.bf16 %v927_v57  ;;  %v207_v16 = vmul.f32 %v725_v8, %v963_v1  ;;  %v728_v17 = vunpack.c.l.bf16 %v897_v3 }
  0x54   :  { %v468_v14 = vadd.f32 %v849_v60, %v276_v4  ;;  %v277_v15 = vadd.f32 %v977_v7, %v206_v5  ;;  %594 = vst.msk [vmem:[%s1547_s4 + $0x190] sm:$0xff] %vm543_vm0, %v529_v10  ;;  %v531_v20 = vmax.f32 %v467_v12, 0.0  ;;  %v856_v21 = vunpack.c.l.bf16 %v928_v9 }
  0x55   :  { %595 = vst.msk [vmem:[%s1547_s4 + $0x198] sm:$0xff] %vm543_vm0, %v530_v11  ;;  %v729_v22 = vunpack.c.h.bf16 %v897_v3  ;;  %v857_v23 = vunpack.c.h.bf16 %v928_v9  ;;  %v278_v26 = vadd.f32 %v977_v7, %v207_v16  ;;  %v208_v27 = vmul.f32 %v728_v17, %v963_v1 }
  0x56   :  { %v532_v24 = vmax.f32 %v468_v14, 0.0  ;;  %v469_v25 = vadd.f32 %v852_v6, %v277_v15  ;;  %596 = vst.msk [vmem:[%s1547_s4 + $0x1a0] sm:$0xff] %vm543_vm0, %v531_v20  ;;  %v732_v30 = vunpack.c.l.bf16 %v898_v18  ;;  %v860_v31 = vunpack.c.l.bf16 %v929_v19 }
  0x57   :  { %v209_v29 = vmul.f32 %v729_v22, %v963_v1  ;;  %v733_v32 = vunpack.c.h.bf16 %v898_v18  ;;  %v470_v35 = vadd.f32 %v853_v13, %v278_v26  ;;  %v279_v36 = vadd.f32 %v977_v7, %v208_v27 }
  0x58   :  { %597 = vst.msk [vmem:[%s1547_s4 + $0x1a8] sm:$0xff] %vm543_vm0, %v532_v24  ;;  %v533_v34 = vmax.f32 %v469_v25, 0.0  ;;  %v861_v37 = vunpack.c.h.bf16 %v929_v19  ;;  %v210_v39 = vmul.f32 %v732_v30, %v963_v1  ;;  %v736_v41 = vunpack.c.l.bf16 %v899_v28 }
  0x59   :  { %v280_v38 = vadd.f32 %v977_v7, %v209_v29  ;;  %v211_v40 = vmul.f32 %v733_v32, %v963_v1  ;;  %v534_v43 = vmax.f32 %v470_v35, 0.0  ;;  %v471_v44 = vadd.f32 %v856_v21, %v279_v36 }
  0x5a   :  { %598 = vst.msk [vmem:[%s1547_s4 + $0x1b0] sm:$0xff] %vm543_vm0, %v533_v34  ;;  %v864_v45 = vunpack.c.l.bf16 %v930_v33  ;;  %v737_v46 = vunpack.c.h.bf16 %v899_v28  ;;  %v281_v48 = vadd.f32 %v977_v7, %v210_v39  ;;  %v212_v50 = vmul.f32 %v736_v41, %v963_v1 }
  0x5b   :  { %v472_v47 = vadd.f32 %v857_v23, %v280_v38  ;;  %v282_v49 = vadd.f32 %v977_v7, %v211_v40  ;;  %599 = vst.msk [vmem:[%s1547_s4 + $0x1b8] sm:$0xff] %vm543_vm0, %v534_v43  ;;  %v535_v52 = vmax.f32 %v471_v44, 0.0  ;;  %v865_v54 = vunpack.c.h.bf16 %v930_v33 }
  0x5c   :  { %v213_v53 = vmul.f32 %v737_v46, %v963_v1  ;;  %v740_v55 = vunpack.c.l.bf16 %v900_v42  ;;  %v473_v57 = vadd.f32 %v860_v31, %v281_v48  ;;  %v283_v59 = vadd.f32 %v977_v7, %v212_v50 }
  0x5d   :  { %v536_v56 = vmax.f32 %v472_v47, 0.0  ;;  %v474_v58 = vadd.f32 %v861_v37, %v282_v49  ;;  %600 = vst.msk [vmem:[%s1547_s4 + $0x1c0] sm:$0xff] %vm543_vm0, %v535_v52  ;;  %v868_v62 = vunpack.c.l.bf16 %v931_v51  ;;  %v741_v63 = vunpack.c.h.bf16 %v900_v42 }
  0x5e   :  { %v284_v60 = vadd.f32 %v977_v7, %v213_v53  ;;  %v214_v61 = vmul.f32 %v740_v55, %v963_v1  ;;  %v537_v0 = vmax.f32 %v473_v57, 0.0  ;;  %v475_v3 = vadd.f32 %v864_v45, %v283_v59 }
  0x5f   :  { %601 = vst.msk [vmem:[%s1547_s4 + $0x1c8] sm:$0xff] %vm543_vm0, %v536_v56  ;;  %v538_v2 = vmax.f32 %v474_v58, 0.0  ;;  %v215_v6 = vmul.f32 %v741_v63, %v963_v1  ;;  %v869_v8 = vunpack.c.h.bf16 %v931_v51 }
  0x60   :  { %v476_v4 = vadd.f32 %v865_v54, %v284_v60  ;;  %v285_v5 = vadd.f32 %v977_v7, %v214_v61  ;;  %602 = vst.msk [vmem:[%s1547_s4 + $0x1d0] sm:$0xff] %vm543_vm0, %v537_v0  ;;  %v539_v9 = vmax.f32 %v475_v3, 0.0 }
  0x61   :  { %603 = vst.msk [vmem:[%s1547_s4 + $0x1d8] sm:$0xff] %vm543_vm0, %v538_v2  ;;  %v286_v12 = vadd.f32 %v977_v7, %v215_v6 }
  0x62   :  { %v540_v10 = vmax.f32 %v476_v4, 0.0  ;;  %v477_v11 = vadd.f32 %v868_v62, %v285_v5  ;;  %604 = vst.msk [vmem:[%s1547_s4 + $0x1e0] sm:$0xff] %vm543_vm0, %v539_v9 }
  0x63   :  { %v478_v13 = vadd.f32 %v869_v8, %v286_v12 }
  0x64   :  { %605 = vst.msk [vmem:[%s1547_s4 + $0x1e8] sm:$0xff] %vm543_vm0, %v540_v10  ;;  %v541_v1 = vmax.f32 %v477_v11, 0.0 }
  0x65   :  { %v542_v14 = vmax.f32 %v478_v13, 0.0 }
  0x66   :  { %606 = vst.msk [vmem:[%s1547_s4 + $0x1f0] sm:$0xff] %vm543_vm0, %v541_v1 }
  0x67   :  { %607 = vst.msk [vmem:[%s1547_s4 + $0x1f8] sm:$0xff] %vm543_vm0, %v542_v14 }

// kernel: bottleneck_forward.5
= control target key start
LH: loop header
LB: loop body
LE: loop exit
PB: predicated region body
PF: predicated region fallthrough
CT: control target
= control target key end

     0   :  { %s7880_s21 = smov 0   ;;  %s9895_s0 = inlined_call_operand.vmem [shape: bf16[2,16,16,4], index: 0, kind: input, shape index: {}]   ;;  %s9896_s1 = inlined_call_operand.vmem [shape: f32[1,4], index: 1, kind: input, shape index: {}]   ;;  %s9897_s2 = inlined_call_operand.vmem [shape: f32[1,4], index: 2, kind: input, shape index: {}]   ;;  %s9898_s3 = inlined_call_operand.vmem [shape: bf16[9,4,4], index: 3, kind: input, shape index: {}]   ;;  %s9899_s4 = inlined_call_operand.vmem [shape: bf16[2,16,16,4], index: 4, kind: output, shape index: {0}]   ;;  %s9900_s5 = inlined_call_operand.vmem [shape: f32[1,4], index: 5, kind: output, shape index: {1}]   ;;  %s9901_s6 = inlined_call_operand.vmem [shape: f32[1,4], index: 6, kind: output, shape index: {2}]  }
   0x1 LB: > { %s6736_s22 = sadd.s32 4294967295, %s7841_s21   ;;  %p6740_p0 = scmp.ge.s32.totalorder %s7841_s21, 1  ;;  %s7841_s21 = sphi %s7880_s21, %s17_s21  }
   0x2   : > { %p207_p1 = scmp.lt.s32.totalorder %s7841_s21, 3 }
   0x4   : > { %p208_p2 = pnand %p6740_p0, %p207_p1 }
   0x5   : > { %p237_p3 = scmp.lt.s32.totalorder (!%p208_p2), %s6736_s22, 1  ;;  %p6745_p4 = scmp.ne.s32.totalorder (!%p208_p2), %s6736_s22, 0 }
   0x6   : > { %211 = sbr.rel (%p208_p2) target bundleno = 712 (0x2c8), region = 36 }
   0xd   : > { %s238_s23 = scalar_select %p237_p3, %s6736_s22, 1 }
   0xe   : > { %251 = sbr.rel (%p6745_p4) target bundleno = 43 (0x2b), region = 40  ;;  %vm252_vm0 = vcmask (!%p6745_p4), 24576   ;;  %vm255_vm1 = vcmask (!%p6745_p4), 27648   ;;  %v7843_v0 = vmov (!%p6745_p4), 0.0   ;;  %v7844_v1 = vmov (!%p6745_p4), 0  }
   0xf   : > { %s7158_s24 = sshll.u32 %s238_s23, 7  ;;  %253 = vst.msk [vmem:[%s9900_s5] sm:$0x1] (!%p6745_p4), %vm252_vm0, %v7843_v0  ;;  %254 = vst.msk [vmem:[%s9901_s6] sm:$0x1] (!%p6745_p4), %vm252_vm0, %v7843_v0 }
  0x10   : > { %s7891_s27 = scalar_lea.vmem %s9895_s0, %s7158_s24  ;;  %s7896_s30 = scalar_lea.vmem %s9899_s4, %s7158_s24  ;;  %256 = vst.msk [vmem:[#allocation2] sm:$0xf] (!%p6745_p4), %vm255_vm1, %v7844_v1  ;;  %257 = vst.msk [vmem:[#allocation2 + $0x4] sm:$0xf] (!%p6745_p4), %vm255_vm1, %v7844_v1 }
  0x11   : > { %258 = vst.msk [vmem:[#allocation2 + $0x8] sm:$0x1] (!%p6745_p4), %vm252_vm0, %v7844_v1  ;;  %261 = vst.msk [vmem:[#allocation2 + $0x14] sm:$0x1] (!%p6745_p4), %vm252_vm0, %v7844_v1 }
  0x12   : > { %259 = vst.msk [vmem:[#allocation2 + $0xc] sm:$0xf] (!%p6745_p4), %vm255_vm1, %v7844_v1  ;;  %260 = vst.msk [vmem:[#allocation2 + $0x10] sm:$0xf] (!%p6745_p4), %vm255_vm1, %v7844_v1 }
  0x13   : > { %262 = vst.msk [vmem:[#allocation2 + $0x18] sm:$0xf] (!%p6745_p4), %vm255_vm1, %v7844_v1  ;;  %263 = vst.msk [vmem:[#allocation2 + $0x1c] sm:$0xf] (!%p6745_p4), %vm255_vm1, %v7844_v1 }
  0x14   : > { %264 = vst.msk [vmem:[#allocation2 + $0x20] sm:$0x1] (!%p6745_p4), %vm252_vm0, %v7844_v1  ;;  %267 = vst.msk [vmem:[#allocation2 + $0x2c] sm:$0x1] (!%p6745_p4), %vm252_vm0, %v7844_v1 }
  0x15   : > { %265 = vst.msk [vmem:[#allocation2 + $0x24] sm:$0xf] %vm255_vm1, %v7844_v1  ;;  %266 = vst.msk [vmem:[#allocation2 + $0x28] sm:$0xf] %vm255_vm1, %v7844_v1 }
  0x16   : > { %268 = vst.msk [vmem:[#allocation2 + $0x30] sm:$0xf] %vm255_vm1, %v7844_v1  ;;  %269 = vst.msk [vmem:[#allocation2 + $0x34] sm:$0xf] %vm255_vm1, %v7844_v1 }
  0x17   : > { %270 = vst.msk [vmem:[#allocation2 + $0x38] sm:$0x1] %vm252_vm0, %v7844_v1  ;;  %273 = vst.msk [vmem:[#allocation2 + $0x44] sm:$0x1] %vm252_vm0, %v7844_v1 }
  0x18   : > { %271 = vst.msk [vmem:[#allocation2 + $0x3c] sm:$0xf] %vm255_vm1, %v7844_v1  ;;  %272 = vst.msk [vmem:[#allocation2 + $0x40] sm:$0xf] %vm255_vm1, %v7844_v1 }
  0x19   : > { %274 = vst.msk [vmem:[#allocation2 + $0x48] sm:$0xf] %vm255_vm1, %v7844_v1  ;;  %275 = vst.msk [vmem:[#allocation2 + $0x4c] sm:$0xf] %vm255_vm1, %v7844_v1 }
  0x1a   : > { %276 = vst.msk [vmem:[#allocation2 + $0x50] sm:$0x1] %vm252_vm0, %v7844_v1  ;;  %279 = vst.msk [vmem:[#allocation2 + $0x5c] sm:$0x1] %vm252_vm0, %v7844_v1 }
  0x1b   : > { %277 = vst.msk [vmem:[#allocation2 + $0x54] sm:$0xf] %vm255_vm1, %v7844_v1  ;;  %278 = vst.msk [vmem:[#allocation2 + $0x58] sm:$0xf] %vm255_vm1, %v7844_v1 }
  0x1c   : > { %280 = vst.msk [vmem:[#allocation2 + $0x60] sm:$0xf] %vm255_vm1, %v7844_v1  ;;  %281 = vst.msk [vmem:[#allocation2 + $0x64] sm:$0xf] %vm255_vm1, %v7844_v1 }
  0x1d   : > { %282 = vst.msk [vmem:[#allocation2 + $0x68] sm:$0x1] %vm252_vm0, %v7844_v1  ;;  %285 = vst.msk [vmem:[#allocation2 + $0x74] sm:$0x1] %vm252_vm0, %v7844_v1 }
  0x1e   : > { %283 = vst.msk [vmem:[#allocation2 + $0x6c] sm:$0xf] %vm255_vm1, %v7844_v1  ;;  %284 = vst.msk [vmem:[#allocation2 + $0x70] sm:$0xf] %vm255_vm1, %v7844_v1 }
  0x1f   : > { %286 = vst.msk [vmem:[#allocation2 + $0x78] sm:$0xf] %vm255_vm1, %v7844_v1  ;;  %287 = vst.msk [vmem:[#allocation2 + $0x7c] sm:$0xf] %vm255_vm1, %v7844_v1 }
  0x20   : > { %288 = vst.msk [vmem:[#allocation2 + $0x80] sm:$0x1] %vm252_vm0, %v7844_v1  ;;  %291 = vst.msk [vmem:[#allocation2 + $0x8c] sm:$0x1] %vm252_vm0, %v7844_v1 }
  0x21   : > { %289 = vst.msk [vmem:[#allocation2 + $0x84] sm:$0xf] %vm255_vm1, %v7844_v1  ;;  %290 = vst.msk [vmem:[#allocation2 + $0x88] sm:$0xf] %vm255_vm1, %v7844_v1 }
  0x22   : > { %292 = vst.msk [vmem:[#allocation2 + $0x90] sm:$0xf] %vm255_vm1, %v7844_v1  ;;  %293 = vst.msk [vmem:[#allocation2 + $0x94] sm:$0xf] %vm255_vm1, %v7844_v1 }
  0x23   : > { %294 = vst.msk [vmem:[#allocation2 + $0x98] sm:$0x1] %vm252_vm0, %v7844_v1  ;;  %297 = vst.msk [vmem:[#allocation2 + $0xa4] sm:$0x1] %vm252_vm0, %v7844_v1 }
  0x24   : > { %295 = vst.msk [vmem:[#allocation2 + $0x9c] sm:$0xf] %vm255_vm1, %v7844_v1  ;;  %296 = vst.msk [vmem:[#allocation2 + $0xa0] sm:$0xf] %vm255_vm1, %v7844_v1 }
  0x25   : > { %298 = vst.msk [vmem:[#allocation2 + $0xa8] sm:$0xf] %vm255_vm1, %v7844_v1  ;;  %299 = vst.msk [vmem:[#allocation2 + $0xac] sm:$0xf] %vm255_vm1, %v7844_v1 }
  0x26   : > { %300 = vst.msk [vmem:[#allocation2 + $0xb0] sm:$0x1] %vm252_vm0, %v7844_v1  ;;  %303 = vst.msk [vmem:[#allocation2 + $0xbc] sm:$0x1] %vm252_vm0, %v7844_v1 }
  0x27   : > { %301 = vst.msk [vmem:[#allocation2 + $0xb4] sm:$0xf] %vm255_vm1, %v7844_v1  ;;  %302 = vst.msk [vmem:[#allocation2 + $0xb8] sm:$0xf] %vm255_vm1, %v7844_v1 }
  0x28   : > { %304 = vst.msk [vmem:[#allocation2 + $0xc0] sm:$0xf] %vm255_vm1, %v7844_v1  ;;  %305 = vst.msk [vmem:[#allocation2 + $0xc4] sm:$0xf] %vm255_vm1, %v7844_v1 }
  0x29   : > { %306 = vst.msk [vmem:[#allocation2 + $0xc8] sm:$0x1] %vm252_vm0, %v7844_v1  ;;  %309 = vst.msk [vmem:[#allocation2 + $0xd4] sm:$0x1] %vm252_vm0, %v7844_v1 }
  0x2a   : > { %307 = vst.msk [vmem:[#allocation2 + $0xcc] sm:$0xf] %vm255_vm1, %v7844_v1  ;;  %308 = vst.msk [vmem:[#allocation2 + $0xd0] sm:$0xf] %vm255_vm1, %v7844_v1 }
  0x2b PF: > { %v1054_v2 = vld [vmem:[%s9898_s3] sm:$0x3]  ;;  %vm1184_vm2 = vcmask 1041408   ;;  %v7294_v3 = vld [vmem:[%s7891_s27 + $0x38] sm:$0xff]   ;;  %v6812_v12 = vld [vmem:[%s9898_s3 + $0x2] sm:$0x3] }
  0x2c   : > { %v7967_v4 = vld [vmem:[%s9896_s1] ss:$0 sm:$0xff]  ;;  %7765 = vmatprep.subr.msk.bf16.mxu1 %vm1184_vm2, %v1054_v2  ;;  %v1186_v5 = vsel %vm1184_vm2, %v1054_v2, 0  ;;  %v7254_v6 = vunpack.c.l.bf16 %v7294_v3  ;;  %v7255_v7 = vunpack.c.h.bf16 %v7294_v3  ;;  %7764 = vmatprep.subr.msk.bf16.mxu0 %vm1184_vm2, %v1054_v2  ;;  %vm580_vm3 = vsmask.f32 256  ;;  %v7296_v26 = vld [vmem:[%s7891_s27 + $0x48] sm:$0xff]  }
  0x2d   : > { %v7295_v8 = vld [vmem:[%s7891_s27 + $0x40] sm:$0xff]   ;;  %7763 = vmatpush3.bf16.msra.mxu1 %v1186_v5  ;;  %7457 = vmatpush3.bf16.msra.mxu0 %v1186_v5  ;;  %vm581_vm4 = vsmask.f32 4368  ;;  %vm904_vm5 = vcmask 27648   ;;  %vm905_vm6 = vsmask.f32 7938  ;;  %v7262_v29 = vunpack.c.l.bf16 %v7296_v26 }
  0x2e   : > { %v7976_v9 = vld [vmem:[%s9897_s2] ss:$0 sm:$0xff]  ;;  %v395_v10 = vmul.f32 %v7254_v6, %v7967_v4  ;;  %v396_v11 = vmul.f32 %v7255_v7, %v7967_v4  ;;  %v7258_v13 = vunpack.c.l.bf16 %v7295_v8  ;;  %7766 = vmatprep.subr.msk.bf16.mxu1 %vm1184_vm2, %v6812_v12  ;;  %v7259_v14 = vunpack.c.h.bf16 %v7295_v8  ;;  %v7999_v31 = vld [vmem:[%s9898_s3 + $0x4] sm:$0x3]  ;;  %vm8011_vm8 = vmor %vm580_vm3, %vm581_vm4 }
  0x2f   : > { %v7786_v18 = vld [vmem:[#allocation2] sm:$0xff]   ;;  %vm1135_vm7 = vcmask 31744   ;;  %v7989_v20 = vsel %vm1184_vm2, %v6812_v12, 0  ;;  %v7263_v30 = vunpack.c.h.bf16 %v7296_v26  ;;  %7767 = vmatprep.subr.msk.bf16.mxu0 %vm1184_vm2, %v7999_v31  ;;  %v399_v38 = vmul.f32 %v7262_v29, %v7967_v4  ;;  %vm8021_vm10 = vmand %vm904_vm5, %vm905_vm6  ;;  %v966_v6 = vld [vmem:[#allocation2 + $0x6c] sm:$0xf] }
  0x30   : > { %v434_v15 = vadd.f32 %v7976_v9, %v395_v10  ;;  %v435_v16 = vadd.f32 %v7976_v9, %v396_v11  ;;  %v397_v17 = vmul.f32 %v7258_v13, %v7967_v4  ;;  %v398_v19 = vmul.f32 %v7259_v14, %v7967_v4  ;;  %v7225_v21 = vld [vmem:[%s7891_s27] sm:$0xff]   ;;  %7458 = vmatprep.mubr.msk.bf16.mxu0 %vm1135_vm7, %v7786_v18  ;;  %v7297_v10 = vld [vmem:[%s7891_s27 + $0x50] sm:$0xff]  }
  0x31   : > { %v7226_v25 = vunpack.c.l.bf16 %v7225_v21  ;;  %v7227_v28 = vunpack.c.h.bf16 %v7225_v21  ;;  %v400_v39 = vmul.f32 %v7263_v30, %v7967_v4  ;;  %vm912_vm9 = vcmask 24576   ;;  %v959_v54 = vld [vmem:[#allocation2 + $0x60] sm:$0xf] }
  0x32   : > { %v466_v22 = vmax.f32 %v434_v15, 0.0  ;;  %v467_v23 = vmax.f32 %v435_v16, 0.0  ;;  %v436_v24 = vadd.f32 %v7976_v9, %v397_v17  ;;  %v437_v27 = vadd.f32 %v7976_v9, %v398_v19  ;;  %vm8047_vm11 = vmand %vm912_vm9, %vm580_vm3 }
  0x33   : > { %v381_v35 = vmul.f32 %v7226_v25, %v7967_v4  ;;  %v382_v37 = vmul.f32 %v7227_v28, %v7967_v4  ;;  %v438_v51 = vadd.f32 %v7976_v9, %v399_v38  ;;  %v439_v52 = vadd.f32 %v7976_v9, %v400_v39  ;;  %v7288_v28 = vld [vmem:[%s7891_s27 + $0x8] sm:$0xff]  }
  0x34   : > { %v7174_v32 = vpack.c.bf16 %v466_v22, %v466_v22  ;;  %v7175_v33 = vpack.c.bf16 %v467_v23, %v467_v23  ;;  %v468_v34 = vmax.f32 %v436_v24, 0.0  ;;  %v469_v36 = vmax.f32 %v437_v27, 0.0 }
  0x35   : > { %v420_v46 = vadd.f32 %v7976_v9, %v381_v35  ;;  %v421_v47 = vadd.f32 %v7976_v9, %v382_v37  ;;  %v470_v7 = vmax.f32 %v438_v51, 0.0  ;;  %v471_v8 = vmax.f32 %v439_v52, 0.0  ;;  %v914_v37 = vld [vmem:[#allocation2 + $0x14] sm:$0x1] }
  0x36   : > { %v703_v40 = vshrl.u32 %v7174_v32, 16  ;;  %v706_v41 = vshll.u32 %v7174_v32, 16  ;;  %v711_v42 = vshrl.u32 %v7175_v33, 16  ;;  %v714_v43 = vshll.u32 %v7175_v33, 16 }
  0x37   : > { %v7176_v44 = vpack.c.bf16 %v468_v34, %v468_v34  ;;  %v7177_v45 = vpack.c.bf16 %v469_v36, %v469_v36  ;;  %v452_v1 = vmax.f32 %v420_v46, 0.0  ;;  %v453_v2 = vmax.f32 %v421_v47, 0.0  ;;  %v907_v36 = vld [vmem:[#allocation2 + $0xc] sm:$0xf] }
  0x38   : > { %v705_v49 = vrot.slane %v703_v40, 7  ;;  %v8015_v50 = vrot.slane %v711_v42, 7  ;;  %v7178_v17 = vpack.c.bf16 %v470_v7, %v470_v7  ;;  %v7179_v18 = vpack.c.bf16 %v471_v8, %v471_v8 }
  0x39   : > { %v720_v55 = vshrl.u32 %v7176_v44, 16  ;;  %v723_v56 = vshll.u32 %v7176_v44, 16  ;;  %v728_v57 = vshrl.u32 %v7177_v45, 16  ;;  %v731_v58 = vshll.u32 %v7177_v45, 16 }
  0x3a   : > { %v708_v59 = vor.u32 %v706_v41, %v705_v49  ;;  %v709_v60 = vrot.slane %v705_v49, 4  ;;  %v716_v61 = vor.u32 %v714_v43, %v8015_v50  ;;  %v718_v62 = vrot.slane %v8015_v50, 4  ;;  %v973_v43 = vld [vmem:[#allocation2 + $0x78] sm:$0xf] }
  0x3b   : > { %v722_v63 = vrot.slane %v720_v55, 7  ;;  %v8027_v0 = vrot.slane %v728_v57, 7  ;;  %v7160_v15 = vpack.c.bf16 %v452_v1, %v452_v1  ;;  %v7161_v16 = vpack.c.bf16 %v453_v2, %v453_v2 }
  0x3c   : > { %v717_v3 = vsel %vm8011_vm8, %v709_v60, %v716_v61  ;;  %v960_v5 = vsel %vm8021_vm10, %v708_v59, %v959_v54  ;;  %v7266_v22 = vunpack.c.l.bf16 %v7297_v10  ;;  %v7267_v23 = vunpack.c.h.bf16 %v7297_v10 }
  0x3d   : > { %961 = vst [vmem:[#allocation2 + $0x60] sm:$0xf] %v960_v5  ;;  %962 = vst.msk [vmem:[#allocation2 + $0x64] sm:$0xf] %vm904_vm5, %v717_v3  ;;  %v725_v11 = vor.u32 %v723_v56, %v722_v63  ;;  %v726_v12 = vrot.slane %v722_v63, 4  ;;  %v733_v13 = vor.u32 %v731_v58, %v8027_v0  ;;  %v735_v14 = vrot.slane %v8027_v0, 4 }
  0x3e   : > { %v584_v24 = vshrl.u32 %v7160_v15, 16  ;;  %v587_v25 = vshll.u32 %v7160_v15, 16  ;;  %v592_v26 = vshrl.u32 %v7161_v16, 16  ;;  %v595_v27 = vshll.u32 %v7161_v16, 16  ;;  %v7289_v58 = vld [vmem:[%s7891_s27 + $0x10] sm:$0xff]   ;;  %v7298_v63 = vld [vmem:[%s7891_s27 + $0x58] sm:$0xff]  }
  0x3f   : > { %v734_v19 = vsel %vm8011_vm8, %v726_v12, %v733_v13  ;;  %v967_v21 = vsel %vm8021_vm10, %v725_v11, %v966_v6  ;;  %v737_v29 = vshrl.u32 %v7178_v17, 16  ;;  %v740_v30 = vshll.u32 %v7178_v17, 16  ;;  %v8080_v12 = vld [vmem:[%s9898_s3 + $0x6] sm:$0x3] }
  0x40   : > { %968 = vst [vmem:[#allocation2 + $0x6c] sm:$0xf] %v967_v21  ;;  %969 = vst.msk [vmem:[#allocation2 + $0x70] sm:$0xf] %vm904_vm5, %v734_v19  ;;  %v745_v32 = vshrl.u32 %v7179_v18, 16  ;;  %v748_v33 = vshll.u32 %v7179_v18, 16  ;;  %v401_v38 = vmul.f32 %v7266_v22, %v7967_v4  ;;  %v402_v39 = vmul.f32 %v7267_v23, %v7967_v4 }
  0x41   : > { %v586_v34 = vrot.slane %v584_v24, 7  ;;  %v594_v35 = vrot.slane %v592_v26, 7  ;;  %v739_v41 = vrot.slane %v737_v29, 7  ;;  %v8055_v44 = vsel %vm1184_vm2, %v7999_v31, 0 }
  0x42   : > { %v8051_v42 = vrot.slane %v745_v32, 7  ;;  %v7230_v45 = vunpack.c.l.bf16 %v7288_v28  ;;  %v440_v52 = vadd.f32 %v7976_v9, %v401_v38  ;;  %v441_v61 = vadd.f32 %v7976_v9, %v402_v39 }
  0x43   : > { %v589_v47 = vor.u32 %v587_v25, %v586_v34  ;;  %v590_v49 = vrot.slane %v586_v34, 4  ;;  %v597_v51 = vor.u32 %v595_v27, %v594_v35  ;;  %v599_v54 = vrot.slane %v594_v35, 4  ;;  %v7299_v27 = vld [vmem:[%s7891_s27 + $0x60] sm:$0xff]  }
  0x44   : > { %v7784_v46 = vld [vmem:[#allocation2 + $0x60] sm:$0xff]   ;;  %v742_v55 = vor.u32 %v740_v30, %v739_v41  ;;  %v743_v56 = vrot.slane %v739_v41, 4  ;;  %v750_v57 = vor.u32 %v748_v33, %v8051_v42  ;;  %v752_v60 = vrot.slane %v8051_v42, 4  ;;  %v984_v42 = vld [vmem:[#allocation2 + $0x8c] sm:$0x1] }
  0x45   : > { %7474 = vmatprep.mubr.msk.bf16.mxu1 %vm1135_vm7, %v7784_v46  ;;  %v598_v31 = vsel %vm8011_vm8, %v590_v49, %v597_v51  ;;  %v908_v59 = vsel %vm8021_vm10, %v589_v47, %v907_v36  ;;  %v915_v2 = vsel %vm8047_vm11, %v599_v54, %v914_v37  ;;  %v472_v6 = vmax.f32 %v440_v52, 0.0  ;;  %v8099_v37 = vld [vmem:[%s9898_s3 + $0x8] sm:$0x3] }
  0x46   : > { %909 = vst [vmem:[#allocation2 + $0xc] sm:$0xf] %v908_v59  ;;  %911 = vst.msk [vmem:[#allocation2 + $0x10] sm:$0xf] %vm904_vm5, %v598_v31  ;;  %v751_v3 = vsel %vm8011_vm8, %v743_v56, %v750_v57  ;;  %v974_v5 = vsel %vm8021_vm10, %v742_v55, %v973_v43  ;;  %v473_v7 = vmax.f32 %v441_v61, 0.0  ;;  %v7231_v8 = vunpack.c.h.bf16 %v7288_v28 }
  0x47   : > { %v7785_v1 = vld [vmem:[#allocation2 + $0x6c] sm:$0xff]   ;;  %916 = vst [vmem:[#allocation2 + $0x14] sm:$0x1] %v915_v2  ;;  %975 = vst [vmem:[#allocation2 + $0x78] sm:$0xf] %v974_v5  ;;  %v383_v10 = vmul.f32 %v7230_v45, %v7967_v4  ;;  %v7234_v11 = vunpack.c.l.bf16 %v7289_v58  ;;  %v7180_v13 = vpack.c.bf16 %v472_v6, %v472_v6  ;;  %v7235_v15 = vunpack.c.h.bf16 %v7289_v58 }
  0x48   : > { %976 = vst.msk [vmem:[#allocation2 + $0x7c] sm:$0xf] %vm904_vm5, %v751_v3  ;;  %7475 = vmatmul.mubr.msk.bf16.vlgmr.msra.gmra.mrb[0].mxu1 %vm1135_vm7, %v7785_v1  ;;  %v7270_v16 = vunpack.c.l.bf16 %v7298_v63  ;;  %v7271_v17 = vunpack.c.h.bf16 %v7298_v63  ;;  %v7181_v18 = vpack.c.bf16 %v473_v7, %v473_v7  ;;  %v384_v19 = vmul.f32 %v7231_v8, %v7967_v4  ;;  %v917_v5 = vld [vmem:[#allocation2 + $0x18] sm:$0xf] }
  0x49   : > { %7491 = vmatpush3.bf16.msra.mxu1 %v7989_v20  ;;  %v422_v21 = vadd.f32 %v7976_v9, %v383_v10  ;;  %v385_v22 = vmul.f32 %v7234_v11, %v7967_v4  ;;  %v754_v23 = vshrl.u32 %v7180_v13, 16  ;;  %v757_v24 = vshll.u32 %v7180_v13, 16  ;;  %v980_v20 = vld [vmem:[#allocation2 + $0x84] sm:$0xf] }
  0x4a   : > { %v386_v25 = vmul.f32 %v7235_v15, %v7967_v4  ;;  %v403_v26 = vmul.f32 %v7270_v16, %v7967_v4  ;;  %7768 = vmatprep.subr.msk.bf16.mxu1 %vm1184_vm2, %v8080_v12  ;;  %v762_v28 = vshrl.u32 %v7181_v18, 16  ;;  %v765_v29 = vshll.u32 %v7181_v18, 16 }
  0x4b   : > { %v423_v30 = vadd.f32 %v7976_v9, %v384_v19  ;;  %v454_v32 = vmax.f32 %v422_v21, 0.0  ;;  %v756_v33 = vrot.slane %v754_v23, 7  ;;  %v424_v34 = vadd.f32 %v7976_v9, %v385_v22 }
  0x4c   : > { %v425_v35 = vadd.f32 %v7976_v9, %v386_v25  ;;  %v404_v36 = vmul.f32 %v7271_v17, %v7967_v4  ;;  %v8101_v39 = vrot.slane %v762_v28, 7  ;;  %v442_v43 = vadd.f32 %v7976_v9, %v403_v26 }
  0x4d   : > { %v7787_v38 = vld [vmem:[#allocation2 + $0xc] sm:$0xff]   ;;  %v7162_v41 = vpack.c.bf16 %v454_v32, %v454_v32  ;;  %v7274_v45 = vunpack.c.l.bf16 %v7299_v27  ;;  %v759_v47 = vor.u32 %v757_v24, %v756_v33  ;;  %v760_v49 = vrot.slane %v756_v33, 4 }
  0x4e   : > { %v443_v51 = vadd.f32 %v7976_v9, %v404_v36  ;;  %v7275_v52 = vunpack.c.h.bf16 %v7299_v27  ;;  %7459 = vmatmul.mubr.msk.bf16.vlgmr.msra.gmra.mrb[0].mxu0 %vm1135_vm7, %v7787_v38  ;;  %v767_v54 = vor.u32 %v765_v29, %v8101_v39  ;;  %v769_v55 = vrot.slane %v8101_v39, 4  ;;  %v924_v27 = vld [vmem:[#allocation2 + $0x24] sm:$0xf] }
  0x4f   : > { %v7788_v46 = vld [vmem:[#allocation2 + $0x78] sm:$0xff]   ;;  %v455_v56 = vmax.f32 %v423_v30, 0.0  ;;  %v601_v57 = vshrl.u32 %v7162_v41, 16  ;;  %v981_v58 = vsel %vm8021_vm10, %v759_v47, %v980_v20  ;;  %7525 = vmatpush3.bf16.msra.mxu0 %v8055_v44  ;;  %v604_v31 = vshll.u32 %v7162_v41, 16 }
  0x50   : > { %7478 = vmatprep.mubr.msk.bf16.mxu1 %vm1135_vm7, %v7788_v46  ;;  %v456_v59 = vmax.f32 %v424_v34, 0.0  ;;  %v457_v61 = vmax.f32 %v425_v35, 0.0  ;;  %v768_v63 = vsel %vm8011_vm8, %v760_v49, %v767_v54  ;;  %982 = vst [vmem:[#allocation2 + $0x84] sm:$0xf] %v981_v58  ;;  %v474_v3 = vmax.f32 %v442_v43, 0.0  ;;  %7769 = vmatprep.subr.msk.bf16.mxu0 %vm1184_vm2, %v8099_v37  ;;  %v7290_v41 = vld [vmem:[%s7891_s27 + $0x18] sm:$0xff]  }
  0x51   : > { %v7163_v1 = vpack.c.bf16 %v455_v56, %v455_v56  ;;  %v603_v2 = vrot.slane %v601_v57, 7  ;;  %983 = vst.msk [vmem:[#allocation2 + $0x88] sm:$0xf] %vm904_vm5, %v768_v63  ;;  %v475_v8 = vmax.f32 %v443_v51, 0.0  ;;  %v405_v44 = vmul.f32 %v7274_v45, %v7967_v4  ;;  %v7291_v43 = vld [vmem:[%s7891_s27 + $0x20] sm:$0xff]  }
  0x52   : > { %v7164_v6 = vpack.c.bf16 %v456_v59, %v456_v59  ;;  %v7165_v7 = vpack.c.bf16 %v457_v61, %v457_v61  ;;  %v7182_v23 = vpack.c.bf16 %v474_v3, %v474_v3  ;;  %v406_v28 = vmul.f32 %v7275_v52, %v7967_v4  ;;  %v987_v56 = vld [vmem:[#allocation2 + $0x90] sm:$0xf] }
  0x53   : > { %v606_v10 = vor.u32 %v604_v31, %v603_v2  ;;  %v607_v11 = vrot.slane %v603_v2, 4  ;;  %v609_v13 = vshrl.u32 %v7163_v1, 16  ;;  %v612_v15 = vshll.u32 %v7163_v1, 16 }
  0x54   : > { %v618_v16 = vshrl.u32 %v7164_v6, 16  ;;  %v621_v17 = vshll.u32 %v7164_v6, 16  ;;  %v626_v18 = vshrl.u32 %v7165_v7, 16  ;;  %v629_v19 = vshll.u32 %v7165_v7, 16 }
  0x55   : > { %v8118_v21 = vrot.slane %v609_v13, 7  ;;  %v918_v22 = vsel %vm8021_vm10, %v606_v10, %v917_v5  ;;  %v7183_v24 = vpack.c.bf16 %v475_v8, %v475_v8  ;;  %v444_v29 = vadd.f32 %v7976_v9, %v405_v44 }
  0x56   : > { %919 = vst [vmem:[#allocation2 + $0x18] sm:$0xf] %v918_v22  ;;  %v620_v25 = vrot.slane %v618_v16, 7  ;;  %v8122_v26 = vrot.slane %v626_v18, 7  ;;  %v771_v32 = vshrl.u32 %v7182_v23, 16  ;;  %v774_v33 = vshll.u32 %v7182_v23, 16 }
  0x57   : > { %v614_v20 = vor.u32 %v612_v15, %v8118_v21  ;;  %v616_v30 = vrot.slane %v8118_v21, 4  ;;  %v779_v49 = vshrl.u32 %v7183_v24, 16  ;;  %v782_v51 = vshll.u32 %v7183_v24, 16  ;;  %v7300_v16 = vld [vmem:[%s7891_s27 + $0x68] sm:$0xff]   ;;  %v994_v18 = vld [vmem:[#allocation2 + $0x9c] sm:$0xf] }
  0x58   : > { %v623_v34 = vor.u32 %v621_v17, %v620_v25  ;;  %v624_v35 = vrot.slane %v620_v25, 4  ;;  %v631_v36 = vor.u32 %v629_v19, %v8122_v26  ;;  %v633_v38 = vrot.slane %v8122_v26, 4  ;;  %v7789_v45 = vld [vmem:[#allocation2 + $0x84] sm:$0xff]  }
  0x59   : > { %v615_v46 = vsel %vm8011_vm8, %v607_v11, %v614_v20  ;;  %v773_v47 = vrot.slane %v771_v32, 7  ;;  %v445_v57 = vadd.f32 %v7976_v9, %v406_v28  ;;  %v476_v58 = vmax.f32 %v444_v29, 0.0  ;;  %7479 = vmatmul.mubr.msk.bf16.gmra.mrb[4].mxu1 %vm1135_vm7, %v7789_v45 }
  0x5a   : > { %920 = vst.msk [vmem:[#allocation2 + $0x1c] sm:$0xf] %vm904_vm5, %v615_v46  ;;  %v632_v52 = vsel %vm8011_vm8, %v624_v35, %v631_v36  ;;  %v925_v54 = vsel %vm8021_vm10, %v623_v34, %v924_v27  ;;  %v8142_v61 = vrot.slane %v779_v49, 7  ;;  %v7238_v63 = vunpack.c.l.bf16 %v7290_v41  ;;  %v8160_v35 = vld [vmem:[%s7891_s27 + $0x70] sm:$0xff]  }
  0x5b   : > { %926 = vst [vmem:[#allocation2 + $0x24] sm:$0xf] %v925_v54  ;;  %927 = vst.msk [vmem:[#allocation2 + $0x28] sm:$0xf] %vm904_vm5, %v632_v52  ;;  %v776_v31 = vor.u32 %v774_v33, %v773_v47  ;;  %v777_v59 = vrot.slane %v773_v47, 4  ;;  %v477_v1 = vmax.f32 %v445_v57, 0.0  ;;  %v7184_v2 = vpack.c.bf16 %v476_v58, %v476_v58 }
  0x5c   : > { %v7239_v3 = vunpack.c.h.bf16 %v7290_v41  ;;  %v7242_v5 = vunpack.c.l.bf16 %v7291_v43  ;;  %v784_v6 = vor.u32 %v782_v51, %v8142_v61  ;;  %v786_v7 = vrot.slane %v8142_v61, 4 }
  0x5d   : > { %v988_v8 = vsel %vm8021_vm10, %v776_v31, %v987_v56  ;;  %v387_v44 = vmul.f32 %v7238_v63, %v7967_v4  ;;  %v7185_v10 = vpack.c.bf16 %v477_v1, %v477_v1  ;;  %v788_v11 = vshrl.u32 %v7184_v2, 16 }
  0x5e   : > { %989 = vst [vmem:[#allocation2 + $0x90] sm:$0xf] %v988_v8  ;;  %v791_v13 = vshll.u32 %v7184_v2, 16  ;;  %v388_v15 = vmul.f32 %v7239_v3, %v7967_v4  ;;  %v785_v17 = vsel %vm8011_vm8, %v777_v59, %v784_v6  ;;  %v7243_v22 = vunpack.c.h.bf16 %v7291_v43 }
  0x5f   : > { %v426_v19 = vadd.f32 %v7976_v9, %v387_v44  ;;  %v389_v23 = vmul.f32 %v7242_v5, %v7967_v4  ;;  %990 = vst.msk [vmem:[#allocation2 + $0x94] sm:$0xf] %vm904_vm5, %v785_v17  ;;  %v790_v24 = vrot.slane %v788_v11, 7  ;;  %v796_v25 = vshrl.u32 %v7185_v10, 16 }
  0x60   : > { %v799_v27 = vshll.u32 %v7185_v10, 16  ;;  %v427_v28 = vadd.f32 %v7976_v9, %v388_v15  ;;  %v390_v32 = vmul.f32 %v7243_v22, %v7967_v4  ;;  %v7278_v34 = vunpack.c.l.bf16 %v7300_v16 }
  0x61   : > { %v7790_v29 = vld [vmem:[#allocation2 + $0x18] sm:$0xff]   ;;  %v458_v20 = vmax.f32 %v426_v19, 0.0  ;;  %v428_v33 = vadd.f32 %v7976_v9, %v389_v23  ;;  %v793_v41 = vor.u32 %v791_v13, %v790_v24  ;;  %v794_v43 = vrot.slane %v790_v24, 4  ;;  %v931_v13 = vld [vmem:[#allocation2 + $0x30] sm:$0xf] }
  0x62   : > { %v7791_v36 = vld [vmem:[#allocation2 + $0x24] sm:$0xff]   ;;  %v7279_v45 = vunpack.c.h.bf16 %v7300_v16  ;;  %7462 = vmatprep.mubr.msk.bf16.mxu0 %vm1135_vm7, %v7790_v29  ;;  %v8163_v46 = vrot.slane %v796_v25, 7  ;;  %v459_v47 = vmax.f32 %v427_v28, 0.0  ;;  %v429_v51 = vadd.f32 %v7976_v9, %v390_v32 }
  0x63   : > { %v7166_v49 = vpack.c.bf16 %v458_v20, %v458_v20  ;;  %7463 = vmatmul.mubr.msk.bf16.gmra.mrb[4].mxu0 %vm1135_vm7, %v7791_v36  ;;  %v995_v52 = vsel %vm8021_vm10, %v793_v41, %v994_v18  ;;  %v460_v54 = vmax.f32 %v428_v33, 0.0  ;;  %v407_v56 = vmul.f32 %v7278_v34, %v7967_v4  ;;  %v938_v34 = vld [vmem:[#allocation2 + $0x3c] sm:$0xf] }
  0x64   : > { %v408_v57 = vmul.f32 %v7279_v45, %v7967_v4  ;;  %v801_v58 = vor.u32 %v799_v27, %v8163_v46  ;;  %996 = vst [vmem:[#allocation2 + $0x9c] sm:$0xf] %v995_v52  ;;  %v7167_v31 = vpack.c.bf16 %v459_v47, %v459_v47  ;;  %v7282_v63 = vunpack.c.l.bf16 %v8160_v35 }
  0x65   : > { %v635_v59 = vshrl.u32 %v7166_v49, 16  ;;  %v638_v1 = vshll.u32 %v7166_v49, 16  ;;  %v461_v2 = vmax.f32 %v429_v51, 0.0  ;;  %v7168_v3 = vpack.c.bf16 %v460_v54, %v460_v54 }
  0x66   : > { %v446_v5 = vadd.f32 %v7976_v9, %v407_v56  ;;  %v7792_v6 = vld [vmem:[#allocation2 + $0x90] sm:$0xff]   ;;  %v802_v8 = vsel %vm8011_vm8, %v794_v43, %v801_v58  ;;  %v643_v10 = vshrl.u32 %v7167_v31, 16  ;;  %v646_v11 = vshll.u32 %v7167_v31, 16  ;;  %v7292_v56 = vld [vmem:[%s7891_s27 + $0x28] sm:$0xff]  }
  0x67   : > { %v637_v44 = vrot.slane %v635_v59, 7  ;;  %997 = vst.msk [vmem:[#allocation2 + $0xa0] sm:$0xf] %vm904_vm5, %v802_v8  ;;  %v7169_v15 = vpack.c.bf16 %v461_v2, %v461_v2  ;;  %v652_v16 = vshrl.u32 %v7168_v3, 16  ;;  %v655_v17 = vshll.u32 %v7168_v3, 16  ;;  %7482 = vmatprep.mubr.msk.bf16.mxu1 %vm1135_vm7, %v7792_v6 }
  0x68   : > { %v447_v18 = vadd.f32 %v7976_v9, %v408_v57  ;;  %v8179_v23 = vrot.slane %v643_v10, 7  ;;  %v478_v24 = vmax.f32 %v446_v5, 0.0  ;;  %v803_v20 = vrot.slane %v8163_v46, 4 }
  0x69   : > { %v640_v19 = vor.u32 %v638_v1, %v637_v44  ;;  %v641_v22 = vrot.slane %v637_v44, 4  ;;  %v654_v25 = vrot.slane %v652_v16, 7  ;;  %v660_v27 = vshrl.u32 %v7169_v15, 16  ;;  %v1001_v44 = vld [vmem:[#allocation2 + $0xa8] sm:$0xf] }
  0x6a   : > { %v663_v28 = vshll.u32 %v7169_v15, 16  ;;  %v479_v29 = vmax.f32 %v447_v18, 0.0  ;;  %v648_v32 = vor.u32 %v646_v11, %v8179_v23  ;;  %v7186_v36 = vpack.c.bf16 %v478_v24, %v478_v24 }
  0x6b   : > { %v932_v33 = vsel %vm8021_vm10, %v640_v19, %v931_v13  ;;  %v657_v41 = vor.u32 %v655_v17, %v654_v25  ;;  %v658_v43 = vrot.slane %v654_v25, 4  ;;  %v8185_v45 = vrot.slane %v660_v27, 7  ;;  %v7293_v13 = vld [vmem:[%s7891_s27 + $0x30] sm:$0xff]  }
  0x6c   : > { %933 = vst [vmem:[#allocation2 + $0x30] sm:$0xf] %v932_v33  ;;  %v7187_v47 = vpack.c.bf16 %v479_v29, %v479_v29  ;;  %v649_v49 = vsel %vm8011_vm8, %v641_v22, %v648_v32  ;;  %v805_v51 = vshrl.u32 %v7186_v36, 16  ;;  %v808_v52 = vshll.u32 %v7186_v36, 16  ;;  %v1381_v32 = vld [vmem:[#allocation2] sm:$0xf] }
  0x6d   : > { %v7283_v54 = vunpack.c.h.bf16 %v8160_v35  ;;  %v650_v57 = vrot.slane %v8179_v23, 4  ;;  %934 = vst.msk [vmem:[#allocation2 + $0x34] sm:$0xf] %vm904_vm5, %v649_v49  ;;  %v665_v58 = vor.u32 %v663_v28, %v8185_v45  ;;  %v939_v31 = vsel %vm8021_vm10, %v657_v41, %v938_v34 }
  0x6e   : > { %v813_v59 = vshrl.u32 %v7187_v47, 16  ;;  %v7793_v1 = vld [vmem:[#allocation2 + $0x9c] sm:$0xff]   ;;  %940 = vst [vmem:[#allocation2 + $0x3c] sm:$0xf] %v939_v31  ;;  %v807_v2 = vrot.slane %v805_v51, 7  ;;  %v816_v3 = vshll.u32 %v7187_v47, 16  ;;  %v409_v5 = vmul.f32 %v7282_v63, %v7967_v4 }
  0x6f   : > { %v410_v35 = vmul.f32 %v7283_v54, %v7967_v4  ;;  %v666_v6 = vsel %vm8011_vm8, %v658_v43, %v665_v58  ;;  %v7246_v10 = vunpack.c.l.bf16 %v7292_v56  ;;  %v7247_v11 = vunpack.c.h.bf16 %v7292_v56  ;;  %7483 = vmatmul.mubr.msk.bf16.gmra.mrb[8].mxu1 %vm1135_vm7, %v7793_v1 }
  0x70   : > { %v8200_v8 = vrot.slane %v813_v59, 7  ;;  %941 = vst.msk [vmem:[#allocation2 + $0x40] sm:$0xf] %vm904_vm5, %v666_v6  ;;  %v810_v15 = vor.u32 %v808_v52, %v807_v2  ;;  %v811_v16 = vrot.slane %v807_v2, 4  ;;  %v448_v17 = vadd.f32 %v7976_v9, %v409_v5 }
  0x71   : > { %v449_v63 = vadd.f32 %v7976_v9, %v410_v35  ;;  %v667_v18 = vrot.slane %v8185_v45, 4  ;;  %v391_v22 = vmul.f32 %v7246_v10, %v7967_v4  ;;  %v392_v24 = vmul.f32 %v7247_v11, %v7967_v4 }
  0x72   : > { %v818_v19 = vor.u32 %v816_v3, %v8200_v8  ;;  %v1002_v25 = vsel %vm8021_vm10, %v810_v15, %v1001_v44  ;;  %v480_v27 = vmax.f32 %v448_v17, 0.0  ;;  %v7250_v29 = vunpack.c.l.bf16 %v7293_v13  ;;  %v1008_v17 = vld [vmem:[#allocation2 + $0xb4] sm:$0xf] }
  0x73   : > { %v481_v28 = vmax.f32 %v449_v63, 0.0  ;;  %1003 = vst [vmem:[#allocation2 + $0xa8] sm:$0xf] %v1002_v25  ;;  %v430_v34 = vadd.f32 %v7976_v9, %v391_v22  ;;  %v431_v36 = vadd.f32 %v7976_v9, %v392_v24  ;;  %v7251_v41 = vunpack.c.h.bf16 %v7293_v13 }
  0x74   : > { %v819_v33 = vsel %vm8011_vm8, %v811_v16, %v818_v19  ;;  %v7794_v43 = vld [vmem:[#allocation2 + $0x30] sm:$0xff]   ;;  %v820_v47 = vrot.slane %v8200_v8, 4  ;;  %v7188_v49 = vpack.c.bf16 %v480_v27, %v480_v27  ;;  %v393_v52 = vmul.f32 %v7250_v29, %v7967_v4  ;;  %v921_v16 = vld [vmem:[#allocation2 + $0x20] sm:$0x1] }
  0x75   : > { %1004 = vst.msk [vmem:[#allocation2 + $0xac] sm:$0xf] %vm904_vm5, %v819_v33  ;;  %v7189_v51 = vpack.c.bf16 %v481_v28, %v481_v28  ;;  %v462_v54 = vmax.f32 %v430_v34, 0.0  ;;  %v463_v56 = vmax.f32 %v431_v36, 0.0  ;;  %v394_v58 = vmul.f32 %v7251_v41, %v7967_v4  ;;  %7466 = vmatprep.mubr.msk.bf16.mxu0 %vm1135_vm7, %v7794_v43 }
  0x76   : > { %vm1429_vm12 = vsmask.f32 3328  ;;  %vm1430_vm13 = vsmask.f32 7440  ;;  %v1433_v31 = vshrl.u32 %v1381_v32, 16  ;;  %v822_v59 = vshrl.u32 %v7188_v49, 16 }
  0x77   : > { %v825_v1 = vshll.u32 %v7188_v49, 16  ;;  %v830_v2 = vshrl.u32 %v7189_v51, 16  ;;  %v833_v3 = vshll.u32 %v7189_v51, 16  ;;  %v7795_v5 = vld [vmem:[#allocation2 + $0x3c] sm:$0xff]   ;;  %v7170_v35 = vpack.c.bf16 %v462_v54, %v462_v54  ;;  %v945_v51 = vld [vmem:[#allocation2 + $0x48] sm:$0xf]  ;;  %vm8250_vm0 = vmor %vm1429_vm12, %vm1430_vm13 }
  0x78   : > { %v7171_v6 = vpack.c.bf16 %v463_v56, %v463_v56  ;;  %v432_v44 = vadd.f32 %v7976_v9, %v393_v52  ;;  %v433_v10 = vadd.f32 %v7976_v9, %v394_v58  ;;  %v824_v11 = vrot.slane %v822_v59, 7  ;;  %7467 = vmatmul.mubr.msk.bf16.gmra.mrb[8].mxu0 %vm1135_vm7, %v7795_v5  ;;  %v1382_v9 = vld [vmem:[#allocation2 + $0x4] sm:$0xf]  ;;  %v1383_v54 = vld [vmem:[#allocation2 + $0x8] sm:$0x1] }
  0x79   : > { %v8224_v13 = vrot.slane %v830_v2, 7  ;;  %v1435_v4 = vrot.slane %v1433_v31, 4  ;;  %v1436_v15 = vshll.u32 %v1381_v32, 16  ;;  %v669_v63 = vshrl.u32 %v7170_v35, 16 }
  0x7a   : > { %v672_v19 = vshll.u32 %v7170_v35, 16  ;;  %v677_v22 = vshrl.u32 %v7171_v6, 16  ;;  %v680_v24 = vshll.u32 %v7171_v6, 16  ;;  %v827_v25 = vor.u32 %v825_v1, %v824_v11 }
  0x7b   : > { %v828_v27 = vrot.slane %v824_v11, 4  ;;  %v835_v28 = vor.u32 %v833_v3, %v8224_v13  ;;  %v837_v29 = vrot.slane %v8224_v13, 4  ;;  %v671_v34 = vrot.slane %v669_v63, 7  ;;  %v928_v11 = vld [vmem:[#allocation2 + $0x2c] sm:$0x1] }
  0x7c   : > { %v7796_v33 = vld [vmem:[#allocation2 + $0xa8] sm:$0xff]   ;;  %v8229_v36 = vrot.slane %v677_v22, 7  ;;  %v464_v32 = vmax.f32 %v432_v44, 0.0  ;;  %v922_v41 = vsel %vm8047_vm11, %v616_v30, %v921_v16  ;;  %v1009_v49 = vsel %vm8021_vm10, %v827_v25, %v1008_v17  ;;  %v952_v22 = vld [vmem:[#allocation2 + $0x54] sm:$0xf] }
  0x7d   : > { %v836_v43 = vsel %vm8011_vm8, %v828_v27, %v835_v28  ;;  %v465_v52 = vmax.f32 %v433_v10, 0.0  ;;  %v1438_v56 = vrot.slane %v1436_v15, 5  ;;  %923 = vst [vmem:[#allocation2 + $0x20] sm:$0x1] %v922_v41  ;;  %7486 = vmatprep.mubr.msk.bf16.mxu1 %vm1135_vm7, %v7796_v33  ;;  %1010 = vst [vmem:[#allocation2 + $0xb4] sm:$0xf] %v1009_v49  ;;  %v674_v21 = vor.u32 %v672_v19, %v671_v34 }
  0x7e   : > { %1011 = vst.msk [vmem:[#allocation2 + $0xb8] sm:$0xf] %vm904_vm5, %v836_v43  ;;  %v675_v58 = vrot.slane %v671_v34, 4  ;;  %v682_v30 = vor.u32 %v680_v24, %v8229_v36  ;;  %v684_v31 = vrot.slane %v8229_v36, 4  ;;  %vm2270_vm14 = vcmask 1042432  }
  0x7f   : > { %vm2271_vm15 = vcmask 1046532   ;;  %v7172_v59 = vpack.c.bf16 %v464_v32, %v464_v32  ;;  %v7173_v1 = vpack.c.bf16 %v465_v52, %v465_v52  ;;  %v1439_v2 = vor.u32 %v1438_v56, %v1435_v4  ;;  %v1384_v10 = vld [vmem:[#allocation2 + $0xc] sm:$0xf]  ;;  %v1385_v19 = vld [vmem:[#allocation2 + $0x10] sm:$0xf] }
  0x80   : > { %v1442_v3 = vshll.u32 %v1382_v9, 16  ;;  %v683_v5 = vsel %vm8011_vm8, %v675_v58, %v682_v30  ;;  %v946_v35 = vsel %vm8021_vm10, %v674_v21, %v945_v51  ;;  %v1446_v6 = vshrl.u32 %v1382_v9, 16  ;;  %v1386_v49 = vld [vmem:[#allocation2 + $0x14] sm:$0x1]  ;;  %v935_v56 = vld [vmem:[#allocation2 + $0x38] sm:$0x1]  ;;  %vm8280_vm1 = vmor %vm2270_vm14, %vm2271_vm15 }
  0x81   : > { %v1452_v44 = vshll.u32 %v1383_v54, 16  ;;  %947 = vst [vmem:[#allocation2 + $0x48] sm:$0xf] %v946_v35  ;;  %948 = vst.msk [vmem:[#allocation2 + $0x4c] sm:$0xf] %vm904_vm5, %v683_v5  ;;  %v686_v15 = vshrl.u32 %v7172_v59, 16 }
  0x82   : > { %v689_v16 = vshll.u32 %v7172_v59, 16  ;;  %v694_v17 = vshrl.u32 %v7173_v1, 16  ;;  %v697_v63 = vshll.u32 %v7173_v1, 16  ;;  %v1440_v24 = vrot.slane %v1439_v2, 4  ;;  %v2174_v54 = vld [vmem:[#allocation2] sm:$0xe] }
  0x83   : > { %v1444_v25 = vrot.slane %v1442_v3, 5  ;;  %v1448_v27 = vrot.slane %v1446_v6, 4  ;;  %v1454_v28 = vrot.slane %v1452_v44, 5  ;;  %v688_v9 = vrot.slane %v686_v15, 7  ;;  %v2175_v1 = vld [vmem:[#allocation2 + $0x4] sm:$0xf] }
  0x84   : > { %v8254_v33 = vrot.slane %v694_v17, 7  ;;  %v1457_v34 = vshrl.u32 %v1384_v10, 16  ;;  %v1460_v32 = vshll.u32 %v1384_v10, 16  ;;  %v1466_v51 = vshll.u32 %v1385_v19, 16  ;;  %v2176_v44 = vld [vmem:[#allocation2 + $0x8] sm:$0x1] }
  0x85   : > { %v1445_v41 = vsel %vm8250_vm0, %v1440_v24, %v1444_v25  ;;  %v1449_v43 = vor.u32 %v1448_v27, %v1444_v25  ;;  %v1470_v52 = vshrl.u32 %v1385_v19, 16  ;;  %v7797_v21 = vld [vmem:[#allocation2 + $0xb4] sm:$0xff]   ;;  %v691_v58 = vor.u32 %v689_v16, %v688_v9 }
  0x86   : > { %v692_v30 = vrot.slane %v688_v9, 4  ;;  %v699_v59 = vor.u32 %v697_v63, %v8254_v33  ;;  %v929_v2 = vsel %vm8047_vm11, %v633_v38, %v928_v11  ;;  %v701_v3 = vrot.slane %v8254_v33, 4  ;;  %7487 = vmatmul.mubr.msk.bf16.gmra.mrb[12].mxu1 %vm1135_vm7, %v7797_v21  ;;  %v1387_v17 = vld [vmem:[#allocation2 + $0x18] sm:$0xf]  ;;  %v1388_v63 = vld [vmem:[#allocation2 + $0x1c] sm:$0xf] }
  0x87   : > { %v1450_v5 = vrot.slane %v1449_v43, 4  ;;  %v1459_v35 = vrot.slane %v1457_v34, 4  ;;  %v1462_v6 = vrot.slane %v1460_v32, 5  ;;  %930 = vst [vmem:[#allocation2 + $0x2c] sm:$0x1] %v929_v2  ;;  %v953_v15 = vsel %vm8021_vm10, %v691_v58, %v952_v22 }
  0x88   : > { %v700_v10 = vsel %vm8011_vm8, %v692_v30, %v699_v59  ;;  %v1468_v16 = vrot.slane %v1466_v51, 5  ;;  %v1472_v26 = vrot.slane %v1470_v52, 4  ;;  %v7798_v38 = vld [vmem:[#allocation2 + $0x48] sm:$0xff]   ;;  %954 = vst [vmem:[#allocation2 + $0x54] sm:$0xf] %v953_v15  ;;  %v1476_v24 = vshll.u32 %v1386_v49, 16 }
  0x89   : > { %955 = vst.msk [vmem:[#allocation2 + $0x58] sm:$0xf] %vm904_vm5, %v700_v10  ;;  %v1455_v11 = vsel %vm8250_vm0, %v1450_v5, %v1454_v28  ;;  %v1463_v19 = vor.u32 %v1462_v6, %v1459_v35  ;;  %v936_v25 = vsel %vm8047_vm11, %v650_v57, %v935_v56  ;;  %v2906_v9 = vsel %vm1184_vm2, %v8080_v12, 0  ;;  %7470 = vmatprep.mubr.msk.bf16.mxu0 %vm1135_vm7, %v7798_v38  ;;  %v2177_v57 = vld [vmem:[#allocation2 + $0xc] sm:$0xe] }
  0x8a   : > { %v6813_v27 = vcombine.low %v1445_v41, %v1455_v11  ;;  %v1473_v22 = vor.u32 %v1472_v26, %v1468_v16  ;;  %v6845_v32 = vrot.slane %v2174_v54, 9  ;;  %937 = vst [vmem:[#allocation2 + $0x38] sm:$0x1] %v936_v25  ;;  %v1478_v23 = vrot.slane %v1476_v24, 5  ;;  %v942_v41 = vld [vmem:[#allocation2 + $0x44] sm:$0x1] }
  0x8b   : > { %v1464_v28 = vrot.slane %v1463_v19, 4  ;;  %v2275_v43 = vrot.slane %v2175_v1, 5  ;;  %v2278_v49 = vrot.slane %v2176_v44, 5  ;;  %v1389_v12 = vld [vmem:[#allocation2 + $0x20] sm:$0x1]  ;;  %v1481_v52 = vshrl.u32 %v1387_v17, 16 }
  0x8c   : > { %7492 = vmatprep.mubr.msk.bf16.mxu1 %vm1135_vm7, %v6813_v27  ;;  %v1474_v51 = vrot.slane %v1473_v22, 4  ;;  %v1484_v56 = vshll.u32 %v1387_v17, 16  ;;  %v1490_v21 = vshll.u32 %v1388_v63, 16  ;;  %v1494_v59 = vshrl.u32 %v1388_v63, 16  ;;  %v2178_v2 = vld [vmem:[#allocation2 + $0x10] sm:$0xf] }
  0x8d   : > { %v1469_v58 = vsel %vm8250_vm0, %v1464_v28, %v1468_v16  ;;  %v2276_v54 = vsel %vm8280_vm1, %v6845_v32, %v2275_v43  ;;  %v2277_v30 = vrot.slane %v2275_v43, 4  ;;  %v2179_v1 = vld [vmem:[#allocation2 + $0x14] sm:$0x1]  ;;  %v1483_v35 = vrot.slane %v1481_v52, 4  ;;  %v1390_v10 = vld [vmem:[#allocation2 + $0x24] sm:$0xf] }
  0x8e   : > { %v1479_v5 = vsel %vm8250_vm0, %v1474_v51, %v1478_v23  ;;  %v1486_v6 = vrot.slane %v1484_v56, 5  ;;  %v1492_v44 = vrot.slane %v1490_v21, 5  ;;  %v1496_v17 = vrot.slane %v1494_v59, 4  ;;  %v1391_v38 = vld [vmem:[#allocation2 + $0x28] sm:$0xf] }
  0x8f   : > { %v6814_v15 = vcombine.low %v1469_v58, %v1479_v5  ;;  %v2279_v26 = vsel %vm8280_vm1, %v2277_v30, %v2278_v49  ;;  %v1500_v16 = vshll.u32 %v1389_v12, 16  ;;  %v6976_v63 = vld [vmem:[%s9898_s3 + $0xa] sm:$0x3]  ;;  %v6846_v25 = vrot.slane %v2177_v57, 9  ;;  %v1392_v49 = vld [vmem:[#allocation2 + $0x2c] sm:$0x1] }
  0x90   : > { %v7799_v11 = vld [vmem:[#allocation2 + $0x54] sm:$0xff]   ;;  %v6862_v19 = vcombine.low %v2276_v54, %v2279_v26  ;;  %v1487_v24 = vor.u32 %v1486_v6, %v1483_v35  ;;  %v943_v27 = vsel %vm8047_vm11, %v667_v18, %v942_v41  ;;  %v1497_v22 = vor.u32 %v1496_v17, %v1492_v44  ;;  %v2181_v30 = vld [vmem:[#allocation2 + $0x1c] sm:$0xf]  ;;  %v2182_v35 = vld [vmem:[#allocation2 + $0x20] sm:$0x1] }
  0x91   : > { %7493 = vmatmul.mubr.msk.bf16.vlgmr.msra.gmra.mrb[16].mxu1 %vm1135_vm7, %v6814_v15  ;;  %v1502_v32 = vrot.slane %v1500_v16, 5  ;;  %v2282_v28 = vrot.slane %v2178_v2, 5  ;;  %v2285_v23 = vrot.slane %v2179_v1, 5  ;;  %944 = vst [vmem:[#allocation2 + $0x44] sm:$0x1] %v943_v27  ;;  %7471 = vmatmul.mubr.msk.bf16.gmra.mrb[12].mxu0 %vm1135_vm7, %v7799_v11  ;;  %v1505_v51 = vshrl.u32 %v1390_v10, 16 }
  0x92   : > { %7559 = vmatpush3.bf16.msra.mxu1 %v2906_v9  ;;  %v1488_v43 = vrot.slane %v1487_v24, 4  ;;  %v1508_v12 = vshll.u32 %v1390_v10, 16  ;;  %v1514_v57 = vshll.u32 %v1391_v38, 16  ;;  %7526 = vmatprep.mubr.msk.bf16.mxu0 %vm1135_vm7, %v6862_v19  ;;  %v1498_v45 = vrot.slane %v1497_v22, 4  ;;  %v2180_v56 = vld [vmem:[#allocation2 + $0x18] sm:$0xe] }
  0x93   : > { %v2283_v18 = vsel %vm8280_vm1, %v6846_v25, %v2282_v28  ;;  %v2284_v41 = vrot.slane %v2282_v28, 4  ;;  %v1518_v52 = vshrl.u32 %v1391_v38, 16  ;;  %7770 = vmatprep.subr.msk.bf16.mxu1 %vm1184_vm2, %v6976_v63  ;;  %v1507_v9 = vrot.slane %v1505_v51, 4  ;;  %v1393_v6 = vld [vmem:[#allocation2 + $0x30] sm:$0xf] }
  0x94   : > { %v1493_v21 = vsel %vm8250_vm0, %v1488_v43, %v1492_v44  ;;  %v1510_v58 = vrot.slane %v1508_v12, 5  ;;  %v1516_v54 = vrot.slane %v1514_v57, 5  ;;  %v1503_v59 = vsel %vm8250_vm0, %v1498_v45, %v1502_v32  ;;  %v1394_v17 = vld [vmem:[#allocation2 + $0x34] sm:$0xf]  ;;  %v8318_v19 = vld [vmem:[%s9898_s3 + $0xc] sm:$0x3] }
  0x95   : > { %v2286_v2 = vsel %vm8280_vm1, %v2284_v41, %v2285_v23  ;;  %v1520_v1 = vrot.slane %v1518_v52, 4  ;;  %v1524_v5 = vshll.u32 %v1392_v49, 16  ;;  %v6815_v10 = vcombine.low %v1493_v21, %v1503_v59  ;;  %v1395_v27 = vld [vmem:[#allocation2 + $0x38] sm:$0x1]  ;;  %v2183_v28 = vld [vmem:[#allocation2 + $0x24] sm:$0xe] }
  0x96   : > { %v6863_v15 = vcombine.low %v2283_v18, %v2286_v2  ;;  %v1511_v26 = vor.u32 %v1510_v58, %v1507_v9  ;;  %v3696_v44 = vsel %vm1184_vm2, %v8099_v37, 0  ;;  %v6847_v63 = vrot.slane %v2180_v56, 9  ;;  %v2184_v23 = vld [vmem:[#allocation2 + $0x28] sm:$0xf]  ;;  %v2185_v12 = vld [vmem:[#allocation2 + $0x2c] sm:$0x1] }
  0x97   : > { %v1521_v16 = vor.u32 %v1520_v1, %v1516_v54  ;;  %v1526_v38 = vrot.slane %v1524_v5, 5  ;;  %v2289_v11 = vrot.slane %v2181_v30, 5  ;;  %7496 = vmatprep.mubr.msk.bf16.mxu1 %vm1135_vm7, %v6815_v10  ;;  %v2292_v25 = vrot.slane %v2182_v35, 5  ;;  %v1396_v58 = vld [vmem:[#allocation2 + $0x3c] sm:$0xf] }
  0x98   : > { %v1512_v24 = vrot.slane %v1511_v26, 4  ;;  %v1529_v22 = vshrl.u32 %v1393_v6, 16  ;;  %v1532_v32 = vshll.u32 %v1393_v6, 16  ;;  %v1538_v51 = vshll.u32 %v1394_v17, 16  ;;  %v1397_v5 = vld [vmem:[#allocation2 + $0x40] sm:$0xf] }
  0x99   : > { %v1522_v37 = vrot.slane %v1521_v16, 4  ;;  %v2290_v43 = vsel %vm8280_vm1, %v6847_v63, %v2289_v11  ;;  %v2291_v49 = vrot.slane %v2289_v11, 4  ;;  %7527 = vmatmul.mubr.msk.bf16.vlgmr.msra.gmra.mrb[16].mxu0 %vm1135_vm7, %v6863_v15  ;;  %v1542_v41 = vshrl.u32 %v1394_v17, 16  ;;  %v1398_v35 = vld [vmem:[#allocation2 + $0x44] sm:$0x1] }
  0x9a   : > { %v1517_v57 = vsel %vm8250_vm0, %v1512_v24, %v1516_v54  ;;  %v1531_v45 = vrot.slane %v1529_v22, 4  ;;  %v1534_v18 = vrot.slane %v1532_v32, 5  ;;  %7593 = vmatpush3.bf16.msra.mxu0 %v3696_v44  ;;  %v1540_v21 = vrot.slane %v1538_v51, 5  ;;  %v2186_v26 = vld [vmem:[#allocation2 + $0x30] sm:$0xe] }
  0x9b   : > { %v1527_v52 = vsel %vm8250_vm0, %v1522_v37, %v1526_v38  ;;  %v2293_v56 = vsel %vm8280_vm1, %v2291_v49, %v2292_v25  ;;  %v1548_v9 = vshll.u32 %v1395_v27, 16  ;;  %v1544_v1 = vrot.slane %v1542_v41, 4  ;;  %7771 = vmatprep.subr.msk.bf16.mxu0 %vm1184_vm2, %v8318_v19  ;;  %v2187_v27 = vld [vmem:[#allocation2 + $0x34] sm:$0xf]  ;;  %v949_v22 = vld [vmem:[#allocation2 + $0x50] sm:$0x1] }
  0x9c   : > { %v6816_v30 = vcombine.low %v1517_v57, %v1527_v52  ;;  %v6864_v59 = vcombine.low %v2290_v43, %v2293_v56  ;;  %v1535_v2 = vor.u32 %v1534_v18, %v1531_v45  ;;  %v6848_v6 = vrot.slane %v2183_v28, 9  ;;  %v1399_v43 = vld [vmem:[#allocation2 + $0x48] sm:$0xf]  ;;  %v2188_v45 = vld [vmem:[#allocation2 + $0x38] sm:$0x1] }
  0x9d   : > { %v1550_v54 = vrot.slane %v1548_v9, 5  ;;  %v2296_v10 = vrot.slane %v2184_v23, 5  ;;  %v2299_v15 = vrot.slane %v2185_v12, 5  ;;  %v1545_v17 = vor.u32 %v1544_v1, %v1540_v21  ;;  %v3971_v53 = vld [vmem:[#allocation2 + $0x4c] sm:$0xf] }
  0x9e   : > { %7497 = vmatmul.mubr.msk.bf16.gmra.mrb[20].mxu1 %vm1135_vm7, %v6816_v30  ;;  %7530 = vmatprep.mubr.msk.bf16.mxu0 %vm1135_vm7, %v6864_v59  ;;  %v1536_v44 = vrot.slane %v1535_v2, 4  ;;  %v1553_v16 = vshrl.u32 %v1396_v58, 16  ;;  %v1556_v38 = vshll.u32 %v1396_v58, 16  ;;  %v1562_v24 = vshll.u32 %v1397_v5, 16  ;;  %v1400_v59 = vld [vmem:[#allocation2 + $0x4c] sm:$0xf] }
  0x9f   : > { %v2297_v63 = vsel %vm8280_vm1, %v6848_v6, %v2296_v10  ;;  %v2298_v11 = vrot.slane %v2296_v10, 4  ;;  %v1566_v25 = vshrl.u32 %v1397_v5, 16  ;;  %v1546_v28 = vrot.slane %v1545_v17, 4  ;;  %v2189_v2 = vld [vmem:[#allocation2 + $0x3c] sm:$0xe] }
  0xa0   : > { %v1541_v32 = vsel %vm8250_vm0, %v1536_v44, %v1540_v21  ;;  %v1555_v23 = vrot.slane %v1553_v16, 4  ;;  %v1558_v37 = vrot.slane %v1556_v38, 5  ;;  %v1564_v51 = vrot.slane %v1562_v24, 5  ;;  %v956_v10 = vld [vmem:[#allocation2 + $0x5c] sm:$0x1] }
  0xa1   : > { %v2300_v49 = vsel %vm8280_vm1, %v2298_v11, %v2299_v15  ;;  %v1568_v12 = vrot.slane %v1566_v25, 4  ;;  %v1572_v57 = vshll.u32 %v1398_v35, 16  ;;  %v1551_v18 = vsel %vm8250_vm0, %v1546_v28, %v1550_v54  ;;  %v2190_v54 = vld [vmem:[#allocation2 + $0x40] sm:$0xf]  ;;  %v1402_v16 = vld [vmem:[#allocation2 + $0x54] sm:$0xf] }
  0xa2   : > { %v6865_v41 = vcombine.low %v2297_v63, %v2300_v49  ;;  %v1559_v52 = vor.u32 %v1558_v37, %v1555_v23  ;;  %v6849_v56 = vrot.slane %v2186_v26, 9  ;;  %v6817_v9 = vcombine.low %v1541_v32, %v1551_v18  ;;  %v1403_v32 = vld [vmem:[#allocation2 + $0x58] sm:$0xf] }
  0xa3   : > { %v1569_v58 = vor.u32 %v1568_v12, %v1564_v51  ;;  %v1574_v21 = vrot.slane %v1572_v57, 5  ;;  %v2303_v30 = vrot.slane %v2187_v27, 5  ;;  %v2306_v5 = vrot.slane %v2188_v45, 5  ;;  %v2192_v45 = vld [vmem:[#allocation2 + $0x48] sm:$0xe] }
  0xa4   : > { %7531 = vmatmul.mubr.msk.bf16.gmra.mrb[20].mxu0 %vm1135_vm7, %v6865_v41  ;;  %v1560_v1 = vrot.slane %v1559_v52, 4  ;;  %v950_v35 = vsel %vm8047_vm11, %v684_v31, %v949_v22  ;;  %v1577_v6 = vshrl.u32 %v1399_v43, 16  ;;  %7500 = vmatprep.mubr.msk.bf16.mxu1 %vm1135_vm7, %v6817_v9  ;;  %v1580_v17 = vshll.u32 %v1399_v43, 16  ;;  %v2191_v31 = vld [vmem:[#allocation2 + $0x44] sm:$0x1] }
  0xa5   : > { %v1570_v15 = vrot.slane %v1569_v58, 4  ;;  %v2304_v26 = vsel %vm8280_vm1, %v6849_v56, %v2303_v30  ;;  %v2305_v44 = vrot.slane %v2303_v30, 4  ;;  %951 = vst [vmem:[#allocation2 + $0x50] sm:$0x1] %v950_v35  ;;  %v1586_v63 = vshll.u32 %v1400_v59, 16 }
  0xa6   : > { %v1565_v38 = vsel %vm8250_vm0, %v1560_v1, %v1564_v51  ;;  %v1579_v36 = vrot.slane %v1577_v6, 4  ;;  %v1590_v11 = vshrl.u32 %v1400_v59, 16  ;;  %v1582_v27 = vrot.slane %v1580_v17, 5  ;;  %v2193_v9 = vld [vmem:[#allocation2 + $0x4c] sm:$0xf] }
  0xa7   : > { %v1575_v24 = vsel %vm8250_vm0, %v1570_v15, %v1574_v21  ;;  %v2307_v25 = vsel %vm8280_vm1, %v2305_v44, %v2306_v5  ;;  %v6850_v22 = vrot.slane %v2189_v2, 9  ;;  %v1588_v37 = vrot.slane %v1586_v63, 5  ;;  %v963_v58 = vld [vmem:[#allocation2 + $0x68] sm:$0x1]  ;;  %v1405_v44 = vld [vmem:[#allocation2 + $0x60] sm:$0xf] }
  0xa8   : > { %v6818_v28 = vcombine.low %v1565_v38, %v1575_v24  ;;  %v6866_v23 = vcombine.low %v2304_v26, %v2307_v25  ;;  %v1592_v43 = vrot.slane %v1590_v11, 4  ;;  %v1583_v49 = vor.u32 %v1582_v27, %v1579_v36  ;;  %v1406_v63 = vld [vmem:[#allocation2 + $0x64] sm:$0xf]  ;;  %v2195_v27 = vld [vmem:[#allocation2 + $0x54] sm:$0xe] }
  0xa9   : > { %v2310_v12 = vrot.slane %v2190_v54, 5  ;;  %v2313_v51 = vrot.slane %v2191_v31, 5  ;;  %v957_v57 = vsel %vm8047_vm11, %v701_v3, %v956_v10  ;;  %v1601_v41 = vshrl.u32 %v1402_v16, 16 }
  0xaa   : > { %7501 = vmatmul.mubr.msk.bf16.gmra.mrb[24].mxu1 %vm1135_vm7, %v6818_v28  ;;  %7534 = vmatprep.mubr.msk.bf16.mxu0 %vm1135_vm7, %v6866_v23  ;;  %v1593_v18 = vor.u32 %v1592_v43, %v1588_v37  ;;  %958 = vst [vmem:[#allocation2 + $0x5c] sm:$0x1] %v957_v57  ;;  %v1604_v52 = vshll.u32 %v1402_v16, 16  ;;  %v1610_v56 = vshll.u32 %v1403_v32, 16  ;;  %v1584_v21 = vrot.slane %v1583_v49, 4 }
  0xab   : > { %v2311_v30 = vsel %vm8280_vm1, %v6850_v22, %v2310_v12  ;;  %v2312_v33 = vrot.slane %v2310_v12, 4  ;;  %v1614_v59 = vshrl.u32 %v1403_v32, 16  ;;  %v1603_v1 = vrot.slane %v1601_v41, 4  ;;  %v2196_v22 = vld [vmem:[#allocation2 + $0x58] sm:$0xf] }
  0xac   : > { %v1401_v2 = vld [vmem:[#allocation2 + $0x50] sm:$0x1]  ;;  %v1594_v3 = vrot.slane %v1593_v18, 4  ;;  %v1606_v5 = vrot.slane %v1604_v52, 5  ;;  %v1612_v35 = vrot.slane %v1610_v56, 5  ;;  %v1589_v6 = vsel %vm8250_vm0, %v1584_v21, %v1588_v37 }
  0xad   : > { %v1596_v54 = vshll.u32 %v1401_v2, 16  ;;  %v2314_v10 = vsel %vm8280_vm1, %v2312_v33, %v2313_v51  ;;  %v1616_v15 = vrot.slane %v1614_v59, 4  ;;  %v2194_v26 = vld [vmem:[#allocation2 + $0x50] sm:$0x1]  ;;  %v6851_v38 = vrot.slane %v2192_v45, 9 }
  0xae   : > { %v6867_v17 = vcombine.low %v2311_v30, %v2314_v10  ;;  %v1607_v16 = vor.u32 %v1606_v5, %v1603_v1  ;;  %v2317_v36 = vrot.slane %v2193_v9, 5  ;;  %v2320_v24 = vrot.slane %v2194_v26, 5  ;;  %v970_v43 = vld [vmem:[#allocation2 + $0x74] sm:$0x1]  ;;  %v1408_v56 = vld [vmem:[#allocation2 + $0x6c] sm:$0xf] }
  0xaf   : > { %v1598_v11 = vrot.slane %v1596_v54, 5  ;;  %v1617_v31 = vor.u32 %v1616_v15, %v1612_v35  ;;  %v964_v25 = vsel %vm8047_vm11, %v718_v62, %v963_v58  ;;  %v1625_v37 = vshrl.u32 %v1405_v44, 16 }
  0xb0   : > { %7535 = vmatmul.mubr.msk.bf16.gmra.mrb[24].mxu0 %vm1135_vm7, %v6867_v17  ;;  %v1608_v32 = vrot.slane %v1607_v16, 4  ;;  %v2318_v28 = vsel %vm8280_vm1, %v6851_v38, %v2317_v36  ;;  %v2319_v23 = vrot.slane %v2317_v36, 4  ;;  %965 = vst [vmem:[#allocation2 + $0x68] sm:$0x1] %v964_v25  ;;  %v1628_v51 = vshll.u32 %v1405_v44, 16 }
  0xb1   : > { %v1599_v49 = vsel %vm8250_vm0, %v1594_v3, %v1598_v11  ;;  %v1404_v12 = vld [vmem:[#allocation2 + $0x5c] sm:$0x1]  ;;  %v1618_v50 = vrot.slane %v1617_v31, 4  ;;  %v1634_v57 = vshll.u32 %v1406_v63, 16  ;;  %v1627_v58 = vrot.slane %v1625_v37, 4 }
  0xb2   : > { %v6819_v62 = vcombine.low %v1589_v6, %v1599_v49  ;;  %v1613_v45 = vsel %vm8250_vm0, %v1608_v32, %v1612_v35  ;;  %v1620_v18 = vshll.u32 %v1404_v12, 16  ;;  %v2321_v41 = vsel %vm8280_vm1, %v2319_v23, %v2320_v24  ;;  %v2197_v52 = vld [vmem:[#allocation2 + $0x5c] sm:$0x1]  ;;  %v1409_v6 = vld [vmem:[#allocation2 + $0x70] sm:$0xf] }
  0xb3   : > { %v6868_v9 = vcombine.low %v2318_v28, %v2321_v41  ;;  %v1630_v21 = vrot.slane %v1628_v51, 5  ;;  %v1636_v30 = vrot.slane %v1634_v57, 5  ;;  %v1638_v59 = vshrl.u32 %v1406_v63, 16  ;;  %v2198_v17 = vld [vmem:[#allocation2 + $0x60] sm:$0xe] }
  0xb4   : > { %7504 = vmatprep.mubr.msk.bf16.mxu1 %vm1135_vm7, %v6819_v62  ;;  %v1622_v33 = vrot.slane %v1620_v18, 5  ;;  %v6852_v2 = vrot.slane %v2195_v27, 9  ;;  %v2324_v3 = vrot.slane %v2196_v22, 5  ;;  %v2327_v5 = vrot.slane %v2197_v52, 5  ;;  %v2199_v16 = vld [vmem:[#allocation2 + $0x64] sm:$0xf] }
  0xb5   : > { %7538 = vmatprep.mubr.msk.bf16.mxu0 %vm1135_vm7, %v6868_v9  ;;  %v1631_v1 = vor.u32 %v1630_v21, %v1627_v58  ;;  %v971_v35 = vsel %vm8047_vm11, %v735_v14, %v970_v43  ;;  %v1649_v54 = vshrl.u32 %v1408_v56, 16  ;;  %v1640_v15 = vrot.slane %v1638_v59, 4  ;;  %v977_v31 = vld [vmem:[#allocation2 + $0x80] sm:$0x1]  ;;  %v1411_v32 = vld [vmem:[#allocation2 + $0x78] sm:$0xf] }
  0xb6   : > { %v1623_v10 = vsel %vm8250_vm0, %v1618_v50, %v1622_v33  ;;  %v2325_v26 = vsel %vm8280_vm1, %v6852_v2, %v2324_v3  ;;  %v2326_v44 = vrot.slane %v2324_v3, 4  ;;  %972 = vst [vmem:[#allocation2 + $0x74] sm:$0x1] %v971_v35  ;;  %v1652_v11 = vshll.u32 %v1408_v56, 16  ;;  %v2201_v41 = vld [vmem:[#allocation2 + $0x6c] sm:$0xe] }
  0xb7   : > { %v6820_v38 = vcombine.low %v1613_v45, %v1623_v10  ;;  %v1407_v36 = vld [vmem:[#allocation2 + $0x68] sm:$0x1]  ;;  %v1632_v63 = vrot.slane %v1631_v1, 4  ;;  %v1651_v0 = vrot.slane %v1649_v54, 4  ;;  %v1641_v14 = vor.u32 %v1640_v15, %v1636_v30  ;;  %v1412_v9 = vld [vmem:[#allocation2 + $0x7c] sm:$0xf] }
  0xb8   : > { %v1644_v24 = vshll.u32 %v1407_v36, 16  ;;  %v2328_v25 = vsel %vm8280_vm1, %v2326_v44, %v2327_v5  ;;  %v1658_v27 = vshll.u32 %v1409_v6, 16  ;;  %v2200_v22 = vld [vmem:[#allocation2 + $0x68] sm:$0x1]  ;;  %v1654_v37 = vrot.slane %v1652_v11, 5 }
  0xb9   : > { %7505 = vmatmul.mubr.msk.bf16.gmra.mrb[28].mxu1 %vm1135_vm7, %v6820_v38  ;;  %v1637_v28 = vsel %vm8250_vm0, %v1632_v63, %v1636_v30  ;;  %v6869_v23 = vcombine.low %v2325_v26, %v2328_v25  ;;  %v1662_v43 = vshrl.u32 %v1409_v6, 16  ;;  %v1642_v49 = vrot.slane %v1641_v14, 4  ;;  %v2202_v1 = vld [vmem:[#allocation2 + $0x70] sm:$0xf]  ;;  %v1414_v63 = vld [vmem:[#allocation2 + $0x84] sm:$0xf] }
  0xba   : > { %v1646_v12 = vrot.slane %v1644_v24, 5  ;;  %v1660_v50 = vrot.slane %v1658_v27, 5  ;;  %v6853_v51 = vrot.slane %v2198_v17, 9  ;;  %v1655_v57 = vor.u32 %v1654_v37, %v1651_v0  ;;  %v1415_v24 = vld [vmem:[#allocation2 + $0x88] sm:$0xf] }
  0xbb   : > { %7539 = vmatmul.mubr.msk.bf16.gmra.mrb[28].mxu0 %vm1135_vm7, %v6869_v23  ;;  %v1664_v62 = vrot.slane %v1662_v43, 4  ;;  %v2331_v45 = vrot.slane %v2199_v16, 5  ;;  %v2334_v18 = vrot.slane %v2200_v22, 5  ;;  %v978_v56 = vsel %vm8047_vm11, %v752_v60, %v977_v31  ;;  %v2205_v23 = vld [vmem:[#allocation2 + $0x7c] sm:$0xf] }
  0xbc   : > { %v1647_v52 = vsel %vm8250_vm0, %v1642_v49, %v1646_v12  ;;  %v1673_v58 = vshrl.u32 %v1411_v32, 16  ;;  %v1676_v21 = vshll.u32 %v1411_v32, 16  ;;  %v1656_v59 = vrot.slane %v1655_v57, 4  ;;  %979 = vst [vmem:[#allocation2 + $0x80] sm:$0x1] %v978_v56 }
  0xbd   : > { %v6821_v30 = vcombine.low %v1637_v28, %v1647_v52  ;;  %v1410_v33 = vld [vmem:[#allocation2 + $0x74] sm:$0x1]  ;;  %v1665_v2 = vor.u32 %v1664_v62, %v1660_v50  ;;  %v2332_v3 = vsel %vm8280_vm1, %v6853_v51, %v2331_v45  ;;  %v2333_v35 = vrot.slane %v2331_v45, 4  ;;  %v2204_v28 = vld [vmem:[#allocation2 + $0x78] sm:$0xe] }
  0xbe   : > { %v1668_v5 = vshll.u32 %v1410_v33, 16  ;;  %v1675_v6 = vrot.slane %v1673_v58, 4  ;;  %v1678_v54 = vrot.slane %v1676_v21, 5  ;;  %v1661_v60 = vsel %vm8250_vm0, %v1656_v59, %v1660_v50  ;;  %v2203_v44 = vld [vmem:[#allocation2 + $0x74] sm:$0x1] }
  0xbf   : > { %7508 = vmatprep.mubr.msk.bf16.mxu1 %vm1135_vm7, %v6821_v30  ;;  %v1666_v10 = vrot.slane %v1665_v2, 4  ;;  %v1682_v15 = vshll.u32 %v1412_v9, 16  ;;  %v1686_v26 = vshrl.u32 %v1412_v9, 16  ;;  %v2335_v16 = vsel %vm8280_vm1, %v2333_v35, %v2334_v18  ;;  %v991_v50 = vld [vmem:[#allocation2 + $0x98] sm:$0x1] }
  0xc0   : > { %v1670_v17 = vrot.slane %v1668_v5, 5  ;;  %v1679_v38 = vor.u32 %v1678_v54, %v1675_v6  ;;  %v6854_v36 = vrot.slane %v2201_v41, 9  ;;  %v6870_v0 = vcombine.low %v2332_v3, %v2335_v16  ;;  %v1417_v51 = vld [vmem:[#allocation2 + $0x90] sm:$0xf]  ;;  %v1418_v54 = vld [vmem:[#allocation2 + $0x94] sm:$0xf] }
  0xc1   : > { %v1684_v11 = vrot.slane %v1682_v15, 5  ;;  %v1688_v31 = vrot.slane %v1686_v26, 4  ;;  %v2338_v14 = vrot.slane %v2202_v1, 5  ;;  %v2341_v22 = vrot.slane %v2203_v44, 5  ;;  %v2207_v44 = vld [vmem:[#allocation2 + $0x84] sm:$0xe] }
  0xc2   : > { %v1671_v25 = vsel %vm8250_vm0, %v1666_v10, %v1670_v17  ;;  %v1680_v27 = vrot.slane %v1679_v38, 4  ;;  %v985_v32 = vsel %vm8047_vm11, %v769_v55, %v984_v42  ;;  %7542 = vmatprep.mubr.msk.bf16.mxu0 %vm1135_vm7, %v6870_v0  ;;  %v1697_v62 = vshrl.u32 %v1414_v63, 16  ;;  %v2208_v17 = vld [vmem:[#allocation2 + $0x88] sm:$0xf]  ;;  %v998_v16 = vld [vmem:[#allocation2 + $0xa4] sm:$0x1] }
  0xc3   : > { %v6822_v37 = vcombine.low %v1661_v60, %v1671_v25  ;;  %v1689_v43 = vor.u32 %v1688_v31, %v1684_v11  ;;  %v2339_v49 = vsel %vm8280_vm1, %v6854_v36, %v2338_v14  ;;  %v2340_v12 = vrot.slane %v2338_v14, 4  ;;  %986 = vst [vmem:[#allocation2 + $0x8c] sm:$0x1] %v985_v32  ;;  %v1413_v57 = vld [vmem:[#allocation2 + $0x80] sm:$0x1] }
  0xc4   : > { %v1685_v39 = vsel %vm8250_vm0, %v1680_v27, %v1684_v11  ;;  %v1700_v45 = vshll.u32 %v1414_v63, 16  ;;  %v1706_v55 = vshll.u32 %v1415_v24, 16  ;;  %v1692_v41 = vshll.u32 %v1413_v57, 16  ;;  %v2206_v9 = vld [vmem:[#allocation2 + $0x80] sm:$0x1] }
  0xc5   : > { %7509 = vmatmul.mubr.msk.bf16.gmra.mrb[32].mxu1 %vm1135_vm7, %v6822_v37  ;;  %v1690_v18 = vrot.slane %v1689_v43, 4  ;;  %v2342_v52 = vsel %vm8280_vm1, %v2340_v12, %v2341_v22  ;;  %v1710_v56 = vshrl.u32 %v1415_v24, 16  ;;  %v1699_v21 = vrot.slane %v1697_v62, 4 }
  0xc6   : > { %v6871_v58 = vcombine.low %v2339_v49, %v2342_v52  ;;  %v1702_v30 = vrot.slane %v1700_v45, 5  ;;  %v1708_v33 = vrot.slane %v1706_v55, 5  ;;  %v1694_v59 = vrot.slane %v1692_v41, 5  ;;  %v2210_v41 = vld [vmem:[#allocation2 + $0x90] sm:$0xe] }
  0xc7   : > { %v1712_v2 = vrot.slane %v1710_v56, 4  ;;  %v6855_v3 = vrot.slane %v2204_v28, 9  ;;  %v2345_v1 = vrot.slane %v2205_v23, 5  ;;  %v2348_v35 = vrot.slane %v2206_v9, 5  ;;  %v1420_v28 = vld [vmem:[#allocation2 + $0x9c] sm:$0xf] }
  0xc8   : > { %7543 = vmatmul.mubr.msk.bf16.gmra.mrb[32].mxu0 %vm1135_vm7, %v6871_v58  ;;  %v1703_v5 = vor.u32 %v1702_v30, %v1699_v21  ;;  %v992_v6 = vsel %vm8047_vm11, %v786_v7, %v991_v50  ;;  %v1721_v42 = vshrl.u32 %v1417_v51, 16  ;;  %v1695_v60 = vsel %vm8250_vm0, %v1690_v18, %v1694_v59  ;;  %v1005_v52 = vld [vmem:[#allocation2 + $0xb0] sm:$0x1]  ;;  %v2211_v30 = vld [vmem:[#allocation2 + $0x94] sm:$0xf] }
  0xc9   : > { %v1713_v10 = vor.u32 %v1712_v2, %v1708_v33  ;;  %v2346_v15 = vsel %vm8280_vm1, %v6855_v3, %v2345_v1  ;;  %v2347_v26 = vrot.slane %v2345_v1, 4  ;;  %993 = vst [vmem:[#allocation2 + $0x98] sm:$0x1] %v992_v6  ;;  %v6823_v38 = vcombine.low %v1685_v39, %v1695_v60  ;;  %v1421_v39 = vld [vmem:[#allocation2 + $0xa0] sm:$0xf] }
  0xca   : > { %v1416_v36 = vld [vmem:[#allocation2 + $0x8c] sm:$0x1]  ;;  %v1704_v61 = vrot.slane %v1703_v5, 4  ;;  %v1723_v63 = vrot.slane %v1721_v42, 4  ;;  %v1724_v0 = vshll.u32 %v1417_v51, 16  ;;  %v1730_v14 = vshll.u32 %v1418_v54, 16 }
  0xcb   : > { %v1714_v7 = vrot.slane %v1713_v10, 4  ;;  %v1716_v11 = vshll.u32 %v1416_v36, 16  ;;  %v2349_v31 = vsel %vm8280_vm1, %v2347_v26, %v2348_v35  ;;  %v2209_v24 = vld [vmem:[#allocation2 + $0x8c] sm:$0x1]  ;;  %7512 = vmatprep.mubr.msk.bf16.mxu1 %vm1135_vm7, %v6823_v38  ;;  %v1734_v32 = vshrl.u32 %v1418_v54, 16 }
  0xcc   : > { %v1709_v25 = vsel %vm8250_vm0, %v1704_v61, %v1708_v33  ;;  %v6872_v27 = vcombine.low %v2346_v15, %v2349_v31  ;;  %v1726_v22 = vrot.slane %v1724_v0, 5  ;;  %v1732_v37 = vrot.slane %v1730_v14, 5  ;;  %v1423_v54 = vld [vmem:[#allocation2 + $0xa8] sm:$0xf]  ;;  %v1424_v61 = vld [vmem:[#allocation2 + $0xac] sm:$0xf] }
  0xcd   : > { %v1718_v23 = vrot.slane %v1716_v11, 5  ;;  %v6856_v43 = vrot.slane %v2207_v44, 9  ;;  %v2352_v49 = vrot.slane %v2208_v17, 5  ;;  %v1736_v50 = vrot.slane %v1734_v32, 4  ;;  %v2214_v32 = vld [vmem:[#allocation2 + $0xa0] sm:$0xf] }
  0xce   : > { %7546 = vmatprep.mubr.msk.bf16.mxu0 %vm1135_vm7, %v6872_v27  ;;  %v1727_v12 = vor.u32 %v1726_v22, %v1723_v63  ;;  %v2355_v51 = vrot.slane %v2209_v24, 5  ;;  %v999_v57 = vsel %vm8047_vm11, %v803_v20, %v998_v16  ;;  %v1745_v18 = vshrl.u32 %v1420_v28, 16 }
  0xcf   : > { %v1719_v62 = vsel %vm8250_vm0, %v1714_v7, %v1718_v23  ;;  %v2353_v45 = vsel %vm8280_vm1, %v6856_v43, %v2352_v49  ;;  %v2354_v55 = vrot.slane %v2352_v49, 4  ;;  %1000 = vst [vmem:[#allocation2 + $0xa4] sm:$0x1] %v999_v57  ;;  %v1737_v21 = vor.u32 %v1736_v50, %v1732_v37 }
  0xd0   : > { %v6824_v56 = vcombine.low %v1709_v25, %v1719_v62  ;;  %v1419_v9 = vld [vmem:[#allocation2 + $0x98] sm:$0x1]  ;;  %v1728_v58 = vrot.slane %v1727_v12, 4  ;;  %v1748_v46 = vshll.u32 %v1420_v28, 16  ;;  %v1747_v59 = vrot.slane %v1745_v18, 4 }
  0xd1   : > { %v1740_v33 = vshll.u32 %v1419_v9, 16  ;;  %v2356_v20 = vsel %vm8280_vm1, %v2354_v55, %v2355_v51  ;;  %v1754_v2 = vshll.u32 %v1421_v39, 16  ;;  %v2212_v3 = vld [vmem:[#allocation2 + $0x98] sm:$0x1]  ;;  %v1738_v5 = vrot.slane %v1737_v21, 4 }
  0xd2   : > { %7513 = vmatmul.mubr.msk.bf16.gmra.mrb[36].mxu1 %vm1135_vm7, %v6824_v56  ;;  %v1733_v1 = vsel %vm8250_vm0, %v1728_v58, %v1732_v37  ;;  %v6873_v35 = vcombine.low %v2353_v45, %v2356_v20  ;;  %v1750_v6 = vrot.slane %v1748_v46, 5  ;;  %v1758_v10 = vshrl.u32 %v1421_v39, 16  ;;  %v2213_v25 = vld [vmem:[#allocation2 + $0x9c] sm:$0xe]  ;;  %v1012_v12 = vld [vmem:[#allocation2 + $0xbc] sm:$0x1] }
  0xd3   : > { %v1742_v42 = vrot.slane %v1740_v33, 5  ;;  %v1756_v60 = vrot.slane %v1754_v2, 5  ;;  %v6857_v15 = vrot.slane %v2210_v41, 9  ;;  %v2359_v44 = vrot.slane %v2211_v30, 5  ;;  %v1426_v41 = vld [vmem:[#allocation2 + $0xb4] sm:$0xf] }
  0xd4   : > { %7547 = vmatmul.mubr.msk.bf16.gmra.mrb[36].mxu0 %vm1135_vm7, %v6873_v35  ;;  %v1751_v26 = vor.u32 %v1750_v6, %v1747_v59  ;;  %v2362_v17 = vrot.slane %v2212_v3, 5  ;;  %v1006_v16 = vsel %vm8047_vm11, %v820_v47, %v1005_v52  ;;  %v1760_v36 = vrot.slane %v1758_v10, 4  ;;  %v1427_v21 = vld [vmem:[#allocation2 + $0xb8] sm:$0xf]  ;;  %v2216_v46 = vld [vmem:[#allocation2 + $0xa8] sm:$0xe] }
  0xd5   : > { %v1743_v38 = vsel %vm8250_vm0, %v1738_v5, %v1742_v42  ;;  %1007 = vst [vmem:[#allocation2 + $0xb0] sm:$0x1] %v1006_v16  ;;  %v1769_v63 = vshrl.u32 %v1423_v54, 16  ;;  %v1772_v0 = vshll.u32 %v1423_v54, 16  ;;  %v2360_v14 = vsel %vm8280_vm1, %v6857_v15, %v2359_v44  ;;  %v2217_v30 = vld [vmem:[#allocation2 + $0xac] sm:$0xf] }
  0xd6   : > { %v6825_v7 = vcombine.low %v1733_v1, %v1743_v38  ;;  %v1422_v11 = vld [vmem:[#allocation2 + $0xa4] sm:$0x1]  ;;  %v1752_v31 = vrot.slane %v1751_v26, 4  ;;  %v2361_v24 = vrot.slane %v2359_v44, 4  ;;  %v1761_v8 = vor.u32 %v1760_v36, %v1756_v60  ;;  %v2219_v1 = vld [vmem:[#allocation2 + $0xb4] sm:$0xe] }
  0xd7   : > { %v1764_v27 = vshll.u32 %v1422_v11, 16  ;;  %v1771_v22 = vrot.slane %v1769_v63, 4  ;;  %v1774_v47 = vrot.slane %v1772_v0, 5  ;;  %v1778_v37 = vshll.u32 %v1424_v61, 16  ;;  %v2215_v49 = vld [vmem:[#allocation2 + $0xa4] sm:$0x1] }
  0xd8   : > { %7516 = vmatprep.mubr.msk.bf16.mxu1 %vm1135_vm7, %v6825_v7  ;;  %v1757_v28 = vsel %vm8250_vm0, %v1752_v31, %v1756_v60  ;;  %v2363_v23 = vsel %vm8280_vm1, %v2361_v24, %v2362_v17  ;;  %v1782_v43 = vshrl.u32 %v1424_v61, 16  ;;  %v1762_v50 = vrot.slane %v1761_v8, 4  ;;  %v2220_v15 = vld [vmem:[#allocation2 + $0xb8] sm:$0xf]  ;;  %v3165_v24 = vld [vmem:[#allocation2 + $0xc] sm:$0xf] }
  0xd9   : > { %v1766_v51 = vrot.slane %v1764_v27, 5  ;;  %v6874_v57 = vcombine.low %v2360_v14, %v2363_v23  ;;  %v1775_v39 = vor.u32 %v1774_v47, %v1771_v22  ;;  %v1780_v62 = vrot.slane %v1778_v37, 5  ;;  %v8481_v0 = vld [vmem:[%s7891_s27 + $0x78] sm:$0xff]   ;;  %v3166_v47 = vld [vmem:[#allocation2 + $0x10] sm:$0xf] }
  0xda   : > { %v1784_v45 = vrot.slane %v1782_v43, 4  ;;  %v6858_v55 = vrot.slane %v2213_v25, 9  ;;  %v2366_v18 = vrot.slane %v2214_v32, 5  ;;  %v2369_v9 = vrot.slane %v2215_v49, 5 }
  0xdb   : > { %v1767_v52 = vsel %vm8250_vm0, %v1762_v50, %v1766_v51  ;;  %7550 = vmatprep.mubr.msk.bf16.mxu0 %vm1135_vm7, %v6874_v57  ;;  %v1776_v56 = vrot.slane %v1775_v39, 4  ;;  %v1013_v58 = vsel %vm8047_vm11, %v837_v29, %v1012_v12  ;;  %v1793_v13 = vshrl.u32 %v1426_v41, 16  ;;  %v3167_v39 = vld [vmem:[#allocation2 + $0x14] sm:$0x1] }
  0xdc   : > { %v6826_v33 = vcombine.low %v1757_v28, %v1767_v52  ;;  %v1425_v20 = vld [vmem:[#allocation2 + $0xb0] sm:$0x1]  ;;  %v1785_v59 = vor.u32 %v1784_v45, %v1780_v62  ;;  %v2367_v2 = vsel %vm8280_vm1, %v6858_v55, %v2366_v18  ;;  %v2368_v3 = vrot.slane %v2366_v18, 4  ;;  %1014 = vst [vmem:[#allocation2 + $0xbc] sm:$0x1] %v1013_v58 }
  0xdd   : > { %v1781_v5 = vsel %vm8250_vm0, %v1776_v56, %v1780_v62  ;;  %v1788_v35 = vshll.u32 %v1425_v20, 16  ;;  %v1796_v6 = vshll.u32 %v1426_v41, 16  ;;  %v2218_v29 = vld [vmem:[#allocation2 + $0xb0] sm:$0x1]  ;;  %v1802_v60 = vshll.u32 %v1427_v21, 16 }
  0xde   : > { %7517 = vmatmul.mubr.msk.bf16.gmra.mrb[40].mxu1 %vm1135_vm7, %v6826_v33  ;;  %v1786_v54 = vrot.slane %v1785_v59, 4  ;;  %v2370_v42 = vsel %vm8280_vm1, %v2368_v3, %v2369_v9  ;;  %v1806_v10 = vshrl.u32 %v1427_v21, 16  ;;  %v1795_v17 = vrot.slane %v1793_v13, 4  ;;  %v3168_v41 = vld [vmem:[#allocation2 + $0x18] sm:$0xf]  ;;  %v7800_v33 = vld [vmem:[#allocation2 + $0xc] sm:$0xff]  }
  0xdf   : > { %v1790_v26 = vrot.slane %v1788_v35, 5  ;;  %v6875_v44 = vcombine.low %v2367_v2, %v2370_v42  ;;  %v1798_v16 = vrot.slane %v1796_v6, 5  ;;  %v1804_v38 = vrot.slane %v1802_v60, 5  ;;  %v7832_v56 = vld [vmem:[%s9898_s3 + $0xa] sm:$0x3] }
  0xe0   : > { %v1808_v36 = vrot.slane %v1806_v10, 4  ;;  %v6859_v61 = vrot.slane %v2216_v46, 9  ;;  %v2373_v63 = vrot.slane %v2217_v30, 5  ;;  %v2376_v31 = vrot.slane %v2218_v29, 5  ;;  %v3169_v46 = vld [vmem:[#allocation2 + $0x1c] sm:$0xf] }
  0xe1   : > { %v1791_v7 = vsel %vm8250_vm0, %v1786_v54, %v1790_v26  ;;  %7551 = vmatmul.mubr.msk.bf16.gmra.mrb[40].mxu0 %vm1135_vm7, %v6875_v44  ;;  %v1799_v11 = vor.u32 %v1798_v16, %v1795_v17  ;;  %v6860_v14 = vrot.slane %v2219_v1, 9  ;;  %v2380_v37 = vrot.slane %v2220_v15, 5  ;;  %v3170_v13 = vld [vmem:[#allocation2 + $0x20] sm:$0x1]  ;;  %v3171_v60 = vld [vmem:[#allocation2 + $0x24] sm:$0xf] }
  0xe2   : > { %v6827_v25 = vcombine.low %v1781_v5, %v1791_v7  ;;  %v1809_v8 = vor.u32 %v1808_v36, %v1804_v38  ;;  %v2374_v27 = vsel %vm8280_vm1, %v6859_v61, %v2373_v63  ;;  %v2375_v22 = vrot.slane %v2373_v63, 4  ;;  %v3172_v17 = vld [vmem:[#allocation2 + $0x28] sm:$0xf] }
  0xe3   : > { %v1428_v32 = vld [vmem:[#allocation2 + $0xbc] sm:$0x1]  ;;  %v1800_v28 = vrot.slane %v1799_v11, 4  ;;  %v7286_v43 = vunpack.c.l.bf16 %v8481_v0  ;;  %v7287_v49 = vunpack.c.h.bf16 %v8481_v0  ;;  %v2381_v55 = vsel %vm8280_vm1, %v6860_v14, %v2380_v37  ;;  %v3956_v0 = vld [vmem:[#allocation2 + $0x10] sm:$0xf] }
  0xe4   : > { %v2221_v23 = vld [vmem:[#allocation2 + $0xbc] sm:$0x1]  ;;  %7520 = vmatprep.mubr.msk.bf16.mxu1 %vm1135_vm7, %v6827_v25  ;;  %v1810_v12 = vrot.slane %v1809_v8, 4  ;;  %v1812_v50 = vshll.u32 %v1428_v32, 16  ;;  %v2377_v51 = vsel %vm8280_vm1, %v2375_v22, %v2376_v31  ;;  %v2382_v18 = vrot.slane %v2380_v37, 4 }
  0xe5   : > { %v2383_v57 = vrot.slane %v2221_v23, 5  ;;  %v1805_v62 = vsel %vm8250_vm0, %v1800_v28, %v1804_v38  ;;  %v6876_v45 = vcombine.low %v2374_v27, %v2377_v51  ;;  %v8501_v9 = vsel %vm1184_vm2, %v7832_v56, 0  ;;  %v7801_v14 = vld [vmem:[#allocation2 + $0x18] sm:$0xff]   ;;  %v3173_v27 = vld [vmem:[#allocation2 + $0x2c] sm:$0x1] }
  0xe6   : > { %v1814_v52 = vrot.slane %v1812_v50, 5  ;;  %v3214_v58 = vshrl.u32 %v3165_v24, 16  ;;  %v3217_v21 = vshll.u32 %v3165_v24, 16  ;;  %v3223_v20 = vshll.u32 %v3166_v47, 16  ;;  %v3175_v37 = vld [vmem:[#allocation2 + $0x34] sm:$0xf] }
  0xe7   : > { %7554 = vmatprep.mubr.msk.bf16.mxu0 %vm1135_vm7, %v6876_v45  ;;  %v2384_v30 = vsel %vm8280_vm1, %v2382_v18, %v2383_v57  ;;  %v3227_v59 = vshrl.u32 %v3166_v47, 16  ;;  %v3233_v2 = vshll.u32 %v3167_v39, 16  ;;  %v3238_v15 = vshrl.u32 %v3168_v41, 16 }
  0xe8   : > { %v1815_v3 = vsel %vm8250_vm0, %v1810_v12, %v1814_v52  ;;  %v6877_v1 = vcombine.low %v2381_v55, %v2384_v30  ;;  %v3216_v5 = vrot.slane %v3214_v58, 4  ;;  %v3219_v35 = vrot.slane %v3217_v21, 5 }
  0xe9   : > { %v6828_v6 = vcombine.low %v1805_v62, %v1815_v3  ;;  %v3225_v29 = vrot.slane %v3223_v20, 5  ;;  %v3229_v54 = vrot.slane %v3227_v59, 4  ;;  %v3235_v42 = vrot.slane %v3233_v2, 5  ;;  %v7802_v62 = vld [vmem:[#allocation2 + $0x24] sm:$0xff]   ;;  %v8525_v2 = vld [vmem:[%s9898_s3 + $0xe] sm:$0x3] }
  0xea   : > { %7555 = vmatmul.mubr.msk.bf16.gmra.mrb[44].mxu0 %vm1135_vm7, %v6877_v1  ;;  %v3220_v10 = vor.u32 %v3219_v35, %v3216_v5  ;;  %v3241_v26 = vshll.u32 %v3168_v41, 16  ;;  %v3247_v44 = vshll.u32 %v3169_v46, 16  ;;  %v3251_v38 = vshrl.u32 %v3169_v46, 16  ;;  %v3176_v41 = vld [vmem:[#allocation2 + $0x38] sm:$0x1] }
  0xeb   : > { %7521 = vmatmul.mubr.msk.bf16.gmra.mrb[44].mxu1 %vm1135_vm7, %v6828_v6  ;;  %v3230_v16 = vor.u32 %v3229_v54, %v3225_v29  ;;  %v3257_v36 = vshll.u32 %v3170_v13, 16  ;;  %v8512_v61 = vsel %vm1184_vm2, %v8318_v19, 0  ;;  %v3240_v7 = vrot.slane %v3238_v15, 4  ;;  %v3174_v19 = vld [vmem:[#allocation2 + $0x30] sm:$0xf] }
  0xec   : > { %7560 = vmatprep.mubr.msk.bf16.mxu1 %vm1135_vm7, %v7800_v33  ;;  %v3221_v63 = vrot.slane %v3220_v10, 4  ;;  %v3243_v11 = vrot.slane %v3241_v26, 5  ;;  %v3249_v31 = vrot.slane %v3247_v44, 5  ;;  %v3253_v25 = vrot.slane %v3251_v38, 4  ;;  %v3177_v46 = vld [vmem:[#allocation2 + $0x3c] sm:$0xf] }
  0xed   : > { %v3231_v24 = vrot.slane %v3230_v16, 4  ;;  %v3259_v8 = vrot.slane %v3257_v36, 5  ;;  %v3262_v22 = vshrl.u32 %v3171_v60, 16  ;;  %v3265_v28 = vshll.u32 %v3171_v60, 16  ;;  %v3178_v13 = vld [vmem:[#allocation2 + $0x40] sm:$0xf] }
  0xee   : > { %v3226_v47 = vsel %vm8250_vm0, %v3221_v63, %v3225_v29  ;;  %v3244_v32 = vor.u32 %v3243_v11, %v3240_v7  ;;  %v3271_v23 = vshll.u32 %v3172_v17, 16  ;;  %v3254_v50 = vor.u32 %v3253_v25, %v3249_v31  ;;  %v3179_v60 = vld [vmem:[#allocation2 + $0x44] sm:$0x1]  ;;  %v3180_v10 = vld [vmem:[#allocation2 + $0x48] sm:$0xf]  ;;  %v7803_v11 = vld [vmem:[#allocation2 + $0x30] sm:$0xff]  }
  0xef   : > { %v3236_v12 = vsel %vm8250_vm0, %v3231_v24, %v3235_v42  ;;  %v3264_v51 = vrot.slane %v3262_v22, 4  ;;  %v3275_v57 = vshrl.u32 %v3172_v17, 16  ;;  %v3267_v55 = vrot.slane %v3265_v28, 5  ;;  %v8537_v16 = vld [vmem:[%s9898_s3 + $0x10] sm:$0x3] }
  0xf0   : > { %v6928_v39 = vcombine.low %v3226_v47, %v3236_v12  ;;  %v3245_v45 = vrot.slane %v3244_v32, 4  ;;  %v3273_v18 = vrot.slane %v3271_v23, 5  ;;  %v3255_v52 = vrot.slane %v3254_v50, 4  ;;  %v3181_v7 = vld [vmem:[#allocation2 + $0x4c] sm:$0xf] }
  0xf1   : > { %v3277_v56 = vrot.slane %v3275_v57, 4  ;;  %v3281_v58 = vshll.u32 %v3173_v27, 16  ;;  %v3286_v21 = vshrl.u32 %v3174_v19, 16  ;;  %v3268_v33 = vor.u32 %v3267_v55, %v3264_v51  ;;  %v7804_v27 = vld [vmem:[#allocation2 + $0x3c] sm:$0xff]   ;;  %v3183_v12 = vld [vmem:[#allocation2 + $0x54] sm:$0xf] }
  0xf2   : > { %7594 = vmatprep.mubr.msk.bf16.mxu0 %vm1135_vm7, %v6928_v39  ;;  %v3250_v30 = vsel %vm8250_vm0, %v3245_v45, %v3249_v31  ;;  %v3289_v20 = vshll.u32 %v3174_v19, 16  ;;  %v3295_v59 = vshll.u32 %v3175_v37, 16  ;;  %v3260_v3 = vsel %vm8250_vm0, %v3255_v52, %v3259_v8  ;;  %v3182_v51 = vld [vmem:[#allocation2 + $0x50] sm:$0x1] }
  0xf3   : > { %7561 = vmatmul.mubr.msk.bf16.vlgmr.msra.gmra.mrb[48].mxu1 %vm1135_vm7, %v7801_v14  ;;  %v3278_v1 = vor.u32 %v3277_v56, %v3273_v18  ;;  %v3283_v5 = vrot.slane %v3281_v58, 5  ;;  %v3288_v35 = vrot.slane %v3286_v21, 4  ;;  %v6929_v6 = vcombine.low %v3250_v30, %v3260_v3 }
  0xf4   : > { %7627 = vmatpush3.bf16.msra.mxu1 %v8501_v9  ;;  %7564 = vmatprep.mubr.msk.bf16.mxu1 %vm1135_vm7, %v7802_v62  ;;  %v3269_v29 = vrot.slane %v3268_v33, 4  ;;  %v3291_v54 = vrot.slane %v3289_v20, 5  ;;  %v3297_v42 = vrot.slane %v3295_v59, 5  ;;  %v3299_v26 = vshrl.u32 %v3175_v37, 16  ;;  %v3184_v33 = vld [vmem:[#allocation2 + $0x58] sm:$0xf] }
  0xf5   : > { %v3279_v15 = vrot.slane %v3278_v1, 4  ;;  %v3305_v44 = vshll.u32 %v3176_v41, 16  ;;  %v3310_v17 = vshrl.u32 %v3177_v46, 16  ;;  %7772 = vmatprep.subr.msk.bf16.mxu1 %vm1184_vm2, %v8525_v2  ;;  %7595 = vmatmul.mubr.msk.bf16.vlgmr.msra.gmra.mrb[48].mxu0 %vm1135_vm7, %v6929_v6  ;;  %v3313_v36 = vshll.u32 %v3177_v46, 16  ;;  %v7805_v6 = vld [vmem:[#allocation2 + $0x48] sm:$0xff]  }
  0xf6   : > { %v3274_v9 = vsel %vm8250_vm0, %v3269_v29, %v3273_v18  ;;  %v3292_v38 = vor.u32 %v3291_v54, %v3288_v35  ;;  %v3319_v63 = vshll.u32 %v3178_v13, 16  ;;  %7661 = vmatpush3.bf16.msra.mxu0 %v8512_v61  ;;  %v3301_v14 = vrot.slane %v3299_v26, 4  ;;  %v3185_v35 = vld [vmem:[#allocation2 + $0x5c] sm:$0x1] }
  0xf7   : > { %v3284_v31 = vsel %vm8250_vm0, %v3279_v15, %v3283_v5  ;;  %v3307_v24 = vrot.slane %v3305_v44, 5  ;;  %v3312_v25 = vrot.slane %v3310_v17, 4  ;;  %v3315_v47 = vrot.slane %v3313_v36, 5  ;;  %7773 = vmatprep.subr.msk.bf16.mxu0 %vm1184_vm2, %v8537_v16 }
  0xf8   : > { %v6930_v8 = vcombine.low %v3274_v9, %v3284_v31  ;;  %v3293_v22 = vrot.slane %v3292_v38, 4  ;;  %v3321_v32 = vrot.slane %v3319_v63, 5  ;;  %v3302_v28 = vor.u32 %v3301_v14, %v3297_v42  ;;  %v3187_v63 = vld [vmem:[#allocation2 + $0x64] sm:$0xf] }
  0xf9   : > { %v3323_v23 = vshrl.u32 %v3178_v13, 16  ;;  %v3329_v19 = vshll.u32 %v3179_v60, 16  ;;  %v3334_v37 = vshrl.u32 %v3180_v10, 16  ;;  %v3316_v50 = vor.u32 %v3315_v47, %v3312_v25  ;;  %v3186_v13 = vld [vmem:[#allocation2 + $0x60] sm:$0xf] }
  0xfa   : > { %7598 = vmatprep.mubr.msk.bf16.mxu0 %vm1135_vm7, %v6930_v8  ;;  %v3298_v61 = vsel %vm8250_vm0, %v3293_v22, %v3297_v42  ;;  %v3337_v57 = vshll.u32 %v3180_v10, 16  ;;  %v3343_v39 = vshll.u32 %v3181_v7, 16  ;;  %v3303_v62 = vrot.slane %v3302_v28, 4  ;;  %v7806_v10 = vld [vmem:[#allocation2 + $0x54] sm:$0xff]   ;;  %v3188_v25 = vld [vmem:[#allocation2 + $0x68] sm:$0x1] }
  0xfb   : > { %7565 = vmatmul.mubr.msk.bf16.gmra.mrb[52].mxu1 %vm1135_vm7, %v7803_v11  ;;  %v3325_v45 = vrot.slane %v3323_v23, 4  ;;  %v3331_v55 = vrot.slane %v3329_v19, 5  ;;  %v3336_v18 = vrot.slane %v3334_v37, 4  ;;  %v3317_v41 = vrot.slane %v3316_v50, 4 }
  0xfc   : > { %7568 = vmatprep.mubr.msk.bf16.mxu1 %vm1135_vm7, %v7804_v27  ;;  %v3339_v52 = vrot.slane %v3337_v57, 5  ;;  %v3345_v56 = vrot.slane %v3343_v39, 5  ;;  %v3347_v58 = vshrl.u32 %v3181_v7, 16  ;;  %v3308_v21 = vsel %vm8250_vm0, %v3303_v62, %v3307_v24  ;;  %v3190_v57 = vld [vmem:[#allocation2 + $0x70] sm:$0xf] }
  0xfd   : > { %v3326_v46 = vor.u32 %v3325_v45, %v3321_v32  ;;  %v3353_v30 = vshll.u32 %v3182_v51, 16  ;;  %v3358_v20 = vshrl.u32 %v3183_v12, 16  ;;  %v6931_v59 = vcombine.low %v3298_v61, %v3308_v21 }
  0xfe   : > { %v3322_v3 = vsel %vm8250_vm0, %v3317_v41, %v3321_v32  ;;  %v3340_v1 = vor.u32 %v3339_v52, %v3336_v18  ;;  %v3349_v5 = vrot.slane %v3347_v58, 4  ;;  %v3361_v60 = vshll.u32 %v3183_v12, 16  ;;  %v3189_v32 = vld [vmem:[#allocation2 + $0x6c] sm:$0xf]  ;;  %v7807_v41 = vld [vmem:[#allocation2 + $0x60] sm:$0xff]  }
  0xff   : > { %v3327_v29 = vrot.slane %v3326_v46, 4  ;;  %v3355_v54 = vrot.slane %v3353_v30, 5  ;;  %v3360_v42 = vrot.slane %v3358_v20, 4  ;;  %7599 = vmatmul.mubr.msk.bf16.gmra.mrb[52].mxu0 %vm1135_vm7, %v6931_v59  ;;  %v3367_v44 = vshll.u32 %v3184_v33, 16  ;;  %v7808_v46 = vld [vmem:[#allocation2 + $0x6c] sm:$0xff]  }
 0x100   : > { %v3341_v15 = vrot.slane %v3340_v1, 4  ;;  %v3350_v26 = vor.u32 %v3349_v5, %v3345_v56  ;;  %v3371_v17 = vshrl.u32 %v3184_v33, 16  ;;  %v3363_v38 = vrot.slane %v3361_v60, 5 }
 0x101   : > { %v3332_v9 = vsel %vm8250_vm0, %v3327_v29, %v3331_v55  ;;  %v3377_v36 = vshll.u32 %v3185_v35, 16  ;;  %v3382_v7 = vshrl.u32 %v3186_v13, 16  ;;  %v3369_v24 = vrot.slane %v3367_v44, 5  ;;  %v3191_v55 = vld [vmem:[#allocation2 + $0x74] sm:$0x1] }
 0x102   : > { %v6932_v11 = vcombine.low %v3322_v3, %v3332_v9  ;;  %v3346_v31 = vsel %vm8250_vm0, %v3341_v15, %v3345_v56  ;;  %v3351_v14 = vrot.slane %v3350_v26, 4  ;;  %v3364_v8 = vor.u32 %v3363_v38, %v3360_v42  ;;  %v3192_v3 = vld [vmem:[#allocation2 + $0x78] sm:$0xf]  ;;  %v3194_v44 = vld [vmem:[#allocation2 + $0x80] sm:$0x1] }
 0x103   : > { %7569 = vmatmul.mubr.msk.bf16.gmra.mrb[56].mxu1 %vm1135_vm7, %v7805_v6  ;;  %v3373_v27 = vrot.slane %v3371_v17, 4  ;;  %v3379_v22 = vrot.slane %v3377_v36, 5  ;;  %v3384_v47 = vrot.slane %v3382_v7, 4  ;;  %v3385_v23 = vshll.u32 %v3186_v13, 16  ;;  %v3193_v6 = vld [vmem:[#allocation2 + $0x7c] sm:$0xf] }
 0x104   : > { %7602 = vmatprep.mubr.msk.bf16.mxu0 %vm1135_vm7, %v6932_v11  ;;  %7572 = vmatprep.mubr.msk.bf16.mxu1 %vm1135_vm7, %v7806_v10  ;;  %v3356_v28 = vsel %vm8250_vm0, %v3351_v14, %v3355_v54  ;;  %v3391_v19 = vshll.u32 %v3187_v63, 16  ;;  %v3395_v37 = vshrl.u32 %v3187_v63, 16  ;;  %v3365_v61 = vrot.slane %v3364_v8, 4  ;;  %v3195_v7 = vld [vmem:[#allocation2 + $0x84] sm:$0xf] }
 0x105   : > { %v6933_v12 = vcombine.low %v3346_v31, %v3356_v28  ;;  %v3374_v50 = vor.u32 %v3373_v27, %v3369_v24  ;;  %v3401_v51 = vshll.u32 %v3188_v25, 16  ;;  %v3387_v39 = vrot.slane %v3385_v23, 5  ;;  %v3196_v25 = vld [vmem:[#allocation2 + $0x88] sm:$0xf] }
 0x106   : > { %v3393_v62 = vrot.slane %v3391_v19, 5  ;;  %v3397_v45 = vrot.slane %v3395_v37, 4  ;;  %v3406_v18 = vshrl.u32 %v3189_v32, 16  ;;  %v3370_v52 = vsel %vm8250_vm0, %v3365_v61, %v3369_v24  ;;  %v7810_v61 = vld [vmem:[#allocation2 + $0x84] sm:$0xff]  }
 0x107   : > { %v3375_v56 = vrot.slane %v3374_v50, 4  ;;  %v3403_v58 = vrot.slane %v3401_v51, 5  ;;  %v3409_v21 = vshll.u32 %v3189_v32, 16  ;;  %7603 = vmatmul.mubr.msk.bf16.gmra.mrb[56].mxu0 %vm1135_vm7, %v6933_v12  ;;  %v3388_v30 = vor.u32 %v3387_v39, %v3384_v47  ;;  %v7809_v32 = vld [vmem:[#allocation2 + $0x78] sm:$0xff]   ;;  %v3198_v12 = vld [vmem:[#allocation2 + $0x90] sm:$0xf] }
 0x108   : > { %v3398_v33 = vor.u32 %v3397_v45, %v3393_v62  ;;  %v3408_v20 = vrot.slane %v3406_v18, 4  ;;  %v3415_v59 = vshll.u32 %v3190_v57, 16  ;;  %v3419_v35 = vshrl.u32 %v3190_v57, 16  ;;  %v3197_v39 = vld [vmem:[#allocation2 + $0x8c] sm:$0x1] }
 0x109   : > { %v3380_v1 = vsel %vm8250_vm0, %v3375_v56, %v3379_v22  ;;  %v3411_v5 = vrot.slane %v3409_v21, 5  ;;  %v3425_v13 = vshll.u32 %v3191_v55, 16  ;;  %v3389_v54 = vrot.slane %v3388_v30, 4 }
 0x10a   : > { %v6934_v29 = vcombine.low %v3370_v52, %v3380_v1  ;;  %v3399_v42 = vrot.slane %v3398_v33, 4  ;;  %v3417_v60 = vrot.slane %v3415_v59, 5  ;;  %v3421_v15 = vrot.slane %v3419_v35, 4  ;;  %v3199_v52 = vld [vmem:[#allocation2 + $0x94] sm:$0xf] }
 0x10b   : > { %7573 = vmatmul.mubr.msk.bf16.gmra.mrb[60].mxu1 %vm1135_vm7, %v7807_v41  ;;  %v3412_v10 = vor.u32 %v3411_v5, %v3408_v20  ;;  %v3427_v26 = vrot.slane %v3425_v13, 5  ;;  %v3430_v17 = vshrl.u32 %v3192_v3, 16  ;;  %v3394_v9 = vsel %vm8250_vm0, %v3389_v54, %v3393_v62  ;;  %v3200_v5 = vld [vmem:[#allocation2 + $0x98] sm:$0x1] }
 0x10c   : > { %7606 = vmatprep.mubr.msk.bf16.mxu0 %vm1135_vm7, %v6934_v29  ;;  %7576 = vmatprep.mubr.msk.bf16.mxu1 %vm1135_vm7, %v7808_v46  ;;  %v3404_v38 = vsel %vm8250_vm0, %v3399_v42, %v3403_v58  ;;  %v3433_v36 = vshll.u32 %v3192_v3, 16  ;;  %v3439_v63 = vshll.u32 %v3193_v6, 16  ;;  %v3422_v14 = vor.u32 %v3421_v15, %v3417_v60 }
 0x10d   : > { %v6935_v11 = vcombine.low %v3394_v9, %v3404_v38  ;;  %v3413_v31 = vrot.slane %v3412_v10, 4  ;;  %v3432_v24 = vrot.slane %v3430_v17, 4  ;;  %v3443_v22 = vshrl.u32 %v3193_v6, 16  ;;  %v3202_v17 = vld [vmem:[#allocation2 + $0xa0] sm:$0xf]  ;;  %v7811_v38 = vld [vmem:[#allocation2 + $0x90] sm:$0xff]  }
 0x10e   : > { %v3435_v8 = vrot.slane %v3433_v36, 5  ;;  %v3441_v27 = vrot.slane %v3439_v63, 5  ;;  %v3449_v47 = vshll.u32 %v3194_v44, 16  ;;  %v3423_v23 = vrot.slane %v3422_v14, 4 }
 0x10f   : > { %v3418_v28 = vsel %vm8250_vm0, %v3413_v31, %v3417_v60  ;;  %v3454_v19 = vshrl.u32 %v3195_v7, 16  ;;  %v3457_v37 = vshll.u32 %v3195_v7, 16  ;;  %7607 = vmatmul.mubr.msk.bf16.gmra.mrb[60].mxu0 %vm1135_vm7, %v6935_v11  ;;  %v3445_v51 = vrot.slane %v3443_v22, 4  ;;  %v3201_v60 = vld [vmem:[#allocation2 + $0x9c] sm:$0xf] }
 0x110   : > { %v3436_v50 = vor.u32 %v3435_v8, %v3432_v24  ;;  %v3451_v57 = vrot.slane %v3449_v47, 5  ;;  %v3463_v62 = vshll.u32 %v3196_v25, 16  ;;  %v3428_v45 = vsel %vm8250_vm0, %v3423_v23, %v3427_v26  ;;  %v7812_v11 = vld [vmem:[#allocation2 + $0x9c] sm:$0xff]   ;;  %v3203_v24 = vld [vmem:[#allocation2 + $0xa4] sm:$0x1] }
 0x111   : > { %v3456_v55 = vrot.slane %v3454_v19, 4  ;;  %v3459_v18 = vrot.slane %v3457_v37, 5  ;;  %v3467_v41 = vshrl.u32 %v3196_v25, 16  ;;  %v6936_v56 = vcombine.low %v3418_v28, %v3428_v45  ;;  %v3204_v28 = vld [vmem:[#allocation2 + $0xa8] sm:$0xf] }
 0x112   : > { %v3437_v58 = vrot.slane %v3436_v50, 4  ;;  %v3446_v21 = vor.u32 %v3445_v51, %v3441_v27  ;;  %v3465_v46 = vrot.slane %v3463_v62, 5  ;;  %v3473_v20 = vshll.u32 %v3197_v39, 16 }
 0x113   : > { %7577 = vmatmul.mubr.msk.bf16.gmra.mrb[64].mxu1 %vm1135_vm7, %v7809_v32  ;;  %v3460_v30 = vor.u32 %v3459_v18, %v3456_v55  ;;  %v3469_v33 = vrot.slane %v3467_v41, 4  ;;  %v3478_v59 = vshrl.u32 %v3198_v12, 16  ;;  %7610 = vmatprep.mubr.msk.bf16.mxu0 %vm1135_vm7, %v6936_v56  ;;  %v3481_v35 = vshll.u32 %v3198_v12, 16 }
 0x114   : > { %7580 = vmatprep.mubr.msk.bf16.mxu1 %vm1135_vm7, %v7810_v61  ;;  %v3442_v3 = vsel %vm8250_vm0, %v3437_v58, %v3441_v27  ;;  %v3447_v1 = vrot.slane %v3446_v21, 4  ;;  %v3487_v13 = vshll.u32 %v3199_v52, 16  ;;  %v3475_v54 = vrot.slane %v3473_v20, 5  ;;  %v3205_v61 = vld [vmem:[#allocation2 + $0xac] sm:$0xf] }
 0x115   : > { %v3461_v6 = vrot.slane %v3460_v30, 4  ;;  %v3470_v29 = vor.u32 %v3469_v33, %v3465_v46  ;;  %v3480_v42 = vrot.slane %v3478_v59, 4  ;;  %v3483_v15 = vrot.slane %v3481_v35, 5  ;;  %v3206_v21 = vld [vmem:[#allocation2 + $0xb0] sm:$0x1] }
 0x116   : > { %v3452_v10 = vsel %vm8250_vm0, %v3447_v1, %v3451_v57  ;;  %v3489_v26 = vrot.slane %v3487_v13, 5  ;;  %v3491_v44 = vshrl.u32 %v3199_v52, 16  ;;  %v3497_v7 = vshll.u32 %v3200_v5, 16  ;;  %v3207_v1 = vld [vmem:[#allocation2 + $0xb4] sm:$0xf]  ;;  %v7813_v13 = vld [vmem:[#allocation2 + $0xa8] sm:$0xff]  }
 0x117   : > { %v6937_v9 = vcombine.low %v3442_v3, %v3452_v10  ;;  %v3466_v36 = vsel %vm8250_vm0, %v3461_v6, %v3465_v46  ;;  %v3471_v63 = vrot.slane %v3470_v29, 4  ;;  %v3484_v31 = vor.u32 %v3483_v15, %v3480_v42 }
 0x118   : > { %v3493_v14 = vrot.slane %v3491_v44, 4  ;;  %v3502_v25 = vshrl.u32 %v3201_v60, 16  ;;  %v3505_v8 = vshll.u32 %v3201_v60, 16  ;;  %v3499_v22 = vrot.slane %v3497_v7, 5  ;;  %v7814_v60 = vld [vmem:[#allocation2 + $0xb4] sm:$0xff]  }
 0x119   : > { %7611 = vmatmul.mubr.msk.bf16.gmra.mrb[64].mxu0 %vm1135_vm7, %v6937_v9  ;;  %v3476_v27 = vsel %vm8250_vm0, %v3471_v63, %v3475_v54  ;;  %v3511_v47 = vshll.u32 %v3202_v17, 16  ;;  %v3515_v32 = vshrl.u32 %v3202_v17, 16  ;;  %v3485_v19 = vrot.slane %v3484_v31, 4  ;;  %v7833_v44 = vld [vmem:[%s9896_s1] ss:$0 sm:$0xff] }
 0x11a   : > { %v6938_v23 = vcombine.low %v3466_v36, %v3476_v27  ;;  %v3494_v37 = vor.u32 %v3493_v14, %v3489_v26  ;;  %v3504_v12 = vrot.slane %v3502_v25, 4  ;;  %v3507_v50 = vrot.slane %v3505_v8, 5  ;;  %v3208_v63 = vld [vmem:[#allocation2 + $0xb8] sm:$0xf]  ;;  %v7834_v25 = vld [vmem:[%s9897_s2] ss:$0 sm:$0xff] }
 0x11b   : > { %7581 = vmatmul.mubr.msk.bf16.gmra.mrb[68].mxu1 %vm1135_vm7, %v7811_v38  ;;  %v3513_v51 = vrot.slane %v3511_v47, 5  ;;  %v3517_v57 = vrot.slane %v3515_v32, 4  ;;  %v3521_v39 = vshll.u32 %v3203_v24, 16  ;;  %v3490_v62 = vsel %vm8250_vm0, %v3485_v19, %v3489_v26  ;;  %v7476_v41 = vpop.f32.mrb[0].mxu1  ;;  %v3955_v32 = vld [vmem:[#allocation2 + $0xc] sm:$0xe] }
 0x11c   : > { %7614 = vmatprep.mubr.msk.bf16.mxu0 %vm1135_vm7, %v6938_v23  ;;  %7584 = vmatprep.mubr.msk.bf16.mxu1 %vm1135_vm7, %v7812_v11  ;;  %v3495_v45 = vrot.slane %v3494_v37, 4  ;;  %v3526_v55 = vshrl.u32 %v3204_v28, 16  ;;  %v3529_v18 = vshll.u32 %v3204_v28, 16  ;;  %v3508_v52 = vor.u32 %v3507_v50, %v3504_v12  ;;  %1367 = vst.msk [vmem:[#allocation3 + $0x90] sm:$0xff] %vm1135_vm7, %v7476_v41  ;;  %v1286_v30 = vpop.f32.mrb[1].mxu1 }
 0x11d   : > { %v3518_v56 = vor.u32 %v3517_v57, %v3513_v51  ;;  %v3523_v58 = vrot.slane %v3521_v39, 5  ;;  %v3535_v46 = vshll.u32 %v3205_v61, 16  ;;  %v3539_v3 = vshrl.u32 %v3205_v61, 16  ;;  %1365 = vst.msk [vmem:[#allocation3 + $0x80] sm:$0xff] %vm1135_vm7, %v1286_v30  ;;  %v7477_v5 = vpop.f32.mrb[2].mxu1 }
 0x11e   : > { %v3500_v33 = vsel %vm8250_vm0, %v3495_v45, %v3499_v22  ;;  %v3528_v20 = vrot.slane %v3526_v55, 4  ;;  %v3531_v59 = vrot.slane %v3529_v18, 5  ;;  %v3509_v6 = vrot.slane %v3508_v52, 4  ;;  %1368 = vst.msk [vmem:[#allocation3 + $0x98] sm:$0xff] %vm1135_vm7, %v7477_v5  ;;  %v1289_v42 = vpop.f32.mrb[3].mxu1 }
 0x11f   : > { %v6939_v35 = vcombine.low %v3490_v62, %v3500_v33  ;;  %v3519_v29 = vrot.slane %v3518_v56, 4  ;;  %v3537_v54 = vrot.slane %v3535_v46, 5  ;;  %v3541_v15 = vrot.slane %v3539_v3, 4  ;;  %1366 = vst.msk [vmem:[#allocation3 + $0x88] sm:$0xff] %vm1135_vm7, %v1289_v42  ;;  %v3957_v12 = vld [vmem:[#allocation2 + $0x14] sm:$0x1] }
 0x120   : > { %v3532_v10 = vor.u32 %v3531_v59, %v3528_v20  ;;  %v3545_v26 = vshll.u32 %v3206_v21, 16  ;;  %v411_v17 = vmul.f32 %v7833_v44, %v7286_v43  ;;  %v3514_v9 = vsel %vm8250_vm0, %v3509_v6, %v3513_v51  ;;  %v3209_v43 = vld [vmem:[#allocation2 + $0xbc] sm:$0x1]  ;;  %v3958_v6 = vld [vmem:[#allocation2 + $0x18] sm:$0xe] }
 0x121   : > { %7615 = vmatmul.mubr.msk.bf16.gmra.mrb[68].mxu0 %vm1135_vm7, %v6939_v35  ;;  %v3524_v38 = vsel %vm8250_vm0, %v3519_v29, %v3523_v58  ;;  %v412_v36 = vmul.f32 %v7833_v44, %v7287_v49  ;;  %v3550_v7 = vshrl.u32 %v3207_v1, 16  ;;  %v3542_v14 = vor.u32 %v3541_v15, %v3537_v54  ;;  %v7460_v49 = vpop.f32.mrb[0].mxu0  ;;  %v3959_v3 = vld [vmem:[#allocation2 + $0x1c] sm:$0xf]  ;;  %v1015_v29 = vld [vmem:[#allocation2 + $0xc0] sm:$0xf] }
 0x122   : > { %v6940_v11 = vcombine.low %v3514_v9, %v3524_v38  ;;  %v3533_v31 = vrot.slane %v3532_v10, 4  ;;  %v3547_v24 = vrot.slane %v3545_v26, 5  ;;  %v450_v8 = vadd.f32 %v7834_v25, %v411_v17  ;;  %1351 = vst.msk [vmem:[#allocation3 + $0x10] sm:$0xff] %vm1135_vm7, %v7460_v49  ;;  %v1222_v61 = vpop.f32.mrb[1].mxu0  ;;  %v3960_v15 = vld [vmem:[#allocation2 + $0x20] sm:$0x1] }
 0x123   : > { %7585 = vmatmul.mubr.msk.bf16.gmra.mrb[72].mxu1 %vm1135_vm7, %v7813_v13  ;;  %v451_v27 = vadd.f32 %v7834_v25, %v412_v36  ;;  %v3552_v22 = vrot.slane %v3550_v7, 4  ;;  %v3553_v47 = vshll.u32 %v3207_v1, 16  ;;  %v3543_v23 = vrot.slane %v3542_v14, 4  ;;  %1349 = vst.msk [vmem:[#allocation3] sm:$0xff] %vm1135_vm7, %v1222_v61  ;;  %v7461_v62 = vpop.f32.mrb[2].mxu0 }
 0x124   : > { %7618 = vmatprep.mubr.msk.bf16.mxu0 %vm1135_vm7, %v6940_v11  ;;  %7588 = vmatprep.mubr.msk.bf16.mxu1 %vm1135_vm7, %v7814_v60  ;;  %v3538_v28 = vsel %vm8250_vm0, %v3533_v31, %v3537_v54  ;;  %v3559_v19 = vshll.u32 %v3208_v63, 16  ;;  %v3563_v37 = vshrl.u32 %v3208_v63, 16  ;;  %v482_v50 = vmax.f32 %v450_v8, 0.0  ;;  %1352 = vst.msk [vmem:[#allocation3 + $0x18] sm:$0xff] %vm1135_vm7, %v7461_v62  ;;  %v1225_v52 = vpop.f32.mrb[3].mxu0 }
 0x125   : > { %v483_v51 = vmax.f32 %v451_v27, 0.0  ;;  %v3555_v57 = vrot.slane %v3553_v47, 5  ;;  %v3569_v39 = vshll.u32 %v3209_v43, 16  ;;  %v3548_v45 = vsel %vm8250_vm0, %v3543_v23, %v3547_v24  ;;  %1350 = vst.msk [vmem:[#allocation3 + $0x8] sm:$0xff] %vm1135_vm7, %v1225_v52  ;;  %v1019_v60 = vld [vmem:[#allocation2 + $0xc8] sm:$0x1] }
 0x126   : > { %v3561_v55 = vrot.slane %v3559_v19, 5  ;;  %v3565_v18 = vrot.slane %v3563_v37, 4  ;;  %v6960_v41 = vrot.slane %v3955_v32, 9  ;;  %v6941_v56 = vcombine.low %v3538_v28, %v3548_v45  ;;  %v3961_v9 = vld [vmem:[#allocation2 + $0x24] sm:$0xe] }
 0x127   : > { %v7190_v58 = vpack.c.bf16 %v482_v50, %v482_v50  ;;  %v7191_v21 = vpack.c.bf16 %v483_v51, %v483_v51  ;;  %v3556_v46 = vor.u32 %v3555_v57, %v3552_v22  ;;  %v3571_v33 = vrot.slane %v3569_v39, 5  ;;  %v3962_v11 = vld [vmem:[#allocation2 + $0x28] sm:$0xf]  ;;  %v3963_v31 = vld [vmem:[#allocation2 + $0x2c] sm:$0x1] }
 0x128   : > { %v3566_v30 = vor.u32 %v3565_v18, %v3561_v55  ;;  %v4053_v20 = vrot.slane %v3956_v0, 5  ;;  %v4056_v59 = vrot.slane %v3957_v12, 5  ;;  %v4060_v17 = vrot.slane %v3959_v3, 5  ;;  %v3964_v14 = vld [vmem:[#allocation2 + $0x30] sm:$0xe] }
 0x129   : > { %7619 = vmatmul.mubr.msk.bf16.gmra.mrb[72].mxu0 %vm1135_vm7, %v6941_v56  ;;  %v839_v1 = vshrl.u32 %v7190_v58, 16  ;;  %v842_v5 = vshll.u32 %v7190_v58, 16  ;;  %v847_v35 = vshrl.u32 %v7191_v21, 16  ;;  %v850_v13 = vshll.u32 %v7191_v21, 16  ;;  %v3965_v27 = vld [vmem:[#allocation2 + $0x34] sm:$0xf] }
 0x12a   : > { %v3557_v54 = vrot.slane %v3556_v46, 4  ;;  %v3567_v42 = vrot.slane %v3566_v30, 4  ;;  %v4055_v10 = vrot.slane %v4053_v20, 4  ;;  %v8639_v63 = vsel %vm8280_vm1, %v6960_v41, %v4053_v20  ;;  %v3966_v22 = vld [vmem:[#allocation2 + $0x38] sm:$0x1] }
 0x12b   : > { %v841_v26 = vrot.slane %v839_v1, 7  ;;  %v849_v44 = vrot.slane %v847_v35, 7  ;;  %v6961_v32 = vrot.slane %v3958_v6, 9  ;;  %v4063_v0 = vrot.slane %v3960_v15, 5  ;;  %v3967_v49 = vld [vmem:[#allocation2 + $0x3c] sm:$0xe] }
 0x12c   : > { %v3562_v38 = vsel %vm8250_vm0, %v3557_v54, %v3561_v55  ;;  %v3572_v36 = vsel %vm8250_vm0, %v3567_v42, %v3571_v33  ;;  %v8643_v7 = vsel %vm8280_vm1, %v4055_v10, %v4056_v59  ;;  %v3968_v28 = vld [vmem:[#allocation2 + $0x40] sm:$0xf]  ;;  %v4062_v12 = vrot.slane %v4060_v17, 4  ;;  %v3969_v61 = vld [vmem:[#allocation2 + $0x44] sm:$0x1]  ;;  %v7480_v51 = vpop.f32.mrb[4].mxu1 }
 0x12d   : > { %v844_v24 = vor.u32 %v842_v5, %v841_v26  ;;  %v845_v43 = vrot.slane %v841_v26, 4  ;;  %v852_v25 = vor.u32 %v850_v13, %v849_v44  ;;  %v854_v8 = vrot.slane %v849_v44, 4  ;;  %v3970_v50 = vld [vmem:[#allocation2 + $0x48] sm:$0xe]  ;;  %1371 = vst.msk [vmem:[#allocation3 + $0xb0] sm:$0xff] %vm1135_vm7, %v7480_v51  ;;  %v1302_v40 = vpop.f32.mrb[5].mxu1 }
 0x12e   : > { %v6942_v47 = vcombine.low %v3562_v38, %v3572_v36  ;;  %v6977_v48 = vcombine.low %v8639_v63, %v8643_v7  ;;  %v6962_v57 = vrot.slane %v3961_v9, 9  ;;  %v4067_v39 = vrot.slane %v3962_v11, 5  ;;  %1369 = vst.msk [vmem:[#allocation3 + $0xa0] sm:$0xff] %vm1135_vm7, %v1302_v40  ;;  %v7481_v41 = vpop.f32.mrb[6].mxu1  ;;  %v3972_v46 = vld [vmem:[#allocation2 + $0x50] sm:$0x1] }
 0x12f   : > { %v853_v23 = vsel %vm8011_vm8, %v845_v43, %v852_v25  ;;  %v1016_v19 = vsel %vm8021_vm10, %v844_v24, %v1015_v29  ;;  %v1020_v37 = vsel %vm8047_vm11, %v854_v8, %v1019_v60  ;;  %v4070_v62 = vrot.slane %v3963_v31, 5  ;;  %1372 = vst.msk [vmem:[#allocation3 + $0xb8] sm:$0xff] %vm1135_vm7, %v7481_v41  ;;  %v1305_v30 = vpop.f32.mrb[7].mxu1  ;;  %v3973_v1 = vld [vmem:[#allocation2 + $0x54] sm:$0xe] }
 0x130   : > { %1017 = vst [vmem:[#allocation2 + $0xc0] sm:$0xf] %v1016_v19  ;;  %1018 = vst.msk [vmem:[#allocation2 + $0xc4] sm:$0xf] %vm904_vm5, %v853_v23  ;;  %7622 = vmatprep.mubr.msk.bf16.mxu0 %vm1135_vm7, %v6942_v47  ;;  %v6963_v45 = vrot.slane %v3964_v14, 9  ;;  %v4074_v55 = vrot.slane %v3965_v27, 5  ;;  %v8659_v52 = vsel %vm8280_vm1, %v6961_v32, %v4060_v17  ;;  %v8668_v33 = vsel %vm8280_vm1, %v4062_v12, %v4063_v0 }
 0x131   : > { %1021 = vst [vmem:[#allocation2 + $0xc8] sm:$0x1] %v1020_v37  ;;  %v4077_v18 = vrot.slane %v3966_v22, 5  ;;  %v8663_v56 = vsel %vm1184_vm2, %v8525_v2, 0  ;;  %v4069_v58 = vrot.slane %v4067_v39, 4  ;;  %v6964_v21 = vrot.slane %v3967_v49, 9 }
 0x132   : > { %v4076_v20 = vrot.slane %v4074_v55, 4  ;;  %v4081_v59 = vrot.slane %v3968_v28, 5  ;;  %v4084_v3 = vrot.slane %v3969_v61, 5  ;;  %1370 = vst.msk [vmem:[#allocation3 + $0xa8] sm:$0xff] %vm1135_vm7, %v1305_v30  ;;  %v8673_v2 = vsel %vm8280_vm1, %v6962_v57, %v4067_v39  ;;  %v3974_v6 = vld [vmem:[#allocation2 + $0x58] sm:$0xf] }
 0x133   : > { %v8677_v5 = vsel %vm8280_vm1, %v6963_v45, %v4074_v55  ;;  %v6965_v35 = vrot.slane %v3970_v50, 9  ;;  %v4088_v13 = vrot.slane %v3971_v53, 5  ;;  %v8681_v29 = vsel %vm8280_vm1, %v4069_v58, %v4070_v62  ;;  %v3975_v36 = vld [vmem:[#allocation2 + $0x5c] sm:$0x1]  ;;  %v3976_v7 = vld [vmem:[#allocation2 + $0x60] sm:$0xe] }
 0x134   : > { %v8685_v54 = vsel %vm8280_vm1, %v4076_v20, %v4077_v18  ;;  %v8689_v42 = vsel %vm8280_vm1, %v6964_v21, %v4081_v59  ;;  %v4083_v60 = vrot.slane %v4081_v59, 4  ;;  %v8693_v10 = vsel %vm1184_vm2, %v8537_v16, 0  ;;  %v3977_v11 = vld [vmem:[#allocation2 + $0x64] sm:$0xf]  ;;  %v3978_v27 = vld [vmem:[#allocation2 + $0x68] sm:$0x1] }
 0x135   : > { %v4090_v15 = vrot.slane %v4088_v13, 4  ;;  %v4091_v26 = vrot.slane %v3972_v46, 5  ;;  %v6966_v44 = vrot.slane %v3973_v1, 9  ;;  %v6978_v9 = vcombine.low %v8659_v52, %v8668_v33  ;;  %v3979_v49 = vld [vmem:[#allocation2 + $0x6c] sm:$0xe] }
 0x136   : > { %v8699_v38 = vsel %vm8280_vm1, %v4083_v60, %v4084_v3  ;;  %v4095_v63 = vrot.slane %v3974_v6, 5  ;;  %v6979_v16 = vcombine.low %v8673_v2, %v8681_v29  ;;  %v6980_v43 = vcombine.low %v8677_v5, %v8685_v54  ;;  %v3980_v12 = vld [vmem:[#allocation2 + $0x70] sm:$0xf]  ;;  %v3981_v61 = vld [vmem:[#allocation2 + $0x74] sm:$0x1]  ;;  %v7464_v20 = vpop.f32.mrb[4].mxu0 }
 0x137   : > { %v7815_v17 = vld [vmem:[#allocation2 + $0xc0] sm:$0xff]   ;;  %v6981_v25 = vcombine.low %v8689_v42, %v8699_v38  ;;  %v8709_v8 = vsel %vm8280_vm1, %v6965_v35, %v4088_v13  ;;  %v8715_v23 = vsel %vm8280_vm1, %v4090_v15, %v4091_v26  ;;  %v3982_v53 = vld [vmem:[#allocation2 + $0x78] sm:$0xe]  ;;  %v4098_v62 = vrot.slane %v3975_v36, 5  ;;  %v3983_v55 = vld [vmem:[#allocation2 + $0x7c] sm:$0xf] }
 0x138   : > { %v3210_v31 = vld [vmem:[#allocation2 + $0xc0] sm:$0xf]  ;;  %v3211_v14 = vld [vmem:[#allocation2 + $0xc4] sm:$0xf]  ;;  %v3212_v24 = vld [vmem:[#allocation2 + $0xc8] sm:$0x1]  ;;  %7589 = vmatmul.mubr.msk.bf16.gmra.mrb[76].mxu1 %vm1135_vm7, %v7815_v17  ;;  %v8719_v19 = vsel %vm8280_vm1, %v6966_v44, %v4095_v63  ;;  %v6982_v59 = vcombine.low %v8709_v8, %v8715_v23 }
 0x139   : > { %v3574_v22 = vshrl.u32 %v3210_v31, 16  ;;  %v3577_v47 = vshll.u32 %v3210_v31, 16  ;;  %v3583_v32 = vshll.u32 %v3211_v14, 16  ;;  %v3587_v0 = vshrl.u32 %v3211_v14, 16  ;;  %7628 = vmatprep.mubr.msk.bf16.mxu1 %vm1135_vm7, %v6977_v48  ;;  %v3984_v46 = vld [vmem:[#allocation2 + $0x80] sm:$0x1] }
 0x13a   : > { %v3593_v28 = vshll.u32 %v3212_v24, 16  ;;  %v4097_v37 = vrot.slane %v4095_v63, 4  ;;  %v6967_v45 = vrot.slane %v3976_v7, 9  ;;  %v4102_v48 = vrot.slane %v3977_v11, 5  ;;  %v3985_v30 = vld [vmem:[#allocation2 + $0x84] sm:$0xe] }
 0x13b   : > { %v3576_v50 = vrot.slane %v3574_v22, 4  ;;  %v3579_v51 = vrot.slane %v3577_v47, 5  ;;  %v3585_v57 = vrot.slane %v3583_v32, 5  ;;  %v3589_v39 = vrot.slane %v3587_v0, 4  ;;  %v3986_v13 = vld [vmem:[#allocation2 + $0x88] sm:$0xf] }
 0x13c   : > { %v3595_v40 = vrot.slane %v3593_v28, 5  ;;  %v4105_v58 = vrot.slane %v3978_v27, 5  ;;  %v6968_v21 = vrot.slane %v3979_v49, 9  ;;  %v8725_v3 = vsel %vm8280_vm1, %v4097_v37, %v4098_v62  ;;  %1355 = vst.msk [vmem:[#allocation3 + $0x30] sm:$0xff] %vm1135_vm7, %v7464_v20  ;;  %v1238_v6 = vpop.f32.mrb[5].mxu0  ;;  %v7816_v32 = vld [vmem:[#allocation2 + $0x18] sm:$0xff]  }
 0x13d   : > { %v3580_v18 = vor.u32 %v3579_v51, %v3576_v50  ;;  %v3590_v41 = vor.u32 %v3589_v39, %v3585_v57  ;;  %v4104_v1 = vrot.slane %v4102_v48, 4  ;;  %v4109_v35 = vrot.slane %v3980_v12, 5  ;;  %v3987_v17 = vld [vmem:[#allocation2 + $0x8c] sm:$0x1]  ;;  %v8732_v36 = vld [vmem:[#allocation2 + $0x90] sm:$0xe] }
 0x13e   : > { %v8730_v26 = vsel %vm8280_vm1, %v6967_v45, %v4102_v48  ;;  %v4112_v44 = vrot.slane %v3981_v61, 5  ;;  %1353 = vst.msk [vmem:[#allocation3 + $0x20] sm:$0xff] %vm1135_vm7, %v1238_v6  ;;  %v7465_v63 = vpop.f32.mrb[6].mxu0  ;;  %v6983_v7 = vcombine.low %v8719_v19, %v8725_v3  ;;  %v6969_v14 = vrot.slane %v3982_v53, 9  ;;  %v3989_v24 = vld [vmem:[#allocation2 + $0x94] sm:$0xf] }
 0x13f   : > { %v3581_v60 = vrot.slane %v3580_v18, 4  ;;  %v3591_v15 = vrot.slane %v3590_v41, 4  ;;  %v8739_v11 = vsel %vm8280_vm1, %v4104_v1, %v4105_v58  ;;  %v4111_v31 = vrot.slane %v4109_v35, 4  ;;  %1356 = vst.msk [vmem:[#allocation3 + $0x38] sm:$0xff] %vm1135_vm7, %v7465_v63  ;;  %v1241_v27 = vpop.f32.mrb[7].mxu0 }
 0x140   : > { %7629 = vmatmul.mubr.msk.bf16.vlgmr.msra.gmra.mrb[80].mxu1 %vm1135_vm7, %v6978_v9  ;;  %v8752_v0 = vsel %vm8280_vm1, %v6968_v21, %v4109_v35  ;;  %v4116_v49 = vrot.slane %v3983_v55, 5  ;;  %v3990_v28 = vld [vmem:[#allocation2 + $0x98] sm:$0x1]  ;;  %v3991_v37 = vld [vmem:[#allocation2 + $0x9c] sm:$0xe]  ;;  %1354 = vst.msk [vmem:[#allocation3 + $0x28] sm:$0xff] %vm1135_vm7, %v1241_v27  ;;  %v6984_v52 = vcombine.low %v8730_v26, %v8739_v11 }
 0x141   : > { %v3586_v22 = vsel %vm8250_vm0, %v3581_v60, %v3585_v57  ;;  %v3596_v47 = vsel %vm8250_vm0, %v3591_v15, %v3595_v40  ;;  %7695 = vmatpush3.bf16.msra.mxu1 %v8663_v56  ;;  %7632 = vmatprep.mubr.msk.bf16.mxu1 %vm1135_vm7, %v6979_v16  ;;  %v4119_v33 = vrot.slane %v3984_v46, 5  ;;  %v6970_v9 = vrot.slane %v3985_v30, 9  ;;  %v3992_v61 = vld [vmem:[#allocation2 + $0xa0] sm:$0xf]  ;;  %v3993_v50 = vld [vmem:[#allocation2 + $0xa4] sm:$0x1] }
 0x142   : > { %v6943_v12 = vcombine.low %v3586_v22, %v3596_v47  ;;  %v8764_v51 = vsel %vm8280_vm1, %v4111_v31, %v4112_v44  ;;  %v8768_v57 = vsel %vm8280_vm1, %v6969_v14, %v4116_v49  ;;  %v4118_v56 = vrot.slane %v4116_v49, 4  ;;  %v3994_v2 = vld [vmem:[#allocation2 + $0xa8] sm:$0xe]  ;;  %v3995_v29 = vld [vmem:[#allocation2 + $0xac] sm:$0xf]  ;;  %v7484_v21 = vpop.f32.mrb[8].mxu1 }
 0x143   : > { %v4123_v39 = vrot.slane %v3986_v13, 5  ;;  %v4126_v16 = vrot.slane %v3987_v17, 5  ;;  %v6971_v53 = vrot.slane %v8732_v36, 9  ;;  %v4130_v40 = vrot.slane %v3989_v24, 5  ;;  %v3996_v45 = vld [vmem:[#allocation2 + $0xb0] sm:$0x1] }
 0x144   : > { %7623 = vmatmul.mubr.msk.bf16.gmra.mrb[76].mxu0 %vm1135_vm7, %v6943_v12  ;;  %v4133_v62 = vrot.slane %v3990_v28, 5  ;;  %v8775_v48 = vsel %vm8280_vm1, %v4118_v56, %v4119_v33  ;;  %v6972_v41 = vrot.slane %v3991_v37, 9  ;;  %v3997_v58 = vld [vmem:[#allocation2 + $0xb4] sm:$0xe]  ;;  %v7817_v46 = vld [vmem:[#allocation2 + $0x24] sm:$0xff]   ;;  %v6985_v30 = vcombine.low %v8752_v0, %v8764_v51  ;;  %1375 = vst.msk [vmem:[#allocation3 + $0xd0] sm:$0xff] %vm1135_vm7, %v7484_v21 }
 0x145   : > { %7662 = vmatprep.mubr.msk.bf16.mxu0 %vm1135_vm7, %v7816_v32  ;;  %v8779_v55 = vsel %vm8280_vm1, %v6970_v9, %v4123_v39  ;;  %v4125_v18 = vrot.slane %v4123_v39, 4  ;;  %v6986_v20 = vcombine.low %v8768_v57, %v8775_v48  ;;  %v4132_v1 = vrot.slane %v4130_v40, 4  ;;  %v3998_v13 = vld [vmem:[#allocation2 + $0xb8] sm:$0xf]  ;;  %v1318_v6 = vpop.f32.mrb[9].mxu1  ;;  %v7818_v49 = vld [vmem:[#allocation2 + $0x30] sm:$0xff]  }
 0x146   : > { %v4137_v35 = vrot.slane %v3992_v61, 5  ;;  %v4140_v15 = vrot.slane %v3993_v50, 5  ;;  %v6973_v44 = vrot.slane %v3994_v2, 9  ;;  %v4144_v17 = vrot.slane %v3995_v29, 5  ;;  %v3999_v36 = vld [vmem:[#allocation2 + $0xbc] sm:$0x1] }
 0x147   : > { %v8788_v60 = vsel %vm8280_vm1, %v4125_v18, %v4126_v16  ;;  %1373 = vst.msk [vmem:[#allocation3 + $0xc0] sm:$0xff] %vm1135_vm7, %v1318_v6  ;;  %v7485_v63 = vpop.f32.mrb[10].mxu1  ;;  %v8795_v14 = vsel %vm8280_vm1, %v6971_v53, %v4130_v40  ;;  %v8799_v24 = vsel %vm8280_vm1, %v4132_v1, %v4133_v62  ;;  %v4000_v22 = vld [vmem:[#allocation2 + $0xc0] sm:$0xe]  ;;  %v4001_v47 = vld [vmem:[#allocation2 + $0xc4] sm:$0xf] }
 0x148   : > { %v6987_v31 = vcombine.low %v8779_v55, %v8788_v60  ;;  %v4139_v27 = vrot.slane %v4137_v35, 4  ;;  %1376 = vst.msk [vmem:[#allocation3 + $0xd8] sm:$0xff] %vm1135_vm7, %v7485_v63  ;;  %v1321_v32 = vpop.f32.mrb[11].mxu1  ;;  %7633 = vmatmul.mubr.msk.bf16.gmra.mrb[84].mxu1 %vm1135_vm7, %v6980_v43  ;;  %v8808_v28 = vsel %vm8280_vm1, %v6972_v41, %v4137_v35  ;;  %v8812_v37 = vsel %vm8280_vm1, %v6973_v44, %v4144_v17  ;;  %v4002_v9 = vld [vmem:[#allocation2 + $0xc8] sm:$0x1] }
 0x149   : > { %v4146_v12 = vrot.slane %v4144_v17, 4  ;;  %v4147_v33 = vrot.slane %v3996_v45, 5  ;;  %1374 = vst.msk [vmem:[#allocation3 + $0xc8] sm:$0xff] %vm1135_vm7, %v1321_v32  ;;  %7636 = vmatprep.mubr.msk.bf16.mxu1 %vm1135_vm7, %v6981_v25  ;;  %v6974_v54 = vrot.slane %v3997_v58, 9  ;;  %v4151_v43 = vrot.slane %v3998_v13, 5 }
 0x14a   : > { %v8821_v5 = vsel %vm8280_vm1, %v4139_v27, %v4140_v15  ;;  %v4154_v61 = vrot.slane %v3999_v36, 5  ;;  %v4944_v50 = vld [vmem:[#allocation2 + $0x18] sm:$0xf]  ;;  %v6988_v56 = vcombine.low %v8795_v14, %v8799_v24  ;;  %v6975_v2 = vrot.slane %v4000_v22, 9  ;;  %v4945_v42 = vld [vmem:[#allocation2 + $0x1c] sm:$0xf] }
 0x14b   : > { %v8827_v39 = vsel %vm8280_vm1, %v4146_v12, %v4147_v33  ;;  %v4158_v29 = vrot.slane %v4001_v47, 5  ;;  %v4946_v38 = vld [vmem:[#allocation2 + $0x20] sm:$0x1]  ;;  %v6989_v25 = vcombine.low %v8808_v28, %v8821_v5  ;;  %v8834_v16 = vsel %vm8280_vm1, %v6974_v54, %v4151_v43  ;;  %v4947_v62 = vld [vmem:[#allocation2 + $0x24] sm:$0xf]  ;;  %v7468_v44 = vpop.f32.mrb[8].mxu0 }
 0x14c   : > { %7663 = vmatmul.mubr.msk.bf16.vlgmr.msra.gmra.mrb[80].mxu0 %vm1135_vm7, %v7817_v46  ;;  %v4153_v53 = vrot.slane %v4151_v43, 4  ;;  %v4161_v40 = vrot.slane %v4002_v9, 5  ;;  %v6990_v45 = vcombine.low %v8812_v37, %v8827_v39  ;;  %v4993_v41 = vshrl.u32 %v4944_v50, 16  ;;  %v4948_v21 = vld [vmem:[#allocation2 + $0x28] sm:$0xf]  ;;  %v7819_v46 = vld [vmem:[#allocation2 + $0x3c] sm:$0xff]  }
 0x14d   : > { %7729 = vmatpush3.bf16.msra.mxu0 %v8693_v10  ;;  %7666 = vmatprep.mubr.msk.bf16.mxu0 %vm1135_vm7, %v7818_v49  ;;  %v4160_v18 = vrot.slane %v4158_v29, 4  ;;  %v4996_v58 = vshll.u32 %v4944_v50, 16  ;;  %v5002_v35 = vshll.u32 %v4945_v42, 16  ;;  %v5006_v13 = vshrl.u32 %v4945_v42, 16  ;;  %v4949_v15 = vld [vmem:[#allocation2 + $0x2c] sm:$0x1] }
 0x14e   : > { %v8842_v1 = vsel %vm8280_vm1, %v4153_v53, %v4154_v61  ;;  %v5012_v6 = vshll.u32 %v4946_v38, 16  ;;  %v7820_v10 = vld [vmem:[#allocation2 + $0x48] sm:$0xff]   ;;  %v8848_v36 = vsel %vm8280_vm1, %v6975_v2, %v4158_v29  ;;  %v4995_v63 = vrot.slane %v4993_v41, 4  ;;  %v5734_v22 = vld [vmem:[#allocation2 + $0x18] sm:$0xe]  ;;  %1359 = vst.msk [vmem:[#allocation3 + $0x50] sm:$0xff] %vm1135_vm7, %v7468_v44 }
 0x14f   : > { %v6991_v17 = vcombine.low %v8834_v16, %v8842_v1  ;;  %v4998_v27 = vrot.slane %v4996_v58, 5  ;;  %v1254_v47 = vpop.f32.mrb[9].mxu0  ;;  %v8853_v32 = vsel %vm8280_vm1, %v4160_v18, %v4161_v40  ;;  %v5004_v49 = vrot.slane %v5002_v35, 5  ;;  %v4950_v9 = vld [vmem:[#allocation2 + $0x30] sm:$0xf] }
 0x150   : > { %v5008_v12 = vrot.slane %v5006_v13, 4  ;;  %v5014_v33 = vrot.slane %v5012_v6, 5  ;;  %1357 = vst.msk [vmem:[#allocation3 + $0x40] sm:$0xff] %vm1135_vm7, %v1254_v47  ;;  %v7469_v54 = vpop.f32.mrb[10].mxu0  ;;  %7637 = vmatmul.mubr.msk.bf16.gmra.mrb[88].mxu1 %vm1135_vm7, %v6982_v59  ;;  %v5017_v61 = vshrl.u32 %v4947_v62, 16  ;;  %v5020_v50 = vshll.u32 %v4947_v62, 16 }
 0x151   : > { %v4999_v43 = vor.u32 %v4998_v27, %v4995_v63  ;;  %v5026_v2 = vshll.u32 %v4948_v21, 16  ;;  %v5735_v29 = vld [vmem:[#allocation2 + $0x1c] sm:$0xf]  ;;  %1360 = vst.msk [vmem:[#allocation3 + $0x58] sm:$0xff] %vm1135_vm7, %v7469_v54  ;;  %v1257_v42 = vpop.f32.mrb[11].mxu0  ;;  %7640 = vmatprep.mubr.msk.bf16.mxu1 %vm1135_vm7, %v6983_v7  ;;  %v5030_v53 = vshrl.u32 %v4948_v21, 16  ;;  %v6992_v58 = vcombine.low %v8848_v36, %v8853_v32 }
 0x152   : > { %v5009_v38 = vor.u32 %v5008_v12, %v5004_v49  ;;  %v5036_v40 = vshll.u32 %v4949_v15, 16  ;;  %v5736_v18 = vld [vmem:[#allocation2 + $0x20] sm:$0x1]  ;;  %v7075_v8 = vrot.slane %v5734_v22, 9  ;;  %1358 = vst.msk [vmem:[#allocation3 + $0x48] sm:$0xff] %vm1135_vm7, %v1257_v42  ;;  %v5019_v59 = vrot.slane %v5017_v61, 4 }
 0x153   : > { %v5000_v23 = vrot.slane %v4999_v43, 4  ;;  %v5022_v62 = vrot.slane %v5020_v50, 5  ;;  %v8866_v41 = vrot.slane %v5026_v2, 5  ;;  %v5032_v3 = vrot.slane %v5030_v53, 4  ;;  %v4951_v6 = vld [vmem:[#allocation2 + $0x34] sm:$0xf] }
 0x154   : > { %7667 = vmatmul.mubr.msk.bf16.gmra.mrb[84].mxu0 %vm1135_vm7, %v7819_v46  ;;  %v5010_v19 = vrot.slane %v5009_v38, 4  ;;  %v5832_v7 = vrot.slane %v5735_v29, 5  ;;  %v8872_v35 = vrot.slane %v5036_v40, 5  ;;  %v5835_v13 = vrot.slane %v5736_v18, 5  ;;  %v4952_v22 = vld [vmem:[#allocation2 + $0x38] sm:$0x1] }
 0x155   : > { %7670 = vmatprep.mubr.msk.bf16.mxu0 %vm1135_vm7, %v7820_v10  ;;  %v5023_v21 = vor.u32 %v5022_v62, %v5019_v59  ;;  %v5041_v15 = vshrl.u32 %v4950_v9, 16  ;;  %v5005_v44 = vsel %vm8250_vm0, %v5000_v23, %v5004_v49  ;;  %v5033_v63 = vor.u32 %v5032_v3, %v8866_v41  ;;  %v7821_v47 = vld [vmem:[#allocation2 + $0x54] sm:$0xff]   ;;  %v5737_v61 = vld [vmem:[#allocation2 + $0x24] sm:$0xe]  ;;  %v5738_v42 = vld [vmem:[#allocation2 + $0x28] sm:$0xf] }
 0x156   : > { %v5015_v46 = vsel %vm8250_vm0, %v5010_v19, %v5014_v33  ;;  %v5834_v27 = vrot.slane %v5832_v7, 4  ;;  %v8881_v10 = vsel %vm8280_vm1, %v7075_v8, %v5832_v7  ;;  %v5044_v43 = vshll.u32 %v4950_v9, 16  ;;  %v7822_v50 = vld [vmem:[#allocation2 + $0x60] sm:$0xff]   ;;  %v5739_v18 = vld [vmem:[#allocation2 + $0x2c] sm:$0x1] }
 0x157   : > { %v5024_v12 = vrot.slane %v5023_v21, 4  ;;  %v5043_v54 = vrot.slane %v5041_v15, 4  ;;  %v5034_v2 = vrot.slane %v5033_v63, 4  ;;  %v5050_v33 = vshll.u32 %v4951_v6, 16  ;;  %v4953_v8 = vld [vmem:[#allocation2 + $0x3c] sm:$0xf] }
 0x158   : > { %v8885_v49 = vsel %vm8280_vm1, %v5834_v27, %v5835_v13  ;;  %v5054_v29 = vshrl.u32 %v4951_v6, 16  ;;  %7641 = vmatmul.mubr.msk.bf16.gmra.mrb[92].mxu1 %vm1135_vm7, %v6984_v52  ;;  %v8891_v38 = vcombine.low %v5005_v44, %v5015_v46  ;;  %v5046_v53 = vrot.slane %v5044_v43, 5  ;;  %v4954_v59 = vld [vmem:[#allocation2 + $0x40] sm:$0xf]  ;;  %v4955_v7 = vld [vmem:[#allocation2 + $0x44] sm:$0x1] }
 0x159   : > { %v5029_v9 = vsel %vm8250_vm0, %v5024_v12, %v8866_v41  ;;  %v5060_v40 = vshll.u32 %v4952_v22, 16  ;;  %7644 = vmatprep.mubr.msk.bf16.mxu1 %vm1135_vm7, %v6985_v30  ;;  %v7092_v26 = vcombine.low %v8881_v10, %v8885_v49  ;;  %v5052_v11 = vrot.slane %v5050_v33, 5  ;;  %v7488_v21 = vpop.f32.mrb[12].mxu1  ;;  %v5740_v15 = vld [vmem:[#allocation2 + $0x30] sm:$0xe] }
 0x15a   : > { %v5056_v52 = vrot.slane %v5054_v29, 4  ;;  %v7076_v23 = vrot.slane %v5737_v61, 9  ;;  %v5039_v62 = vsel %vm8250_vm0, %v5034_v2, %v8872_v35  ;;  %v5047_v41 = vor.u32 %v5046_v53, %v5043_v54  ;;  %1379 = vst.msk [vmem:[#allocation3 + $0xf0] sm:$0xff] %vm1135_vm7, %v7488_v21  ;;  %v1334_v6 = vpop.f32.mrb[13].mxu1  ;;  %v5741_v22 = vld [vmem:[#allocation2 + $0x34] sm:$0xf] }
 0x15b   : > { %v5062_v19 = vrot.slane %v5060_v40, 5  ;;  %v5839_v3 = vrot.slane %v5738_v42, 5  ;;  %v5842_v51 = vrot.slane %v5739_v18, 5  ;;  %v5065_v30 = vshrl.u32 %v4953_v8, 16  ;;  %1377 = vst.msk [vmem:[#allocation3 + $0xe0] sm:$0xff] %vm1135_vm7, %v1334_v6  ;;  %v7489_v27 = vpop.f32.mrb[14].mxu1 }
 0x15c   : > { %7671 = vmatmul.mubr.msk.bf16.gmra.mrb[88].mxu0 %vm1135_vm7, %v7821_v47  ;;  %v5057_v0 = vor.u32 %v5056_v52, %v5052_v11  ;;  %v5068_v13 = vshll.u32 %v4953_v8, 16  ;;  %v5048_v44 = vrot.slane %v5047_v41, 4  ;;  %v5074_v63 = vshll.u32 %v4954_v59, 16  ;;  %1380 = vst.msk [vmem:[#allocation3 + $0xf8] sm:$0xff] %vm1135_vm7, %v7489_v27  ;;  %v1337_v61 = vpop.f32.mrb[15].mxu1  ;;  %v7823_v40 = vld [vmem:[#allocation2 + $0x6c] sm:$0xff]  }
 0x15d   : > { %7674 = vmatprep.mubr.msk.bf16.mxu0 %vm1135_vm7, %v7822_v50  ;;  %v8910_v35 = vsel %vm8280_vm1, %v7076_v23, %v5839_v3  ;;  %v5841_v46 = vrot.slane %v5839_v3, 4  ;;  %v5067_v12 = vrot.slane %v5065_v30, 4  ;;  %v5078_v43 = vshrl.u32 %v4954_v59, 16  ;;  %1378 = vst.msk [vmem:[#allocation3 + $0xe8] sm:$0xff] %vm1135_vm7, %v1337_v61  ;;  %v5742_v42 = vld [vmem:[#allocation2 + $0x38] sm:$0x1] }
 0x15e   : > { %v5058_v47 = vrot.slane %v5057_v0, 4  ;;  %v5070_v54 = vrot.slane %v5068_v13, 5  ;;  %v8914_v2 = vcombine.low %v5029_v9, %v5039_v62  ;;  %v8920_v33 = vrot.slane %v5074_v63, 5  ;;  %v4956_v53 = vld [vmem:[#allocation2 + $0x48] sm:$0xf]  ;;  %v7824_v62 = vld [vmem:[#allocation2 + $0x78] sm:$0xff]  }
 0x15f   : > { %v8918_v50 = vsel %vm8280_vm1, %v5841_v46, %v5842_v51  ;;  %v5084_v29 = vshll.u32 %v4955_v7, 16  ;;  %v5053_v18 = vsel %vm8250_vm0, %v5048_v44, %v5052_v11  ;;  %v5080_v52 = vrot.slane %v5078_v43, 4  ;;  %v4957_v23 = vld [vmem:[#allocation2 + $0x4c] sm:$0xf]  ;;  %v4958_v59 = vld [vmem:[#allocation2 + $0x50] sm:$0x1] }
 0x160   : > { %v5063_v8 = vsel %vm8250_vm0, %v5058_v47, %v5062_v19  ;;  %v5071_v9 = vor.u32 %v5070_v54, %v5067_v12  ;;  %7645 = vmatmul.mubr.msk.bf16.gmra.mrb[96].mxu1 %vm1135_vm7, %v6986_v20  ;;  %v7093_v41 = vcombine.low %v8910_v35, %v8918_v50  ;;  %v7077_v7 = vrot.slane %v5740_v15, 9  ;;  %v5743_v21 = vld [vmem:[#allocation2 + $0x3c] sm:$0xe]  ;;  %v5744_v20 = vld [vmem:[#allocation2 + $0x40] sm:$0xf] }
 0x161   : > { %v8933_v3 = vrot.slane %v5084_v29, 5  ;;  %v5846_v11 = vrot.slane %v5741_v22, 5  ;;  %7648 = vmatprep.mubr.msk.bf16.mxu1 %vm1135_vm7, %v6987_v31  ;;  %v5081_v0 = vor.u32 %v5080_v52, %v8920_v33  ;;  %v5849_v57 = vrot.slane %v5742_v42, 5  ;;  %v5745_v44 = vld [vmem:[#allocation2 + $0x44] sm:$0x1] }
 0x162   : > { %v5072_v19 = vrot.slane %v5071_v9, 4  ;;  %v5089_v48 = vshrl.u32 %v4956_v53, 16  ;;  %v8940_v51 = vcombine.low %v5053_v18, %v5063_v8  ;;  %v5092_v13 = vshll.u32 %v4956_v53, 16  ;;  %v4959_v46 = vld [vmem:[#allocation2 + $0x54] sm:$0xf]  ;;  %v7825_v9 = vld [vmem:[#allocation2 + $0x84] sm:$0xff]  }
 0x163   : > { %v5848_v30 = vrot.slane %v5846_v11, 4  ;;  %v5098_v6 = vshll.u32 %v4957_v23, 16  ;;  %v5082_v15 = vrot.slane %v5081_v0, 4  ;;  %v8945_v55 = vsel %vm8280_vm1, %v7077_v7, %v5846_v11  ;;  %v4965_v39 = vld [vmem:[#allocation2 + $0x6c] sm:$0xf]  ;;  %v2106_v34 = vld [vmem:[#allocation3 + $0xe0] sm:$0xff] }
 0x164   : > { %7675 = vmatmul.mubr.msk.bf16.gmra.mrb[92].mxu0 %vm1135_vm7, %v7823_v40  ;;  %v5091_v60 = vrot.slane %v5089_v48, 4  ;;  %v5102_v31 = vshrl.u32 %v4957_v23, 16  ;;  %v7494_v63 = vpop.f32.mrb[16].mxu1  ;;  %v5094_v22 = vrot.slane %v5092_v13, 5  ;;  %v5108_v12 = vshll.u32 %v4958_v59, 16  ;;  %v7472_v54 = vpop.f32.mrb[12].mxu0 }
 0x165   : > { %7678 = vmatprep.mubr.msk.bf16.mxu0 %vm1135_vm7, %v7824_v62  ;;  %v8950_v27 = vsel %vm8280_vm1, %v5848_v30, %v5849_v57  ;;  %v8952_v47 = vrot.slane %v5098_v6, 5  ;;  %v1951_v43 = vpop.f32.mrb[17].mxu1  ;;  %v5077_v61 = vsel %vm8250_vm0, %v5072_v19, %v8920_v33  ;;  %v5087_v29 = vsel %vm8250_vm0, %v5082_v15, %v8933_v3  ;;  %v4960_v40 = vld [vmem:[#allocation2 + $0x58] sm:$0xf]  ;;  %1363 = vst.msk [vmem:[#allocation3 + $0x70] sm:$0xff] %vm1135_vm7, %v7472_v54  ;;  %v1270_v18 = vpop.f32.mrb[13].mxu0 }
 0x166   : > { %v5104_v42 = vrot.slane %v5102_v31, 4  ;;  %v7078_v53 = vrot.slane %v5743_v21, 9  ;;  %v7495_v8 = vpop.f32.mrb[18].mxu1  ;;  %v7094_v52 = vcombine.low %v8945_v55, %v8950_v27  ;;  %v5095_v23 = vor.u32 %v5094_v22, %v5091_v60  ;;  %1361 = vst.msk [vmem:[#allocation3 + $0x60] sm:$0xff] %vm1135_vm7, %v1270_v18  ;;  %v7473_v33 = vpop.f32.mrb[14].mxu0  ;;  %v7826_v48 = vld [vmem:[#allocation2 + $0x90] sm:$0xff]  }
 0x167   : > { %v8963_v59 = vrot.slane %v5108_v12, 5  ;;  %v5853_v62 = vrot.slane %v5744_v20, 5  ;;  %v1954_v7 = vpop.f32.mrb[19].mxu1  ;;  %v5856_v11 = vrot.slane %v5745_v44, 5  ;;  %v4961_v21 = vld [vmem:[#allocation2 + $0x5c] sm:$0x1]  ;;  %v8983_v60 = vcombine.low %v5077_v61, %v5087_v29 }
 0x168   : > { %v5105_v3 = vor.u32 %v5104_v42, %v8952_v47  ;;  %v5113_v19 = vshrl.u32 %v4959_v46, 16  ;;  %v5116_v0 = vshll.u32 %v4959_v46, 16  ;;  %1364 = vst.msk [vmem:[#allocation3 + $0x78] sm:$0xff] %vm1135_vm7, %v7473_v33  ;;  %v1273_v57 = vpop.f32.mrb[15].mxu0  ;;  %7649 = vmatmul.mubr.msk.bf16.gmra.mrb[100].mxu1 %vm1135_vm7, %v6988_v56  ;;  %v5096_v20 = vrot.slane %v5095_v23, 4  ;;  %v2080_v29 = vld [vmem:[#allocation3 + $0x10] sm:$0xff] }
 0x169   : > { %v8974_v30 = vsel %vm8280_vm1, %v7078_v53, %v5853_v62  ;;  %v5855_v13 = vrot.slane %v5853_v62, 4  ;;  %v5122_v6 = vshll.u32 %v4960_v40, 16  ;;  %1362 = vst.msk [vmem:[#allocation3 + $0x68] sm:$0xff] %vm1135_vm7, %v1273_v57  ;;  %7652 = vmatprep.mubr.msk.bf16.mxu1 %vm1135_vm7, %v6989_v25  ;;  %v5126_v24 = vshrl.u32 %v4960_v40, 16  ;;  %v8981_v56 = vld [vmem:[#allocation2 + $0x48] sm:$0xe] }
 0x16a   : > { %v5106_v44 = vrot.slane %v5105_v3, 4  ;;  %v5115_v15 = vrot.slane %v5113_v19, 4  ;;  %v5118_v14 = vrot.slane %v5116_v0, 5  ;;  %v5132_v22 = vshll.u32 %v4961_v21, 16  ;;  %v5747_v12 = vld [vmem:[#allocation2 + $0x4c] sm:$0xf] }
 0x16b   : > { %v8987_v31 = vsel %vm8280_vm1, %v5855_v13, %v5856_v11  ;;  %v5124_v46 = vrot.slane %v5122_v6, 5  ;;  %v8989_v54 = vld [vmem:[#allocation2 + $0x50] sm:$0x1]  ;;  %v5101_v28 = vsel %vm8250_vm0, %v5096_v20, %v8952_v47  ;;  %v5128_v61 = vrot.slane %v5126_v24, 4  ;;  %v2078_v42 = vld [vmem:[#allocation3] sm:$0xff]  ;;  %v2079_v33 = vld [vmem:[#allocation3 + $0x8] sm:$0xff] }
 0x16c   : > { %7679 = vmatmul.mubr.msk.bf16.gmra.mrb[96].mxu0 %vm1135_vm7, %v7825_v9  ;;  %v5111_v5 = vsel %vm8250_vm0, %v5106_v44, %v8963_v59  ;;  %v5119_v25 = vor.u32 %v5118_v14, %v5115_v15  ;;  %v4962_v53 = vld [vmem:[#allocation2 + $0x60] sm:$0xf]  ;;  %v7095_v40 = vcombine.low %v8974_v30, %v8987_v31  ;;  %v5134_v18 = vrot.slane %v5132_v22, 5  ;;  %v2081_v62 = vld [vmem:[#allocation3 + $0x18] sm:$0xff]  ;;  %v4963_v47 = vld [vmem:[#allocation2 + $0x64] sm:$0xf] }
 0x16d   : > { %7682 = vmatprep.mubr.msk.bf16.mxu0 %vm1135_vm7, %v7826_v48  ;;  %v2112_v9 = vadd.f32 %v7494_v63, %v2080_v29  ;;  %v2110_v23 = vadd.f32 %v2078_v42, %v1951_v43  ;;  %v9001_v3 = vpop.f32.mrb[16].mxu0  ;;  %v7827_v11 = vld [vmem:[#allocation2 + $0x9c] sm:$0xff]   ;;  %v5129_v21 = vor.u32 %v5128_v61, %v5124_v46  ;;  %v2113_v19 = vadd.f32 %v7495_v8, %v2081_v62  ;;  %v4964_v57 = vld [vmem:[#allocation2 + $0x68] sm:$0x1]  ;;  %v5749_v20 = vld [vmem:[#allocation2 + $0x54] sm:$0xe] }
 0x16e   : > { %v5120_v59 = vrot.slane %v5119_v25, 4  ;;  %v2111_v0 = vadd.f32 %v2079_v33, %v1954_v7  ;;  %v9003_v13 = vpop.f32.mrb[17].mxu0  ;;  %v7828_v48 = vld [vmem:[#allocation2 + $0xa8] sm:$0xff]   ;;  %v7079_v63 = vrot.slane %v8981_v56, 9  ;;  %v5860_v43 = vrot.slane %v5747_v12, 5 }
 0x16f   : > { %2144 = vst.msk [vmem:[#allocation3 + $0x10] sm:$0xff] %vm1135_vm7, %v2112_v9  ;;  %2142 = vst.msk [vmem:[#allocation3] sm:$0xff] %vm1135_vm7, %v2110_v23  ;;  %v5863_v6 = vrot.slane %v8989_v54, 5  ;;  %v5137_v44 = vshrl.u32 %v4962_v53, 16  ;;  %v9009_v15 = vpop.f32.mrb[18].mxu0  ;;  %v5130_v7 = vrot.slane %v5129_v21, 4  ;;  %v9021_v56 = vcombine.low %v5101_v28, %v5111_v5 }
 0x170   : > { %v5125_v8 = vsel %vm8250_vm0, %v5120_v59, %v5124_v46  ;;  %2145 = vst.msk [vmem:[#allocation3 + $0x18] sm:$0xff] %vm1135_vm7, %v2113_v19  ;;  %2143 = vst.msk [vmem:[#allocation3 + $0x8] sm:$0xff] %vm1135_vm7, %v2111_v0  ;;  %v5140_v14 = vshll.u32 %v4962_v53, 16  ;;  %v5146_v24 = vshll.u32 %v4963_v47, 16  ;;  %v5750_v22 = vld [vmem:[#allocation2 + $0x58] sm:$0xf]  ;;  %7653 = vmatmul.mubr.msk.bf16.gmra.mrb[104].mxu1 %vm1135_vm7, %v6990_v45  ;;  %v9035_v5 = vsel %vm8280_vm1, %v7079_v63, %v5860_v43 }
 0x171   : > { %v9015_v25 = vpop.f32.mrb[19].mxu0  ;;  %v5862_v12 = vrot.slane %v5860_v43, 4  ;;  %v5139_v54 = vrot.slane %v5137_v44, 4  ;;  %v5150_v46 = vshrl.u32 %v4963_v47, 16  ;;  %v5751_v61 = vld [vmem:[#allocation2 + $0x5c] sm:$0x1]  ;;  %7656 = vmatprep.mubr.msk.bf16.mxu1 %vm1135_vm7, %v6991_v17  ;;  %v5135_v42 = vsel %vm8250_vm0, %v5130_v7, %v5134_v18 }
 0x172   : > { %v7498_v29 = vpop.f32.mrb[20].mxu1  ;;  %v5142_v53 = vrot.slane %v5140_v14, 5  ;;  %v9029_v9 = vrot.slane %v5146_v24, 5  ;;  %v5156_v37 = vshll.u32 %v4964_v57, 16  ;;  %v9031_v28 = vcombine.low %v5125_v8, %v5135_v42  ;;  %v4966_v16 = vld [vmem:[#allocation2 + $0x70] sm:$0xf] }
 0x173   : > { %v1967_v45 = vpop.f32.mrb[21].mxu1  ;;  %v5152_v23 = vrot.slane %v5150_v46, 4  ;;  %v7080_v62 = vrot.slane %v5749_v20, 9  ;;  %v9040_v17 = vsel %vm8280_vm1, %v5862_v12, %v5863_v6  ;;  %v5867_v47 = vrot.slane %v5750_v22, 5  ;;  %v4967_v0 = vld [vmem:[#allocation2 + $0x74] sm:$0x1] }
 0x174   : > { %v7499_v1 = vpop.f32.mrb[22].mxu1  ;;  %7683 = vmatmul.mubr.msk.bf16.gmra.mrb[100].mxu0 %vm1135_vm7, %v7827_v11  ;;  %v5143_v18 = vor.u32 %v5142_v53, %v5139_v54  ;;  %v9042_v33 = vrot.slane %v5156_v37, 5  ;;  %v5870_v19 = vrot.slane %v5751_v61, 5  ;;  %v5161_v57 = vshrl.u32 %v4965_v39, 16  ;;  %v7829_v24 = vld [vmem:[#allocation2 + $0xb4] sm:$0xff]   ;;  %v7830_v22 = vld [vmem:[#allocation2 + $0xc0] sm:$0xff]  }
 0x175   : > { %v1970_v59 = vpop.f32.mrb[23].mxu1  ;;  %7686 = vmatprep.mubr.msk.bf16.mxu0 %vm1135_vm7, %v7828_v48  ;;  %v5153_v21 = vor.u32 %v5152_v23, %v9029_v9  ;;  %v5164_v20 = vshll.u32 %v4965_v39, 16  ;;  %v9050_v11 = vsel %vm8280_vm1, %v7080_v62, %v5867_v47  ;;  %v5869_v43 = vrot.slane %v5867_v47, 4  ;;  %v9062_v53 = vld [vmem:[#allocation2 + $0x60] sm:$0xe]  ;;  %v2084_v47 = vld [vmem:[#allocation3 + $0x30] sm:$0xff] }
 0x176   : > { %v9046_v63 = vrot.slane %v5143_v18, 4  ;;  %v5170_v6 = vshll.u32 %v4966_v16, 16  ;;  %v5163_v8 = vrot.slane %v5161_v57, 4  ;;  %v5174_v14 = vshrl.u32 %v4966_v16, 16  ;;  %v2649_v48 = vld [vmem:[#allocation3 + $0x10] sm:$0xff]  ;;  %v2647_v42 = vld [vmem:[#allocation3] sm:$0xff] }
 0x177   : > { %v9052_v44 = vrot.slane %v5153_v21, 4  ;;  %v5166_v7 = vrot.slane %v5164_v20, 5  ;;  %v9058_v54 = vsel %vm8280_vm1, %v5869_v43, %v5870_v19  ;;  %v5180_v61 = vshll.u32 %v4967_v0, 16  ;;  %v9064_v37 = vld [vmem:[#allocation2 + $0x64] sm:$0xf]  ;;  %v9066_v39 = vpop.f32.mrb[20].mxu0 }
 0x178   : > { %v9060_v46 = vrot.slane %v5170_v6, 5  ;;  %7657 = vmatmul.mubr.msk.bf16.gmra.mrb[108].mxu1 %vm1135_vm7, %v6992_v58  ;;  %v5149_v23 = vsel %vm8250_vm0, %v9046_v63, %v9029_v9  ;;  %v5176_v18 = vrot.slane %v5174_v14, 4  ;;  %v2650_v21 = vld [vmem:[#allocation3 + $0x18] sm:$0xff]  ;;  %v2648_v19 = vld [vmem:[#allocation3 + $0x8] sm:$0xff]  ;;  %v9080_v0 = vld [vmem:[#allocation2 + $0x68] sm:$0x1]  ;;  %v7097_v32 = vcombine.low %v9050_v11, %v9058_v54 }
 0x179   : > { %v5159_v62 = vsel %vm8250_vm0, %v9052_v44, %v9042_v33  ;;  %v5167_v16 = vor.u32 %v5166_v7, %v5163_v8  ;;  %v9082_v36 = vpop.f32.mrb[21].mxu0  ;;  %7696 = vmatprep.mubr.msk.bf16.mxu1 %vm1135_vm7, %v8891_v38  ;;  %v5182_v58 = vrot.slane %v5180_v61, 5  ;;  %v2681_v9 = vadd.f32 %v9001_v3, %v2649_v48  ;;  %v2082_v33 = vld [vmem:[#allocation3 + $0x20] sm:$0xff]  ;;  %v2085_v7 = vld [vmem:[#allocation3 + $0x38] sm:$0xff]  ;;  %v2083_v14 = vld [vmem:[#allocation3 + $0x28] sm:$0xff] }
 0x17a   : > { %v2116_v57 = vadd.f32 %v7498_v29, %v2084_v47  ;;  %v4968_v20 = vld [vmem:[#allocation2 + $0x78] sm:$0xf]  ;;  %v9089_v63 = vpop.f32.mrb[22].mxu0  ;;  %v5177_v6 = vor.u32 %v5176_v18, %v9060_v46  ;;  %v2679_v44 = vadd.f32 %v2647_v42, %v9003_v13  ;;  %v2114_v8 = vadd.f32 %v2082_v33, %v1967_v45  ;;  %v4969_v38 = vld [vmem:[#allocation2 + $0x7c] sm:$0xf] }
 0x17b   : > { %v5168_v43 = vrot.slane %v5167_v16, 4  ;;  %v9093_v12 = vpop.f32.mrb[23].mxu0  ;;  %2713 = vst.msk [vmem:[#allocation3 + $0x10] sm:$0xff] %vm1135_vm7, %v2681_v9  ;;  %v2682_v3 = vadd.f32 %v9009_v15, %v2650_v21  ;;  %v2117_v29 = vadd.f32 %v7499_v1, %v2085_v7  ;;  %v2680_v48 = vadd.f32 %v2648_v19, %v9015_v25  ;;  %v4970_v16 = vld [vmem:[#allocation2 + $0x80] sm:$0x1] }
 0x17c   : > { %7687 = vmatmul.mubr.msk.bf16.gmra.mrb[104].mxu0 %vm1135_vm7, %v7829_v24  ;;  %2148 = vst.msk [vmem:[#allocation3 + $0x30] sm:$0xff] %vm1135_vm7, %v2116_v57  ;;  %v2115_v61 = vadd.f32 %v2083_v14, %v1970_v59  ;;  %v5755_v13 = vld [vmem:[#allocation2 + $0x6c] sm:$0xe]  ;;  %v5178_v42 = vrot.slane %v5177_v6, 4  ;;  %2711 = vst.msk [vmem:[#allocation3] sm:$0xff] %vm1135_vm7, %v2679_v44  ;;  %v7081_v24 = vrot.slane %v9062_v53, 9 }
 0x17d   : > { %7690 = vmatprep.mubr.msk.bf16.mxu0 %vm1135_vm7, %v7830_v22  ;;  %v5173_v45 = vsel %vm8250_vm0, %v5168_v43, %v9060_v46  ;;  %2146 = vst.msk [vmem:[#allocation3 + $0x20] sm:$0xff] %vm1135_vm7, %v2114_v8  ;;  %v5874_v15 = vrot.slane %v9064_v37, 5  ;;  %v5756_v1 = vld [vmem:[#allocation2 + $0x70] sm:$0xf]  ;;  %v9108_v25 = vpop.f32.mrb[24].mxu1  ;;  %2714 = vst.msk [vmem:[#allocation3 + $0x18] sm:$0xff] %vm1135_vm7, %v2682_v3  ;;  %v9117_v37 = vcombine.low %v5149_v23, %v5159_v62 }
 0x17e   : > { %2149 = vst.msk [vmem:[#allocation3 + $0x38] sm:$0xff] %vm1135_vm7, %v2117_v29  ;;  %2712 = vst.msk [vmem:[#allocation3 + $0x8] sm:$0xff] %vm1135_vm7, %v2680_v48  ;;  %v5877_v59 = vrot.slane %v9080_v0, 5  ;;  %v5185_v22 = vshrl.u32 %v4968_v20, 16  ;;  %v5188_v46 = vshll.u32 %v4968_v20, 16  ;;  %v5194_v18 = vshll.u32 %v4969_v38, 16 }
 0x17f   : > { %2147 = vst.msk [vmem:[#allocation3 + $0x28] sm:$0xff] %vm1135_vm7, %v2115_v61  ;;  %v9115_v47 = vpop.f32.mrb[25].mxu1  ;;  %v7831_v53 = vld [vmem:[#allocation2 + $0xcc] sm:$0xff]   ;;  %v5183_v21 = vsel %vm8250_vm0, %v5178_v42, %v5182_v58  ;;  %v5876_v19 = vrot.slane %v5874_v15, 4  ;;  %v5198_v9 = vshrl.u32 %v4969_v38, 16  ;;  %v9125_v43 = vsel %vm8280_vm1, %v7081_v24, %v5874_v15 }
 0x180   : > { %v5757_v57 = vld [vmem:[#allocation2 + $0x74] sm:$0x1]  ;;  %v9121_v33 = vpop.f32.mrb[26].mxu1  ;;  %v5187_v0 = vrot.slane %v5185_v22, 4  ;;  %v5190_v20 = vrot.slane %v5188_v46, 5  ;;  %v9127_v6 = vrot.slane %v5194_v18, 5  ;;  %7697 = vmatmul.mubr.msk.bf16.vlgmr.msra.gmra.mrb[112].mxu1 %vm1135_vm7, %v8914_v2  ;;  %v9133_v23 = vcombine.low %v5173_v45, %v5183_v21 }
 0x181   : > { %v4971_v44 = vld [vmem:[#allocation2 + $0x84] sm:$0xf]  ;;  %v9129_v8 = vpop.f32.mrb[27].mxu1  ;;  %v5200_v62 = vrot.slane %v5198_v9, 4  ;;  %v5204_v58 = vshll.u32 %v4970_v16, 16  ;;  %v7082_v7 = vrot.slane %v5755_v13, 9  ;;  %7700 = vmatprep.mubr.msk.bf16.mxu1 %vm1135_vm7, %v8940_v51  ;;  %v9139_v38 = vsel %vm8280_vm1, %v5876_v19, %v5877_v59 }
 0x182   : > { %v4972_v14 = vld [vmem:[#allocation2 + $0x88] sm:$0xf]  ;;  %v5191_v3 = vor.u32 %v5190_v20, %v5187_v0  ;;  %v5881_v29 = vrot.slane %v5756_v1, 5  ;;  %v5884_v48 = vrot.slane %v5757_v57, 5  ;;  %v4973_v2 = vld [vmem:[#allocation2 + $0x8c] sm:$0x1]  ;;  %v7098_v19 = vcombine.low %v9125_v43, %v9139_v38 }
 0x183   : > { %v5201_v61 = vor.u32 %v5200_v62, %v9127_v6  ;;  %v9142_v42 = vrot.slane %v5204_v58, 5  ;;  %v5209_v45 = vshrl.u32 %v4971_v44, 16  ;;  %v5212_v24 = vshll.u32 %v4971_v44, 16  ;;  %v9144_v16 = vpop.f32.mrb[24].mxu0  ;;  %v2653_v21 = vld [vmem:[#allocation3 + $0x30] sm:$0xff] }
 0x184   : > { %7691 = vmatmul.mubr.msk.bf16.gmra.mrb[108].mxu0 %vm1135_vm7, %v7831_v53  ;;  %v9147_v13 = vrot.slane %v5191_v3, 4  ;;  %v9151_v51 = vsel %vm8280_vm1, %v7082_v7, %v5881_v29  ;;  %v5883_v15 = vrot.slane %v5881_v29, 4  ;;  %v5218_v1 = vshll.u32 %v4972_v14, 16  ;;  %v9153_v59 = vpop.f32.mrb[25].mxu0  ;;  %v2651_v20 = vld [vmem:[#allocation3 + $0x20] sm:$0xff] }
 0x185   : > { %7730 = vmatprep.mubr.msk.bf16.mxu0 %vm1135_vm7, %v7092_v26  ;;  %v9159_v22 = vrot.slane %v5201_v61, 4  ;;  %v5211_v46 = vrot.slane %v5209_v45, 4  ;;  %v5214_v18 = vrot.slane %v5212_v24, 5  ;;  %v5222_v53 = vshrl.u32 %v4972_v14, 16  ;;  %v9169_v10 = vld [vmem:[#allocation2 + $0x78] sm:$0xe] }
 0x186   : > { %v9165_v9 = vsel %vm8280_vm1, %v5883_v15, %v5884_v48  ;;  %v9167_v57 = vrot.slane %v5218_v1, 5  ;;  %v5228_v0 = vshll.u32 %v4973_v2, 16  ;;  %v5759_v49 = vld [vmem:[#allocation2 + $0x7c] sm:$0xf]  ;;  %v9171_v26 = vpop.f32.mrb[26].mxu0  ;;  %v5197_v44 = vsel %vm8250_vm0, %v9147_v13, %v9127_v6  ;;  %v2088_v14 = vld [vmem:[#allocation3 + $0x50] sm:$0xff] }
 0x187   : > { %v5207_v62 = vsel %vm8250_vm0, %v9159_v22, %v9142_v42  ;;  %v5215_v58 = vor.u32 %v5214_v18, %v5211_v46  ;;  %v5224_v7 = vrot.slane %v5222_v53, 4  ;;  %v2654_v3 = vld [vmem:[#allocation3 + $0x38] sm:$0xff]  ;;  %v2652_v29 = vld [vmem:[#allocation3 + $0x28] sm:$0xff]  ;;  %v9181_v48 = vpop.f32.mrb[27].mxu0  ;;  %v7099_v61 = vcombine.low %v9151_v51, %v9165_v9  ;;  %v2086_v24 = vld [vmem:[#allocation3 + $0x40] sm:$0xff] }
 0x188   : > { %v5230_v2 = vrot.slane %v5228_v0, 5  ;;  %v2685_v45 = vadd.f32 %v9066_v39, %v2653_v21  ;;  %v2120_v6 = vadd.f32 %v9108_v25, %v2088_v14  ;;  %v5760_v13 = vld [vmem:[#allocation2 + $0x80] sm:$0x1]  ;;  %v4974_v15 = vld [vmem:[#allocation2 + $0x90] sm:$0xf]  ;;  %7701 = vmatmul.mubr.msk.bf16.gmra.mrb[116].mxu1 %vm1135_vm7, %v8983_v60  ;;  %v2683_v22 = vadd.f32 %v2651_v20, %v9082_v36 }
 0x189   : > { %v5216_v42 = vrot.slane %v5215_v58, 4  ;;  %v5225_v1 = vor.u32 %v5224_v7, %v9167_v57  ;;  %v2118_v46 = vadd.f32 %v2086_v24, %v9115_v47  ;;  %v2089_v18 = vld [vmem:[#allocation3 + $0x58] sm:$0xff]  ;;  %v2087_v53 = vld [vmem:[#allocation3 + $0x48] sm:$0xff]  ;;  %7704 = vmatprep.mubr.msk.bf16.mxu1 %vm1135_vm7, %v9021_v56  ;;  %v2686_v39 = vadd.f32 %v9089_v63, %v2654_v3  ;;  %v4976_v21 = vld [vmem:[#allocation2 + $0x98] sm:$0x1] }
 0x18a   : > { %v4975_v0 = vld [vmem:[#allocation2 + $0x94] sm:$0xf]  ;;  %2717 = vst.msk [vmem:[#allocation3 + $0x30] sm:$0xff] %vm1135_vm7, %v2685_v45  ;;  %2152 = vst.msk [vmem:[#allocation3 + $0x50] sm:$0xff] %vm1135_vm7, %v2120_v6  ;;  %v2121_v60 = vadd.f32 %v9121_v33, %v2089_v18  ;;  %v2684_v25 = vadd.f32 %v2652_v29, %v9093_v12  ;;  %v2119_v36 = vadd.f32 %v2087_v53, %v9129_v8  ;;  %v5761_v47 = vld [vmem:[#allocation2 + $0x84] sm:$0xe] }
 0x18b   : > { %v5221_v20 = vsel %vm8250_vm0, %v5216_v42, %v9167_v57  ;;  %v5226_v58 = vrot.slane %v5225_v1, 4  ;;  %2715 = vst.msk [vmem:[#allocation3 + $0x20] sm:$0xff] %vm1135_vm7, %v2683_v22  ;;  %2150 = vst.msk [vmem:[#allocation3 + $0x40] sm:$0xff] %vm1135_vm7, %v2118_v46  ;;  %v7083_v56 = vrot.slane %v9169_v10, 9  ;;  %v5888_v63 = vrot.slane %v5759_v49, 5 }
 0x18c   : > { %v5762_v7 = vld [vmem:[#allocation2 + $0x88] sm:$0xf]  ;;  %v5763_v33 = vld [vmem:[#allocation2 + $0x8c] sm:$0x1]  ;;  %7731 = vmatmul.mubr.msk.bf16.vlgmr.msra.gmra.mrb[112].mxu0 %vm1135_vm7, %v7093_v41  ;;  %2718 = vst.msk [vmem:[#allocation3 + $0x38] sm:$0xff] %vm1135_vm7, %v2686_v39  ;;  %2153 = vst.msk [vmem:[#allocation3 + $0x58] sm:$0xff] %vm1135_vm7, %v2121_v60  ;;  %v9218_v35 = vcombine.low %v5197_v44, %v5207_v62 }
 0x18d   : > { %2716 = vst.msk [vmem:[#allocation3 + $0x28] sm:$0xff] %vm1135_vm7, %v2684_v25  ;;  %2151 = vst.msk [vmem:[#allocation3 + $0x48] sm:$0xff] %vm1135_vm7, %v2119_v36  ;;  %v5891_v12 = vrot.slane %v5760_v13, 5  ;;  %v5233_v8 = vshrl.u32 %v4974_v15, 16  ;;  %v5236_v57 = vshll.u32 %v4974_v15, 16  ;;  %v5242_v10 = vshll.u32 %v4975_v0, 16  ;;  %7734 = vmatprep.mubr.msk.bf16.mxu0 %vm1135_vm7, %v7094_v52 }
 0x18e   : > { %v4977_v49 = vld [vmem:[#allocation2 + $0x9c] sm:$0xf]  ;;  %v7506_v14 = vpop.f32.mrb[28].mxu1  ;;  %v5231_v50 = vsel %vm8250_vm0, %v5226_v58, %v5230_v2  ;;  %v5890_v41 = vrot.slane %v5888_v63, 4  ;;  %v5246_v3 = vshrl.u32 %v4975_v0, 16  ;;  %v9224_v6 = vsel %vm8280_vm1, %v7083_v56, %v5888_v63  ;;  %v9230_v27 = vpop.f32.mrb[28].mxu0 }
 0x18f   : > { %v4978_v29 = vld [vmem:[#allocation2 + $0xa0] sm:$0xf]  ;;  %v1999_v45 = vpop.f32.mrb[29].mxu1  ;;  %v5235_v24 = vrot.slane %v5233_v8, 4  ;;  %v5238_v13 = vrot.slane %v5236_v57, 5  ;;  %v9226_v15 = vrot.slane %v5242_v10, 5  ;;  %v9232_v52 = vcombine.low %v5221_v20, %v5231_v50 }
 0x190   : > { %v9228_v55 = vpop.f32.mrb[30].mxu1  ;;  %v5248_v44 = vrot.slane %v5246_v3, 4  ;;  %v5252_v62 = vshll.u32 %v4976_v21, 16  ;;  %v7084_v2 = vrot.slane %v5761_v47, 9  ;;  %v9234_v1 = vpop.f32.mrb[29].mxu0  ;;  %v9238_v22 = vsel %vm8280_vm1, %v5890_v41, %v5891_v12  ;;  %7705 = vmatmul.mubr.msk.bf16.gmra.mrb[120].mxu1 %vm1135_vm7, %v9031_v28 }
 0x191   : > { %v2002_v42 = vpop.f32.mrb[31].mxu1  ;;  %v5239_v46 = vor.u32 %v5238_v13, %v5235_v24  ;;  %v5895_v18 = vrot.slane %v5762_v7, 5  ;;  %v5898_v53 = vrot.slane %v5763_v33, 5  ;;  %v9240_v0 = vpop.f32.mrb[30].mxu0  ;;  %v4979_v25 = vld [vmem:[#allocation2 + $0xa4] sm:$0x1]  ;;  %7708 = vmatprep.mubr.msk.bf16.mxu1 %vm1135_vm7, %v9117_v37  ;;  %v7100_v37 = vcombine.low %v9224_v6, %v9238_v22 }
 0x192   : > { %v5249_v39 = vor.u32 %v5248_v44, %v9226_v15  ;;  %v9245_v60 = vrot.slane %v5252_v62, 5  ;;  %v5257_v36 = vshrl.u32 %v4977_v49, 16  ;;  %v5260_v21 = vshll.u32 %v4977_v49, 16  ;;  %v9247_v47 = vpop.f32.mrb[31].mxu0  ;;  %v2657_v8 = vld [vmem:[#allocation3 + $0x50] sm:$0xff]  ;;  %v2655_v50 = vld [vmem:[#allocation3 + $0x40] sm:$0xff] }
 0x193   : > { %v9251_v20 = vrot.slane %v5239_v46, 4  ;;  %v9255_v58 = vsel %vm8280_vm1, %v7084_v2, %v5895_v18  ;;  %v5897_v56 = vrot.slane %v5895_v18, 4  ;;  %v5266_v28 = vshll.u32 %v4978_v29, 16  ;;  %v5764_v41 = vld [vmem:[#allocation2 + $0x90] sm:$0xe]  ;;  %v2092_v13 = vld [vmem:[#allocation3 + $0x70] sm:$0xff] }
 0x194   : > { %v9257_v63 = vrot.slane %v5249_v39, 4  ;;  %v5259_v7 = vrot.slane %v5257_v36, 4  ;;  %v5262_v33 = vrot.slane %v5260_v21, 5  ;;  %v5270_v12 = vshrl.u32 %v4978_v29, 16  ;;  %7735 = vmatmul.mubr.msk.bf16.gmra.mrb[116].mxu0 %vm1135_vm7, %v7095_v40  ;;  %v5765_v3 = vld [vmem:[#allocation2 + $0x94] sm:$0xf] }
 0x195   : > { %v9267_v57 = vsel %vm8280_vm1, %v5897_v56, %v5898_v53  ;;  %v9269_v10 = vrot.slane %v5266_v28, 5  ;;  %v5276_v49 = vshll.u32 %v4979_v25, 16  ;;  %v9912_v29 = vcombine.low %v9035_v5, %v9040_v17  ;;  %v2658_v44 = vld [vmem:[#allocation3 + $0x58] sm:$0xff]  ;;  %v2656_v62 = vld [vmem:[#allocation3 + $0x48] sm:$0xff]  ;;  %v2090_v18 = vld [vmem:[#allocation3 + $0x60] sm:$0xff] }
 0x196   : > { %v5245_v30 = vsel %vm8250_vm0, %v9251_v20, %v9226_v15  ;;  %v5255_v31 = vsel %vm8250_vm0, %v9257_v63, %v9245_v60  ;;  %v5263_v40 = vor.u32 %v5262_v33, %v5259_v7  ;;  %v5272_v24 = vrot.slane %v5270_v12, 4  ;;  %v5766_v53 = vld [vmem:[#allocation2 + $0x98] sm:$0x1]  ;;  %v4980_v15 = vld [vmem:[#allocation2 + $0xa8] sm:$0xf]  ;;  %v2093_v21 = vld [vmem:[#allocation3 + $0x78] sm:$0xff] }
 0x197   : > { %7738 = vmatprep.mubr.msk.bf16.mxu0 %vm1135_vm7, %v9912_v29  ;;  %v7101_v5 = vcombine.low %v9255_v58, %v9267_v57  ;;  %v5278_v17 = vrot.slane %v5276_v49, 5  ;;  %v2689_v2 = vadd.f32 %v9144_v16, %v2657_v8  ;;  %v2124_v46 = vadd.f32 %v7506_v14, %v2092_v13  ;;  %v2091_v20 = vld [vmem:[#allocation3 + $0x68] sm:$0xff]  ;;  %v4981_v56 = vld [vmem:[#allocation2 + $0xac] sm:$0xf]  ;;  %v4982_v7 = vld [vmem:[#allocation2 + $0xb0] sm:$0x1] }
 0x198   : > { %v5264_v39 = vrot.slane %v5263_v40, 4  ;;  %v5273_v25 = vor.u32 %v5272_v24, %v9269_v10  ;;  %v2687_v60 = vadd.f32 %v2655_v50, %v9153_v59  ;;  %v2122_v36 = vadd.f32 %v2090_v18, %v1999_v45  ;;  %v9293_v33 = vpop.f32.mrb[32].mxu1  ;;  %7709 = vmatmul.mubr.msk.bf16.gmra.mrb[124].mxu1 %vm1135_vm7, %v9133_v23  ;;  %v5767_v12 = vld [vmem:[#allocation2 + $0x9c] sm:$0xe]  ;;  %v5769_v40 = vld [vmem:[#allocation2 + $0xa4] sm:$0x1] }
 0x199   : > { %2721 = vst.msk [vmem:[#allocation3 + $0x50] sm:$0xff] %vm1135_vm7, %v2689_v2  ;;  %2156 = vst.msk [vmem:[#allocation3 + $0x70] sm:$0xff] %vm1135_vm7, %v2124_v46  ;;  %v2690_v28 = vadd.f32 %v9171_v26, %v2658_v44  ;;  %v2125_v16 = vadd.f32 %v9228_v55, %v2093_v21  ;;  %v2688_v14 = vadd.f32 %v2656_v62, %v9181_v48  ;;  %v7085_v26 = vrot.slane %v5764_v41, 9  ;;  %v5768_v48 = vld [vmem:[#allocation2 + $0xa0] sm:$0xf] }
 0x19a   : > { %v2123_v63 = vadd.f32 %v2091_v20, %v2002_v42  ;;  %v5269_v59 = vsel %vm8250_vm0, %v5264_v39, %v9269_v10  ;;  %v5274_v45 = vrot.slane %v5273_v25, 4  ;;  %2719 = vst.msk [vmem:[#allocation3 + $0x40] sm:$0xff] %vm1135_vm7, %v2687_v60  ;;  %2154 = vst.msk [vmem:[#allocation3 + $0x60] sm:$0xff] %vm1135_vm7, %v2122_v36  ;;  %v5902_v55 = vrot.slane %v5765_v3, 5  ;;  %v9302_v42 = vpop.f32.mrb[33].mxu1  ;;  %7712 = vmatprep.mubr.msk.bf16.mxu1 %vm1135_vm7, %v9218_v35 }
 0x19b   : > { %2722 = vst.msk [vmem:[#allocation3 + $0x58] sm:$0xff] %vm1135_vm7, %v2690_v28  ;;  %2157 = vst.msk [vmem:[#allocation3 + $0x78] sm:$0xff] %vm1135_vm7, %v2125_v16  ;;  %v5905_v23 = vrot.slane %v5766_v53, 5  ;;  %v5281_v8 = vshrl.u32 %v4980_v15, 16  ;;  %v5284_v10 = vshll.u32 %v4980_v15, 16  ;;  %v5290_v49 = vshll.u32 %v4981_v56, 16 }
 0x19c   : > { %2720 = vst.msk [vmem:[#allocation3 + $0x48] sm:$0xff] %vm1135_vm7, %v2688_v14  ;;  %2155 = vst.msk [vmem:[#allocation3 + $0x68] sm:$0xff] %vm1135_vm7, %v2123_v63  ;;  %v9310_v50 = vpop.f32.mrb[34].mxu1  ;;  %v7053_v41 = vcombine.low %v5245_v30, %v5255_v31  ;;  %v5279_v3 = vsel %vm8250_vm0, %v5274_v45, %v5278_v17  ;;  %v5904_v29 = vrot.slane %v5902_v55, 4  ;;  %v5294_v35 = vshrl.u32 %v4981_v56, 16  ;;  %v9316_v13 = vpop.f32.mrb[32].mxu0  ;;  %7739 = vmatmul.mubr.msk.bf16.gmra.mrb[120].mxu0 %vm1135_vm7, %v7097_v32 }
 0x19d   : > { %v9314_v24 = vpop.f32.mrb[35].mxu1  ;;  %v9324_v44 = vsel %vm8280_vm1, %v7085_v26, %v5902_v55  ;;  %v5283_v30 = vrot.slane %v5281_v8, 4  ;;  %v5286_v31 = vrot.slane %v5284_v10, 5  ;;  %v5292_v62 = vrot.slane %v5290_v49, 5  ;;  %v4983_v17 = vld [vmem:[#allocation2 + $0xb4] sm:$0xf]  ;;  %7742 = vmatprep.mubr.msk.bf16.mxu0 %vm1135_vm7, %v7098_v19 }
 0x19e   : > { %v9326_v2 = vpop.f32.mrb[33].mxu0  ;;  %v9332_v46 = vcombine.low %v5269_v59, %v5279_v3  ;;  %v9336_v11 = vsel %vm8280_vm1, %v5904_v29, %v5905_v23  ;;  %v5296_v54 = vrot.slane %v5294_v35, 4  ;;  %v5300_v32 = vshll.u32 %v4982_v7, 16  ;;  %v4984_v18 = vld [vmem:[#allocation2 + $0xb8] sm:$0xf]  ;;  %v2096_v8 = vld [vmem:[#allocation3 + $0x90] sm:$0xff] }
 0x19f   : > { %v9338_v53 = vpop.f32.mrb[34].mxu0  ;;  %v5287_v15 = vor.u32 %v5286_v31, %v5283_v30  ;;  %v7086_v39 = vrot.slane %v5767_v12, 9  ;;  %v5909_v25 = vrot.slane %v5768_v48, 5  ;;  %v5912_v60 = vrot.slane %v5769_v40, 5  ;;  %v4985_v19 = vld [vmem:[#allocation2 + $0xbc] sm:$0x1] }
 0x1a0   : > { %v9340_v36 = vpop.f32.mrb[35].mxu0  ;;  %v5297_v43 = vor.u32 %v5296_v54, %v5292_v62  ;;  %v5302_v38 = vrot.slane %v5300_v32, 5  ;;  %v5305_v21 = vshrl.u32 %v4983_v17, 16  ;;  %v5308_v20 = vshll.u32 %v4983_v17, 16  ;;  %7713 = vmatmul.mubr.msk.bf16.gmra.mrb[128].mxu1 %vm1135_vm7, %v9232_v52  ;;  %v2661_v26 = vld [vmem:[#allocation3 + $0x70] sm:$0xff]  ;;  %v2094_v52 = vld [vmem:[#allocation3 + $0x80] sm:$0xff] }
 0x1a1   : > { %v7102_v56 = vcombine.low %v9324_v44, %v9336_v11  ;;  %v5288_v28 = vrot.slane %v5287_v15, 4  ;;  %v5911_v16 = vrot.slane %v5909_v25, 4  ;;  %v5314_v14 = vshll.u32 %v4984_v18, 16  ;;  %7716 = vmatprep.mubr.msk.bf16.mxu1 %vm1135_vm7, %v7053_v41  ;;  %v2659_v10 = vld [vmem:[#allocation3 + $0x60] sm:$0xff]  ;;  %v2097_v40 = vld [vmem:[#allocation3 + $0x98] sm:$0xff] }
 0x1a2   : > { %v5298_v63 = vrot.slane %v5297_v43, 4  ;;  %v5307_v7 = vrot.slane %v5305_v21, 4  ;;  %v5310_v59 = vrot.slane %v5308_v20, 5  ;;  %v5318_v45 = vshrl.u32 %v4984_v18, 16  ;;  %v2662_v35 = vld [vmem:[#allocation3 + $0x78] sm:$0xff]  ;;  %v2095_v18 = vld [vmem:[#allocation3 + $0x88] sm:$0xff] }
 0x1a3   : > { %v5293_v55 = vsel %vm8250_vm0, %v5288_v28, %v5292_v62  ;;  %v9351_v12 = vsel %vm8280_vm1, %v7086_v39, %v5909_v25  ;;  %v9353_v48 = vrot.slane %v5314_v14, 5  ;;  %v5324_v23 = vshll.u32 %v4985_v19, 16  ;;  %v2660_v30 = vld [vmem:[#allocation3 + $0x68] sm:$0xff]  ;;  %v5770_v31 = vld [vmem:[#allocation2 + $0xa8] sm:$0xe] }
 0x1a4   : > { %v5303_v49 = vsel %vm8250_vm0, %v5298_v63, %v5302_v38  ;;  %v9359_v3 = vsel %vm8280_vm1, %v5911_v16, %v5912_v60  ;;  %v5311_v41 = vor.u32 %v5310_v59, %v5307_v7  ;;  %v5320_v29 = vrot.slane %v5318_v45, 4  ;;  %7743 = vmatmul.mubr.msk.bf16.gmra.mrb[124].mxu0 %vm1135_vm7, %v7099_v61  ;;  %v5771_v15 = vld [vmem:[#allocation2 + $0xac] sm:$0xf]  ;;  %v5772_v39 = vld [vmem:[#allocation2 + $0xb0] sm:$0x1] }
 0x1a5   : > { %v7055_v62 = vcombine.low %v5293_v55, %v5303_v49  ;;  %v5326_v17 = vrot.slane %v5324_v23, 5  ;;  %v2693_v54 = vadd.f32 %v9230_v27, %v2661_v26  ;;  %v2128_v32 = vadd.f32 %v9293_v33, %v2096_v8  ;;  %7746 = vmatprep.mubr.msk.bf16.mxu0 %vm1135_vm7, %v7100_v37  ;;  %v4986_v61 = vld [vmem:[#allocation2 + $0xc0] sm:$0xf]  ;;  %v4987_v43 = vld [vmem:[#allocation2 + $0xc4] sm:$0xf]  ;;  %v9374_v27 = vpop.f32.mrb[36].mxu1 }
 0x1a6   : > { %v5312_v25 = vrot.slane %v5311_v41, 4  ;;  %v5321_v60 = vor.u32 %v5320_v29, %v9353_v48  ;;  %v2691_v51 = vadd.f32 %v2659_v10, %v9234_v1  ;;  %v2126_v9 = vadd.f32 %v2094_v52, %v9302_v42  ;;  %v4988_v38 = vld [vmem:[#allocation2 + $0xc8] sm:$0x1]  ;;  %v9382_v1 = vpop.f32.mrb[37].mxu1  ;;  %v5773_v20 = vld [vmem:[#allocation2 + $0xb4] sm:$0xe] }
 0x1a7   : > { %2725 = vst.msk [vmem:[#allocation3 + $0x70] sm:$0xff] %vm1135_vm7, %v2693_v54  ;;  %2160 = vst.msk [vmem:[#allocation3 + $0x90] sm:$0xff] %vm1135_vm7, %v2128_v32  ;;  %v2694_v33 = vadd.f32 %v9240_v0, %v2662_v35  ;;  %v2129_v6 = vadd.f32 %v9310_v50, %v2097_v40  ;;  %v2692_v22 = vadd.f32 %v2660_v30, %v9247_v47  ;;  %v7087_v21 = vrot.slane %v5770_v31, 9  ;;  %v5774_v50 = vld [vmem:[#allocation2 + $0xb8] sm:$0xf]  ;;  %v9389_v28 = vpop.f32.mrb[38].mxu1 }
 0x1a8   : > { %v2127_v37 = vadd.f32 %v2095_v18, %v9314_v24  ;;  %v5317_v42 = vsel %vm8250_vm0, %v5312_v25, %v9353_v48  ;;  %v5322_v19 = vrot.slane %v5321_v60, 4  ;;  %2723 = vst.msk [vmem:[#allocation3 + $0x60] sm:$0xff] %vm1135_vm7, %v2691_v51  ;;  %2158 = vst.msk [vmem:[#allocation3 + $0x80] sm:$0xff] %vm1135_vm7, %v2126_v9  ;;  %v5916_v0 = vrot.slane %v5771_v15, 5  ;;  %v9391_v47 = vpop.f32.mrb[36].mxu0  ;;  %v9397_v7 = vpop.f32.mrb[39].mxu1  ;;  %7717 = vmatmul.mubr.msk.bf16.gmra.mrb[132].mxu1 %vm1135_vm7, %v9332_v46 }
 0x1a9   : > { %2726 = vst.msk [vmem:[#allocation3 + $0x78] sm:$0xff] %vm1135_vm7, %v2694_v33  ;;  %2161 = vst.msk [vmem:[#allocation3 + $0x98] sm:$0xff] %vm1135_vm7, %v2129_v6  ;;  %v5919_v24 = vrot.slane %v5772_v39, 5  ;;  %v5329_v16 = vshrl.u32 %v4986_v61, 16  ;;  %v5332_v14 = vshll.u32 %v4986_v61, 16  ;;  %v5338_v63 = vshll.u32 %v4987_v43, 16  ;;  %7720 = vmatprep.mubr.msk.bf16.mxu1 %vm1135_vm7, %v7055_v62 }
 0x1aa   : > { %2724 = vst.msk [vmem:[#allocation3 + $0x68] sm:$0xff] %vm1135_vm7, %v2692_v22  ;;  %2159 = vst.msk [vmem:[#allocation3 + $0x88] sm:$0xff] %vm1135_vm7, %v2127_v37  ;;  %v9399_v59 = vpop.f32.mrb[37].mxu0  ;;  %v7103_v45 = vcombine.low %v9351_v12, %v9359_v3  ;;  %v5327_v26 = vsel %vm8250_vm0, %v5322_v19, %v5326_v17  ;;  %v5918_v55 = vrot.slane %v5916_v0, 4  ;;  %v5342_v48 = vshrl.u32 %v4987_v43, 16 }
 0x1ab   : > { %v5775_v23 = vld [vmem:[#allocation2 + $0xbc] sm:$0x1]  ;;  %v9407_v8 = vpop.f32.mrb[38].mxu0  ;;  %v9412_v10 = vsel %vm8280_vm1, %v7087_v21, %v5916_v0  ;;  %v5331_v52 = vrot.slane %v5329_v16, 4  ;;  %v5334_v49 = vrot.slane %v5332_v14, 5  ;;  %v5340_v46 = vrot.slane %v5338_v63, 5 }
 0x1ac   : > { %v4989_v41 = vld [vmem:[#allocation2 + $0xcc] sm:$0xf]  ;;  %v9414_v29 = vpop.f32.mrb[39].mxu0  ;;  %v7056_v35 = vcombine.low %v5317_v42, %v5327_v26  ;;  %v9418_v40 = vsel %vm8280_vm1, %v5918_v55, %v5919_v24  ;;  %v5344_v30 = vrot.slane %v5342_v48, 4  ;;  %v5348_v31 = vshll.u32 %v4988_v38, 16  ;;  %7747 = vmatmul.mubr.msk.bf16.gmra.mrb[128].mxu0 %vm1135_vm7, %v7101_v5 }
 0x1ad   : > { %v4990_v17 = vld [vmem:[#allocation2 + $0xd0] sm:$0xf]  ;;  %v5335_v62 = vor.u32 %v5334_v49, %v5331_v52  ;;  %v7088_v54 = vrot.slane %v5773_v20, 9  ;;  %v5923_v32 = vrot.slane %v5774_v50, 5  ;;  %v5926_v18 = vrot.slane %v5775_v23, 5  ;;  %7750 = vmatprep.mubr.msk.bf16.mxu0 %vm1135_vm7, %v7102_v56  ;;  %v2100_v38 = vld [vmem:[#allocation3 + $0xb0] sm:$0xff] }
 0x1ae   : > { %v5345_v15 = vor.u32 %v5344_v30, %v5340_v46  ;;  %v5350_v39 = vrot.slane %v5348_v31, 5  ;;  %v4991_v25 = vld [vmem:[#allocation2 + $0xd4] sm:$0x1]  ;;  %v5353_v60 = vshrl.u32 %v4989_v41, 16  ;;  %v5356_v51 = vshll.u32 %v4989_v41, 16  ;;  %v2665_v22 = vld [vmem:[#allocation3 + $0x90] sm:$0xff] }
 0x1af   : > { %v7104_v9 = vcombine.low %v9412_v10, %v9418_v40  ;;  %v5336_v58 = vrot.slane %v5335_v62, 4  ;;  %v5925_v57 = vrot.slane %v5923_v32, 4  ;;  %v5362_v5 = vshll.u32 %v4990_v17, 16  ;;  %v2663_v42 = vld [vmem:[#allocation3 + $0x80] sm:$0xff]  ;;  %v5776_v16 = vld [vmem:[#allocation2 + $0xc0] sm:$0xe] }
 0x1b0   : > { %v5346_v61 = vrot.slane %v5345_v15, 4  ;;  %v5355_v43 = vrot.slane %v5353_v60, 4  ;;  %v5358_v33 = vrot.slane %v5356_v51, 5  ;;  %v5366_v6 = vshrl.u32 %v4990_v17, 16  ;;  %7721 = vmatmul.mubr.msk.bf16.gmra.mrb[136].mxu1 %vm1135_vm7, %v7056_v35  ;;  %v2666_v50 = vld [vmem:[#allocation3 + $0x98] sm:$0xff]  ;;  %v2098_v23 = vld [vmem:[#allocation3 + $0xa0] sm:$0xff] }
 0x1b1   : > { %v5341_v44 = vsel %vm8250_vm0, %v5336_v58, %v5340_v46  ;;  %v9434_v11 = vsel %vm8280_vm1, %v7088_v54, %v5923_v32  ;;  %v9436_v56 = vrot.slane %v5362_v5, 5  ;;  %v5372_v37 = vshll.u32 %v4991_v25, 16  ;;  %v2664_v24 = vld [vmem:[#allocation3 + $0x88] sm:$0xff]  ;;  %v7518_v14 = vpop.f32.mrb[40].mxu1  ;;  %v2101_v10 = vld [vmem:[#allocation3 + $0xb8] sm:$0xff]  ;;  %v2104_v60 = vld [vmem:[#allocation3 + $0xd0] sm:$0xff] }
 0x1b2   : > { %v5351_v19 = vsel %vm8250_vm0, %v5346_v61, %v5350_v39  ;;  %v9443_v21 = vsel %vm8280_vm1, %v5925_v57, %v5926_v18  ;;  %v5359_v0 = vor.u32 %v5358_v33, %v5355_v43  ;;  %v5368_v20 = vrot.slane %v5366_v6, 4  ;;  %v5777_v52 = vld [vmem:[#allocation2 + $0xc4] sm:$0xf]  ;;  %v2047_v49 = vpop.f32.mrb[41].mxu1  ;;  %v5778_v30 = vld [vmem:[#allocation2 + $0xc8] sm:$0x1] }
 0x1b3   : > { %v7057_v63 = vcombine.low %v5341_v44, %v5351_v19  ;;  %v5374_v26 = vrot.slane %v5372_v37, 5  ;;  %v2697_v55 = vadd.f32 %v9316_v13, %v2665_v22  ;;  %v2132_v48 = vadd.f32 %v9374_v27, %v2100_v38  ;;  %v5780_v31 = vld [vmem:[#allocation2 + $0xd0] sm:$0xf]  ;;  %v7519_v17 = vpop.f32.mrb[42].mxu1  ;;  %v5779_v54 = vld [vmem:[#allocation2 + $0xcc] sm:$0xe] }
 0x1b4   : > { %v5360_v46 = vrot.slane %v5359_v0, 4  ;;  %v5369_v41 = vor.u32 %v5368_v20, %v9436_v56  ;;  %v2695_v35 = vadd.f32 %v2663_v42, %v9326_v2  ;;  %v2130_v40 = vadd.f32 %v2098_v23, %v9382_v1  ;;  %7751 = vmatmul.mubr.msk.bf16.gmra.mrb[132].mxu0 %vm1135_vm7, %v7103_v45  ;;  %v2099_v1 = vld [vmem:[#allocation3 + $0xa8] sm:$0xff]  ;;  %v2050_v32 = vpop.f32.mrb[43].mxu1  ;;  %v9460_v18 = vpop.f32.mrb[40].mxu0  ;;  %v2102_v5 = vld [vmem:[#allocation3 + $0xc0] sm:$0xff]  ;;  %v2105_v44 = vld [vmem:[#allocation3 + $0xd8] sm:$0xff] }
 0x1b5   : > { %7724 = vmatprep.mubr.msk.bf16.mxu1 %vm1135_vm7, %v7057_v63  ;;  %2729 = vst.msk [vmem:[#allocation3 + $0x90] sm:$0xff] %vm1135_vm7, %v2697_v55  ;;  %2164 = vst.msk [vmem:[#allocation3 + $0xb0] sm:$0xff] %vm1135_vm7, %v2132_v48  ;;  %v2698_v13 = vadd.f32 %v9338_v53, %v2666_v50  ;;  %v2133_v2 = vadd.f32 %v9389_v28, %v2101_v10  ;;  %v2696_v27 = vadd.f32 %v2664_v24, %v9340_v36  ;;  %v5781_v28 = vld [vmem:[#allocation2 + $0xd4] sm:$0x1]  ;;  %v9469_v45 = vpop.f32.mrb[41].mxu0 }
 0x1b6   : > { %v7089_v62 = vrot.slane %v5776_v16, 9  ;;  %7754 = vmatprep.mubr.msk.bf16.mxu0 %vm1135_vm7, %v7104_v9  ;;  %v5365_v12 = vsel %vm8250_vm0, %v5360_v46, %v9436_v56  ;;  %v5370_v3 = vrot.slane %v5369_v41, 4  ;;  %2727 = vst.msk [vmem:[#allocation3 + $0x80] sm:$0xff] %vm1135_vm7, %v2695_v35  ;;  %2162 = vst.msk [vmem:[#allocation3 + $0xa0] sm:$0xff] %vm1135_vm7, %v2130_v40  ;;  %v2131_v53 = vadd.f32 %v2099_v1, %v9397_v7  ;;  %v9476_v51 = vpop.f32.mrb[42].mxu0  ;;  %v2109_v40 = vld [vmem:[#allocation3 + $0xf8] sm:$0xff] }
 0x1b7   : > { %v5930_v36 = vrot.slane %v5777_v52, 5  ;;  %v7105_v15 = vcombine.low %v9434_v11, %v9443_v21  ;;  %2730 = vst.msk [vmem:[#allocation3 + $0x98] sm:$0xff] %vm1135_vm7, %v2698_v13  ;;  %2165 = vst.msk [vmem:[#allocation3 + $0xb8] sm:$0xff] %vm1135_vm7, %v2133_v2  ;;  %v5933_v39 = vrot.slane %v5778_v30, 5  ;;  %v5937_v25 = vrot.slane %v5780_v31, 5  ;;  %v2619_v61 = vpop.f32.mrb[43].mxu0 }
 0x1b8   : > { %2728 = vst.msk [vmem:[#allocation3 + $0x88] sm:$0xff] %vm1135_vm7, %v2696_v27  ;;  %v5375_v7 = vsel %vm8250_vm0, %v5370_v3, %v5374_v26  ;;  %2163 = vst.msk [vmem:[#allocation3 + $0xa8] sm:$0xff] %vm1135_vm7, %v2131_v53  ;;  %v2136_v57 = vadd.f32 %v7518_v14, %v2104_v60  ;;  %v7090_v33 = vrot.slane %v5779_v54, 9  ;;  %v5940_v6 = vrot.slane %v5781_v28, 5  ;;  %v2103_v11 = vld [vmem:[#allocation3 + $0xc8] sm:$0xff] }
 0x1b9   : > { %v5931_v9 = vsel %vm8280_vm1, %v7089_v62, %v5930_v36  ;;  %v5932_v58 = vrot.slane %v5930_v36, 4  ;;  %v7058_v43 = vcombine.low %v5365_v12, %v5375_v7  ;;  %v2134_v22 = vadd.f32 %v2102_v5, %v2047_v49  ;;  %v2107_v13 = vld [vmem:[#allocation3 + $0xe8] sm:$0xff]  ;;  %v3071_v12 = vld [vmem:[#allocation3 + $0x10] sm:$0xff]  ;;  %v3069_v36 = vld [vmem:[#allocation3] sm:$0xff] }
 0x1ba   : > { %v5939_v4 = vrot.slane %v5937_v25, 4  ;;  %2168 = vst.msk [vmem:[#allocation3 + $0xd0] sm:$0xff] %vm1135_vm7, %v2136_v57  ;;  %v2137_v37 = vadd.f32 %v7519_v17, %v2105_v44  ;;  %v2135_v38 = vadd.f32 %v2103_v11, %v2050_v32  ;;  %v5938_v20 = vsel %vm8280_vm1, %v7090_v33, %v5937_v25 }
 0x1bb   : > { %v5934_v56 = vsel %vm8280_vm1, %v5932_v58, %v5933_v39  ;;  %7725 = vmatmul.mubr.msk.bf16.gmra.mrb[140].mxu1 %vm1135_vm7, %v7058_v43  ;;  %2166 = vst.msk [vmem:[#allocation3 + $0xc0] sm:$0xff] %vm1135_vm7, %v2134_v22  ;;  %v3072_v39 = vld [vmem:[#allocation3 + $0x18] sm:$0xff] }
 0x1bc   : > { %v7106_v42 = vcombine.low %v5931_v9, %v5934_v56  ;;  %v2669_v19 = vld [vmem:[#allocation3 + $0xb0] sm:$0xff]  ;;  %2169 = vst.msk [vmem:[#allocation3 + $0xd8] sm:$0xff] %vm1135_vm7, %v2137_v37  ;;  %2167 = vst.msk [vmem:[#allocation3 + $0xc8] sm:$0xff] %vm1135_vm7, %v2135_v38  ;;  %7755 = vmatmul.mubr.msk.bf16.gmra.mrb[136].mxu0 %vm1135_vm7, %v7105_v15  ;;  %v5941_v50 = vsel %vm8280_vm1, %v5939_v4, %v5940_v6  ;;  %v3070_v9 = vld [vmem:[#allocation3 + $0x8] sm:$0xff] }
 0x1bd   : > { %v2701_v21 = vadd.f32 %v9391_v47, %v2669_v19  ;;  %v2667_v0 = vld [vmem:[#allocation3 + $0xa0] sm:$0xff]  ;;  %v7556_v14 = vpop.f32.mrb[44].mxu0  ;;  %v2108_v47 = vld [vmem:[#allocation3 + $0xf0] sm:$0xff]  ;;  %v7107_v46 = vcombine.low %v5938_v20, %v5941_v50  ;;  %v3076_v20 = vld [vmem:[#allocation3 + $0x38] sm:$0xff] }
 0x1be   : > { %7758 = vmatprep.mubr.msk.bf16.mxu0 %vm1135_vm7, %v7106_v42  ;;  %v2699_v24 = vadd.f32 %v2667_v0, %v9399_v59  ;;  %v2670_v16 = vld [vmem:[#allocation3 + $0xb8] sm:$0xff]  ;;  %v7522_v55 = vpop.f32.mrb[44].mxu1  ;;  %v2632_v48 = vpop.f32.mrb[45].mxu0  ;;  %v3075_v4 = vld [vmem:[#allocation3 + $0x30] sm:$0xff]  ;;  %v3073_v42 = vld [vmem:[#allocation3 + $0x20] sm:$0xff] }
 0x1bf   : > { %2733 = vst.msk [vmem:[#allocation3 + $0xb0] sm:$0xff] %vm1135_vm7, %v2701_v21  ;;  %v2702_v63 = vadd.f32 %v9407_v8, %v2670_v16  ;;  %v2668_v26 = vld [vmem:[#allocation3 + $0xa8] sm:$0xff]  ;;  %v2140_v10 = vadd.f32 %v7522_v55, %v2108_v47  ;;  %v2063_v52 = vpop.f32.mrb[45].mxu1  ;;  %v7557_v49 = vpop.f32.mrb[46].mxu0 }
 0x1c0   : > { %2731 = vst.msk [vmem:[#allocation3 + $0xa0] sm:$0xff] %vm1135_vm7, %v2699_v24  ;;  %v2700_v23 = vadd.f32 %v2668_v26, %v9414_v29  ;;  %v2138_v41 = vadd.f32 %v2106_v34, %v2063_v52  ;;  %v7523_v35 = vpop.f32.mrb[46].mxu1  ;;  %v2635_v8 = vpop.f32.mrb[47].mxu0 }
 0x1c1   : > { %2734 = vst.msk [vmem:[#allocation3 + $0xb8] sm:$0xff] %vm1135_vm7, %v2702_v63  ;;  %v2673_v59 = vld [vmem:[#allocation3 + $0xd0] sm:$0xff]  ;;  %2172 = vst.msk [vmem:[#allocation3 + $0xf0] sm:$0xff] %vm1135_vm7, %v2140_v10  ;;  %v2141_v29 = vadd.f32 %v7523_v35, %v2109_v40  ;;  %v2066_v17 = vpop.f32.mrb[47].mxu1  ;;  %v3074_v63 = vld [vmem:[#allocation3 + $0x28] sm:$0xff] }
 0x1c2   : > { %2732 = vst.msk [vmem:[#allocation3 + $0xa8] sm:$0xff] %vm1135_vm7, %v2700_v23  ;;  %v2705_v30 = vadd.f32 %v9460_v18, %v2673_v59  ;;  %v2671_v31 = vld [vmem:[#allocation3 + $0xc0] sm:$0xff]  ;;  %2170 = vst.msk [vmem:[#allocation3 + $0xe0] sm:$0xff] %vm1135_vm7, %v2138_v41  ;;  %v2139_v62 = vadd.f32 %v2107_v13, %v2066_v17  ;;  %v3079_v59 = vld [vmem:[#allocation3 + $0x50] sm:$0xff] }
 0x1c3   : > { %v2703_v2 = vadd.f32 %v2671_v31, %v9469_v45  ;;  %v2674_v27 = vld [vmem:[#allocation3 + $0xd8] sm:$0xff]  ;;  %v2672_v1 = vld [vmem:[#allocation3 + $0xc8] sm:$0xff]  ;;  %2173 = vst.msk [vmem:[#allocation3 + $0xf8] sm:$0xff] %vm1135_vm7, %v2141_v29 }
 0x1c4   : > { %2737 = vst.msk [vmem:[#allocation3 + $0xd0] sm:$0xff] %vm1135_vm7, %v2705_v30  ;;  %v2706_v54 = vadd.f32 %v9476_v51, %v2674_v27  ;;  %v2704_v32 = vadd.f32 %v2672_v1, %v2619_v61  ;;  %7759 = vmatmul.mubr.msk.bf16.gmra.mrb[140].mxu0 %vm1135_vm7, %v7107_v46  ;;  %2171 = vst.msk [vmem:[#allocation3 + $0xe8] sm:$0xff] %vm1135_vm7, %v2139_v62  ;;  %v3080_v17 = vld [vmem:[#allocation3 + $0x58] sm:$0xff]  ;;  %v3078_v62 = vld [vmem:[#allocation3 + $0x48] sm:$0xff] }
 0x1c5   : > { %2735 = vst.msk [vmem:[#allocation3 + $0xc0] sm:$0xff] %vm1135_vm7, %v2703_v2 }
 0x1c6   : > { %2738 = vst.msk [vmem:[#allocation3 + $0xd8] sm:$0xff] %vm1135_vm7, %v2706_v54  ;;  %2736 = vst.msk [vmem:[#allocation3 + $0xc8] sm:$0xff] %vm1135_vm7, %v2704_v32  ;;  %v7562_v18 = vpop.f32.mrb[48].mxu1 }
 0x1c7   : > { %v3103_v3 = vadd.f32 %v7562_v18, %v3071_v12  ;;  %v2942_v53 = vpop.f32.mrb[49].mxu1 }
 0x1c8   : > { %v2677_v28 = vld [vmem:[#allocation3 + $0xf0] sm:$0xff]  ;;  %v3101_v45 = vadd.f32 %v3069_v36, %v2942_v53  ;;  %v7563_v15 = vpop.f32.mrb[50].mxu1  ;;  %v7596_v58 = vpop.f32.mrb[48].mxu0 }
 0x1c9   : > { %v2709_v25 = vadd.f32 %v7556_v14, %v2677_v28  ;;  %v2675_v60 = vld [vmem:[#allocation3 + $0xe0] sm:$0xff]  ;;  %3135 = vst.msk [vmem:[#allocation3 + $0x10] sm:$0xff] %vm1135_vm7, %v3103_v3  ;;  %v3104_v51 = vadd.f32 %v7563_v15, %v3072_v39  ;;  %v2945_v7 = vpop.f32.mrb[51].mxu1  ;;  %v3732_v43 = vpop.f32.mrb[49].mxu0  ;;  %v3083_v39 = vld [vmem:[#allocation3 + $0x70] sm:$0xff] }
 0x1ca   : > { %v2707_v57 = vadd.f32 %v2675_v60, %v2632_v48  ;;  %v2678_v5 = vld [vmem:[#allocation3 + $0xf8] sm:$0xff]  ;;  %3133 = vst.msk [vmem:[#allocation3] sm:$0xff] %vm1135_vm7, %v3101_v45  ;;  %v3102_v61 = vadd.f32 %v3070_v9, %v2945_v7  ;;  %v7597_v22 = vpop.f32.mrb[50].mxu0  ;;  %v3081_v7 = vld [vmem:[#allocation3 + $0x60] sm:$0xff] }
 0x1cb   : > { %2741 = vst.msk [vmem:[#allocation3 + $0xf0] sm:$0xff] %vm1135_vm7, %v2709_v25  ;;  %v2710_v33 = vadd.f32 %v7557_v49, %v2678_v5  ;;  %v2676_v6 = vld [vmem:[#allocation3 + $0xe8] sm:$0xff]  ;;  %3136 = vst.msk [vmem:[#allocation3 + $0x18] sm:$0xff] %vm1135_vm7, %v3104_v51  ;;  %v3735_v11 = vpop.f32.mrb[51].mxu0  ;;  %v3084_v5 = vld [vmem:[#allocation3 + $0x78] sm:$0xff] }
 0x1cc   : > { %2739 = vst.msk [vmem:[#allocation3 + $0xe0] sm:$0xff] %vm1135_vm7, %v2707_v57  ;;  %v2708_v44 = vadd.f32 %v2676_v6, %v2635_v8  ;;  %3134 = vst.msk [vmem:[#allocation3 + $0x8] sm:$0xff] %vm1135_vm7, %v3102_v61  ;;  %v3077_v8 = vld [vmem:[#allocation3 + $0x40] sm:$0xff] }
 0x1cd   : > { %2742 = vst.msk [vmem:[#allocation3 + $0xf8] sm:$0xff] %vm1135_vm7, %v2710_v33 }
 0x1ce   : > { %2740 = vst.msk [vmem:[#allocation3 + $0xe8] sm:$0xff] %vm1135_vm7, %v2708_v44  ;;  %v7566_v56 = vpop.f32.mrb[52].mxu1 }
 0x1cf   : > { %v3107_v37 = vadd.f32 %v7566_v56, %v3075_v4  ;;  %v2958_v38 = vpop.f32.mrb[53].mxu1 }
 0x1d0   : > { %v3861_v19 = vld [vmem:[#allocation3 + $0x10] sm:$0xff]  ;;  %v3105_v21 = vadd.f32 %v3073_v42, %v2958_v38  ;;  %v7567_v0 = vpop.f32.mrb[54].mxu1 }
 0x1d1   : > { %v3893_v50 = vadd.f32 %v7596_v58, %v3861_v19  ;;  %3139 = vst.msk [vmem:[#allocation3 + $0x30] sm:$0xff] %vm1135_vm7, %v3107_v37  ;;  %v3859_v24 = vld [vmem:[#allocation3] sm:$0xff]  ;;  %v3108_v16 = vadd.f32 %v7567_v0, %v3076_v20  ;;  %v2961_v14 = vpop.f32.mrb[55].mxu1  ;;  %v3087_v20 = vld [vmem:[#allocation3 + $0x90] sm:$0xff] }
 0x1d2   : > { %v3891_v26 = vadd.f32 %v3859_v24, %v3732_v43  ;;  %3137 = vst.msk [vmem:[#allocation3 + $0x20] sm:$0xff] %vm1135_vm7, %v3105_v21  ;;  %v3862_v55 = vld [vmem:[#allocation3 + $0x18] sm:$0xff]  ;;  %v3106_v47 = vadd.f32 %v3074_v63, %v2961_v14  ;;  %v7600_v10 = vpop.f32.mrb[52].mxu0  ;;  %v3085_v14 = vld [vmem:[#allocation3 + $0x80] sm:$0xff] }
 0x1d3   : > { %3925 = vst.msk [vmem:[#allocation3 + $0x10] sm:$0xff] %vm1135_vm7, %v3893_v50  ;;  %v3894_v48 = vadd.f32 %v7597_v22, %v3862_v55  ;;  %3140 = vst.msk [vmem:[#allocation3 + $0x38] sm:$0xff] %vm1135_vm7, %v3108_v16  ;;  %v3860_v23 = vld [vmem:[#allocation3 + $0x8] sm:$0xff]  ;;  %v3748_v34 = vpop.f32.mrb[53].mxu0 }
 0x1d4   : > { %3923 = vst.msk [vmem:[#allocation3] sm:$0xff] %vm1135_vm7, %v3891_v26  ;;  %v3892_v52 = vadd.f32 %v3860_v23, %v3735_v11  ;;  %3138 = vst.msk [vmem:[#allocation3 + $0x28] sm:$0xff] %vm1135_vm7, %v3106_v47  ;;  %v7601_v49 = vpop.f32.mrb[54].mxu0  ;;  %v3082_v22 = vld [vmem:[#allocation3 + $0x68] sm:$0xff]  ;;  %v3088_v47 = vld [vmem:[#allocation3 + $0x98] sm:$0xff] }
 0x1d5   : > { %3926 = vst.msk [vmem:[#allocation3 + $0x18] sm:$0xff] %vm1135_vm7, %v3894_v48  ;;  %v3751_v41 = vpop.f32.mrb[55].mxu0 }
 0x1d6   : > { %3924 = vst.msk [vmem:[#allocation3 + $0x8] sm:$0xff] %vm1135_vm7, %v3892_v52  ;;  %v7570_v46 = vpop.f32.mrb[56].mxu1 }
 0x1d7   : > { %v3111_v35 = vadd.f32 %v7570_v46, %v3079_v59  ;;  %v2974_v40 = vpop.f32.mrb[57].mxu1 }
 0x1d8   : > { %v3865_v30 = vld [vmem:[#allocation3 + $0x30] sm:$0xff]  ;;  %v3109_v31 = vadd.f32 %v3077_v8, %v2974_v40  ;;  %v7571_v29 = vpop.f32.mrb[58].mxu1 }
 0x1d9   : > { %v3897_v13 = vadd.f32 %v7600_v10, %v3865_v30  ;;  %3143 = vst.msk [vmem:[#allocation3 + $0x50] sm:$0xff] %vm1135_vm7, %v3111_v35  ;;  %v3863_v2 = vld [vmem:[#allocation3 + $0x20] sm:$0xff]  ;;  %v3112_v27 = vadd.f32 %v7571_v29, %v3080_v17  ;;  %v2977_v1 = vpop.f32.mrb[59].mxu1  ;;  %v3091_v29 = vld [vmem:[#allocation3 + $0xb0] sm:$0xff] }
 0x1da   : > { %v3895_v54 = vadd.f32 %v3863_v2, %v3748_v34  ;;  %3141 = vst.msk [vmem:[#allocation3 + $0x40] sm:$0xff] %vm1135_vm7, %v3109_v31  ;;  %v3866_v32 = vld [vmem:[#allocation3 + $0x38] sm:$0xff]  ;;  %v3110_v18 = vadd.f32 %v3078_v62, %v2977_v1  ;;  %v7604_v53 = vpop.f32.mrb[56].mxu0  ;;  %v3086_v34 = vld [vmem:[#allocation3 + $0x88] sm:$0xff] }
 0x1db   : > { %3929 = vst.msk [vmem:[#allocation3 + $0x30] sm:$0xff] %vm1135_vm7, %v3897_v13  ;;  %v3898_v12 = vadd.f32 %v7601_v49, %v3866_v32  ;;  %3144 = vst.msk [vmem:[#allocation3 + $0x58] sm:$0xff] %vm1135_vm7, %v3112_v27  ;;  %v3864_v3 = vld [vmem:[#allocation3 + $0x28] sm:$0xff]  ;;  %v3764_v28 = vpop.f32.mrb[57].mxu0  ;;  %v3089_v27 = vld [vmem:[#allocation3 + $0xa0] sm:$0xff] }
 0x1dc   : > { %3927 = vst.msk [vmem:[#allocation3 + $0x20] sm:$0xff] %vm1135_vm7, %v3895_v54  ;;  %v3896_v36 = vadd.f32 %v3864_v3, %v3751_v41  ;;  %3142 = vst.msk [vmem:[#allocation3 + $0x48] sm:$0xff] %vm1135_vm7, %v3110_v18  ;;  %v7605_v45 = vpop.f32.mrb[58].mxu0  ;;  %v3092_v18 = vld [vmem:[#allocation3 + $0xb8] sm:$0xff] }
 0x1dd   : > { %3930 = vst.msk [vmem:[#allocation3 + $0x38] sm:$0xff] %vm1135_vm7, %v3898_v12  ;;  %v3767_v25 = vpop.f32.mrb[59].mxu0 }
 0x1de   : > { %3928 = vst.msk [vmem:[#allocation3 + $0x28] sm:$0xff] %vm1135_vm7, %v3896_v36  ;;  %v7574_v15 = vpop.f32.mrb[60].mxu1 }
 0x1df   : > { %v3115_v60 = vadd.f32 %v7574_v15, %v3083_v39  ;;  %v2990_v51 = vpop.f32.mrb[61].mxu1 }
 0x1e0   : > { %v3869_v9 = vld [vmem:[#allocation3 + $0x50] sm:$0xff]  ;;  %v3113_v58 = vadd.f32 %v3081_v7, %v2990_v51  ;;  %v7575_v57 = vpop.f32.mrb[62].mxu1 }
 0x1e1   : > { %v3901_v61 = vadd.f32 %v7604_v53, %v3869_v9  ;;  %3147 = vst.msk [vmem:[#allocation3 + $0x70] sm:$0xff] %vm1135_vm7, %v3115_v60  ;;  %v3867_v43 = vld [vmem:[#allocation3 + $0x40] sm:$0xff]  ;;  %v3116_v33 = vadd.f32 %v7575_v57, %v3084_v5  ;;  %v2993_v6 = vpop.f32.mrb[63].mxu1  ;;  %v3095_v57 = vld [vmem:[#allocation3 + $0xd0] sm:$0xff] }
 0x1e2   : > { %v3899_v44 = vadd.f32 %v3867_v43, %v3764_v28  ;;  %3145 = vst.msk [vmem:[#allocation3 + $0x60] sm:$0xff] %vm1135_vm7, %v3113_v58  ;;  %v3870_v11 = vld [vmem:[#allocation3 + $0x58] sm:$0xff]  ;;  %v3114_v56 = vadd.f32 %v3082_v22, %v2993_v6  ;;  %v7608_v38 = vpop.f32.mrb[60].mxu0  ;;  %v3090_v28 = vld [vmem:[#allocation3 + $0xa8] sm:$0xff] }
 0x1e3   : > { %3933 = vst.msk [vmem:[#allocation3 + $0x50] sm:$0xff] %vm1135_vm7, %v3901_v61  ;;  %v3902_v4 = vadd.f32 %v7605_v45, %v3870_v11  ;;  %3148 = vst.msk [vmem:[#allocation3 + $0x78] sm:$0xff] %vm1135_vm7, %v3116_v33  ;;  %v3868_v37 = vld [vmem:[#allocation3 + $0x48] sm:$0xff]  ;;  %v3780_v19 = vpop.f32.mrb[61].mxu0  ;;  %v3093_v33 = vld [vmem:[#allocation3 + $0xc0] sm:$0xff] }
 0x1e4   : > { %3931 = vst.msk [vmem:[#allocation3 + $0x40] sm:$0xff] %vm1135_vm7, %v3899_v44  ;;  %v3900_v42 = vadd.f32 %v3868_v37, %v3767_v25  ;;  %3146 = vst.msk [vmem:[#allocation3 + $0x68] sm:$0xff] %vm1135_vm7, %v3114_v56  ;;  %v7609_v21 = vpop.f32.mrb[62].mxu0  ;;  %v3096_v56 = vld [vmem:[#allocation3 + $0xd8] sm:$0xff] }
 0x1e5   : > { %3934 = vst.msk [vmem:[#allocation3 + $0x58] sm:$0xff] %vm1135_vm7, %v3902_v4  ;;  %v3783_v50 = vpop.f32.mrb[63].mxu0 }
 0x1e6   : > { %3932 = vst.msk [vmem:[#allocation3 + $0x48] sm:$0xff] %vm1135_vm7, %v3900_v42  ;;  %v7578_v0 = vpop.f32.mrb[64].mxu1 }
 0x1e7   : > { %v3119_v24 = vadd.f32 %v7578_v0, %v3087_v20  ;;  %v3006_v16 = vpop.f32.mrb[65].mxu1 }
 0x1e8   : > { %v3873_v63 = vld [vmem:[#allocation3 + $0x70] sm:$0xff]  ;;  %v3117_v26 = vadd.f32 %v3085_v14, %v3006_v16  ;;  %v7579_v55 = vpop.f32.mrb[66].mxu1 }
 0x1e9   : > { %v3905_v48 = vadd.f32 %v7608_v38, %v3873_v63  ;;  %3151 = vst.msk [vmem:[#allocation3 + $0x90] sm:$0xff] %vm1135_vm7, %v3119_v24  ;;  %v3871_v23 = vld [vmem:[#allocation3 + $0x60] sm:$0xff]  ;;  %v3120_v10 = vadd.f32 %v7579_v55, %v3088_v47  ;;  %v3009_v52 = vpop.f32.mrb[67].mxu1 }
 0x1ea   : > { %v3903_v49 = vadd.f32 %v3871_v23, %v3780_v19  ;;  %3149 = vst.msk [vmem:[#allocation3 + $0x80] sm:$0xff] %vm1135_vm7, %v3117_v26  ;;  %v3874_v46 = vld [vmem:[#allocation3 + $0x78] sm:$0xff]  ;;  %v3118_v59 = vadd.f32 %v3086_v34, %v3009_v52  ;;  %v3094_v19 = vld [vmem:[#allocation3 + $0xc8] sm:$0xff] }
 0x1eb   : > { %3937 = vst.msk [vmem:[#allocation3 + $0x70] sm:$0xff] %vm1135_vm7, %v3905_v48  ;;  %v3906_v41 = vadd.f32 %v7609_v21, %v3874_v46  ;;  %3152 = vst.msk [vmem:[#allocation3 + $0x98] sm:$0xff] %vm1135_vm7, %v3120_v10  ;;  %v3872_v35 = vld [vmem:[#allocation3 + $0x68] sm:$0xff] }
 0x1ec   : > { %3935 = vst.msk [vmem:[#allocation3 + $0x60] sm:$0xff] %vm1135_vm7, %v3903_v49  ;;  %v3904_v40 = vadd.f32 %v3872_v35, %v3783_v50  ;;  %3150 = vst.msk [vmem:[#allocation3 + $0x88] sm:$0xff] %vm1135_vm7, %v3118_v59  ;;  %v7612_v8 = vpop.f32.mrb[64].mxu0 }
 0x1ed   : > { %3938 = vst.msk [vmem:[#allocation3 + $0x78] sm:$0xff] %vm1135_vm7, %v3906_v41  ;;  %v3796_v30 = vpop.f32.mrb[65].mxu0  ;;  %v3099_v41 = vld [vmem:[#allocation3 + $0xf0] sm:$0xff] }
 0x1ee   : > { %3936 = vst.msk [vmem:[#allocation3 + $0x68] sm:$0xff] %vm1135_vm7, %v3904_v40  ;;  %v7582_v31 = vpop.f32.mrb[68].mxu1  ;;  %v7613_v17 = vpop.f32.mrb[66].mxu0 }
 0x1ef   : > { %v3123_v13 = vadd.f32 %v7582_v31, %v3091_v29  ;;  %v3022_v2 = vpop.f32.mrb[69].mxu1  ;;  %v3799_v1 = vpop.f32.mrb[67].mxu0  ;;  %v3100_v29 = vld [vmem:[#allocation3 + $0xf8] sm:$0xff] }
 0x1f0   : > { %v3877_v62 = vld [vmem:[#allocation3 + $0x90] sm:$0xff]  ;;  %v3121_v54 = vadd.f32 %v3089_v27, %v3022_v2  ;;  %v7583_v32 = vpop.f32.mrb[70].mxu1  ;;  %v3098_v2 = vld [vmem:[#allocation3 + $0xe8] sm:$0xff] }
 0x1f1   : > { %v3909_v12 = vadd.f32 %v7612_v8, %v3877_v62  ;;  %3155 = vst.msk [vmem:[#allocation3 + $0xb0] sm:$0xff] %vm1135_vm7, %v3123_v13  ;;  %v3875_v3 = vld [vmem:[#allocation3 + $0x80] sm:$0xff]  ;;  %v3124_v53 = vadd.f32 %v7583_v32, %v3092_v18  ;;  %v3025_v36 = vpop.f32.mrb[71].mxu1  ;;  %v4427_v62 = vld [vmem:[#allocation3 + $0x10] sm:$0xff] }
 0x1f2   : > { %v3907_v45 = vadd.f32 %v3875_v3, %v3796_v30  ;;  %3153 = vst.msk [vmem:[#allocation3 + $0xa0] sm:$0xff] %vm1135_vm7, %v3121_v54  ;;  %v3878_v15 = vld [vmem:[#allocation3 + $0x98] sm:$0xff]  ;;  %v3122_v39 = vadd.f32 %v3090_v28, %v3025_v36  ;;  %v3097_v8 = vld [vmem:[#allocation3 + $0xe0] sm:$0xff] }
 0x1f3   : > { %3941 = vst.msk [vmem:[#allocation3 + $0x90] sm:$0xff] %vm1135_vm7, %v3909_v12  ;;  %v3910_v25 = vadd.f32 %v7613_v17, %v3878_v15  ;;  %3156 = vst.msk [vmem:[#allocation3 + $0xb8] sm:$0xff] %vm1135_vm7, %v3124_v53  ;;  %v3876_v60 = vld [vmem:[#allocation3 + $0x88] sm:$0xff]  ;;  %v4425_v18 = vld [vmem:[#allocation3] sm:$0xff] }
 0x1f4   : > { %3939 = vst.msk [vmem:[#allocation3 + $0x80] sm:$0xff] %vm1135_vm7, %v3907_v45  ;;  %v3908_v51 = vadd.f32 %v3876_v60, %v3799_v1  ;;  %3154 = vst.msk [vmem:[#allocation3 + $0xa8] sm:$0xff] %vm1135_vm7, %v3122_v39  ;;  %v7616_v7 = vpop.f32.mrb[68].mxu0  ;;  %v4428_v36 = vld [vmem:[#allocation3 + $0x18] sm:$0xff] }
 0x1f5   : > { %3942 = vst.msk [vmem:[#allocation3 + $0x98] sm:$0xff] %vm1135_vm7, %v3910_v25  ;;  %v3812_v9 = vpop.f32.mrb[69].mxu0  ;;  %v4426_v25 = vld [vmem:[#allocation3 + $0x8] sm:$0xff] }
 0x1f6   : > { %3940 = vst.msk [vmem:[#allocation3 + $0x88] sm:$0xff] %vm1135_vm7, %v3908_v51  ;;  %v7586_v58 = vpop.f32.mrb[72].mxu1  ;;  %v7617_v5 = vpop.f32.mrb[70].mxu0 }
 0x1f7   : > { %v3127_v61 = vadd.f32 %v7586_v58, %v3095_v57  ;;  %v3038_v43 = vpop.f32.mrb[73].mxu1  ;;  %v3815_v6 = vpop.f32.mrb[71].mxu0 }
 0x1f8   : > { %v3881_v22 = vld [vmem:[#allocation3 + $0xb0] sm:$0xff]  ;;  %v3125_v44 = vadd.f32 %v3093_v33, %v3038_v43  ;;  %v7587_v11 = vpop.f32.mrb[74].mxu1 }
 0x1f9   : > { %v3913_v4 = vadd.f32 %v7616_v7, %v3881_v22  ;;  %3159 = vst.msk [vmem:[#allocation3 + $0xd0] sm:$0xff] %vm1135_vm7, %v3127_v61  ;;  %v3879_v37 = vld [vmem:[#allocation3 + $0xa0] sm:$0xff]  ;;  %v3128_v38 = vadd.f32 %v7587_v11, %v3096_v56  ;;  %v3041_v42 = vpop.f32.mrb[75].mxu1  ;;  %v4431_v22 = vld [vmem:[#allocation3 + $0x30] sm:$0xff] }
 0x1fa   : > { %v3911_v21 = vadd.f32 %v3879_v37, %v3812_v9  ;;  %3157 = vst.msk [vmem:[#allocation3 + $0xc0] sm:$0xff] %vm1135_vm7, %v3125_v44  ;;  %v3882_v0 = vld [vmem:[#allocation3 + $0xb8] sm:$0xff]  ;;  %v3126_v20 = vadd.f32 %v3094_v19, %v3041_v42  ;;  %v4429_v56 = vld [vmem:[#allocation3 + $0x20] sm:$0xff] }
 0x1fb   : > { %3945 = vst.msk [vmem:[#allocation3 + $0xb0] sm:$0xff] %vm1135_vm7, %v3913_v4  ;;  %v3914_v50 = vadd.f32 %v7617_v5, %v3882_v0  ;;  %3160 = vst.msk [vmem:[#allocation3 + $0xd8] sm:$0xff] %vm1135_vm7, %v3128_v38  ;;  %v3880_v24 = vld [vmem:[#allocation3 + $0xa8] sm:$0xff]  ;;  %v4432_v42 = vld [vmem:[#allocation3 + $0x38] sm:$0xff] }
 0x1fc   : > { %3943 = vst.msk [vmem:[#allocation3 + $0xa0] sm:$0xff] %vm1135_vm7, %v3911_v21  ;;  %v3912_v16 = vadd.f32 %v3880_v24, %v3815_v6  ;;  %3158 = vst.msk [vmem:[#allocation3 + $0xc8] sm:$0xff] %vm1135_vm7, %v3126_v20  ;;  %v7620_v14 = vpop.f32.mrb[72].mxu0 }
 0x1fd   : > { %3946 = vst.msk [vmem:[#allocation3 + $0xb8] sm:$0xff] %vm1135_vm7, %v3914_v50  ;;  %v3828_v63 = vpop.f32.mrb[73].mxu0  ;;  %v4430_v50 = vld [vmem:[#allocation3 + $0x28] sm:$0xff] }
 0x1fe   : > { %3944 = vst.msk [vmem:[#allocation3 + $0xa8] sm:$0xff] %vm1135_vm7, %v3912_v16  ;;  %v7621_v26 = vpop.f32.mrb[74].mxu0 }
 0x1ff   : > { %v3831_v55 = vpop.f32.mrb[75].mxu0 }
 0x200   : > { %v3885_v47 = vld [vmem:[#allocation3 + $0xd0] sm:$0xff] }
 0x201   : > { %v3917_v48 = vadd.f32 %v7620_v14, %v3885_v47  ;;  %v3883_v23 = vld [vmem:[#allocation3 + $0xc0] sm:$0xff] }
 0x202   : > { %v3915_v10 = vadd.f32 %v3883_v23, %v3828_v63  ;;  %v3886_v52 = vld [vmem:[#allocation3 + $0xd8] sm:$0xff] }
 0x203   : > { %3949 = vst.msk [vmem:[#allocation3 + $0xd0] sm:$0xff] %vm1135_vm7, %v3917_v48  ;;  %v3918_v34 = vadd.f32 %v7621_v26, %v3886_v52  ;;  %v3884_v49 = vld [vmem:[#allocation3 + $0xc8] sm:$0xff] }
 0x204   : > { %3947 = vst.msk [vmem:[#allocation3 + $0xc0] sm:$0xff] %vm1135_vm7, %v3915_v10  ;;  %v3916_v46 = vadd.f32 %v3884_v49, %v3831_v55 }
 0x205   : > { %3950 = vst.msk [vmem:[#allocation3 + $0xd8] sm:$0xff] %vm1135_vm7, %v3918_v34  ;;  %v4435_v34 = vld [vmem:[#allocation3 + $0x50] sm:$0xff] }
 0x206   : > { %3948 = vst.msk [vmem:[#allocation3 + $0xc8] sm:$0xff] %vm1135_vm7, %v3916_v46 }
 0x20b   : > { %v7590_v59 = vpop.f32.mrb[76].mxu1 }
 0x20c   : > { %v3131_v35 = vadd.f32 %v7590_v59, %v3099_v41  ;;  %v3054_v40 = vpop.f32.mrb[77].mxu1  ;;  %v4433_v59 = vld [vmem:[#allocation3 + $0x40] sm:$0xff] }
 0x20d   : > { %v3129_v30 = vadd.f32 %v3097_v8, %v3054_v40  ;;  %v7591_v31 = vpop.f32.mrb[78].mxu1  ;;  %v4436_v8 = vld [vmem:[#allocation3 + $0x58] sm:$0xff] }
 0x20e   : > { %3163 = vst.msk [vmem:[#allocation3 + $0xf0] sm:$0xff] %vm1135_vm7, %v3131_v35  ;;  %v3132_v17 = vadd.f32 %v7591_v31, %v3100_v29  ;;  %v3057_v13 = vpop.f32.mrb[79].mxu1 }
 0x20f   : > { %3161 = vst.msk [vmem:[#allocation3 + $0xe0] sm:$0xff] %vm1135_vm7, %v3129_v30  ;;  %v3130_v27 = vadd.f32 %v3098_v2, %v3057_v13  ;;  %v4434_v13 = vld [vmem:[#allocation3 + $0x48] sm:$0xff] }
 0x210   : > { %3164 = vst.msk [vmem:[#allocation3 + $0xf8] sm:$0xff] %vm1135_vm7, %v3132_v17 }
 0x211   : > { %3162 = vst.msk [vmem:[#allocation3 + $0xe8] sm:$0xff] %vm1135_vm7, %v3130_v27 }
 0x213   : > { %v7630_v1 = vpop.f32.mrb[80].mxu1 }
 0x214   : > { %v4459_v54 = vadd.f32 %v7630_v1, %v4427_v62  ;;  %v4298_v32 = vpop.f32.mrb[81].mxu1 }
 0x215   : > { %v3889_v12 = vld [vmem:[#allocation3 + $0xf0] sm:$0xff]  ;;  %v4457_v3 = vadd.f32 %v4425_v18, %v4298_v32  ;;  %v7631_v53 = vpop.f32.mrb[82].mxu1 }
 0x216   : > { %v3887_v45 = vld [vmem:[#allocation3 + $0xe0] sm:$0xff]  ;;  %4491 = vst.msk [vmem:[#allocation3 + $0x10] sm:$0xff] %vm1135_vm7, %v4459_v54  ;;  %v4460_v15 = vadd.f32 %v7631_v53, %v4428_v36  ;;  %v4301_v39 = vpop.f32.mrb[83].mxu1 }
 0x217   : > { %v7624_v28 = vpop.f32.mrb[76].mxu0  ;;  %v3890_v7 = vld [vmem:[#allocation3 + $0xf8] sm:$0xff]  ;;  %4489 = vst.msk [vmem:[#allocation3] sm:$0xff] %vm1135_vm7, %v4457_v3  ;;  %v4458_v9 = vadd.f32 %v4426_v25, %v4301_v39  ;;  %v4437_v39 = vld [vmem:[#allocation3 + $0x60] sm:$0xff] }
 0x218   : > { %v3921_v60 = vadd.f32 %v7624_v28, %v3889_v12  ;;  %v3844_v51 = vpop.f32.mrb[77].mxu0  ;;  %v3888_v5 = vld [vmem:[#allocation3 + $0xe8] sm:$0xff]  ;;  %4492 = vst.msk [vmem:[#allocation3 + $0x18] sm:$0xff] %vm1135_vm7, %v4460_v15  ;;  %v4439_v28 = vld [vmem:[#allocation3 + $0x70] sm:$0xff] }
 0x219   : > { %v3919_v58 = vadd.f32 %v3887_v45, %v3844_v51  ;;  %v7625_v57 = vpop.f32.mrb[78].mxu0  ;;  %4490 = vst.msk [vmem:[#allocation3 + $0x8] sm:$0xff] %vm1135_vm7, %v4458_v9 }
 0x21a   : > { %3953 = vst.msk [vmem:[#allocation3 + $0xf0] sm:$0xff] %vm1135_vm7, %v3921_v60  ;;  %v3922_v61 = vadd.f32 %v7625_v57, %v3890_v7  ;;  %v3847_v43 = vpop.f32.mrb[79].mxu0  ;;  %v4440_v7 = vld [vmem:[#allocation3 + $0x78] sm:$0xff] }
 0x21b   : > { %3951 = vst.msk [vmem:[#allocation3 + $0xe0] sm:$0xff] %vm1135_vm7, %v3919_v58  ;;  %v3920_v33 = vadd.f32 %v3888_v5, %v3847_v43  ;;  %v7634_v6 = vpop.f32.mrb[84].mxu1 }
 0x21c   : > { %3954 = vst.msk [vmem:[#allocation3 + $0xf8] sm:$0xff] %vm1135_vm7, %v3922_v61  ;;  %v4463_v44 = vadd.f32 %v7634_v6, %v4431_v22  ;;  %v4314_v11 = vpop.f32.mrb[85].mxu1  ;;  %v4438_v61 = vld [vmem:[#allocation3 + $0x68] sm:$0xff] }
 0x21d   : > { %3952 = vst.msk [vmem:[#allocation3 + $0xe8] sm:$0xff] %vm1135_vm7, %v3920_v33  ;;  %v4850_v4 = vld [vmem:[#allocation3 + $0x10] sm:$0xff]  ;;  %v4461_v37 = vadd.f32 %v4429_v56, %v4314_v11  ;;  %v7635_v38 = vpop.f32.mrb[86].mxu1 }
 0x21e   : > { %4495 = vst.msk [vmem:[#allocation3 + $0x30] sm:$0xff] %vm1135_vm7, %v4463_v44  ;;  %v4848_v21 = vld [vmem:[#allocation3] sm:$0xff]  ;;  %v4464_v0 = vadd.f32 %v7635_v38, %v4432_v42  ;;  %v4317_v20 = vpop.f32.mrb[87].mxu1 }
 0x21f   : > { %v7664_v19 = vpop.f32.mrb[80].mxu0  ;;  %4493 = vst.msk [vmem:[#allocation3 + $0x20] sm:$0xff] %vm1135_vm7, %v4461_v37  ;;  %v4851_v14 = vld [vmem:[#allocation3 + $0x18] sm:$0xff]  ;;  %v4462_v63 = vadd.f32 %v4430_v50, %v4317_v20  ;;  %v4441_v20 = vld [vmem:[#allocation3 + $0x80] sm:$0xff] }
 0x220   : > { %v4882_v24 = vadd.f32 %v7664_v19, %v4850_v4  ;;  %v4721_v16 = vpop.f32.mrb[81].mxu0  ;;  %4496 = vst.msk [vmem:[#allocation3 + $0x38] sm:$0xff] %vm1135_vm7, %v4464_v0  ;;  %v4849_v47 = vld [vmem:[#allocation3 + $0x8] sm:$0xff]  ;;  %v4443_v19 = vld [vmem:[#allocation3 + $0x90] sm:$0xff] }
 0x221   : > { %v4880_v26 = vadd.f32 %v4848_v21, %v4721_v16  ;;  %v7665_v55 = vpop.f32.mrb[82].mxu0  ;;  %4494 = vst.msk [vmem:[#allocation3 + $0x28] sm:$0xff] %vm1135_vm7, %v4462_v63 }
 0x222   : > { %4914 = vst.msk [vmem:[#allocation3 + $0x10] sm:$0xff] %vm1135_vm7, %v4882_v24  ;;  %v4883_v48 = vadd.f32 %v7665_v55, %v4851_v14  ;;  %v4724_v23 = vpop.f32.mrb[83].mxu0  ;;  %v4444_v14 = vld [vmem:[#allocation3 + $0x98] sm:$0xff] }
 0x223   : > { %4912 = vst.msk [vmem:[#allocation3] sm:$0xff] %vm1135_vm7, %v4880_v26  ;;  %v4881_v10 = vadd.f32 %v4849_v47, %v4724_v23  ;;  %v7638_v52 = vpop.f32.mrb[88].mxu1 }
 0x224   : > { %4915 = vst.msk [vmem:[#allocation3 + $0x18] sm:$0xff] %vm1135_vm7, %v4883_v48  ;;  %v4467_v49 = vadd.f32 %v7638_v52, %v4435_v34  ;;  %v4330_v46 = vpop.f32.mrb[89].mxu1  ;;  %v4442_v48 = vld [vmem:[#allocation3 + $0x88] sm:$0xff] }
 0x225   : > { %4913 = vst.msk [vmem:[#allocation3 + $0x8] sm:$0xff] %vm1135_vm7, %v4881_v10  ;;  %v4854_v41 = vld [vmem:[#allocation3 + $0x30] sm:$0xff]  ;;  %v4465_v35 = vadd.f32 %v4433_v59, %v4330_v46  ;;  %v7639_v40 = vpop.f32.mrb[90].mxu1 }
 0x226   : > { %4499 = vst.msk [vmem:[#allocation3 + $0x50] sm:$0xff] %vm1135_vm7, %v4467_v49  ;;  %v4852_v31 = vld [vmem:[#allocation3 + $0x20] sm:$0xff]  ;;  %v4468_v29 = vadd.f32 %v7639_v40, %v4436_v8  ;;  %v4333_v17 = vpop.f32.mrb[91].mxu1 }
 0x227   : > { %v7668_v30 = vpop.f32.mrb[84].mxu0  ;;  %4497 = vst.msk [vmem:[#allocation3 + $0x40] sm:$0xff] %vm1135_vm7, %v4465_v35  ;;  %v4855_v1 = vld [vmem:[#allocation3 + $0x38] sm:$0xff]  ;;  %v4466_v62 = vadd.f32 %v4434_v13, %v4333_v17  ;;  %v4445_v17 = vld [vmem:[#allocation3 + $0xa0] sm:$0xff] }
 0x228   : > { %v4886_v2 = vadd.f32 %v7668_v30, %v4854_v41  ;;  %v4737_v27 = vpop.f32.mrb[85].mxu0  ;;  %4500 = vst.msk [vmem:[#allocation3 + $0x58] sm:$0xff] %vm1135_vm7, %v4468_v29  ;;  %v4853_v18 = vld [vmem:[#allocation3 + $0x28] sm:$0xff]  ;;  %v4447_v30 = vld [vmem:[#allocation3 + $0xb0] sm:$0xff] }
 0x229   : > { %v4884_v54 = vadd.f32 %v4852_v31, %v4737_v27  ;;  %v7669_v32 = vpop.f32.mrb[86].mxu0  ;;  %4498 = vst.msk [vmem:[#allocation3 + $0x48] sm:$0xff] %vm1135_vm7, %v4466_v62 }
 0x22a   : > { %4918 = vst.msk [vmem:[#allocation3 + $0x30] sm:$0xff] %vm1135_vm7, %v4886_v2  ;;  %v4887_v12 = vadd.f32 %v7669_v32, %v4855_v1  ;;  %v4740_v3 = vpop.f32.mrb[87].mxu0  ;;  %v4448_v1 = vld [vmem:[#allocation3 + $0xb8] sm:$0xff] }
 0x22b   : > { %4916 = vst.msk [vmem:[#allocation3 + $0x20] sm:$0xff] %vm1135_vm7, %v4884_v54  ;;  %v4885_v53 = vadd.f32 %v4853_v18, %v4740_v3  ;;  %v7642_v36 = vpop.f32.mrb[92].mxu1 }
 0x22c   : > { %4919 = vst.msk [vmem:[#allocation3 + $0x38] sm:$0xff] %vm1135_vm7, %v4887_v12  ;;  %v4471_v45 = vadd.f32 %v7642_v36, %v4439_v28  ;;  %v4346_v15 = vpop.f32.mrb[93].mxu1  ;;  %v4446_v12 = vld [vmem:[#allocation3 + $0xa8] sm:$0xff] }
 0x22d   : > { %4917 = vst.msk [vmem:[#allocation3 + $0x28] sm:$0xff] %vm1135_vm7, %v4885_v53  ;;  %v4858_v25 = vld [vmem:[#allocation3 + $0x50] sm:$0xff]  ;;  %v4469_v60 = vadd.f32 %v4437_v39, %v4346_v15  ;;  %v7643_v51 = vpop.f32.mrb[94].mxu1 }
 0x22e   : > { %4503 = vst.msk [vmem:[#allocation3 + $0x70] sm:$0xff] %vm1135_vm7, %v4471_v45  ;;  %v4856_v58 = vld [vmem:[#allocation3 + $0x40] sm:$0xff]  ;;  %v4472_v57 = vadd.f32 %v7643_v51, %v4440_v7  ;;  %v4349_v5 = vpop.f32.mrb[95].mxu1 }
 0x22f   : > { %v7672_v9 = vpop.f32.mrb[88].mxu0  ;;  %4501 = vst.msk [vmem:[#allocation3 + $0x60] sm:$0xff] %vm1135_vm7, %v4469_v60  ;;  %v4859_v6 = vld [vmem:[#allocation3 + $0x58] sm:$0xff]  ;;  %v4470_v22 = vadd.f32 %v4438_v61, %v4349_v5  ;;  %v4449_v5 = vld [vmem:[#allocation3 + $0xc0] sm:$0xff] }
 0x230   : > { %v4890_v43 = vadd.f32 %v7672_v9, %v4858_v25  ;;  %v4753_v33 = vpop.f32.mrb[89].mxu0  ;;  %4504 = vst.msk [vmem:[#allocation3 + $0x78] sm:$0xff] %vm1135_vm7, %v4472_v57  ;;  %v4857_v56 = vld [vmem:[#allocation3 + $0x48] sm:$0xff]  ;;  %v4451_v9 = vld [vmem:[#allocation3 + $0xd0] sm:$0xff] }
 0x231   : > { %v4888_v44 = vadd.f32 %v4856_v58, %v4753_v33  ;;  %v7673_v11 = vpop.f32.mrb[90].mxu0  ;;  %4502 = vst.msk [vmem:[#allocation3 + $0x68] sm:$0xff] %vm1135_vm7, %v4470_v22 }
 0x232   : > { %4922 = vst.msk [vmem:[#allocation3 + $0x50] sm:$0xff] %vm1135_vm7, %v4890_v43  ;;  %v4891_v4 = vadd.f32 %v7673_v11, %v4859_v6  ;;  %v4756_v37 = vpop.f32.mrb[91].mxu0  ;;  %v4452_v6 = vld [vmem:[#allocation3 + $0xd8] sm:$0xff] }
 0x233   : > { %4920 = vst.msk [vmem:[#allocation3 + $0x40] sm:$0xff] %vm1135_vm7, %v4888_v44  ;;  %v4889_v38 = vadd.f32 %v4857_v56, %v4756_v37  ;;  %v7646_v42 = vpop.f32.mrb[96].mxu1 }
 0x234   : > { %4923 = vst.msk [vmem:[#allocation3 + $0x58] sm:$0xff] %vm1135_vm7, %v4891_v4  ;;  %v4475_v21 = vadd.f32 %v7646_v42, %v4443_v19  ;;  %v4362_v0 = vpop.f32.mrb[97].mxu1  ;;  %v4450_v4 = vld [vmem:[#allocation3 + $0xc8] sm:$0xff] }
 0x235   : > { %4921 = vst.msk [vmem:[#allocation3 + $0x48] sm:$0xff] %vm1135_vm7, %v4889_v38  ;;  %v4862_v50 = vld [vmem:[#allocation3 + $0x70] sm:$0xff]  ;;  %v4473_v24 = vadd.f32 %v4441_v20, %v4362_v0  ;;  %v7647_v16 = vpop.f32.mrb[98].mxu1 }
 0x236   : > { %4507 = vst.msk [vmem:[#allocation3 + $0x90] sm:$0xff] %vm1135_vm7, %v4475_v21  ;;  %v4860_v26 = vld [vmem:[#allocation3 + $0x60] sm:$0xff]  ;;  %v4476_v55 = vadd.f32 %v7647_v16, %v4444_v14  ;;  %v4365_v47 = vpop.f32.mrb[99].mxu1 }
 0x237   : > { %v7676_v63 = vpop.f32.mrb[92].mxu0  ;;  %4505 = vst.msk [vmem:[#allocation3 + $0x80] sm:$0xff] %vm1135_vm7, %v4473_v24  ;;  %v4863_v52 = vld [vmem:[#allocation3 + $0x78] sm:$0xff]  ;;  %v4474_v34 = vadd.f32 %v4442_v48, %v4365_v47  ;;  %v4453_v47 = vld [vmem:[#allocation3 + $0xe0] sm:$0xff] }
 0x238   : > { %v4894_v23 = vadd.f32 %v7676_v63, %v4862_v50  ;;  %v4769_v10 = vpop.f32.mrb[93].mxu0  ;;  %4508 = vst.msk [vmem:[#allocation3 + $0x98] sm:$0xff] %vm1135_vm7, %v4476_v55  ;;  %v4861_v59 = vld [vmem:[#allocation3 + $0x68] sm:$0xff]  ;;  %v4455_v63 = vld [vmem:[#allocation3 + $0xf0] sm:$0xff] }
 0x239   : > { %v4892_v49 = vadd.f32 %v4860_v26, %v4769_v10  ;;  %v7677_v46 = vpop.f32.mrb[94].mxu0  ;;  %4506 = vst.msk [vmem:[#allocation3 + $0x88] sm:$0xff] %vm1135_vm7, %v4474_v34 }
 0x23a   : > { %4926 = vst.msk [vmem:[#allocation3 + $0x70] sm:$0xff] %vm1135_vm7, %v4894_v23  ;;  %v4895_v41 = vadd.f32 %v7677_v46, %v4863_v52  ;;  %v4772_v35 = vpop.f32.mrb[95].mxu0  ;;  %v4456_v52 = vld [vmem:[#allocation3 + $0xf8] sm:$0xff] }
 0x23b   : > { %4924 = vst.msk [vmem:[#allocation3 + $0x60] sm:$0xff] %vm1135_vm7, %v4892_v49  ;;  %v4893_v40 = vadd.f32 %v4861_v59, %v4772_v35  ;;  %v7650_v8 = vpop.f32.mrb[100].mxu1 }
 0x23c   : > { %4927 = vst.msk [vmem:[#allocation3 + $0x78] sm:$0xff] %vm1135_vm7, %v4895_v41  ;;  %v4479_v31 = vadd.f32 %v7650_v8, %v4447_v30  ;;  %v4378_v29 = vpop.f32.mrb[101].mxu1  ;;  %v4454_v41 = vld [vmem:[#allocation3 + $0xe8] sm:$0xff] }
 0x23d   : > { %4925 = vst.msk [vmem:[#allocation3 + $0x68] sm:$0xff] %vm1135_vm7, %v4893_v40  ;;  %v4866_v13 = vld [vmem:[#allocation3 + $0x90] sm:$0xff]  ;;  %v4477_v2 = vadd.f32 %v4445_v17, %v4378_v29  ;;  %v7651_v27 = vpop.f32.mrb[102].mxu1 }
 0x23e   : > { %4511 = vst.msk [vmem:[#allocation3 + $0xb0] sm:$0xff] %vm1135_vm7, %v4479_v31  ;;  %v4864_v54 = vld [vmem:[#allocation3 + $0x80] sm:$0xff]  ;;  %v4480_v32 = vadd.f32 %v7651_v27, %v4448_v1  ;;  %v4381_v18 = vpop.f32.mrb[103].mxu1 }
 0x23f   : > { %v7680_v62 = vpop.f32.mrb[96].mxu0  ;;  %4509 = vst.msk [vmem:[#allocation3 + $0xa0] sm:$0xff] %vm1135_vm7, %v4477_v2  ;;  %v4867_v36 = vld [vmem:[#allocation3 + $0x98] sm:$0xff]  ;;  %v4478_v28 = vadd.f32 %v4446_v12, %v4381_v18  ;;  %v5638_v18 = vld [vmem:[#allocation3] sm:$0xff] }
 0x240   : > { %v4898_v3 = vadd.f32 %v7680_v62, %v4866_v13  ;;  %v4785_v53 = vpop.f32.mrb[97].mxu0  ;;  %4512 = vst.msk [vmem:[#allocation3 + $0xb8] sm:$0xff] %vm1135_vm7, %v4480_v32  ;;  %v4865_v39 = vld [vmem:[#allocation3 + $0x88] sm:$0xff]  ;;  %v5640_v62 = vld [vmem:[#allocation3 + $0x10] sm:$0xff] }
 0x241   : > { %v4896_v45 = vadd.f32 %v4864_v54, %v4785_v53  ;;  %v7681_v15 = vpop.f32.mrb[98].mxu0  ;;  %4510 = vst.msk [vmem:[#allocation3 + $0xa8] sm:$0xff] %vm1135_vm7, %v4478_v28 }
 0x242   : > { %4930 = vst.msk [vmem:[#allocation3 + $0x90] sm:$0xff] %vm1135_vm7, %v4898_v3  ;;  %v4899_v25 = vadd.f32 %v7681_v15, %v4867_v36  ;;  %v4788_v60 = vpop.f32.mrb[99].mxu0  ;;  %v5641_v36 = vld [vmem:[#allocation3 + $0x18] sm:$0xff] }
 0x243   : > { %4928 = vst.msk [vmem:[#allocation3 + $0x80] sm:$0xff] %vm1135_vm7, %v4896_v45  ;;  %v4897_v51 = vadd.f32 %v4865_v39, %v4788_v60  ;;  %v7654_v7 = vpop.f32.mrb[104].mxu1 }
 0x244   : > { %4931 = vst.msk [vmem:[#allocation3 + $0x98] sm:$0xff] %vm1135_vm7, %v4899_v25  ;;  %v4483_v58 = vadd.f32 %v7654_v7, %v4451_v9  ;;  %v4394_v57 = vpop.f32.mrb[105].mxu1  ;;  %v5639_v25 = vld [vmem:[#allocation3 + $0x8] sm:$0xff] }
 0x245   : > { %4929 = vst.msk [vmem:[#allocation3 + $0x88] sm:$0xff] %vm1135_vm7, %v4897_v51  ;;  %v4870_v61 = vld [vmem:[#allocation3 + $0xb0] sm:$0xff]  ;;  %v4481_v43 = vadd.f32 %v4449_v5, %v4394_v57  ;;  %v7655_v33 = vpop.f32.mrb[106].mxu1 }
 0x246   : > { %4515 = vst.msk [vmem:[#allocation3 + $0xd0] sm:$0xff] %vm1135_vm7, %v4483_v58  ;;  %v4868_v44 = vld [vmem:[#allocation3 + $0xa0] sm:$0xff]  ;;  %v4484_v11 = vadd.f32 %v7655_v33, %v4452_v6  ;;  %v4397_v56 = vpop.f32.mrb[107].mxu1 }
 0x247   : > { %v7684_v22 = vpop.f32.mrb[100].mxu0  ;;  %4513 = vst.msk [vmem:[#allocation3 + $0xc0] sm:$0xff] %vm1135_vm7, %v4481_v43  ;;  %v4871_v42 = vld [vmem:[#allocation3 + $0xb8] sm:$0xff]  ;;  %v4482_v19 = vadd.f32 %v4450_v4, %v4397_v56  ;;  %v5642_v56 = vld [vmem:[#allocation3 + $0x20] sm:$0xff] }
 0x248   : > { %v4902_v37 = vadd.f32 %v7684_v22, %v4870_v61  ;;  %v4801_v38 = vpop.f32.mrb[101].mxu0  ;;  %4516 = vst.msk [vmem:[#allocation3 + $0xd8] sm:$0xff] %vm1135_vm7, %v4484_v11  ;;  %v4869_v20 = vld [vmem:[#allocation3 + $0xa8] sm:$0xff]  ;;  %v5644_v22 = vld [vmem:[#allocation3 + $0x30] sm:$0xff] }
 0x249   : > { %v4900_v21 = vadd.f32 %v4868_v44, %v4801_v38  ;;  %v7685_v0 = vpop.f32.mrb[102].mxu0  ;;  %4514 = vst.msk [vmem:[#allocation3 + $0xc8] sm:$0xff] %vm1135_vm7, %v4482_v19 }
 0x24a   : > { %4934 = vst.msk [vmem:[#allocation3 + $0xb0] sm:$0xff] %vm1135_vm7, %v4902_v37  ;;  %v4903_v50 = vadd.f32 %v7685_v0, %v4871_v42  ;;  %v4804_v24 = vpop.f32.mrb[103].mxu0  ;;  %v5645_v42 = vld [vmem:[#allocation3 + $0x38] sm:$0xff] }
 0x24b   : > { %4932 = vst.msk [vmem:[#allocation3 + $0xa0] sm:$0xff] %vm1135_vm7, %v4900_v21  ;;  %v4901_v16 = vadd.f32 %v4869_v20, %v4804_v24  ;;  %v7658_v14 = vpop.f32.mrb[108].mxu1 }
 0x24c   : > { %4935 = vst.msk [vmem:[#allocation3 + $0xb8] sm:$0xff] %vm1135_vm7, %v4903_v50  ;;  %v4487_v26 = vadd.f32 %v7658_v14, %v4455_v63  ;;  %v4410_v55 = vpop.f32.mrb[109].mxu1  ;;  %v5643_v50 = vld [vmem:[#allocation3 + $0x28] sm:$0xff] }
 0x24d   : > { %4933 = vst.msk [vmem:[#allocation3 + $0xa8] sm:$0xff] %vm1135_vm7, %v4901_v16  ;;  %v4874_v48 = vld [vmem:[#allocation3 + $0xd0] sm:$0xff]  ;;  %v4485_v23 = vadd.f32 %v4453_v47, %v4410_v55  ;;  %v7659_v10 = vpop.f32.mrb[110].mxu1 }
 0x24e   : > { %4519 = vst.msk [vmem:[#allocation3 + $0xf0] sm:$0xff] %vm1135_vm7, %v4487_v26  ;;  %v4872_v49 = vld [vmem:[#allocation3 + $0xc0] sm:$0xff]  ;;  %v4488_v46 = vadd.f32 %v7659_v10, %v4456_v52  ;;  %v4413_v59 = vpop.f32.mrb[111].mxu1 }
 0x24f   : > { %v7688_v34 = vpop.f32.mrb[104].mxu0  ;;  %4517 = vst.msk [vmem:[#allocation3 + $0xe0] sm:$0xff] %vm1135_vm7, %v4485_v23  ;;  %v4875_v8 = vld [vmem:[#allocation3 + $0xd8] sm:$0xff]  ;;  %v4486_v30 = vadd.f32 %v4454_v41, %v4413_v59  ;;  %v5646_v59 = vld [vmem:[#allocation3 + $0x40] sm:$0xff] }
 0x250   : > { %v4906_v35 = vadd.f32 %v7688_v34, %v4874_v48  ;;  %v4817_v40 = vpop.f32.mrb[105].mxu0  ;;  %4520 = vst.msk [vmem:[#allocation3 + $0xf8] sm:$0xff] %vm1135_vm7, %v4488_v46  ;;  %v4873_v17 = vld [vmem:[#allocation3 + $0xc8] sm:$0xff]  ;;  %v5648_v34 = vld [vmem:[#allocation3 + $0x50] sm:$0xff] }
 0x251   : > { %v4904_v31 = vadd.f32 %v4872_v49, %v4817_v40  ;;  %v7689_v29 = vpop.f32.mrb[106].mxu0  ;;  %4518 = vst.msk [vmem:[#allocation3 + $0xe8] sm:$0xff] %vm1135_vm7, %v4486_v30 }
 0x252   : > { %4938 = vst.msk [vmem:[#allocation3 + $0xd0] sm:$0xff] %vm1135_vm7, %v4906_v35  ;;  %v4907_v13 = vadd.f32 %v7689_v29, %v4875_v8  ;;  %v4820_v2 = vpop.f32.mrb[107].mxu0  ;;  %v5649_v8 = vld [vmem:[#allocation3 + $0x58] sm:$0xff] }
 0x253   : > { %4936 = vst.msk [vmem:[#allocation3 + $0xc0] sm:$0xff] %vm1135_vm7, %v4904_v31  ;;  %v4905_v27 = vadd.f32 %v4873_v17, %v4820_v2  ;;  %v7698_v1 = vpop.f32.mrb[112].mxu1 }
 0x254   : > { %4939 = vst.msk [vmem:[#allocation3 + $0xd8] sm:$0xff] %vm1135_vm7, %v4907_v13  ;;  %v5672_v54 = vadd.f32 %v7698_v1, %v5640_v62  ;;  %v5511_v32 = vpop.f32.mrb[113].mxu1  ;;  %v5647_v13 = vld [vmem:[#allocation3 + $0x48] sm:$0xff] }
 0x255   : > { %4937 = vst.msk [vmem:[#allocation3 + $0xc8] sm:$0xff] %vm1135_vm7, %v4905_v27  ;;  %v4878_v12 = vld [vmem:[#allocation3 + $0xf0] sm:$0xff]  ;;  %v5670_v3 = vadd.f32 %v5638_v18, %v5511_v32  ;;  %v7699_v53 = vpop.f32.mrb[114].mxu1 }
 0x256   : > { %v4876_v45 = vld [vmem:[#allocation3 + $0xe0] sm:$0xff]  ;;  %5704 = vst.msk [vmem:[#allocation3 + $0x10] sm:$0xff] %vm1135_vm7, %v5672_v54  ;;  %v5673_v15 = vadd.f32 %v7699_v53, %v5641_v36  ;;  %v5514_v39 = vpop.f32.mrb[115].mxu1 }
 0x257   : > { %v7692_v28 = vpop.f32.mrb[108].mxu0  ;;  %v4879_v7 = vld [vmem:[#allocation3 + $0xf8] sm:$0xff]  ;;  %5702 = vst.msk [vmem:[#allocation3] sm:$0xff] %vm1135_vm7, %v5670_v3  ;;  %v5671_v9 = vadd.f32 %v5639_v25, %v5514_v39 }
 0x258   : > { %v4910_v60 = vadd.f32 %v7692_v28, %v4878_v12  ;;  %v4833_v51 = vpop.f32.mrb[109].mxu0  ;;  %v4877_v5 = vld [vmem:[#allocation3 + $0xe8] sm:$0xff]  ;;  %5705 = vst.msk [vmem:[#allocation3 + $0x18] sm:$0xff] %vm1135_vm7, %v5673_v15 }
 0x259   : > { %v4908_v58 = vadd.f32 %v4876_v45, %v4833_v51  ;;  %v7693_v57 = vpop.f32.mrb[110].mxu0  ;;  %5703 = vst.msk [vmem:[#allocation3 + $0x8] sm:$0xff] %vm1135_vm7, %v5671_v9 }
 0x25a   : > { %4942 = vst.msk [vmem:[#allocation3 + $0xf0] sm:$0xff] %vm1135_vm7, %v4910_v60  ;;  %v4911_v61 = vadd.f32 %v7693_v57, %v4879_v7  ;;  %v4836_v43 = vpop.f32.mrb[111].mxu0 }
 0x25b   : > { %4940 = vst.msk [vmem:[#allocation3 + $0xe0] sm:$0xff] %vm1135_vm7, %v4908_v58  ;;  %v4909_v33 = vadd.f32 %v4877_v5, %v4836_v43  ;;  %v7702_v6 = vpop.f32.mrb[116].mxu1  ;;  %v5652_v43 = vld [vmem:[#allocation3 + $0x70] sm:$0xff] }
 0x25c   : > { %4943 = vst.msk [vmem:[#allocation3 + $0xf8] sm:$0xff] %vm1135_vm7, %v4911_v61  ;;  %v5676_v44 = vadd.f32 %v7702_v6, %v5644_v22  ;;  %v5527_v11 = vpop.f32.mrb[117].mxu1  ;;  %v5650_v6 = vld [vmem:[#allocation3 + $0x60] sm:$0xff] }
 0x25d   : > { %4941 = vst.msk [vmem:[#allocation3 + $0xe8] sm:$0xff] %vm1135_vm7, %v4909_v33  ;;  %v6206_v4 = vld [vmem:[#allocation3 + $0x10] sm:$0xff]  ;;  %v5674_v37 = vadd.f32 %v5642_v56, %v5527_v11  ;;  %v7703_v38 = vpop.f32.mrb[118].mxu1 }
 0x25e   : > { %5708 = vst.msk [vmem:[#allocation3 + $0x30] sm:$0xff] %vm1135_vm7, %v5676_v44  ;;  %v6204_v21 = vld [vmem:[#allocation3] sm:$0xff]  ;;  %v5677_v0 = vadd.f32 %v7703_v38, %v5645_v42  ;;  %v5530_v20 = vpop.f32.mrb[119].mxu1  ;;  %v5653_v38 = vld [vmem:[#allocation3 + $0x78] sm:$0xff]  ;;  %v5651_v42 = vld [vmem:[#allocation3 + $0x68] sm:$0xff] }
 0x25f   : > { %v7732_v19 = vpop.f32.mrb[112].mxu0  ;;  %5706 = vst.msk [vmem:[#allocation3 + $0x20] sm:$0xff] %vm1135_vm7, %v5674_v37  ;;  %v6207_v14 = vld [vmem:[#allocation3 + $0x18] sm:$0xff]  ;;  %v5675_v63 = vadd.f32 %v5643_v50, %v5530_v20 }
 0x260   : > { %v6238_v24 = vadd.f32 %v7732_v19, %v6206_v4  ;;  %v6077_v16 = vpop.f32.mrb[113].mxu0  ;;  %5709 = vst.msk [vmem:[#allocation3 + $0x38] sm:$0xff] %vm1135_vm7, %v5677_v0  ;;  %v6205_v47 = vld [vmem:[#allocation3 + $0x8] sm:$0xff] }
 0x261   : > { %v6236_v26 = vadd.f32 %v6204_v21, %v6077_v16  ;;  %v7733_v55 = vpop.f32.mrb[114].mxu0  ;;  %5707 = vst.msk [vmem:[#allocation3 + $0x28] sm:$0xff] %vm1135_vm7, %v5675_v63 }
 0x262   : > { %6270 = vst.msk [vmem:[#allocation3 + $0x10] sm:$0xff] %vm1135_vm7, %v6238_v24  ;;  %v6239_v48 = vadd.f32 %v7733_v55, %v6207_v14  ;;  %v6080_v23 = vpop.f32.mrb[115].mxu0 }
 0x263   : > { %6268 = vst.msk [vmem:[#allocation3] sm:$0xff] %vm1135_vm7, %v6236_v26  ;;  %v6237_v10 = vadd.f32 %v6205_v47, %v6080_v23  ;;  %v7706_v52 = vpop.f32.mrb[120].mxu1 }
 0x264   : > { %6271 = vst.msk [vmem:[#allocation3 + $0x18] sm:$0xff] %vm1135_vm7, %v6239_v48  ;;  %v5680_v49 = vadd.f32 %v7706_v52, %v5648_v34  ;;  %v5543_v46 = vpop.f32.mrb[121].mxu1 }
 0x265   : > { %6269 = vst.msk [vmem:[#allocation3 + $0x8] sm:$0xff] %vm1135_vm7, %v6237_v10  ;;  %v6210_v41 = vld [vmem:[#allocation3 + $0x30] sm:$0xff]  ;;  %v5678_v35 = vadd.f32 %v5646_v59, %v5543_v46  ;;  %v7707_v40 = vpop.f32.mrb[122].mxu1 }
 0x266   : > { %5712 = vst.msk [vmem:[#allocation3 + $0x50] sm:$0xff] %vm1135_vm7, %v5680_v49  ;;  %v6208_v31 = vld [vmem:[#allocation3 + $0x20] sm:$0xff]  ;;  %v5681_v29 = vadd.f32 %v7707_v40, %v5649_v8  ;;  %v5546_v17 = vpop.f32.mrb[123].mxu1 }
 0x267   : > { %v7736_v30 = vpop.f32.mrb[116].mxu0  ;;  %5710 = vst.msk [vmem:[#allocation3 + $0x40] sm:$0xff] %vm1135_vm7, %v5678_v35  ;;  %v6211_v1 = vld [vmem:[#allocation3 + $0x38] sm:$0xff]  ;;  %v5679_v62 = vadd.f32 %v5647_v13, %v5546_v17 }
 0x268   : > { %v6242_v2 = vadd.f32 %v7736_v30, %v6210_v41  ;;  %v6093_v27 = vpop.f32.mrb[117].mxu0  ;;  %5713 = vst.msk [vmem:[#allocation3 + $0x58] sm:$0xff] %vm1135_vm7, %v5681_v29  ;;  %v6209_v12 = vld [vmem:[#allocation3 + $0x28] sm:$0xff] }
 0x269   : > { %v6302_v54 = vld [vmem:[#allocation3 + $0x10] sm:$0xff]  ;;  %v6240_v32 = vadd.f32 %v6208_v31, %v6093_v27  ;;  %v7737_v18 = vpop.f32.mrb[118].mxu0  ;;  %5711 = vst.msk [vmem:[#allocation3 + $0x48] sm:$0xff] %vm1135_vm7, %v5679_v62 }
 0x26a   : > { %v7194_v3 = vpack.c.bf16 %v6302_v54, %v6302_v54  ;;  %v6300_v53 = vld [vmem:[#allocation3] sm:$0xff]  ;;  %6274 = vst.msk [vmem:[#allocation3 + $0x30] sm:$0xff] %vm1135_vm7, %v6242_v2  ;;  %v6243_v36 = vadd.f32 %v7737_v18, %v6211_v1  ;;  %v6096_v28 = vpop.f32.mrb[119].mxu0  ;;  %v6568_v60 = vmul.f32 %v6302_v54, %v6302_v54  ;;  %v6496_v19 = vsel %vm1135_vm7, %v6302_v54, 0.0 }
 0x26b   : > { %v7192_v45 = vpack.c.bf16 %v6300_v53, %v6300_v53  ;;  %v6566_v15 = vmul.f32 %v6300_v53, %v6300_v53  ;;  %v6303_v39 = vld [vmem:[#allocation3 + $0x18] sm:$0xff]  ;;  %6272 = vst.msk [vmem:[#allocation3 + $0x20] sm:$0xff] %vm1135_vm7, %v6240_v32  ;;  %v6241_v25 = vadd.f32 %v6209_v12, %v6096_v28  ;;  %v7710_v9 = vpop.f32.mrb[124].mxu1  ;;  %v6493_v58 = vsel %vm1135_vm7, %v6300_v53, 0.0 }
 0x26c   : > { %6462 = vst.msk [vmem:[%s7896_s30 + $0x8] sm:$0xf] %vm904_vm5, %v7194_v3  ;;  %v7195_v51 = vpack.c.bf16 %v6303_v39, %v6303_v39  ;;  %v6301_v7 = vld [vmem:[#allocation3 + $0x8] sm:$0xff]  ;;  %v5559_v33 = vpop.f32.mrb[125].mxu1  ;;  %v6569_v22 = vmul.f32 %v6303_v39, %v6303_v39  ;;  %v5684_v56 = vadd.f32 %v7710_v9, %v5652_v43  ;;  %v6601_v48 = vsel %vm1135_vm7, %v6568_v60, 0.0  ;;  %v5657_v43 = vld [vmem:[#allocation3 + $0x98] sm:$0xff] }
 0x26d   : > { %6275 = vst.msk [vmem:[#allocation3 + $0x38] sm:$0xff] %vm1135_vm7, %v6243_v36  ;;  %v7193_v57 = vpack.c.bf16 %v6301_v7, %v6301_v7  ;;  %v6494_v5 = vsel %vm1135_vm7, %v6301_v7, 0.0  ;;  %v6567_v61 = vmul.f32 %v6301_v7, %v6301_v7  ;;  %6273 = vst.msk [vmem:[#allocation3 + $0x28] sm:$0xff] %vm1135_vm7, %v6241_v25  ;;  %v6214_v11 = vld [vmem:[#allocation3 + $0x50] sm:$0xff]  ;;  %v5682_v4 = vadd.f32 %v5650_v6, %v5559_v33  ;;  %v7711_v37 = vpop.f32.mrb[126].mxu1  ;;  %v5654_v25 = vld [vmem:[#allocation3 + $0x80] sm:$0xff] }
 0x26e   : > { %6460 = vst.msk [vmem:[%s7896_s30] sm:$0xf] %vm904_vm5, %v7192_v45  ;;  %6463 = vst.msk [vmem:[%s7896_s30 + $0xc] sm:$0xf] %vm904_vm5, %v7195_v51  ;;  %v6495_v44 = vadd.f32 %v6494_v5, %v6493_v58  ;;  %v6598_v21 = vsel %vm1135_vm7, %v6566_v15, 0.0  ;;  %v6212_v50 = vld [vmem:[#allocation3 + $0x40] sm:$0xff]  ;;  %v5685_v24 = vadd.f32 %v7711_v37, %v5653_v38 }
 0x26f   : > { %6461 = vst.msk [vmem:[%s7896_s30 + $0x4] sm:$0xf] %vm904_vm5, %v7193_v57  ;;  %v6599_v0 = vsel %vm1135_vm7, %v6567_v61, 0.0  ;;  %v7740_v20 = vpop.f32.mrb[120].mxu0  ;;  %v5562_v16 = vpop.f32.mrb[127].mxu1  ;;  %v6498_v34 = vsel %vm1135_vm7, %v6303_v39, 0.0 }
 0x270   : > { %v6497_v14 = vadd.f32 %v6496_v19, %v6495_v44  ;;  %v6600_v63 = vadd.f32 %v6599_v0, %v6598_v21  ;;  %v6246_v26 = vadd.f32 %v7740_v20, %v6214_v11  ;;  %5716 = vst.msk [vmem:[#allocation3 + $0x70] sm:$0xff] %vm1135_vm7, %v5684_v56  ;;  %v6109_v55 = vpop.f32.mrb[121].mxu0  ;;  %5714 = vst.msk [vmem:[#allocation3 + $0x60] sm:$0xff] %vm1135_vm7, %v5682_v4  ;;  %v6603_v49 = vsel %vm1135_vm7, %v6569_v22, 0.0  ;;  %v6215_v17 = vld [vmem:[#allocation3 + $0x58] sm:$0xff]  ;;  %v6213_v62 = vld [vmem:[#allocation3 + $0x48] sm:$0xff] }
 0x271   : > { %v5683_v47 = vadd.f32 %v5651_v42, %v5562_v16  ;;  %v6306_v23 = vld [vmem:[#allocation3 + $0x30] sm:$0xff]  ;;  %v6244_v10 = vadd.f32 %v6212_v50, %v6109_v55  ;;  %v7741_v52 = vpop.f32.mrb[122].mxu0  ;;  %5717 = vst.msk [vmem:[#allocation3 + $0x78] sm:$0xff] %vm1135_vm7, %v5685_v24  ;;  %v5655_v37 = vld [vmem:[#allocation3 + $0x88] sm:$0xff] }
 0x272   : > { %v6602_v46 = vadd.f32 %v6601_v48, %v6600_v63  ;;  %v7198_v59 = vpack.c.bf16 %v6306_v23, %v6306_v23  ;;  %v6304_v41 = vld [vmem:[#allocation3 + $0x20] sm:$0xff]  ;;  %6278 = vst.msk [vmem:[#allocation3 + $0x50] sm:$0xff] %vm1135_vm7, %v6246_v26  ;;  %v6112_v35 = vpop.f32.mrb[123].mxu0  ;;  %v6499_v8 = vadd.f32 %v6498_v34, %v6497_v14  ;;  %v6504_v13 = vsel %vm1135_vm7, %v6306_v23, 0.0  ;;  %v5656_v39 = vld [vmem:[#allocation3 + $0x90] sm:$0xff] }
 0x273   : > { %5715 = vst.msk [vmem:[#allocation3 + $0x68] sm:$0xff] %vm1135_vm7, %v5683_v47  ;;  %v7196_v40 = vpack.c.bf16 %v6304_v41, %v6304_v41  ;;  %v6500_v30 = vsel %vm1135_vm7, %v6304_v41, 0.0  ;;  %v6570_v31 = vmul.f32 %v6304_v41, %v6304_v41  ;;  %6276 = vst.msk [vmem:[#allocation3 + $0x40] sm:$0xff] %vm1135_vm7, %v6244_v10  ;;  %v7714_v54 = vpop.f32.mrb[128].mxu1  ;;  %v6572_v32 = vmul.f32 %v6306_v23, %v6306_v23 }
 0x274   : > { %v6307_v29 = vld [vmem:[#allocation3 + $0x38] sm:$0xff]  ;;  %6466 = vst.msk [vmem:[%s7896_s30 + $0x18] sm:$0xf] %vm904_vm5, %v7198_v59  ;;  %v6604_v2 = vadd.f32 %v6603_v49, %v6602_v46  ;;  %v6305_v1 = vld [vmem:[#allocation3 + $0x28] sm:$0xff]  ;;  %v6501_v18 = vadd.f32 %v6500_v30, %v6499_v8  ;;  %v5575_v53 = vpop.f32.mrb[129].mxu1  ;;  %v6247_v15 = vadd.f32 %v7741_v52, %v6215_v17  ;;  %v6245_v9 = vadd.f32 %v6213_v62, %v6112_v35  ;;  %v5660_v59 = vld [vmem:[#allocation3 + $0xb0] sm:$0xff] }
 0x275   : > { %v7199_v27 = vpack.c.bf16 %v6307_v29, %v6307_v29  ;;  %6464 = vst.msk [vmem:[%s7896_s30 + $0x10] sm:$0xf] %vm904_vm5, %v7196_v40  ;;  %v6605_v12 = vsel %vm1135_vm7, %v6570_v31, 0.0  ;;  %v7197_v3 = vpack.c.bf16 %v6305_v1, %v6305_v1  ;;  %v6502_v28 = vsel %vm1135_vm7, %v6305_v1, 0.0  ;;  %v7715_v60 = vpop.f32.mrb[130].mxu1  ;;  %v5658_v8 = vld [vmem:[#allocation3 + $0xa0] sm:$0xff] }
 0x276   : > { %v6606_v36 = vadd.f32 %v6605_v12, %v6604_v2  ;;  %v6571_v45 = vmul.f32 %v6305_v1, %v6305_v1  ;;  %v6573_v51 = vmul.f32 %v6307_v29, %v6307_v29  ;;  %v6503_v7 = vadd.f32 %v6502_v28, %v6501_v18  ;;  %v5578_v33 = vpop.f32.mrb[131].mxu1  ;;  %6279 = vst.msk [vmem:[#allocation3 + $0x58] sm:$0xff] %vm1135_vm7, %v6247_v15 }
 0x277   : > { %6467 = vst.msk [vmem:[%s7896_s30 + $0x1c] sm:$0xf] %vm904_vm5, %v7199_v27  ;;  %6465 = vst.msk [vmem:[%s7896_s30 + $0x14] sm:$0xf] %vm904_vm5, %v7197_v3  ;;  %v7744_v58 = vpop.f32.mrb[124].mxu0  ;;  %v6218_v57 = vld [vmem:[#allocation3 + $0x70] sm:$0xff]  ;;  %v5688_v5 = vadd.f32 %v7714_v54, %v5656_v39  ;;  %v5686_v11 = vadd.f32 %v5654_v25, %v5575_v53  ;;  %v5689_v4 = vadd.f32 %v7715_v60, %v5657_v43 }
 0x278   : > { %v6216_v61 = vld [vmem:[#allocation3 + $0x60] sm:$0xff]  ;;  %v6607_v6 = vsel %vm1135_vm7, %v6571_v45, 0.0  ;;  %v6250_v22 = vadd.f32 %v7744_v58, %v6218_v57  ;;  %v6125_v44 = vpop.f32.mrb[125].mxu0  ;;  %v6219_v56 = vld [vmem:[#allocation3 + $0x78] sm:$0xff]  ;;  %v6505_v38 = vadd.f32 %v6504_v13, %v6503_v7  ;;  %6277 = vst.msk [vmem:[#allocation3 + $0x48] sm:$0xff] %vm1135_vm7, %v6245_v9  ;;  %v5687_v50 = vadd.f32 %v5655_v37, %v5578_v33 }
 0x279   : > { %v6608_v42 = vadd.f32 %v6607_v6, %v6606_v36  ;;  %v6310_v19 = vld [vmem:[#allocation3 + $0x50] sm:$0xff]  ;;  %5720 = vst.msk [vmem:[#allocation3 + $0x90] sm:$0xff] %vm1135_vm7, %v5688_v5  ;;  %v6248_v21 = vadd.f32 %v6216_v61, %v6125_v44  ;;  %v7745_v0 = vpop.f32.mrb[126].mxu0  ;;  %v6609_v24 = vsel %vm1135_vm7, %v6572_v32, 0.0  ;;  %v6506_v16 = vsel %vm1135_vm7, %v6307_v29, 0.0  ;;  %5718 = vst.msk [vmem:[#allocation3 + $0x80] sm:$0xff] %vm1135_vm7, %v5686_v11 }
 0x27a   : > { %v6217_v20 = vld [vmem:[#allocation3 + $0x68] sm:$0xff]  ;;  %v7202_v14 = vpack.c.bf16 %v6310_v19, %v6310_v19  ;;  %v6308_v63 = vld [vmem:[#allocation3 + $0x40] sm:$0xff]  ;;  %6282 = vst.msk [vmem:[#allocation3 + $0x70] sm:$0xff] %vm1135_vm7, %v6250_v22  ;;  %v6251_v26 = vadd.f32 %v7745_v0, %v6219_v56  ;;  %5721 = vst.msk [vmem:[#allocation3 + $0x98] sm:$0xff] %vm1135_vm7, %v5689_v4  ;;  %v6128_v55 = vpop.f32.mrb[127].mxu0  ;;  %v6507_v23 = vadd.f32 %v6506_v16, %v6505_v38  ;;  %v6611_v52 = vsel %vm1135_vm7, %v6573_v51, 0.0 }
 0x27b   : > { %v6610_v47 = vadd.f32 %v6609_v24, %v6608_v42  ;;  %v7200_v48 = vpack.c.bf16 %v6308_v63, %v6308_v63  ;;  %v6508_v10 = vsel %vm1135_vm7, %v6308_v63, 0.0  ;;  %6280 = vst.msk [vmem:[#allocation3 + $0x60] sm:$0xff] %vm1135_vm7, %v6248_v21  ;;  %5719 = vst.msk [vmem:[#allocation3 + $0x88] sm:$0xff] %vm1135_vm7, %v5687_v50  ;;  %v6574_v34 = vmul.f32 %v6308_v63, %v6308_v63  ;;  %v7718_v46 = vpop.f32.mrb[132].mxu1  ;;  %v5661_v13 = vld [vmem:[#allocation3 + $0xb8] sm:$0xff]  ;;  %v5659_v32 = vld [vmem:[#allocation3 + $0xa8] sm:$0xff] }
 0x27c   : > { %6470 = vst.msk [vmem:[%s7896_s30 + $0x28] sm:$0xf] %vm904_vm5, %v7202_v14  ;;  %v6249_v49 = vadd.f32 %v6217_v20, %v6128_v55  ;;  %v5692_v35 = vadd.f32 %v7718_v46, %v5660_v59  ;;  %v5591_v40 = vpop.f32.mrb[133].mxu1  ;;  %v6509_v30 = vadd.f32 %v6508_v10, %v6507_v23  ;;  %v6576_v2 = vmul.f32 %v6310_v19, %v6310_v19 }
 0x27d   : > { %6283 = vst.msk [vmem:[#allocation3 + $0x78] sm:$0xff] %vm1135_vm7, %v6251_v26  ;;  %v6612_v41 = vadd.f32 %v6611_v52, %v6610_v47  ;;  %v6613_v31 = vsel %vm1135_vm7, %v6574_v34, 0.0  ;;  %v5690_v29 = vadd.f32 %v5658_v8, %v5591_v40  ;;  %v7719_v17 = vpop.f32.mrb[134].mxu1  ;;  %v6311_v27 = vld [vmem:[#allocation3 + $0x58] sm:$0xff]  ;;  %v6512_v9 = vsel %vm1135_vm7, %v6310_v19, 0.0 }
 0x27e   : > { %6468 = vst.msk [vmem:[%s7896_s30 + $0x20] sm:$0xf] %vm904_vm5, %v7200_v48  ;;  %v5693_v62 = vadd.f32 %v7719_v17, %v5661_v13  ;;  %v5594_v54 = vpop.f32.mrb[135].mxu1  ;;  %v7203_v12 = vpack.c.bf16 %v6311_v27, %v6311_v27  ;;  %v6577_v3 = vmul.f32 %v6311_v27, %v6311_v27  ;;  %v6617_v33 = vsel %vm1135_vm7, %v6576_v2, 0.0  ;;  %v5662_v17 = vld [vmem:[#allocation3 + $0xc0] sm:$0xff] }
 0x27f   : > { %6281 = vst.msk [vmem:[#allocation3 + $0x68] sm:$0xff] %vm1135_vm7, %v6249_v49  ;;  %v7748_v1 = vpop.f32.mrb[128].mxu0  ;;  %5724 = vst.msk [vmem:[#allocation3 + $0xb0] sm:$0xff] %vm1135_vm7, %v5692_v35  ;;  %v6614_v18 = vadd.f32 %v6613_v31, %v6612_v41  ;;  %v6309_v53 = vld [vmem:[#allocation3 + $0x48] sm:$0xff]  ;;  %v5691_v45 = vadd.f32 %v5659_v32, %v5594_v54  ;;  %v6514_v6 = vsel %vm1135_vm7, %v6311_v27, 0.0  ;;  %v5664_v31 = vld [vmem:[#allocation3 + $0xd0] sm:$0xff] }
 0x280   : > { %v6222_v36 = vld [vmem:[#allocation3 + $0x90] sm:$0xff]  ;;  %v6141_v28 = vpop.f32.mrb[129].mxu0  ;;  %5722 = vst.msk [vmem:[#allocation3 + $0xa0] sm:$0xff] %vm1135_vm7, %v5690_v29  ;;  %v7201_v15 = vpack.c.bf16 %v6309_v53, %v6309_v53  ;;  %v6510_v39 = vsel %vm1135_vm7, %v6309_v53, 0.0  ;;  %v6575_v25 = vmul.f32 %v6309_v53, %v6309_v53  ;;  %5725 = vst.msk [vmem:[#allocation3 + $0xb8] sm:$0xff] %vm1135_vm7, %v5693_v62  ;;  %v6220_v61 = vld [vmem:[#allocation3 + $0x80] sm:$0xff] }
 0x281   : > { %v9725_v60 = vld [vmem:[#allocation3 + $0x70] sm:$0xff]  ;;  %v6254_v51 = vadd.f32 %v7748_v1, %v6222_v36  ;;  %v7749_v7 = vpop.f32.mrb[130].mxu0  ;;  %6471 = vst.msk [vmem:[%s7896_s30 + $0x2c] sm:$0xf] %vm904_vm5, %v7203_v12  ;;  %v6511_v58 = vadd.f32 %v6510_v39, %v6509_v30  ;;  %v6223_v42 = vld [vmem:[#allocation3 + $0x98] sm:$0xff]  ;;  %v6619_v21 = vsel %vm1135_vm7, %v6577_v3, 0.0  ;;  %v6252_v24 = vadd.f32 %v6220_v61, %v6141_v28 }
 0x282   : > { %v7206_v57 = vpack.c.bf16 %v9725_v60, %v9725_v60  ;;  %v6312_v5 = vld [vmem:[#allocation3 + $0x60] sm:$0xff]  ;;  %v6144_v43 = vpop.f32.mrb[131].mxu0  ;;  %5723 = vst.msk [vmem:[#allocation3 + $0xa8] sm:$0xff] %vm1135_vm7, %v5691_v45  ;;  %v6615_v22 = vsel %vm1135_vm7, %v6575_v25, 0.0  ;;  %v6580_v0 = vmul.f32 %v9725_v60, %v9725_v60  ;;  %v6221_v16 = vld [vmem:[#allocation3 + $0x88] sm:$0xff]  ;;  %v6255_v49 = vadd.f32 %v7749_v7, %v6223_v42  ;;  %v5665_v32 = vld [vmem:[#allocation3 + $0xd8] sm:$0xff] }
 0x283   : > { %6469 = vst.msk [vmem:[%s7896_s30 + $0x24] sm:$0xf] %vm904_vm5, %v7201_v15  ;;  %v7204_v44 = vpack.c.bf16 %v6312_v5, %v6312_v5  ;;  %v6513_v56 = vadd.f32 %v6512_v9, %v6511_v58  ;;  %v6616_v4 = vadd.f32 %v6615_v22, %v6614_v18  ;;  %v6578_v37 = vmul.f32 %v6312_v5, %v6312_v5  ;;  %v7722_v19 = vpop.f32.mrb[136].mxu1  ;;  %v5668_v61 = vld [vmem:[#allocation3 + $0xf0] sm:$0xff] }
 0x284   : > { %v9739_v11 = vld [vmem:[#allocation3 + $0x78] sm:$0xff]  ;;  %6286 = vst.msk [vmem:[#allocation3 + $0x90] sm:$0xff] %vm1135_vm7, %v6254_v51  ;;  %v6516_v20 = vsel %vm1135_vm7, %v6312_v5, 0.0  ;;  %v5607_v14 = vpop.f32.mrb[137].mxu1  ;;  %6284 = vst.msk [vmem:[#allocation3 + $0x80] sm:$0xff] %vm1135_vm7, %v6252_v24  ;;  %v6253_v8 = vadd.f32 %v6221_v16, %v6144_v43  ;;  %v5696_v27 = vadd.f32 %v7722_v19, %v5664_v31  ;;  %v6520_v15 = vsel %vm1135_vm7, %v9725_v60, 0.0 }
 0x285   : > { %6474 = vst.msk [vmem:[%s7896_s30 + $0x38] sm:$0xf] %vm904_vm5, %v7206_v57  ;;  %v7207_v38 = vpack.c.bf16 %v9739_v11, %v9739_v11  ;;  %6472 = vst.msk [vmem:[%s7896_s30 + $0x30] sm:$0xf] %vm904_vm5, %v7204_v44  ;;  %v6618_v63 = vadd.f32 %v6617_v33, %v6616_v4  ;;  %v6515_v26 = vadd.f32 %v6514_v6, %v6513_v56  ;;  %v7723_v23 = vpop.f32.mrb[138].mxu1  ;;  %v6621_v10 = vsel %vm1135_vm7, %v6578_v37, 0.0 }
 0x286   : > { %v6313_v50 = vld [vmem:[#allocation3 + $0x68] sm:$0xff]  ;;  %v6581_v55 = vmul.f32 %v9739_v11, %v9739_v11  ;;  %v6226_v48 = vld [vmem:[#allocation3 + $0xb0] sm:$0xff]  ;;  %v5610_v41 = vpop.f32.mrb[139].mxu1  ;;  %6287 = vst.msk [vmem:[#allocation3 + $0x98] sm:$0xff] %vm1135_vm7, %v6255_v49  ;;  %v5694_v62 = vadd.f32 %v5662_v17, %v5607_v14  ;;  %6285 = vst.msk [vmem:[#allocation3 + $0x88] sm:$0xff] %vm1135_vm7, %v6253_v8  ;;  %v5697_v28 = vadd.f32 %v7723_v23, %v5665_v32  ;;  %v6625_v60 = vsel %vm1135_vm7, %v6580_v0, 0.0 }
 0x287   : > { %6475 = vst.msk [vmem:[%s7896_s30 + $0x3c] sm:$0xf] %vm904_vm5, %v7207_v38  ;;  %v7205_v47 = vpack.c.bf16 %v6313_v50, %v6313_v50  ;;  %v6518_v52 = vsel %vm1135_vm7, %v6313_v50, 0.0  ;;  %v6579_v34 = vmul.f32 %v6313_v50, %v6313_v50  ;;  %v7752_v46 = vpop.f32.mrb[132].mxu0  ;;  %v6224_v59 = vld [vmem:[#allocation3 + $0xa0] sm:$0xff]  ;;  %v6517_v35 = vadd.f32 %v6516_v20, %v6515_v26  ;;  %v6227_v13 = vld [vmem:[#allocation3 + $0xb8] sm:$0xff] }
 0x288   : > { %v6620_v40 = vadd.f32 %v6619_v21, %v6618_v63  ;;  %v6258_v30 = vadd.f32 %v7752_v46, %v6226_v48  ;;  %v6157_v29 = vpop.f32.mrb[133].mxu0  ;;  %5728 = vst.msk [vmem:[#allocation3 + $0xd0] sm:$0xff] %vm1135_vm7, %v5696_v27  ;;  %5726 = vst.msk [vmem:[#allocation3 + $0xc0] sm:$0xff] %vm1135_vm7, %v5694_v62  ;;  %v5663_v51 = vld [vmem:[#allocation3 + $0xc8] sm:$0xff]  ;;  %v6522_v57 = vsel %vm1135_vm7, %v9739_v11, 0.0  ;;  %v6627_v43 = vsel %vm1135_vm7, %v6581_v55, 0.0 }
 0x289   : > { %6473 = vst.msk [vmem:[%s7896_s30 + $0x34] sm:$0xf] %vm904_vm5, %v7205_v47  ;;  %v6623_v2 = vsel %vm1135_vm7, %v6579_v34, 0.0  ;;  %v6256_v1 = vadd.f32 %v6224_v59, %v6157_v29  ;;  %v7753_v54 = vpop.f32.mrb[134].mxu0  ;;  %v6225_v18 = vld [vmem:[#allocation3 + $0xa8] sm:$0xff]  ;;  %v6519_v3 = vadd.f32 %v6518_v52, %v6517_v35  ;;  %v5695_v58 = vadd.f32 %v5663_v51, %v5610_v41  ;;  %v5666_v4 = vld [vmem:[#allocation3 + $0xe0] sm:$0xff] }
 0x28a   : > { %v6622_v12 = vadd.f32 %v6621_v10, %v6620_v40  ;;  %6290 = vst.msk [vmem:[#allocation3 + $0xb0] sm:$0xff] %vm1135_vm7, %v6258_v30  ;;  %v6259_v36 = vadd.f32 %v7753_v54, %v6227_v13  ;;  %v6160_v45 = vpop.f32.mrb[135].mxu0  ;;  %5729 = vst.msk [vmem:[#allocation3 + $0xd8] sm:$0xff] %vm1135_vm7, %v5697_v28  ;;  %v5669_v0 = vld [vmem:[#allocation3 + $0xf8] sm:$0xff] }
 0x28b   : > { %v9763_v53 = vld [vmem:[#allocation3 + $0x90] sm:$0xff]  ;;  %6288 = vst.msk [vmem:[#allocation3 + $0xa0] sm:$0xff] %vm1135_vm7, %v6256_v1  ;;  %v6257_v25 = vadd.f32 %v6225_v18, %v6160_v45  ;;  %v6521_v7 = vadd.f32 %v6520_v15, %v6519_v3  ;;  %v6316_v6 = vld [vmem:[#allocation3 + $0x80] sm:$0xff]  ;;  %5727 = vst.msk [vmem:[#allocation3 + $0xc8] sm:$0xff] %vm1135_vm7, %v5695_v58 }
 0x28c   : > { %v7210_v39 = vpack.c.bf16 %v9763_v53, %v9763_v53  ;;  %v6624_v9 = vadd.f32 %v6623_v2, %v6622_v12  ;;  %6291 = vst.msk [vmem:[#allocation3 + $0xb8] sm:$0xff] %vm1135_vm7, %v6259_v36  ;;  %v7208_v37 = vpack.c.bf16 %v6316_v6, %v6316_v6  ;;  %v6524_v11 = vsel %vm1135_vm7, %v6316_v6, 0.0 }
 0x28d   : > { %6289 = vst.msk [vmem:[#allocation3 + $0xa8] sm:$0xff] %vm1135_vm7, %v6257_v25  ;;  %v6523_v22 = vadd.f32 %v6522_v57, %v6521_v7  ;;  %v6582_v38 = vmul.f32 %v6316_v6, %v6316_v6  ;;  %v6584_v20 = vmul.f32 %v9763_v53, %v9763_v53  ;;  %v6319_v16 = vld [vmem:[#allocation3 + $0x98] sm:$0xff]  ;;  %v6317_v23 = vld [vmem:[#allocation3 + $0x88] sm:$0xff]  ;;  %v6528_v31 = vsel %vm1135_vm7, %v9763_v53, 0.0 }
 0x28e   : > { %6478 = vst.msk [vmem:[%s7896_s30 + $0x48] sm:$0xf] %vm904_vm5, %v7210_v39  ;;  %v7726_v5 = vpop.f32.mrb[140].mxu1  ;;  %v6626_v33 = vadd.f32 %v6625_v60, %v6624_v9  ;;  %6476 = vst.msk [vmem:[%s7896_s30 + $0x40] sm:$0xf] %vm904_vm5, %v7208_v37  ;;  %v7211_v47 = vpack.c.bf16 %v6319_v16, %v6319_v16  ;;  %v6585_v48 = vmul.f32 %v6319_v16, %v6319_v16  ;;  %v6526_v46 = vsel %vm1135_vm7, %v6317_v23, 0.0 }
 0x28f   : > { %v5700_v44 = vadd.f32 %v7726_v5, %v5668_v61  ;;  %v5623_v56 = vpop.f32.mrb[141].mxu1  ;;  %v7756_v42 = vpop.f32.mrb[136].mxu0  ;;  %v6525_v50 = vadd.f32 %v6524_v11, %v6523_v22  ;;  %v6629_v55 = vsel %vm1135_vm7, %v6582_v38, 0.0  ;;  %v7209_v49 = vpack.c.bf16 %v6317_v23, %v6317_v23  ;;  %v6230_v32 = vld [vmem:[#allocation3 + $0xd0] sm:$0xff]  ;;  %v6228_v18 = vld [vmem:[#allocation3 + $0xc0] sm:$0xff] }
 0x290   : > { %v5698_v19 = vadd.f32 %v5666_v4, %v5623_v56  ;;  %v7727_v21 = vpop.f32.mrb[142].mxu1  ;;  %v6628_v24 = vadd.f32 %v6627_v43, %v6626_v33  ;;  %v6173_v14 = vpop.f32.mrb[137].mxu0  ;;  %v6583_v59 = vmul.f32 %v6317_v23, %v6317_v23  ;;  %6479 = vst.msk [vmem:[%s7896_s30 + $0x4c] sm:$0xf] %vm904_vm5, %v7211_v47  ;;  %v6633_v29 = vsel %vm1135_vm7, %v6584_v20, 0.0  ;;  %v5667_v56 = vld [vmem:[#allocation3 + $0xe8] sm:$0xff] }
 0x291   : > { %5732 = vst.msk [vmem:[#allocation3 + $0xf0] sm:$0xff] %vm1135_vm7, %v5700_v44  ;;  %v5701_v63 = vadd.f32 %v7727_v21, %v5669_v0  ;;  %v9788_v26 = vpop.f32.mrb[143].mxu1  ;;  %v9793_v10 = vld [vmem:[#allocation3 + $0xb0] sm:$0xff]  ;;  %v7757_v52 = vpop.f32.mrb[138].mxu0  ;;  %v6527_v40 = vadd.f32 %v6526_v46, %v6525_v50  ;;  %v6530_v12 = vsel %vm1135_vm7, %v6319_v16, 0.0  ;;  %v6635_v3 = vsel %vm1135_vm7, %v6585_v48, 0.0 }
 0x292   : > { %5730 = vst.msk [vmem:[#allocation3 + $0xe0] sm:$0xff] %vm1135_vm7, %v5698_v19  ;;  %v6630_v34 = vadd.f32 %v6629_v55, %v6628_v24  ;;  %v6320_v41 = vld [vmem:[#allocation3 + $0xa0] sm:$0xff]  ;;  %v6176_v35 = vpop.f32.mrb[139].mxu0  ;;  %v7214_v8 = vpack.c.bf16 %v9793_v10, %v9793_v10  ;;  %v6631_v17 = vsel %vm1135_vm7, %v6583_v59, 0.0  ;;  %v6231_v28 = vld [vmem:[#allocation3 + $0xd8] sm:$0xff]  ;;  %v6229_v45 = vld [vmem:[#allocation3 + $0xc8] sm:$0xff]  ;;  %v6588_v39 = vmul.f32 %v9793_v10, %v9793_v10 }
 0x293   : > { %5733 = vst.msk [vmem:[#allocation3 + $0xf8] sm:$0xff] %vm1135_vm7, %v5701_v63  ;;  %v9802_v30 = vld [vmem:[#allocation3 + $0xb8] sm:$0xff]  ;;  %v7212_v13 = vpack.c.bf16 %v6320_v41, %v6320_v41  ;;  %v6529_v27 = vadd.f32 %v6528_v31, %v6527_v40  ;;  %v6586_v62 = vmul.f32 %v6320_v41, %v6320_v41  ;;  %v6532_v53 = vsel %vm1135_vm7, %v6320_v41, 0.0 }
 0x294   : > { %6477 = vst.msk [vmem:[%s7896_s30 + $0x44] sm:$0xf] %vm904_vm5, %v7209_v49  ;;  %v6321_v2 = vld [vmem:[#allocation3 + $0xa8] sm:$0xff]  ;;  %v6632_v1 = vadd.f32 %v6631_v17, %v6630_v34  ;;  %6482 = vst.msk [vmem:[%s7896_s30 + $0x58] sm:$0xf] %vm904_vm5, %v7214_v8  ;;  %v7215_v54 = vpack.c.bf16 %v9802_v30, %v9802_v30  ;;  %v6262_v57 = vadd.f32 %v7756_v42, %v6230_v32  ;;  %v6536_v24 = vsel %vm1135_vm7, %v9793_v10, 0.0 }
 0x295   : > { %6480 = vst.msk [vmem:[%s7896_s30 + $0x50] sm:$0xf] %vm904_vm5, %v7212_v13  ;;  %v7213_v36 = vpack.c.bf16 %v6321_v2, %v6321_v2  ;;  %v6531_v25 = vadd.f32 %v6530_v12, %v6529_v27  ;;  %v6637_v51 = vsel %vm1135_vm7, %v6586_v62, 0.0  ;;  %v6534_v58 = vsel %vm1135_vm7, %v6321_v2, 0.0 }
 0x296   : > { %v6634_v15 = vadd.f32 %v6633_v29, %v6632_v1  ;;  %6483 = vst.msk [vmem:[%s7896_s30 + $0x5c] sm:$0xf] %vm904_vm5, %v7215_v54  ;;  %v6587_v60 = vmul.f32 %v6321_v2, %v6321_v2  ;;  %v6260_v5 = vadd.f32 %v6228_v18, %v6173_v14  ;;  %v6263_v22 = vadd.f32 %v7757_v52, %v6231_v28 }
 0x297   : > { %v7760_v7 = vpop.f32.mrb[140].mxu0  ;;  %6481 = vst.msk [vmem:[%s7896_s30 + $0x54] sm:$0xf] %vm904_vm5, %v7213_v36  ;;  %v6533_v33 = vadd.f32 %v6532_v53, %v6531_v25  ;;  %v6261_v44 = vadd.f32 %v6229_v45, %v6176_v35  ;;  %v5699_v38 = vadd.f32 %v5667_v56, %v9788_v26  ;;  %v6589_v16 = vmul.f32 %v9802_v30, %v9802_v30 }
 0x298   : > { %v6234_v9 = vld [vmem:[#allocation3 + $0xf0] sm:$0xff]  ;;  %v6189_v61 = vpop.f32.mrb[141].mxu0  ;;  %v6636_v6 = vadd.f32 %v6635_v3, %v6634_v15  ;;  %v6639_v11 = vsel %vm1135_vm7, %v6587_v60, 0.0  ;;  %6294 = vst.msk [vmem:[#allocation3 + $0xd0] sm:$0xff] %vm1135_vm7, %v6262_v57  ;;  %6292 = vst.msk [vmem:[#allocation3 + $0xc0] sm:$0xff] %vm1135_vm7, %v6260_v5  ;;  %v6641_v26 = vsel %vm1135_vm7, %v6588_v39, 0.0 }
 0x299   : > { %v6232_v43 = vld [vmem:[#allocation3 + $0xe0] sm:$0xff]  ;;  %v7761_v4 = vpop.f32.mrb[142].mxu0  ;;  %v6266_v19 = vadd.f32 %v7760_v7, %v6234_v9  ;;  %v6535_v20 = vadd.f32 %v6534_v58, %v6533_v33  ;;  %6295 = vst.msk [vmem:[#allocation3 + $0xd8] sm:$0xff] %vm1135_vm7, %v6263_v22  ;;  %6293 = vst.msk [vmem:[#allocation3 + $0xc8] sm:$0xff] %vm1135_vm7, %v6261_v44  ;;  %v6538_v55 = vsel %vm1135_vm7, %v9802_v30, 0.0  ;;  %v6643_v23 = vsel %vm1135_vm7, %v6589_v16, 0.0 }
 0x29a   : > { %v6235_v37 = vld [vmem:[#allocation3 + $0xf8] sm:$0xff]  ;;  %v6264_v42 = vadd.f32 %v6232_v43, %v6189_v61  ;;  %v6192_v21 = vpop.f32.mrb[143].mxu0  ;;  %v6638_v0 = vadd.f32 %v6637_v51, %v6636_v6  ;;  %5731 = vst.msk [vmem:[#allocation3 + $0xe8] sm:$0xff] %vm1135_vm7, %v5699_v38 }
 0x29b   : > { %v6267_v50 = vadd.f32 %v7761_v4, %v6235_v37  ;;  %6298 = vst.msk [vmem:[#allocation3 + $0xf0] sm:$0xff] %vm1135_vm7, %v6266_v19  ;;  %v6537_v14 = vadd.f32 %v6536_v24, %v6535_v20 }
 0x29c   : > { %6296 = vst.msk [vmem:[#allocation3 + $0xe0] sm:$0xff] %vm1135_vm7, %v6264_v42  ;;  %v6640_v63 = vadd.f32 %v6639_v11, %v6638_v0 }
 0x29d   : > { %6299 = vst.msk [vmem:[#allocation3 + $0xf8] sm:$0xff] %vm1135_vm7, %v6267_v50  ;;  %v6539_v48 = vadd.f32 %v6538_v55, %v6537_v14 }
 0x29e   : > { %v6642_v47 = vadd.f32 %v6641_v26, %v6640_v63 }
 0x29f   : > { %v6326_v10 = vld [vmem:[#allocation3 + $0xd0] sm:$0xff]  ;;  %v6324_v52 = vld [vmem:[#allocation3 + $0xc0] sm:$0xff] }
 0x2a0   : > { %v7218_v34 = vpack.c.bf16 %v6326_v10, %v6326_v10  ;;  %v7216_v49 = vpack.c.bf16 %v6324_v52, %v6324_v52  ;;  %v6644_v46 = vadd.f32 %v6643_v23, %v6642_v47  ;;  %v6327_v59 = vld [vmem:[#allocation3 + $0xd8] sm:$0xff]  ;;  %v6325_v41 = vld [vmem:[#allocation3 + $0xc8] sm:$0xff]  ;;  %v6540_v35 = vsel %vm1135_vm7, %v6324_v52, 0.0 }
 0x2a1   : > { %v6590_v40 = vmul.f32 %v6324_v52, %v6324_v52  ;;  %v7219_v8 = vpack.c.bf16 %v6327_v59, %v6327_v59  ;;  %v6592_v30 = vmul.f32 %v6326_v10, %v6326_v10  ;;  %v6541_v29 = vadd.f32 %v6540_v35, %v6539_v48  ;;  %v6233_v12 = vld [vmem:[#allocation3 + $0xe8] sm:$0xff] }
 0x2a2   : > { %v6330_v31 = vld [vmem:[#allocation3 + $0xf0] sm:$0xff]  ;;  %6486 = vst.msk [vmem:[%s7896_s30 + $0x68] sm:$0xf] %vm904_vm5, %v7218_v34  ;;  %6484 = vst.msk [vmem:[%s7896_s30 + $0x60] sm:$0xf] %vm904_vm5, %v7216_v49  ;;  %v7217_v17 = vpack.c.bf16 %v6325_v41, %v6325_v41  ;;  %v6542_v27 = vsel %vm1135_vm7, %v6325_v41, 0.0  ;;  %v6591_v1 = vmul.f32 %v6325_v41, %v6325_v41  ;;  %v6593_v25 = vmul.f32 %v6327_v59, %v6327_v59 }
 0x2a3   : > { %v6328_v13 = vld [vmem:[#allocation3 + $0xe0] sm:$0xff]  ;;  %v6645_v2 = vsel %vm1135_vm7, %v6590_v40, 0.0  ;;  %6487 = vst.msk [vmem:[%s7896_s30 + $0x6c] sm:$0xf] %vm904_vm5, %v7219_v8  ;;  %v7222_v62 = vpack.c.bf16 %v6330_v31, %v6330_v31  ;;  %v6543_v18 = vadd.f32 %v6542_v27, %v6541_v29  ;;  %v6544_v3 = vsel %vm1135_vm7, %v6326_v10, 0.0 }
 0x2a4   : > { %v6331_v54 = vld [vmem:[#allocation3 + $0xf8] sm:$0xff]  ;;  %v6646_v32 = vadd.f32 %v6645_v2, %v6644_v46  ;;  %6485 = vst.msk [vmem:[%s7896_s30 + $0x64] sm:$0xf] %vm904_vm5, %v7217_v17  ;;  %v6647_v53 = vsel %vm1135_vm7, %v6591_v1, 0.0  ;;  %v7220_v36 = vpack.c.bf16 %v6328_v13, %v6328_v13  ;;  %v6649_v39 = vsel %vm1135_vm7, %v6592_v30, 0.0 }
 0x2a5   : > { %6490 = vst.msk [vmem:[%s7896_s30 + $0x78] sm:$0xf] %vm904_vm5, %v7222_v62  ;;  %v6545_v28 = vadd.f32 %v6544_v3, %v6543_v18  ;;  %v7223_v15 = vpack.c.bf16 %v6331_v54, %v6331_v54  ;;  %v6265_v51 = vadd.f32 %v6233_v12, %v6192_v21  ;;  %v6546_v9 = vsel %vm1135_vm7, %v6327_v59, 0.0  ;;  %v6492_v46 = vld [vmem:[%s9900_s5] sm:$0x1] }
 0x2a6   : > { %v6648_v45 = vadd.f32 %v6647_v53, %v6646_v32  ;;  %6488 = vst.msk [vmem:[%s7896_s30 + $0x70] sm:$0xf] %vm904_vm5, %v7220_v36  ;;  %v6594_v58 = vmul.f32 %v6328_v13, %v6328_v13  ;;  %v6651_v57 = vsel %vm1135_vm7, %v6593_v25, 0.0  ;;  %v6548_v5 = vsel %vm1135_vm7, %v6328_v13, 0.0  ;;  %v6565_v35 = vld [vmem:[%s9901_s6] sm:$0x1] }
 0x2a7   : > { %6491 = vst.msk [vmem:[%s7896_s30 + $0x7c] sm:$0xf] %vm904_vm5, %v7223_v15  ;;  %v6547_v60 = vadd.f32 %v6546_v9, %v6545_v28  ;;  %v6596_v44 = vmul.f32 %v6330_v31, %v6330_v31  ;;  %v6552_v38 = vsel %vm1135_vm7, %v6330_v31, 0.0  ;;  %v6597_v19 = vmul.f32 %v6331_v54, %v6331_v54 }
 0x2a8   : > { %v6650_v7 = vadd.f32 %v6649_v39, %v6648_v45  ;;  %6297 = vst.msk [vmem:[#allocation3 + $0xe8] sm:$0xff] %vm1135_vm7, %v6265_v51  ;;  %v6653_v43 = vsel %vm1135_vm7, %v6594_v58, 0.0  ;;  %v6554_v50 = vsel %vm1135_vm7, %v6331_v54, 0.0 }
 0x2a9   : > { %v6549_v33 = vadd.f32 %v6548_v5, %v6547_v60  ;;  %v6657_v20 = vsel %vm1135_vm7, %v6596_v44, 0.0  ;;  %v6659_v14 = vsel %vm1135_vm7, %v6597_v19, 0.0 }
 0x2aa   : > { %v6652_v61 = vadd.f32 %v6651_v57, %v6650_v7 }
 0x2ac   : > { %v6654_v6 = vadd.f32 %v6653_v43, %v6652_v61 }
 0x2af   : > { %v6329_v22 = vld [vmem:[#allocation3 + $0xe8] sm:$0xff] }
 0x2b0   : > { %v7221_v56 = vpack.c.bf16 %v6329_v22, %v6329_v22  ;;  %v6550_v4 = vsel %vm1135_vm7, %v6329_v22, 0.0  ;;  %v6595_v37 = vmul.f32 %v6329_v22, %v6329_v22 }
 0x2b1   : > { %v6551_v11 = vadd.f32 %v6550_v4, %v6549_v33 }
 0x2b2   : > { %6489 = vst.msk [vmem:[%s7896_s30 + $0x74] sm:$0xf] %vm904_vm5, %v7221_v56  ;;  %v6655_v42 = vsel %vm1135_vm7, %v6595_v37, 0.0 }
 0x2b3   : > { %v6553_v21 = vadd.f32 %v6552_v38, %v6551_v11  ;;  %v6656_v0 = vadd.f32 %v6655_v42, %v6654_v6 }
 0x2b5   : > { %v6555_v24 = vadd.f32 %v6554_v50, %v6553_v21  ;;  %v6658_v16 = vadd.f32 %v6657_v20, %v6656_v0 }
 0x2b7   : > { %v6556_v63 = vrot.slane %v6555_v24, 4  ;;  %v6660_v26 = vadd.f32 %v6659_v14, %v6658_v16 }
 0x2b9   : > { %v6557_v55 = vadd.f32 %v6556_v63, %v6555_v24  ;;  %v6661_v47 = vrot.slane %v6660_v26, 4 }
 0x2bb   : > { %v6558_v48 = vrot.slane %v6557_v55, 2  ;;  %v6662_v23 = vadd.f32 %v6661_v47, %v6660_v26 }
 0x2bd   : > { %v6559_v10 = vadd.f32 %v6558_v48, %v6557_v55  ;;  %v6663_v52 = vrot.slane %v6662_v23, 2 }
 0x2bf   : > { %v6560_v34 = vrot.slane %v6559_v10, 1  ;;  %v6664_v49 = vadd.f32 %v6663_v52, %v6662_v23 }
 0x2c1   : > { %v6561_v59 = vadd.f32 %v6560_v34, %v6559_v10  ;;  %v6665_v41 = vrot.slane %v6664_v49, 1 }
 0x2c3   : > { %v6562_v40 = vadd.f32 %v6561_v59, %v6492_v46  ;;  %v6666_v8 = vadd.f32 %v6665_v41, %v6664_v49 }
 0x2c5   : > { %6564 = vst.msk [vmem:[%s9900_s5] sm:$0x1] %vm912_vm9, %v6562_v40  ;;  %v6667_v31 = vadd.f32 %v6666_v8, %v6565_v35 }
 0x2c7   : > { %6668 = vst.msk [vmem:[%s9901_s6] sm:$0x1] %vm912_vm9, %v6667_v31 }
 0x2c8 PF: > { %s17_s21 = sadd.s32 1, %s7841_s21  }
 0x2c9   : > { %p14_p5 = scmp.ge.s32.totalorder %s17_s21, 4  }
 0x2cb   :  { %16 = sbr.rel (!%p14_p5) target bundleno = 1 (0x1), region = 96 }

</bundles_post_ra>
